<compile_context>
chip_gen: v6e
topology: v6e:2x2x1
jax: 0.10.0
libtpu: 0.0.40
codegen_flags: <defaults>
</compile_context>

<pallas_src>
import functools

import jax
import jax.numpy as jnp
from jax.experimental import pallas as pl
from jax.experimental.pallas import tpu as pltpu


_LANE_TILE = 512                    # TM: lane tile over M = N*Hout*Wout (>=512 for pipelining)
_K_ALIGN = 16                       # bf16 sublane packing: keep the contraction dim tile-aligned
_VMEM_LIMIT = 32 * 1024 * 1024      # explicit scoped-VMEM budget, safe on v5e/v6e/v7x


def _round_up(x, m):
    return (x + m - 1) // m * m


# ----------------------------------------------------------------------------
# Pallas kernels
# ----------------------------------------------------------------------------
def _gemm_bias_relu_kernel(w_ref, p_ref, b_ref, o_ref):
    # w_ref: (Cout, Kp) bf16 resident | p_ref: (Kp, TM) bf16 streamed
    # b_ref: (Cout, 1)  f32 resident  | o_ref: (Cout, TM) bf16 (lane-dense output)
    acc = jnp.dot(w_ref[...], p_ref[...], preferred_element_type=jnp.float32)
    acc = acc + b_ref[...]
    o_ref[...] = jnp.maximum(acc, 0.0).astype(o_ref.dtype)


def gemm_bias_relu(wmat, patches, bias_col):
    # wmat: (Cout, Kp) bf16, patches: (Kp, M) bf16, bias_col: (Cout, 1) f32
    cout, kp = wmat.shape
    m = patches.shape[1]
    tm = _LANE_TILE
    return pl.pallas_call(
        _gemm_bias_relu_kernel,
        out_shape=jax.ShapeDtypeStruct((cout, m), jnp.bfloat16),
        grid=(pl.cdiv(m, tm),),
        in_specs=[
            pl.BlockSpec((cout, kp), lambda i: (0, 0)),   # weights stay resident
            pl.BlockSpec((kp, tm), lambda i: (0, i)),     # stream M (lane) tiles
            pl.BlockSpec((cout, 1), lambda i: (0, 0)),    # bias stays resident
        ],
        out_specs=pl.BlockSpec((cout, tm), lambda i: (0, i)),
        compiler_params=pltpu.CompilerParams(
            dimension_semantics=("parallel",),            # shard M across TCs on v7x
            vmem_limit_bytes=_VMEM_LIMIT,
        ),
    )(wmat, patches, bias_col)


def _linear_softmax_clamp_kernel(min_val, max_val, x_ref, w_ref, b_ref, o_ref):
    # x_ref: (N, F) bf16, w_ref: (F, D) bf16, b_ref: (1, D) f32, o_ref: (N, D) f32
    logits = jnp.dot(x_ref[...], w_ref[...], preferred_element_type=jnp.float32)
    logits = logits + b_ref[...]
    mx = jnp.max(logits, axis=-1, keepdims=True)
    e = jnp.exp(logits - mx)                              # f32 VPU/EUP path (v5e-safe)
    denom = jnp.sum(e, axis=-1, keepdims=True)
    probs = e * pl.reciprocal(denom, approx=True)         # EUP slot, no divide on VALU
    o_ref[...] = jnp.clip(probs, min_val, max_val).astype(o_ref.dtype)


def linear_softmax_clamp(x, wmat_t, bias_row, min_val, max_val):
    # Output is only (N=2, D=4): a single block; lane-density is moot at this size.
    n = x.shape[0]
    d = wmat_t.shape[1]
    kernel = functools.partial(_linear_softmax_clamp_kernel, float(min_val), float(max_val))
    return pl.pallas_call(
        kernel,
        out_shape=jax.ShapeDtypeStruct((n, d), jnp.float32),
        in_specs=[pl.BlockSpec(memory_space=pltpu.MemorySpace.VMEM)] * 3,
        out_specs=pl.BlockSpec(memory_space=pltpu.MemorySpace.VMEM),
        compiler_params=pltpu.CompilerParams(vmem_limit_bytes=_VMEM_LIMIT),
    )(x, wmat_t, bias_row)


# ----------------------------------------------------------------------------
# JAX glue: im2col (transposed, feature-major) + layout plumbing
# ----------------------------------------------------------------------------
def _im2col_t(x, k, pad):
    # x: (N, C, H, W) -> patches (C*k*k, N*Hout*Wout); feature order (c, kh, kw)
    # matches w.reshape(Cout, Cin*k*k).
    n, c, h, w = x.shape
    hout = h + 2 * pad - k + 1
    wout = w + 2 * pad - k + 1
    xp = jnp.pad(x, ((0, 0), (0, 0), (pad, pad), (pad, pad)))
    cols = [xp[:, :, kh:kh + hout, kw:kw + wout] for kh in range(k) for kw in range(k)]
    p = jnp.stack(cols, axis=0)                 # (k*k, N, C, Hout, Wout)
    p = p.transpose(2, 0, 1, 3, 4)              # (C, k*k, N, Hout, Wout)
    return p.reshape(c * k * k, n * hout * wout), hout, wout


# TODO(synk): move im2col inside the kernel (shifted sub-matmul accumulation on a
# VMEM-resident C-last tile) to remove the k*k-fold HBM blow-up of the patches
# matrix and enable fusing adjacent layers into one pallas_call.
def conv2d_relu(x, wmat, bias_col, k, pad):
    # x: (N, Cin, H, W) bf16; wmat: (Cout, Kp) bf16 (pre-reshaped, K zero-padded);
    # bias_col: (Cout, 1) f32.  Returns (N, Cout, Hout, Wout) bf16.
    n = x.shape[0]
    cout, kp = wmat.shape
    patches, hout, wout = _im2col_t(x, k, pad)
    kfeat = patches.shape[0]
    if kp > kfeat:
        patches = jnp.pad(patches, ((0, kp - kfeat), (0, 0)))
    out = gemm_bias_relu(wmat, patches, bias_col)          # (Cout, N*Hout*Wout)
    return out.reshape(cout, n, hout, wout).transpose(1, 0, 2, 3)


# ----------------------------------------------------------------------------
# Generator: parameters (raw PyTorch layouts) + one-time prep + forward
# ----------------------------------------------------------------------------
def init_params(key, embedding_size, dim_size, kernel_size):
    ks = jax.random.split(key, 10)
    k = kernel_size
    s = 0.05

    def rnd(kk, shape):
        return s * jax.random.normal(kk, shape, dtype=jnp.float32)

    return {
        "conv1_w": rnd(ks[0], (dim_size, embedding_size, k, k)),         # OIHW
        "conv1_b": rnd(ks[1], (dim_size,)),
        "conv2_w": rnd(ks[2], (dim_size * 2, dim_size, 2 * k, 2 * k)),   # OIHW
        "conv2_b": rnd(ks[3], (dim_size * 2,)),
        "convt1_w": rnd(ks[4], (dim_size * 2, dim_size, 2 * k, 2 * k)),  # IOHW (ConvTranspose2d)
        "convt1_b": rnd(ks[5], (dim_size,)),
        "convt2_w": rnd(ks[6], (dim_size, embedding_size, k, k)),        # IOHW
        "convt2_b": rnd(ks[7], (embedding_size,)),
        "fc_w": rnd(ks[8], (dim_size, embedding_size * 28 * 28)),        # PyTorch (out, in)
        "fc_b": rnd(ks[9], (dim_size,)),
    }


def prepare_params(raw):
    # One-time weight prep hoisted out of the forward pass:
    #  - OIHW conv weights -> (Cout, Kp) bf16 GEMM matrices (K zero-padded to 16-align),
    #  - ConvTranspose2d -> equivalent Conv2d weights (flip HW, swap in/out channels),
    #  - fc weight pre-transposed to (F, D) bf16.
    def conv_mat(w_oihw):
        cout = w_oihw.shape[0]
        m = w_oihw.reshape(cout, -1)
        kp = _round_up(m.shape[1], _K_ALIGN)
        m = jnp.pad(m, ((0, 0), (0, kp - m.shape[1])))
        return m.astype(jnp.bfloat16)

    def convt_mat(w_iohw):
        w_oihw = jnp.flip(w_iohw, axis=(2, 3)).transpose(1, 0, 2, 3)
        return conv_mat(w_oihw)

    def bias_col(b):
        return b.reshape(-1, 1).astype(jnp.float32)

    return {
        "conv1_w": conv_mat(raw["conv1_w"]), "conv1_b": bias_col(raw["conv1_b"]),
        "conv2_w": conv_mat(raw["conv2_w"]), "conv2_b": bias_col(raw["conv2_b"]),
        "convt1_w": convt_mat(raw["convt1_w"]), "convt1_b": bias_col(raw["convt1_b"]),
        "convt2_w": convt_mat(raw["convt2_w"]), "convt2_b": bias_col(raw["convt2_b"]),
        "fc_w_t": raw["fc_w"].T.astype(jnp.bfloat16),                    # (F, D)
        "fc_b": raw["fc_b"].reshape(1, -1).astype(jnp.float32),          # (1, D)
    }


@functools.partial(jax.jit, static_argnames=("min_val", "max_val", "kernel_size"))
def generator_forward(params, x, *, min_val, max_val, kernel_size):
    k = kernel_size
    h = x.astype(jnp.bfloat16)                                           # MXU operands in bf16
    # denoiser
    h = conv2d_relu(h, params["conv1_w"], params["conv1_b"], k=k, pad=k // 2)       # (N, dim, 28, 28)
    h = conv2d_relu(h, params["conv2_w"], params["conv2_b"], k=2 * k, pad=k)        # (N, 2*dim, 29, 29)
    # transposer: ConvTranspose2d(stride=1, pad=p) == Conv2d(flipped W, pad=K-1-p)
    h = conv2d_relu(h, params["convt1_w"], params["convt1_b"], k=2 * k, pad=2 * k - 1 - k)   # (N, dim, 28, 28)
    h = conv2d_relu(h, params["convt2_w"], params["convt2_b"], k=k, pad=k - 1 - k // 2)      # (N, emb, 28, 28)
    # Flatten (NCHW order, matches torch.nn.Flatten) + Linear + Softmax + clamp
    n = h.shape[0]
    flat = h.reshape(n, -1)                                              # (N, emb*28*28)
    return linear_softmax_clamp(flat, params["fc_w_t"], params["fc_b"], min_val, max_val)


if __name__ == "__main__":
    embedding_size = 2
    dim_size = 4
    kernel_size = 3
    batch = 2

    key = jax.random.PRNGKey(0)
    pkey, xkey = jax.random.split(key)
    params = prepare_params(init_params(pkey, embedding_size, dim_size, kernel_size))

    # Input must be (N, embedding_size, 28, 28) — the Linear layer hard-codes 28x28.
    x = jax.random.normal(xkey, (batch, embedding_size, 28, 28), dtype=jnp.float32)
    min_val = 0.20
    max_val = 0.26

    out = generator_forward(params, x, min_val=min_val, max_val=max_val,
                            kernel_size=kernel_size)
    out = jax.block_until_ready(out)

    assert out.shape == (batch, dim_size)
    assert bool(jnp.all(out >= min_val - 1e-6)) and bool(jnp.all(out <= max_val + 1e-6))
    print("KERNEL_OK")
</pallas_src>

<mosaic_0001>
module attributes {stable_mosaic.version = 11 : i64} {
  func.func @_gemm_bias_relu_kernel(%arg0: i32, %arg1: memref<4x32xbf16, #tpu.memory_space<vmem>>, %arg2: memref<32x512xbf16, #tpu.memory_space<vmem>>, %arg3: memref<4x1xf32, #tpu.memory_space<vmem>>, %arg4: memref<4x512xbf16, #tpu.memory_space<vmem>>) attributes {dimension_semantics = [#tpu.dimension_semantics<parallel>], iteration_bounds = array<i64: 4>, scalar_prefetch = 0 : i64, scratch_operands = 0 : i64, tpu.core_type = #tpu.core_type<tc>, window_params = [{pipeline_mode = #tpu.pipeline_mode<synchronous>, transform_indices = @transform_0, window_bounds = array<i64: 4, 32>}, {transform_indices = @transform_1, window_bounds = array<i64: 32, 512>}, {pipeline_mode = #tpu.pipeline_mode<synchronous>, transform_indices = @transform_2, window_bounds = array<i64: 4, 1>}, {transform_indices = @transform_3, window_bounds = array<i64: 4, 512>}]} {
    %c0 = arith.constant 0 : index
    %c0_0 = arith.constant 0 : index
    %0 = vector.load %arg1[%c0, %c0_0] : memref<4x32xbf16, #tpu.memory_space<vmem>>, vector<4x32xbf16>
    %c0_1 = arith.constant 0 : index
    %c0_2 = arith.constant 0 : index
    %1 = vector.load %arg2[%c0_1, %c0_2] : memref<32x512xbf16, #tpu.memory_space<vmem>>, vector<32x512xbf16>
    %cst = arith.constant dense<0.000000e+00> : vector<4x512xf32>
    %2 = tpu.matmul %0, %1, %cst {dimension_numbers = #tpu.dot_dimension_numbers<[1], [0], [0], [1], [0, 0, 1, 1], [], []>} : vector<4x32xbf16>, vector<32x512xbf16>, vector<4x512xf32> -> vector<4x512xf32>
    %c0_3 = arith.constant 0 : index
    %c0_4 = arith.constant 0 : index
    %3 = vector.load %arg3[%c0_3, %c0_4] : memref<4x1xf32, #tpu.memory_space<vmem>>, vector<4x1xf32>
    %4 = vector.broadcast %3 : vector<4x1xf32> to vector<4x512xf32>
    %5 = arith.addf %2, %4 : vector<4x512xf32>
    %cst_5 = arith.constant 0.000000e+00 : f32
    %6 = vector.broadcast %cst_5 : f32 to vector<4x512xf32>
    %7 = arith.maximumf %5, %6 : vector<4x512xf32>
    %8 = arith.truncf %7 : vector<4x512xf32> to vector<4x512xbf16>
    %c0_6 = arith.constant 0 : index
    %c0_7 = arith.constant 0 : index
    %9 = vector.load %arg4[%c0_6, %c0_7] : memref<4x512xbf16, #tpu.memory_space<vmem>>, vector<4x512xbf16>
    tpu.vector_store %arg4[%c0_6, %c0_7], %8 {strides = array<i32>} : memref<4x512xbf16, #tpu.memory_space<vmem>>, vector<4x512xbf16>,
    return
  }
  func.func @transform_0(%arg0: i32) -> (i32, i32) {
    %c0_i32 = arith.constant 0 : i32
    %c0_i32_0 = arith.constant 0 : i32
    %c0_i32_1 = arith.constant 0 : i32
    return %c0_i32, %c0_i32_0 : i32, i32
  }
  func.func @transform_1(%arg0: i32) -> (i32, i32) {
    %c0_i32 = arith.constant 0 : i32
    %c0_i32_0 = arith.constant 0 : i32
    return %c0_i32, %arg0 : i32, i32
  }
  func.func @transform_2(%arg0: i32) -> (i32, i32) {
    %c0_i32 = arith.constant 0 : i32
    %c0_i32_0 = arith.constant 0 : i32
    %c0_i32_1 = arith.constant 0 : i32
    return %c0_i32, %c0_i32_0 : i32, i32
  }
  func.func @transform_3(%arg0: i32) -> (i32, i32) {
    %c0_i32 = arith.constant 0 : i32
    %c0_i32_0 = arith.constant 0 : i32
    return %c0_i32, %arg0 : i32, i32
  }
}

module attributes {stable_mosaic.version = 11 : i64} {
  func.func @_gemm_bias_relu_kernel(%arg0: i32, %arg1: memref<8x144xbf16, #tpu.memory_space<vmem>>, %arg2: memref<144x512xbf16, #tpu.memory_space<vmem>>, %arg3: memref<8x1xf32, #tpu.memory_space<vmem>>, %arg4: memref<8x512xbf16, #tpu.memory_space<vmem>>) attributes {dimension_semantics = [#tpu.dimension_semantics<parallel>], iteration_bounds = array<i64: 4>, scalar_prefetch = 0 : i64, scratch_operands = 0 : i64, tpu.core_type = #tpu.core_type<tc>, window_params = [{pipeline_mode = #tpu.pipeline_mode<synchronous>, transform_indices = @transform_0, window_bounds = array<i64: 8, 144>}, {transform_indices = @transform_1, window_bounds = array<i64: 144, 512>}, {pipeline_mode = #tpu.pipeline_mode<synchronous>, transform_indices = @transform_2, window_bounds = array<i64: 8, 1>}, {transform_indices = @transform_3, window_bounds = array<i64: 8, 512>}]} {
    %c0 = arith.constant 0 : index
    %c0_0 = arith.constant 0 : index
    %0 = vector.load %arg1[%c0, %c0_0] : memref<8x144xbf16, #tpu.memory_space<vmem>>, vector<8x144xbf16>
    %c0_1 = arith.constant 0 : index
    %c0_2 = arith.constant 0 : index
    %1 = vector.load %arg2[%c0_1, %c0_2] : memref<144x512xbf16, #tpu.memory_space<vmem>>, vector<144x512xbf16>
    %cst = arith.constant dense<0.000000e+00> : vector<8x512xf32>
    %2 = tpu.matmul %0, %1, %cst {dimension_numbers = #tpu.dot_dimension_numbers<[1], [0], [0], [1], [0, 0, 1, 1], [], []>} : vector<8x144xbf16>, vector<144x512xbf16>, vector<8x512xf32> -> vector<8x512xf32>
    %c0_3 = arith.constant 0 : index
    %c0_4 = arith.constant 0 : index
    %3 = vector.load %arg3[%c0_3, %c0_4] : memref<8x1xf32, #tpu.memory_space<vmem>>, vector<8x1xf32>
    %4 = vector.broadcast %3 : vector<8x1xf32> to vector<8x512xf32>
    %5 = arith.addf %2, %4 : vector<8x512xf32>
    %cst_5 = arith.constant 0.000000e+00 : f32
    %6 = vector.broadcast %cst_5 : f32 to vector<8x512xf32>
    %7 = arith.maximumf %5, %6 : vector<8x512xf32>
    %8 = arith.truncf %7 : vector<8x512xf32> to vector<8x512xbf16>
    %c0_6 = arith.constant 0 : index
    %c0_7 = arith.constant 0 : index
    %9 = vector.load %arg4[%c0_6, %c0_7] : memref<8x512xbf16, #tpu.memory_space<vmem>>, vector<8x512xbf16>
    tpu.vector_store %arg4[%c0_6, %c0_7], %8 {strides = array<i32>} : memref<8x512xbf16, #tpu.memory_space<vmem>>, vector<8x512xbf16>,
    return
  }
  func.func @transform_0(%arg0: i32) -> (i32, i32) {
    %c0_i32 = arith.constant 0 : i32
    %c0_i32_0 = arith.constant 0 : i32
    %c0_i32_1 = arith.constant 0 : i32
    return %c0_i32, %c0_i32_0 : i32, i32
  }
  func.func @transform_1(%arg0: i32) -> (i32, i32) {
    %c0_i32 = arith.constant 0 : i32
    %c0_i32_0 = arith.constant 0 : i32
    return %c0_i32, %arg0 : i32, i32
  }
  func.func @transform_2(%arg0: i32) -> (i32, i32) {
    %c0_i32 = arith.constant 0 : i32
    %c0_i32_0 = arith.constant 0 : i32
    %c0_i32_1 = arith.constant 0 : i32
    return %c0_i32, %c0_i32_0 : i32, i32
  }
  func.func @transform_3(%arg0: i32) -> (i32, i32) {
    %c0_i32 = arith.constant 0 : i32
    %c0_i32_0 = arith.constant 0 : i32
    return %c0_i32, %arg0 : i32, i32
  }
}

module attributes {stable_mosaic.version = 11 : i64} {
  func.func @_gemm_bias_relu_kernel(%arg0: i32, %arg1: memref<4x288xbf16, #tpu.memory_space<vmem>>, %arg2: memref<288x512xbf16, #tpu.memory_space<vmem>>, %arg3: memref<4x1xf32, #tpu.memory_space<vmem>>, %arg4: memref<4x512xbf16, #tpu.memory_space<vmem>>) attributes {dimension_semantics = [#tpu.dimension_semantics<parallel>], iteration_bounds = array<i64: 4>, scalar_prefetch = 0 : i64, scratch_operands = 0 : i64, tpu.core_type = #tpu.core_type<tc>, window_params = [{pipeline_mode = #tpu.pipeline_mode<synchronous>, transform_indices = @transform_0, window_bounds = array<i64: 4, 288>}, {transform_indices = @transform_1, window_bounds = array<i64: 288, 512>}, {pipeline_mode = #tpu.pipeline_mode<synchronous>, transform_indices = @transform_2, window_bounds = array<i64: 4, 1>}, {transform_indices = @transform_3, window_bounds = array<i64: 4, 512>}]} {
    %c0 = arith.constant 0 : index
    %c0_0 = arith.constant 0 : index
    %0 = vector.load %arg1[%c0, %c0_0] : memref<4x288xbf16, #tpu.memory_space<vmem>>, vector<4x288xbf16>
    %c0_1 = arith.constant 0 : index
    %c0_2 = arith.constant 0 : index
    %1 = vector.load %arg2[%c0_1, %c0_2] : memref<288x512xbf16, #tpu.memory_space<vmem>>, vector<288x512xbf16>
    %cst = arith.constant dense<0.000000e+00> : vector<4x512xf32>
    %2 = tpu.matmul %0, %1, %cst {dimension_numbers = #tpu.dot_dimension_numbers<[1], [0], [0], [1], [0, 0, 1, 1], [], []>} : vector<4x288xbf16>, vector<288x512xbf16>, vector<4x512xf32> -> vector<4x512xf32>
    %c0_3 = arith.constant 0 : index
    %c0_4 = arith.constant 0 : index
    %3 = vector.load %arg3[%c0_3, %c0_4] : memref<4x1xf32, #tpu.memory_space<vmem>>, vector<4x1xf32>
    %4 = vector.broadcast %3 : vector<4x1xf32> to vector<4x512xf32>
    %5 = arith.addf %2, %4 : vector<4x512xf32>
    %cst_5 = arith.constant 0.000000e+00 : f32
    %6 = vector.broadcast %cst_5 : f32 to vector<4x512xf32>
    %7 = arith.maximumf %5, %6 : vector<4x512xf32>
    %8 = arith.truncf %7 : vector<4x512xf32> to vector<4x512xbf16>
    %c0_6 = arith.constant 0 : index
    %c0_7 = arith.constant 0 : index
    %9 = vector.load %arg4[%c0_6, %c0_7] : memref<4x512xbf16, #tpu.memory_space<vmem>>, vector<4x512xbf16>
    tpu.vector_store %arg4[%c0_6, %c0_7], %8 {strides = array<i32>} : memref<4x512xbf16, #tpu.memory_space<vmem>>, vector<4x512xbf16>,
    return
  }
  func.func @transform_0(%arg0: i32) -> (i32, i32) {
    %c0_i32 = arith.constant 0 : i32
    %c0_i32_0 = arith.constant 0 : i32
    %c0_i32_1 = arith.constant 0 : i32
    return %c0_i32, %c0_i32_0 : i32, i32
  }
  func.func @transform_1(%arg0: i32) -> (i32, i32) {
    %c0_i32 = arith.constant 0 : i32
    %c0_i32_0 = arith.constant 0 : i32
    return %c0_i32, %arg0 : i32, i32
  }
  func.func @transform_2(%arg0: i32) -> (i32, i32) {
    %c0_i32 = arith.constant 0 : i32
    %c0_i32_0 = arith.constant 0 : i32
    %c0_i32_1 = arith.constant 0 : i32
    return %c0_i32, %c0_i32_0 : i32, i32
  }
  func.func @transform_3(%arg0: i32) -> (i32, i32) {
    %c0_i32 = arith.constant 0 : i32
    %c0_i32_0 = arith.constant 0 : i32
    return %c0_i32, %arg0 : i32, i32
  }
}

module attributes {stable_mosaic.version = 11 : i64} {
  func.func @_gemm_bias_relu_kernel(%arg0: i32, %arg1: memref<2x48xbf16, #tpu.memory_space<vmem>>, %arg2: memref<48x512xbf16, #tpu.memory_space<vmem>>, %arg3: memref<2x1xf32, #tpu.memory_space<vmem>>, %arg4: memref<2x512xbf16, #tpu.memory_space<vmem>>) attributes {dimension_semantics = [#tpu.dimension_semantics<parallel>], iteration_bounds = array<i64: 4>, scalar_prefetch = 0 : i64, scratch_operands = 0 : i64, tpu.core_type = #tpu.core_type<tc>, window_params = [{pipeline_mode = #tpu.pipeline_mode<synchronous>, transform_indices = @transform_0, window_bounds = array<i64: 2, 48>}, {transform_indices = @transform_1, window_bounds = array<i64: 48, 512>}, {pipeline_mode = #tpu.pipeline_mode<synchronous>, transform_indices = @transform_2, window_bounds = array<i64: 2, 1>}, {transform_indices = @transform_3, window_bounds = array<i64: 2, 512>}]} {
    %c0 = arith.constant 0 : index
    %c0_0 = arith.constant 0 : index
    %0 = vector.load %arg1[%c0, %c0_0] : memref<2x48xbf16, #tpu.memory_space<vmem>>, vector<2x48xbf16>
    %c0_1 = arith.constant 0 : index
    %c0_2 = arith.constant 0 : index
    %1 = vector.load %arg2[%c0_1, %c0_2] : memref<48x512xbf16, #tpu.memory_space<vmem>>, vector<48x512xbf16>
    %cst = arith.constant dense<0.000000e+00> : vector<2x512xf32>
    %2 = tpu.matmul %0, %1, %cst {dimension_numbers = #tpu.dot_dimension_numbers<[1], [0], [0], [1], [0, 0, 1, 1], [], []>} : vector<2x48xbf16>, vector<48x512xbf16>, vector<2x512xf32> -> vector<2x512xf32>
    %c0_3 = arith.constant 0 : index
    %c0_4 = arith.constant 0 : index
    %3 = vector.load %arg3[%c0_3, %c0_4] : memref<2x1xf32, #tpu.memory_space<vmem>>, vector<2x1xf32>
    %4 = vector.broadcast %3 : vector<2x1xf32> to vector<2x512xf32>
    %5 = arith.addf %2, %4 : vector<2x512xf32>
    %cst_5 = arith.constant 0.000000e+00 : f32
    %6 = vector.broadcast %cst_5 : f32 to vector<2x512xf32>
    %7 = arith.maximumf %5, %6 : vector<2x512xf32>
    %8 = arith.truncf %7 : vector<2x512xf32> to vector<2x512xbf16>
    %c0_6 = arith.constant 0 : index
    %c0_7 = arith.constant 0 : index
    %9 = vector.load %arg4[%c0_6, %c0_7] : memref<2x512xbf16, #tpu.memory_space<vmem>>, vector<2x512xbf16>
    tpu.vector_store %arg4[%c0_6, %c0_7], %8 {strides = array<i32>} : memref<2x512xbf16, #tpu.memory_space<vmem>>, vector<2x512xbf16>,
    return
  }
  func.func @transform_0(%arg0: i32) -> (i32, i32) {
    %c0_i32 = arith.constant 0 : i32
    %c0_i32_0 = arith.constant 0 : i32
    %c0_i32_1 = arith.constant 0 : i32
    return %c0_i32, %c0_i32_0 : i32, i32
  }
  func.func @transform_1(%arg0: i32) -> (i32, i32) {
    %c0_i32 = arith.constant 0 : i32
    %c0_i32_0 = arith.constant 0 : i32
    return %c0_i32, %arg0 : i32, i32
  }
  func.func @transform_2(%arg0: i32) -> (i32, i32) {
    %c0_i32 = arith.constant 0 : i32
    %c0_i32_0 = arith.constant 0 : i32
    %c0_i32_1 = arith.constant 0 : i32
    return %c0_i32, %c0_i32_0 : i32, i32
  }
  func.func @transform_3(%arg0: i32) -> (i32, i32) {
    %c0_i32 = arith.constant 0 : i32
    %c0_i32_0 = arith.constant 0 : i32
    return %c0_i32, %arg0 : i32, i32
  }
}

module attributes {stable_mosaic.version = 11 : i64} {
  func.func @_linear_softmax_clamp_kernel(%arg0: memref<2x1568xbf16, #tpu.memory_space<vmem>>, %arg1: memref<1568x4xbf16, #tpu.memory_space<vmem>>, %arg2: memref<1x4xf32, #tpu.memory_space<vmem>>, %arg3: memref<2x4xf32, #tpu.memory_space<vmem>>) attributes {dimension_semantics = [], scalar_prefetch = 0 : i64, scratch_operands = 0 : i64, tpu.core_type = #tpu.core_type<tc>} {
    %c0 = arith.constant 0 : index
    %c0_0 = arith.constant 0 : index
    %0 = vector.load %arg0[%c0, %c0_0] : memref<2x1568xbf16, #tpu.memory_space<vmem>>, vector<2x1568xbf16>
    %c0_1 = arith.constant 0 : index
    %c0_2 = arith.constant 0 : index
    %1 = vector.load %arg1[%c0_1, %c0_2] : memref<1568x4xbf16, #tpu.memory_space<vmem>>, vector<1568x4xbf16>
    %cst = arith.constant dense<0.000000e+00> : vector<2x4xf32>
    %2 = tpu.matmul %0, %1, %cst {dimension_numbers = #tpu.dot_dimension_numbers<[1], [0], [0], [1], [0, 0, 1, 1], [], []>} : vector<2x1568xbf16>, vector<1568x4xbf16>, vector<2x4xf32> -> vector<2x4xf32>
    %c0_3 = arith.constant 0 : index
    %c0_4 = arith.constant 0 : index
    %3 = vector.load %arg2[%c0_3, %c0_4] : memref<1x4xf32, #tpu.memory_space<vmem>>, vector<1x4xf32>
    %4 = vector.broadcast %3 : vector<1x4xf32> to vector<2x4xf32>
    %5 = arith.addf %2, %4 : vector<2x4xf32>
    %cst_5 = arith.constant dense<0xFF800000> : vector<2xf32>
    %6 = vector.multi_reduction <maximumf>, %5, %cst_5 [1] : vector<2x4xf32> to vector<2xf32>
    %7 = vector.shape_cast %6 : vector<2xf32> to vector<2x1xf32>
    %8 = vector.broadcast %7 : vector<2x1xf32> to vector<2x4xf32>
    %9 = arith.subf %5, %8 : vector<2x4xf32>
    %10 = math.exp %9 : vector<2x4xf32>
    %cst_6 = arith.constant dense<0.000000e+00> : vector<2xf32>
    %11 = vector.multi_reduction <add>, %10, %cst_6 [1] : vector<2x4xf32> to vector<2xf32>
    %12 = vector.shape_cast %11 : vector<2xf32> to vector<2x1xf32>
    %13 = tpu.reciprocal %12 {approx = true} : vector<2x1xf32> -> vector<2x1xf32>
    %14 = vector.broadcast %13 : vector<2x1xf32> to vector<2x4xf32>
    %15 = arith.mulf %10, %14 : vector<2x4xf32>
    %cst_7 = arith.constant 2.000000e-01 : f32
    %cst_8 = arith.constant 2.600000e-01 : f32
    %16 = vector.broadcast %cst_7 : f32 to vector<2x4xf32>
    %17 = arith.maximumf %16, %15 : vector<2x4xf32>
    %18 = vector.broadcast %cst_8 : f32 to vector<2x4xf32>
    %19 = arith.minimumf %18, %17 : vector<2x4xf32>
    %c0_9 = arith.constant 0 : index
    %c0_10 = arith.constant 0 : index
    %20 = vector.load %arg3[%c0_9, %c0_10] : memref<2x4xf32, #tpu.memory_space<vmem>>, vector<2x4xf32>
    tpu.vector_store %arg3[%c0_9, %c0_10], %19 {strides = array<i32>} : memref<2x4xf32, #tpu.memory_space<vmem>>, vector<2x4xf32>,
    return
  }
}

</mosaic_0001>

<bundles_post_ra>
// kernel: generator_forward.5
= control target key start
LH: loop header
LB: loop body
LE: loop exit
PB: predicated region body
PF: predicated region fallthrough
CT: control target
= control target key end

     0   :  { %8 = vsyncpa [#allocation3], 0  ;;  %s2184_s12 = smov 0   ;;  %s2186_s13 = smov 0   ;;  %s2959_s0 = inlined_call_operand.hbm [shape: bf16[4,32], index: 0, kind: input, shape index: {}]   ;;  %s2960_s1 = inlined_call_operand.vmem [shape: bf16[32,1568], index: 1, kind: input, shape index: {}]   ;;  %s2961_s2 = inlined_call_operand.vmem [shape: f32[4,1], index: 2, kind: input, shape index: {}]   ;;  %s2962_s3 = inlined_call_operand.vmem [shape: bf16[4,1568], index: 3, kind: output, shape index: {}]  }
   0x1   :  { %s2188_s14 = smov 0  }
   0x2 LB: > { %s2200_s15 = sadd.s32 4294967295, %s2027_s14   ;;  %s2203_s16 = sadd.s32 1, %s2027_s14   ;;  %s2027_s14 = sphi %s2188_s14, %s2990_s14   ;;  %s2023_s13 = sphi %s2186_s13, %s2989_s13   ;;  %s2019_s12 = sphi %s2184_s12, %s2988_s12  }
   0x3   : > { %s39_s17 = ssub.s32 %s2027_s14, %s2203_s16  ;;  %s42_s18 = sadd.s32 1, %s2023_s13 }
   0x4   : > { %p40_p0 = scmp.eq.s32.totalorder %s39_s17, 0  ;;  %p49_p1 = scmp.ne.s32.totalorder %s2023_s13, %s2019_s12 }
   0x5   : > { %p50_p2 = scmp.eq.s32.totalorder %s2027_s14, 0  ;;  %p100_p3 = scmp.eq.s32.totalorder %s2200_s15, 3 }
   0x6   : > { %s2213_s19 = scalar_select %p40_p0, %s2023_s13, %s42_s18  }
   0x7   : > { %p2215_p4 = por %p50_p2, %p49_p1  ;;  %p2219_p5 = por %p100_p3, %p49_p1 }
   0x8   : > { %p1448_p6 = scmp.ge.s32.totalorder %s2027_s14, 1  ;;  %p113_p7 = scmp.lt.s32.totalorder %s2027_s14, 5 }
   0x9   : > { %s2964_s21 = scalar_select %p2219_p5, 1, 0 }
   0xa   : > { %p1545_p8 = scmp.eq.s32.totalorder %s2200_s15, 0  ;;  %p2226_p9 = pnand %p1448_p6, %p113_p7 }
   0xb   : > { %s2157_s23 = smov [#allocation2]  }
   0xc   : > { %s126_s24 = sshll.u32 %s2157_s23, 4  ;;  %p1541_p10 = pneg %p2226_p9  ;;  %s127_s24 = int_to_ptr.vmem [resolvable:$true] %s126_s24 }
   0xd   : > { %s1858_s25 = scalar_lea.vmem %s127_s24, 32  ;;  %p1866_p2 = scmp.lt.s32.totalorder %s127_s24, %s127_s24 }
   0xe   : > { %p1542_p11 = pnand %p1545_p8, %p1541_p10  ;;  %p1859_p13 = scmp.ne.s32.totalorder %s127_s24, %s1858_s25 }
   0xf   : > { %p1867_p3 = scmp.lt.s32.totalorder %s1858_s25, %s1858_s25 }
  0x10   : > { %p1849_p12 = pneg %p1542_p11 }
  0x11   : > { %p1868_p5 = por %p1867_p3, %p1866_p2 }
  0x12   : > { %p1861_p0 = pnand %p1859_p13, %p1849_p12 }
  0x14   : > { %p1862_p1 = pneg %p1861_p0 }
  0x16   : > { %p1869_p6 = pnand %p1868_p5, %p1862_p1 }
  0x18   : > { %1872 = shalt.err (!%p1869_p6)
}
  0x19   : > { %1544 = dma.hbm_to_vmem [thread:$0]  (!%p1542_p11), %s2959_s0, 32, %s127_s24, [#allocation3]  }
  0x1a   : > { %p1450_p7 = scmp.ge.s32.totalorder %s2027_s14, 4 }
  0x1c   : > { %136 = sbr.rel (%p1450_p7) target bundleno = 146 (0x92), region = 24 }
  0x21   : > { %139 = sbr.rel (!%p2215_p4) target bundleno = 146 (0x92), region = 28  ;;  %s141_s28 = sand.u32 (%p2215_p4), 1, %s2023_s13  }
  0x22   : > { %s1452_s29 = sshll.u32 (%p2215_p4), %s2027_s14, 2  ;;  %s1451_s30 = sshll.u32 (%p2215_p4), %s141_s28, 6 }
  0x23   : > { %s145_s4 = ssub.s32 (%p2215_p4), 13, %s1452_s29  ;;  %s1527_s5 = sshll.u32 (%p2215_p4), %s2027_s14, 4 }
  0x24   : > { %p146_p10 = scmp.lt.s32.totalorder (%p2215_p4), %s145_s4, 4  ;;  %s2246_s8 = scalar_lea.vmem (%p2215_p4), %s2960_s1, %s1527_s5  }
  0x25   : > { %s2250_s11 = scalar_lea.vmem (%p2215_p4), [#allocation4], %s1451_s30  }
  0x26   : > { %s2992_s4 = smov (!%p146_p10, %s145_s4), 4 }
  0x27   : > { %s1453_s9 = sshll.u32 %s2992_s4, 8  ;;  %s2248_s10 = sshll.u32 %s2992_s4, 2 }
  0x28   : > { %p1457_p4 = scmp.eq.s32.totalorder %s1453_s9, 0 }
  0x29   : > { %p156_p5 = scmp.lt.u32.totalorder (!%p1457_p4), %s2248_s10, 8 }
  0x2a   : > { %155 = sbr.rel (%p1457_p4) target bundleno = 146 (0x92), region = 32 }
  0x2f   : > { %159 = sbr.rel (%p156_p5) target bundleno = 135 (0x87), region = 36  ;;  %s2254_s17 = sand.u32 (!%p156_p5), 7, %s2248_s10  }
  0x30   : > { %p182_p11 = scmp.eq.s32.totalorder (!%p156_p5), %s2254_s17, 0  ;;  %p1458_p12 = scmp.ne.s32.totalorder (!%p156_p5), %s2254_s17, 0 }
  0x34   : > { %185 = sbr.rel (%p1458_p12) target bundleno = 90 (0x5a), region = 51  ;;  %s186_s14 = sshrl.u32 (!%p1458_p12), %s2248_s10, 3 }
  0x35   : > { %s2261_s18 = sshrl.u32 (!%p1458_p12), %s186_s14, 4 }
  0x36   : > { %p1459_p13 = scmp.le.s32.totalorder (!%p1458_p12), %s2261_s18, 0 }
  0x39   : > { %1310 = sbr.rel (%p1459_p13) target bundleno = 74 (0x4a), region = 234  ;;  %s2966_s20 = smov (!%p1459_p13), %s2250_s11 }
  0x3a   : > { %s2967_s23 = smov (!%p1459_p13), %s2246_s8  ;;  %s2270_s24 = smov (!%p1459_p13), 0  }
  0x3b   : > { %s2272_s25 = smov (!%p1459_p13), 0  }
  0x3e LB: >> { %v199_v0 = vld [vmem:[%s2035_s23] sm:$0xff]  ;;  %v201_v1 = vld [vmem:[%s2035_s23 + $0x8] sm:$0xff]  ;;  %v231_v2 = vld [vmem:[%s2035_s23 + $0x34] sm:$0xff]  ;;  %s327_s26 = sadd.s32 1, %s2039_s24  ;;  %s193_s25 = sadd.s32 1, %s2043_s25   ;;  %s2043_s25 = sphi %s2272_s25, %s193_s25   ;;  %s2039_s24 = sphi %s2270_s24, %s2968_s24   ;;  %s2035_s23 = sphi %s2967_s23, %s332_s23   ;;  %s2031_s20 = sphi %s2966_s20, %s333_s20  }
  0x3f   : >> { %200 = vst [vmem:[%s2031_s20] sm:$0xff] %v199_v0  ;;  %202 = vst [vmem:[%s2031_s20 + $0x8] sm:$0xff] %v201_v1  ;;  %v233_v3 = vld [vmem:[%s2035_s23 + $0x3c] sm:$0xff]  ;;  %v263_v4 = vld [vmem:[%s2035_s23 + $0x68] sm:$0xff]  ;;  %p328_p0 = scmp.ge.s32.totalorder %s327_s26, %s2261_s18  ;;  %p192_p1 = scmp.ge.s32.totalorder %s193_s25, %s2261_s18 }
  0x40   : >> { %232 = vst [vmem:[%s2031_s20 + $0x10] sm:$0xff] %v231_v2  ;;  %v265_v5 = vld [vmem:[%s2035_s23 + $0x70] sm:$0xff]  ;;  %234 = vst [vmem:[%s2031_s20 + $0x18] sm:$0xff] %v233_v3  ;;  %v295_v6 = vld [vmem:[%s2035_s23 + $0x9c] sm:$0xff] }
  0x41   : >> { %264 = vst [vmem:[%s2031_s20 + $0x20] sm:$0xff] %v263_v4  ;;  %266 = vst [vmem:[%s2031_s20 + $0x28] sm:$0xff] %v265_v5  ;;  %v297_v7 = vld [vmem:[%s2035_s23 + $0xa4] sm:$0xff]  ;;  %v299_v8 = vld [vmem:[%s2035_s23 + $0xac] sm:$0xff]  ;;  %s2994_s26 = smov (%p328_p0, %s327_s26), 0 }
  0x42   : >> { %296 = vst [vmem:[%s2031_s20 + $0x30] sm:$0xff] %v295_v6  ;;  %298 = vst [vmem:[%s2031_s20 + $0x38] sm:$0xff] %v297_v7  ;;  %v301_v9 = vld [vmem:[%s2035_s23 + $0xb4] sm:$0xff]  ;;  %v303_v10 = vld [vmem:[%s2035_s23 + $0xbc] sm:$0xff]  ;;  %s1460_s27 = sshll.u32 %s2994_s26, 7  ;;  %s2968_s24 = smov %s2994_s26 }
  0x43   : >> { %300 = vst [vmem:[%s2031_s20 + $0x40] sm:$0xff] %v299_v8  ;;  %v305_v11 = vld [vmem:[%s2035_s23 + $0xc4] sm:$0xff]  ;;  %302 = vst [vmem:[%s2031_s20 + $0x48] sm:$0xff] %v301_v9  ;;  %v307_v12 = vld [vmem:[%s2035_s23 + $0xcc] sm:$0xff] }
  0x44   : >> { %304 = vst [vmem:[%s2031_s20 + $0x50] sm:$0xff] %v303_v10  ;;  %306 = vst [vmem:[%s2031_s20 + $0x58] sm:$0xff] %v305_v11  ;;  %v309_v13 = vld [vmem:[%s2035_s23 + $0xd4] sm:$0xff]  ;;  %v311_v14 = vld [vmem:[%s2035_s23 + $0xdc] sm:$0xff] }
  0x45   : >> { %308 = vst [vmem:[%s2031_s20 + $0x60] sm:$0xff] %v307_v12  ;;  %310 = vst [vmem:[%s2031_s20 + $0x68] sm:$0xff] %v309_v13  ;;  %v313_v15 = vld [vmem:[%s2035_s23 + $0xe4] sm:$0xff]  ;;  %v315_v16 = vld [vmem:[%s2035_s23 + $0xec] sm:$0xff]  ;;  %195 = sbr.rel (!%p192_p1) target bundleno = 62 (0x3e), region = 240 }
  0x46   : >> { %312 = vst [vmem:[%s2031_s20 + $0x70] sm:$0xff] %v311_v14  ;;  %v317_v17 = vld [vmem:[%s2035_s23 + $0xf4] sm:$0xff]  ;;  %314 = vst [vmem:[%s2031_s20 + $0x78] sm:$0xff] %v313_v15  ;;  %v319_v18 = vld [vmem:[%s2035_s23 + $0xfc] sm:$0xff] }
  0x47   : >> { %316 = vst [vmem:[%s2031_s20 + $0x80] sm:$0xff] %v315_v16  ;;  %318 = vst [vmem:[%s2031_s20 + $0x88] sm:$0xff] %v317_v17  ;;  %v321_v19 = vld [vmem:[%s2035_s23 + $0x104] sm:$0xff]  ;;  %v323_v20 = vld [vmem:[%s2035_s23 + $0x10c] sm:$0xff] }
  0x48   : >> { %320 = vst [vmem:[%s2031_s20 + $0x90] sm:$0xff] %v319_v18  ;;  %322 = vst [vmem:[%s2031_s20 + $0x98] sm:$0xff] %v321_v19  ;;  %v325_v21 = vld [vmem:[%s2035_s23 + $0x114] sm:$0xff]  ;;  %s332_s23 = scalar_lea.vmem %s2246_s8, %s1460_s27  }
  0x49   : >> { %324 = vst [vmem:[%s2031_s20 + $0xa0] sm:$0xff] %v323_v20  ;;  %326 = vst [vmem:[%s2031_s20 + $0xa8] sm:$0xff] %v325_v21  ;;  %s333_s20 = scalar_lea.vmem %s2250_s11, %s1460_s27 [#allocation4]  }
  0x4a PF: > { %s2346_s28 = sand.u32 15, %s186_s14   ;;  %s1528_s29 = sshll.u32 %s2261_s18, 11 }
  0x4b   : > { %s338_s30 = sshra.s32 %s1528_s29, 4  ;;  %p1465_p2 = scmp.le.s32.totalorder %s2346_s28, 0 }
  0x4c   : > { %s2350_s4 = scalar_lea.vmem %s2246_s8, %s338_s30   ;;  %s2353_s5 = scalar_lea.vmem %s2250_s11, %s338_s30 [#allocation4]  }
  0x4d   : > { %1324 = sbr.rel (%p1465_p2) target bundleno = 90 (0x5a), region = 245  ;;  %s2969_s6 = smov (!%p1465_p2), %s2353_s5 }
  0x4e   : > { %s2970_s7 = smov (!%p1465_p2), %s2350_s4  ;;  %s2362_s9 = smov (!%p1465_p2), 0  }
  0x4f   : > { %s2057_s20 = smov (!%p1465_p2), 0  }
  0x52 LB: >> { %v354_v22 = vld [vmem:[%s2051_s7] sm:$0xff]  ;;  %v356_v23 = vld [vmem:[%s2051_s7 + $0x34] sm:$0xff]  ;;  %v358_v24 = vld [vmem:[%s2051_s7 + $0x68] sm:$0xff]  ;;  %s362_s14 = sadd.s32 1, %s2055_s9  ;;  %s348_s20 = sadd.s32 1, %s2059_s20   ;;  %s2059_s20 = sphi %s2057_s20, %s348_s20   ;;  %s2055_s9 = sphi %s2362_s9, %s2971_s9   ;;  %s2051_s7 = sphi %s2970_s7, %s367_s7   ;;  %s2047_s6 = sphi %s2969_s6, %s368_s6  }
  0x53   : >> { %355 = vst [vmem:[%s2047_s6] sm:$0xff] %v354_v22  ;;  %357 = vst [vmem:[%s2047_s6 + $0x10] sm:$0xff] %v356_v23  ;;  %v360_v25 = vld [vmem:[%s2051_s7 + $0x9c] sm:$0xff]  ;;  %p363_p3 = scmp.ge.s32.totalorder %s362_s14, %s2346_s28  ;;  %p347_p6 = scmp.ge.s32.totalorder %s348_s20, %s2346_s28 }
  0x54   : >> { %359 = vst [vmem:[%s2047_s6 + $0x20] sm:$0xff] %v358_v24  ;;  %361 = vst [vmem:[%s2047_s6 + $0x30] sm:$0xff] %v360_v25 }
  0x55   : >> { %s2996_s14 = smov (%p363_p3, %s362_s14), 0  ;;  %350 = sbr.rel (!%p347_p6) target bundleno = 82 (0x52), region = 251 }
  0x56   : >> { %s1466_s18 = sshll.u32 %s2996_s14, 3  ;;  %s2971_s9 = smov %s2996_s14 }
  0x57   : >> { %s367_s7 = scalar_lea.vmem %s2350_s4, %s1466_s18   ;;  %s368_s6 = scalar_lea.vmem %s2353_s5, %s1466_s18 [#allocation4]  }
  0x5a PF: > { %371 = sbr.rel (%p182_p11) target bundleno = 135 (0x87), region = 69  ;;  %s373_s23 = ssub.s32 (!%p182_p11), %s2248_s10, %s2254_s17 }
  0x5b   : > { %s377_s24 = sshrl.u32 (!%p182_p11), %s2248_s10, 3  ;;  %s2383_s25 = scalar_lea.vmem (!%p182_p11), %s2246_s8, %s373_s23 }
  0x5c   : > { %s2386_s26 = scalar_lea.vmem (!%p182_p11), %s2250_s11, %s373_s23 [#allocation4]  ;;  %s2390_s27 = sshrl.u32 (!%p182_p11), %s377_s24, 4 }
  0x5d   : > { %p1468_p7 = scmp.le.s32.totalorder (!%p182_p11), %s2390_s27, 0 }
  0x5f   : > { %1338 = sbr.rel (%p1468_p7) target bundleno = 112 (0x70), region = 256  ;;  %s2972_s28 = smov (!%p1468_p7), %s2250_s11 }
  0x60   : > { %s2973_s29 = smov (!%p1468_p7), %s2246_s8  ;;  %s2399_s30 = smov (!%p1468_p7), 0  }
  0x61   : > { %s2401_s4 = smov (!%p1468_p7), 0  }
  0x64 LB: >> { %v390_v26 = vld [vmem:[%s2067_s29] sm:$0xff]  ;;  %v392_v27 = vld [vmem:[%s2067_s29 + $0x8] sm:$0xff]  ;;  %v422_v28 = vld [vmem:[%s2067_s29 + $0x34] sm:$0xff]  ;;  %s518_s5 = sadd.s32 1, %s2071_s30  ;;  %s384_s4 = sadd.s32 1, %s2075_s4   ;;  %s2075_s4 = sphi %s2401_s4, %s384_s4   ;;  %s2071_s30 = sphi %s2399_s30, %s2974_s30   ;;  %s2067_s29 = sphi %s2973_s29, %s523_s29   ;;  %s2063_s28 = sphi %s2972_s28, %s524_s28  }
  0x65   : >> { %391 = vst [vmem:[%s2063_s28] sm:$0xff] %v390_v26  ;;  %393 = vst [vmem:[%s2063_s28 + $0x8] sm:$0xff] %v392_v27  ;;  %v424_v29 = vld [vmem:[%s2067_s29 + $0x3c] sm:$0xff]  ;;  %v454_v30 = vld [vmem:[%s2067_s29 + $0x68] sm:$0xff]  ;;  %p519_p10 = scmp.ge.s32.totalorder %s518_s5, %s2390_s27  ;;  %p383_p4 = scmp.ge.s32.totalorder %s384_s4, %s2390_s27 }
  0x66   : >> { %423 = vst [vmem:[%s2063_s28 + $0x10] sm:$0xff] %v422_v28  ;;  %v456_v31 = vld [vmem:[%s2067_s29 + $0x70] sm:$0xff]  ;;  %425 = vst [vmem:[%s2063_s28 + $0x18] sm:$0xff] %v424_v29  ;;  %v486_v32 = vld [vmem:[%s2067_s29 + $0x9c] sm:$0xff] }
  0x67   : >> { %455 = vst [vmem:[%s2063_s28 + $0x20] sm:$0xff] %v454_v30  ;;  %457 = vst [vmem:[%s2063_s28 + $0x28] sm:$0xff] %v456_v31  ;;  %v488_v33 = vld [vmem:[%s2067_s29 + $0xa4] sm:$0xff]  ;;  %v490_v34 = vld [vmem:[%s2067_s29 + $0xac] sm:$0xff]  ;;  %s2998_s5 = smov (%p519_p10, %s518_s5), 0 }
  0x68   : >> { %487 = vst [vmem:[%s2063_s28 + $0x30] sm:$0xff] %v486_v32  ;;  %489 = vst [vmem:[%s2063_s28 + $0x38] sm:$0xff] %v488_v33  ;;  %v492_v35 = vld [vmem:[%s2067_s29 + $0xb4] sm:$0xff]  ;;  %v494_v36 = vld [vmem:[%s2067_s29 + $0xbc] sm:$0xff]  ;;  %s1469_s6 = sshll.u32 %s2998_s5, 7  ;;  %s2974_s30 = smov %s2998_s5 }
  0x69   : >> { %491 = vst [vmem:[%s2063_s28 + $0x40] sm:$0xff] %v490_v34  ;;  %v496_v37 = vld [vmem:[%s2067_s29 + $0xc4] sm:$0xff]  ;;  %493 = vst [vmem:[%s2063_s28 + $0x48] sm:$0xff] %v492_v35  ;;  %v498_v38 = vld [vmem:[%s2067_s29 + $0xcc] sm:$0xff] }
  0x6a   : >> { %495 = vst [vmem:[%s2063_s28 + $0x50] sm:$0xff] %v494_v36  ;;  %497 = vst [vmem:[%s2063_s28 + $0x58] sm:$0xff] %v496_v37  ;;  %v500_v39 = vld [vmem:[%s2067_s29 + $0xd4] sm:$0xff]  ;;  %v502_v40 = vld [vmem:[%s2067_s29 + $0xdc] sm:$0xff] }
  0x6b   : >> { %499 = vst [vmem:[%s2063_s28 + $0x60] sm:$0xff] %v498_v38  ;;  %501 = vst [vmem:[%s2063_s28 + $0x68] sm:$0xff] %v500_v39  ;;  %v504_v41 = vld [vmem:[%s2067_s29 + $0xe4] sm:$0xff]  ;;  %v506_v42 = vld [vmem:[%s2067_s29 + $0xec] sm:$0xff]  ;;  %386 = sbr.rel (!%p383_p4) target bundleno = 100 (0x64), region = 262 }
  0x6c   : >> { %503 = vst [vmem:[%s2063_s28 + $0x70] sm:$0xff] %v502_v40  ;;  %v508_v43 = vld [vmem:[%s2067_s29 + $0xf4] sm:$0xff]  ;;  %505 = vst [vmem:[%s2063_s28 + $0x78] sm:$0xff] %v504_v41  ;;  %v510_v44 = vld [vmem:[%s2067_s29 + $0xfc] sm:$0xff] }
  0x6d   : >> { %507 = vst [vmem:[%s2063_s28 + $0x80] sm:$0xff] %v506_v42  ;;  %509 = vst [vmem:[%s2063_s28 + $0x88] sm:$0xff] %v508_v43  ;;  %v512_v45 = vld [vmem:[%s2067_s29 + $0x104] sm:$0xff]  ;;  %v514_v46 = vld [vmem:[%s2067_s29 + $0x10c] sm:$0xff] }
  0x6e   : >> { %511 = vst [vmem:[%s2063_s28 + $0x90] sm:$0xff] %v510_v44  ;;  %513 = vst [vmem:[%s2063_s28 + $0x98] sm:$0xff] %v512_v45  ;;  %v516_v47 = vld [vmem:[%s2067_s29 + $0x114] sm:$0xff]  ;;  %s523_s29 = scalar_lea.vmem %s2246_s8, %s1469_s6  }
  0x6f   : >> { %515 = vst [vmem:[%s2063_s28 + $0xa0] sm:$0xff] %v514_v46  ;;  %517 = vst [vmem:[%s2063_s28 + $0xa8] sm:$0xff] %v516_v47  ;;  %s524_s28 = scalar_lea.vmem %s2250_s11, %s1469_s6 [#allocation4]  }
  0x70 PF: > { %s2475_s7 = sand.u32 15, %s377_s24   ;;  %s1530_s9 = sshll.u32 %s2390_s27, 11 }
  0x71   : > { %s529_s20 = sshra.s32 %s1530_s9, 4  ;;  %p1474_p5 = scmp.le.s32.totalorder %s2475_s7, 0 }
  0x72   : > { %s2479_s14 = scalar_lea.vmem %s2246_s8, %s529_s20   ;;  %s2482_s18 = scalar_lea.vmem %s2250_s11, %s529_s20 [#allocation4]  }
  0x73   : > { %1352 = sbr.rel (%p1474_p5) target bundleno = 128 (0x80), region = 267  ;;  %s2975_s23 = smov (!%p1474_p5), %s2482_s18 }
  0x74   : > { %s2976_s28 = smov (!%p1474_p5), %s2479_s14  ;;  %s2085_s29 = smov (!%p1474_p5), 0  }
  0x75   : > { %s2089_s30 = smov (!%p1474_p5), 0  }
  0x78 LB: >> { %v545_v48 = vld [vmem:[%s2083_s28] sm:$0xff]  ;;  %v547_v49 = vld [vmem:[%s2083_s28 + $0x34] sm:$0xff]  ;;  %v549_v50 = vld [vmem:[%s2083_s28 + $0x68] sm:$0xff]  ;;  %s553_s24 = sadd.s32 1, %s2087_s29  ;;  %s539_s30 = sadd.s32 1, %s2091_s30   ;;  %s2091_s30 = sphi %s2089_s30, %s539_s30   ;;  %s2087_s29 = sphi %s2085_s29, %s2086_s29   ;;  %s2083_s28 = sphi %s2976_s28, %s558_s28   ;;  %s2079_s23 = sphi %s2975_s23, %s559_s23  }
  0x79   : >> { %546 = vst [vmem:[%s2079_s23] sm:$0xff] %v545_v48  ;;  %548 = vst [vmem:[%s2079_s23 + $0x10] sm:$0xff] %v547_v49  ;;  %v551_v51 = vld [vmem:[%s2083_s28 + $0x9c] sm:$0xff]  ;;  %p554_p11 = scmp.ge.s32.totalorder %s553_s24, %s2475_s7  ;;  %p538_p12 = scmp.ge.s32.totalorder %s539_s30, %s2475_s7 }
  0x7a   : >> { %550 = vst [vmem:[%s2079_s23 + $0x20] sm:$0xff] %v549_v50  ;;  %552 = vst [vmem:[%s2079_s23 + $0x30] sm:$0xff] %v551_v51 }
  0x7b   : >> { %s3000_s24 = smov (%p554_p11, %s553_s24), 0  ;;  %541 = sbr.rel (!%p538_p12) target bundleno = 120 (0x78), region = 273 }
  0x7c   : >> { %s1475_s27 = sshll.u32 %s3000_s24, 3  ;;  %s2086_s29 = smov %s3000_s24  }
  0x7d   : >> { %s558_s28 = scalar_lea.vmem %s2479_s14, %s1475_s27   ;;  %s559_s23 = scalar_lea.vmem %s2482_s18, %s1475_s27 [#allocation4]  }
  0x80 PF: > { %s2158_s4 = smov 1  }
  0x81   : > { %s560_s5 = sshll.u32 %s2158_s4, %s2254_s17 }
  0x82   : > { %s1477_s6 = sadd.s32 4294967295, %s560_s5 }
  0x83   : > { %v570_v52 = vld [vmem:[%s2383_s25] sm:%s1477_s6]  ;;  %v572_v53 = vld [vmem:[%s2383_s25 + $0x34] sm:%s1477_s6] }
  0x84   : > { %571 = vst [vmem:[%s2386_s26] sm:%s1477_s6] %v570_v52  ;;  %573 = vst [vmem:[%s2386_s26 + $0x10] sm:%s1477_s6] %v572_v53 }
  0x85   : > { %v574_v54 = vld [vmem:[%s2383_s25 + $0x68] sm:%s1477_s6]  ;;  %v576_v55 = vld [vmem:[%s2383_s25 + $0x9c] sm:%s1477_s6] }
  0x86   : > { %575 = vst [vmem:[%s2386_s26 + $0x20] sm:%s1477_s6] %v574_v54  ;;  %577 = vst [vmem:[%s2386_s26 + $0x30] sm:%s1477_s6] %v576_v55 }
  0x87 PF: > { %p1478_p13 = scmp.ge.u32.totalorder %s2248_s10, 8 }
  0x88   : > { %s2159_s7 = smov (!%p1478_p13), 1  }
  0x89   : > { %162 = sbr.rel (%p1478_p13) target bundleno = 146 (0x92), region = 40  ;;  %s163_s17 = sshll.u32 (!%p1478_p13), %s2159_s7, %s2248_s10 }
  0x8a   : > { %s1479_s9 = sadd.s32 (!%p1478_p13), 4294967295, %s163_s17 }
  0x8e   : > { %v173_v56 = vld [vmem:[%s2246_s8] sm:%s1479_s9]  ;;  %v175_v57 = vld [vmem:[%s2246_s8 + $0x34] sm:%s1479_s9] }
  0x8f   : > { %174 = vst [vmem:[%s2250_s11] sm:%s1479_s9] %v173_v56  ;;  %176 = vst [vmem:[%s2250_s11 + $0x10] sm:%s1479_s9] %v175_v57 }
  0x90   : > { %v177_v58 = vld [vmem:[%s2246_s8 + $0x68] sm:%s1479_s9]  ;;  %v179_v59 = vld [vmem:[%s2246_s8 + $0x9c] sm:%s1479_s9] }
  0x91   : > { %178 = vst [vmem:[%s2250_s11 + $0x20] sm:%s1479_s9] %v177_v58  ;;  %180 = vst [vmem:[%s2250_s11 + $0x30] sm:%s1479_s9] %v179_v59 }
  0x92 PF: > { %584 = sbr.rel (%p2226_p9) target bundleno = 516 (0x204), region = 94 }
  0x97   : > { %2014 = dma.done.wait (%p1545_p8), [#allocation3], 32  }
  0x98   : > { %2016 = vsyncadd (%p1545_p8), [#allocation3], 4294967264  ;;  %s591_s10 = sand.u32 1, %s2019_s12   ;;  %v2160_v60 = vmov 0   ;;  %v633_v5 = vld [vmem:[%s2961_s2] sm:$0xf]  ;;  %v782_v9 = vlaneseq }
  0x99   : > { %s1482_s8 = sshll.u32 %s591_s10, 6  ;;  %715 = vmatprep.mubr.bf16.mxu0 %v2160_v60  ;;  %756 = vmatprep.mubr.bf16.mxu1 %v2160_v60  ;;  %v624_v6 = vld [vmem:[#allocation2] sm:$0x3]  ;;  %vm679_vm0 = vcmask 261120   ;;  %v2161_v7 = vmov 1983009808  }
  0x9a   : > { %1834 = vset.pattern.permute.xlu0 %v2160_v60  ;;  %s593_s11 = scalar_lea.vmem [#allocation4], %s1482_s8  ;;  %v780_v8 = vunpack.c.l.s4 %v2161_v7  ;;  %v783_v14 = vshrl.u32 %v782_v9, 7  ;;  %s1483_s26 = sshll.u32 %s591_s10, 3 }
  0x9b   : > { %v1835_v61 = vld [vmem:[%s593_s11 + $0x24] ss:$16 sps:$4 sm:$0xff]   ;;  %v1837_v62 = vld [vmem:[%s593_s11 + $0x2c] ss:$16 sps:$4 sm:$0xff]   ;;  %v1839_v63 = vld [vmem:[%s593_s11 + $0x20] ss:$16 sps:$4 sm:$0xff]   ;;  %636 = vperm.xlu0 %1834, %v633_v5  }
  0x9c   : > { %695 = vmatprep.subr.bf16.mxu0 %v1835_v61  ;;  %v1840_v0 = vld [vmem:[%s593_s11 + $0x28] ss:$16 sps:$4 sm:$0xff]   ;;  %736 = vmatprep.subr.bf16.mxu1 %v1837_v62  ;;  %v1841_v1 = vld [vmem:[%s593_s11 + $0x4] ss:$16 sps:$4 sm:$0xff]   ;;  %v1843_v2 = vld [vmem:[%s593_s11 + $0xc] ss:$16 sps:$4 sm:$0xff]   ;;  %v781_v13 = vunpack.c.0.s8 %v780_v8 }
  0x9d   : > { %696 = vmatpush1.bf16.msra.mxu0 %v1839_v63  ;;  %737 = vmatpush1.bf16.msra.mxu1 %v1840_v0  ;;  %v1845_v3 = vld [vmem:[%s593_s11] ss:$16 sps:$4 sm:$0xff]   ;;  %v1846_v4 = vld [vmem:[%s593_s11 + $0x8] ss:$16 sps:$4 sm:$0xff]   ;;  %s2534_s20 = scalar_lea.vmem [#allocation5], %s1483_s26   ;;  %p2977_p8 = scmp.ne.s32.totalorder %s2964_s21, 0 }
  0x9e   : > { %697 = vmatprep.subr.bf16.mxu0 %v1841_v1  ;;  %738 = vmatprep.subr.bf16.mxu1 %v1843_v2  ;;  %v784_v21 = vsub.s32 %v781_v13, %v783_v14  ;;  %s1497_s14 = sshll.u32 (%p2977_p8), %s2200_s15, 2  ;;  %s1532_s18 = sshll.u32 (%p2977_p8), %s2200_s15, 3 }
  0x9f   : > { %s804_s23 = ssub.s32 (%p2977_p8), 13, %s1497_s14  ;;  %s2544_s12 = scalar_lea.vmem (%p2977_p8), %s2962_s3, %s1532_s18  }
  0xa0   : > { %p805_p9 = scmp.lt.s32.totalorder (%p2977_p8), %s804_s23, 4 }
  0xa1   : > { %698 = vmatpush1.bf16.msra.mxu0 %v1845_v3  ;;  %739 = vmatpush1.bf16.msra.mxu1 %v1846_v4 }
  0xa4   : > { %1492 = vmatmul.mubr.msk.bf16.vlgmr.msra.gmra.mxu0 %vm679_vm0, %v624_v6  ;;  %1493 = vmatmul.mubr.msk.bf16.vlgmr.msra.gmra.mxu1 %vm679_vm0, %v624_v6 }
 0x116   : > { %v637_v10 = vpop.permute.xlu0 %636 }
 0x164   : > { %v717_v11 = vpop.f32.mrf.mxu0  ;;  %v758_v12 = vpop.f32.mrf.mxu1 }
 0x165   : > { %v718_v15 = vadd.f32 %v717_v11, %v637_v10  ;;  %v759_v16 = vadd.f32 %v758_v12, %v637_v10 }
 0x166   : > { %v719_v17 = vpop.f32.mrf.mxu0  ;;  %v760_v18 = vpop.f32.mrf.mxu1 }
 0x167   : > { %v720_v19 = vadd.f32 %v719_v17, %v637_v10  ;;  %v761_v20 = vadd.f32 %v760_v18, %v637_v10  ;;  %v765_v24 = vmax.f32 %v718_v15, 0.0  ;;  %v767_v25 = vmax.f32 %v759_v16, 0.0 }
 0x168   : > { %v721_v22 = vpop.f32.mrf.mxu0  ;;  %v762_v23 = vpop.f32.mrf.mxu1 }
 0x169   : > { %v766_v26 = vmax.f32 %v720_v19, 0.0  ;;  %v768_v27 = vmax.f32 %v761_v20, 0.0 }
 0x16a   : > { %v722_v28 = vpop.f32.mrf.mxu0  ;;  %v763_v29 = vpop.f32.mrf.mxu1 }
 0x16b   : > { %v1494_v30 = vpack.c.bf16 %v766_v26, %v765_v24  ;;  %v1495_v31 = vpack.c.bf16 %v768_v27, %v767_v25 }
 0x16d   : > { %v785_v32 = vrot.slane %v1494_v30, %v784_v21  ;;  %v792_v33 = vrot.slane %v1495_v31, %v784_v21  ;;  %802 = sbr.rel (!%p2977_p8) target bundleno = 516 (0x204), region = 106 }
 0x16f   : > { %v793_v34 = vcombine.low %v785_v32, %v792_v33 }
 0x171   : > { %795 = vst [vmem:[%s2534_s20] sm:$0xff] %v793_v34 }
 0x172   : > { %s3002_s23 = smov (!%p805_p9, %s804_s23), 4 }
 0x173   : > { %s1498_s30 = sshll.u32 %s3002_s23, 5  ;;  %s2546_s24 = sshll.u32 %s3002_s23, 1 }
 0x174   : > { %p1502_p0 = scmp.eq.s32.totalorder %s1498_s30, 0 }
 0x175   : > { %p815_p1 = scmp.lt.u32.totalorder (!%p1502_p0), %s2546_s24, 8 }
 0x176   : > { %814 = sbr.rel (%p1502_p0) target bundleno = 516 (0x204), region = 110 }
 0x17b   : > { %818 = sbr.rel (%p815_p1) target bundleno = 507 (0x1fb), region = 114  ;;  %s2550_s21 = sand.u32 (!%p815_p1), 7, %s2546_s24  }
 0x17c   : > { %p835_p2 = scmp.eq.s32.totalorder (!%p815_p1), %s2550_s21, 0  ;;  %p1503_p3 = scmp.ne.s32.totalorder (!%p815_p1), %s2550_s21, 0 }
 0x180   : > { %838 = sbr.rel (%p1503_p3) target bundleno = 443 (0x1bb), region = 129  ;;  %s839_s15 = sshrl.u32 (!%p1503_p3), %s2546_s24, 3 }
 0x181   : > { %s2557_s27 = sshrl.u32 (!%p1503_p3), %s839_s15, 6 }
 0x182   : > { %p1504_p6 = scmp.le.s32.totalorder (!%p1503_p3), %s2557_s27, 0 }
 0x185   : > { %1366 = sbr.rel (%p1504_p6) target bundleno = 427 (0x1ab), region = 278  ;;  %s2978_s4 = smov (!%p1504_p6), %s2544_s12 }
 0x186   : > { %s2979_s5 = smov (!%p1504_p6), %s2534_s20  ;;  %s2566_s6 = smov (!%p1504_p6), 0  }
 0x187   : > { %s2568_s7 = smov (!%p1504_p6), 0  }
 0x18a LB: >> { %v852_v35 = vld [vmem:[%s2099_s5] sm:$0xff]  ;;  %v854_v36 = vld [vmem:[%s2099_s5 + $0x8] sm:$0xff]  ;;  %v856_v37 = vld [vmem:[%s2099_s5 + $0x10] sm:$0xff]  ;;  %s980_s17 = sadd.s32 1, %s2103_s6  ;;  %s846_s7 = sadd.s32 1, %s2107_s7   ;;  %s2107_s7 = sphi %s2568_s7, %s846_s7   ;;  %s2103_s6 = sphi %s2566_s6, %s2982_s6   ;;  %s2099_s5 = sphi %s2979_s5, %s2981_s5   ;;  %s2095_s4 = sphi %s2978_s4, %s2980_s4  }
 0x18b   : >> { %853 = vst [vmem:[%s2095_s4] sm:$0xff] %v852_v35  ;;  %855 = vst [vmem:[%s2095_s4 + $0x8] sm:$0xff] %v854_v36  ;;  %v858_v38 = vld [vmem:[%s2099_s5 + $0x18] sm:$0xff]  ;;  %v860_v39 = vld [vmem:[%s2099_s5 + $0x20] sm:$0xff]  ;;  %p981_p7 = scmp.ge.s32.totalorder %s980_s17, %s2557_s27  ;;  %p845_p10 = scmp.ge.s32.totalorder %s846_s7, %s2557_s27 }
 0x18c   : >> { %857 = vst [vmem:[%s2095_s4 + $0x10] sm:$0xff] %v856_v37  ;;  %v862_v40 = vld [vmem:[%s2099_s5 + $0x28] sm:$0xff]  ;;  %859 = vst [vmem:[%s2095_s4 + $0x18] sm:$0xff] %v858_v38  ;;  %v864_v41 = vld [vmem:[%s2099_s5 + $0x30] sm:$0xff] }
 0x18d   : >> { %861 = vst [vmem:[%s2095_s4 + $0x20] sm:$0xff] %v860_v39  ;;  %863 = vst [vmem:[%s2095_s4 + $0x28] sm:$0xff] %v862_v40  ;;  %v866_v42 = vld [vmem:[%s2099_s5 + $0x38] sm:$0xff]  ;;  %v868_v43 = vld [vmem:[%s2099_s5 + $0x40] sm:$0xff]  ;;  %s3004_s17 = smov (%p981_p7, %s980_s17), 0 }
 0x18e   : >> { %865 = vst [vmem:[%s2095_s4 + $0x30] sm:$0xff] %v864_v41  ;;  %867 = vst [vmem:[%s2095_s4 + $0x38] sm:$0xff] %v866_v42  ;;  %v870_v44 = vld [vmem:[%s2099_s5 + $0x48] sm:$0xff]  ;;  %v872_v45 = vld [vmem:[%s2099_s5 + $0x50] sm:$0xff]  ;;  %s1505_s9 = sshll.u32 %s3004_s17, 9  ;;  %s2982_s6 = smov %s3004_s17 }
 0x18f   : >> { %869 = vst [vmem:[%s2095_s4 + $0x40] sm:$0xff] %v868_v43  ;;  %v874_v46 = vld [vmem:[%s2099_s5 + $0x58] sm:$0xff]  ;;  %871 = vst [vmem:[%s2095_s4 + $0x48] sm:$0xff] %v870_v44  ;;  %v876_v47 = vld [vmem:[%s2099_s5 + $0x60] sm:$0xff]  ;;  %s2624_s10 = scalar_lea.vmem %s2534_s20, %s1505_s9 [#allocation5]   ;;  %s2627_s8 = scalar_lea.vmem %s2544_s12, %s1505_s9  }
 0x190   : >> { %873 = vst [vmem:[%s2095_s4 + $0x50] sm:$0xff] %v872_v45  ;;  %875 = vst [vmem:[%s2095_s4 + $0x58] sm:$0xff] %v874_v46  ;;  %v878_v48 = vld [vmem:[%s2099_s5 + $0x68] sm:$0xff]  ;;  %v880_v49 = vld [vmem:[%s2099_s5 + $0x70] sm:$0xff] }
 0x191   : >> { %877 = vst [vmem:[%s2095_s4 + $0x60] sm:$0xff] %v876_v47  ;;  %879 = vst [vmem:[%s2095_s4 + $0x68] sm:$0xff] %v878_v48  ;;  %v882_v50 = vld [vmem:[%s2099_s5 + $0x78] sm:$0xff]  ;;  %v884_v51 = vld [vmem:[%s2099_s5 + $0x80] sm:$0xff] }
 0x192   : >> { %881 = vst [vmem:[%s2095_s4 + $0x70] sm:$0xff] %v880_v49  ;;  %v886_v52 = vld [vmem:[%s2099_s5 + $0x88] sm:$0xff]  ;;  %883 = vst [vmem:[%s2095_s4 + $0x78] sm:$0xff] %v882_v50  ;;  %v888_v53 = vld [vmem:[%s2099_s5 + $0x90] sm:$0xff] }
 0x193   : >> { %885 = vst [vmem:[%s2095_s4 + $0x80] sm:$0xff] %v884_v51  ;;  %887 = vst [vmem:[%s2095_s4 + $0x88] sm:$0xff] %v886_v52  ;;  %v890_v54 = vld [vmem:[%s2099_s5 + $0x98] sm:$0xff]  ;;  %v892_v55 = vld [vmem:[%s2099_s5 + $0xa0] sm:$0xff] }
 0x194   : >> { %889 = vst [vmem:[%s2095_s4 + $0x90] sm:$0xff] %v888_v53  ;;  %891 = vst [vmem:[%s2095_s4 + $0x98] sm:$0xff] %v890_v54  ;;  %v894_v56 = vld [vmem:[%s2099_s5 + $0xa8] sm:$0xff]  ;;  %v896_v57 = vld [vmem:[%s2099_s5 + $0xb0] sm:$0xff] }
 0x195   : >> { %893 = vst [vmem:[%s2095_s4 + $0xa0] sm:$0xff] %v892_v55  ;;  %v898_v58 = vld [vmem:[%s2099_s5 + $0xb8] sm:$0xff]  ;;  %895 = vst [vmem:[%s2095_s4 + $0xa8] sm:$0xff] %v894_v56  ;;  %v900_v59 = vld [vmem:[%s2099_s5 + $0xc0] sm:$0xff] }
 0x196   : >> { %897 = vst [vmem:[%s2095_s4 + $0xb0] sm:$0xff] %v896_v57  ;;  %899 = vst [vmem:[%s2095_s4 + $0xb8] sm:$0xff] %v898_v58  ;;  %v902_v60 = vld [vmem:[%s2099_s5 + $0xc8] sm:$0xff]  ;;  %v904_v61 = vld [vmem:[%s2099_s5 + $0xd0] sm:$0xff] }
 0x197   : >> { %901 = vst [vmem:[%s2095_s4 + $0xc0] sm:$0xff] %v900_v59  ;;  %903 = vst [vmem:[%s2095_s4 + $0xc8] sm:$0xff] %v902_v60  ;;  %v906_v62 = vld [vmem:[%s2099_s5 + $0xd8] sm:$0xff]  ;;  %v908_v63 = vld [vmem:[%s2099_s5 + $0xe0] sm:$0xff] }
 0x198   : >> { %905 = vst [vmem:[%s2095_s4 + $0xd0] sm:$0xff] %v904_v61  ;;  %v910_v0 = vld [vmem:[%s2099_s5 + $0xe8] sm:$0xff]  ;;  %907 = vst [vmem:[%s2095_s4 + $0xd8] sm:$0xff] %v906_v62  ;;  %v912_v1 = vld [vmem:[%s2099_s5 + $0xf0] sm:$0xff] }
 0x199   : >> { %909 = vst [vmem:[%s2095_s4 + $0xe0] sm:$0xff] %v908_v63  ;;  %911 = vst [vmem:[%s2095_s4 + $0xe8] sm:$0xff] %v910_v0  ;;  %v914_v2 = vld [vmem:[%s2099_s5 + $0xf8] sm:$0xff]  ;;  %v916_v3 = vld [vmem:[%s2099_s5 + $0x100] sm:$0xff] }
 0x19a   : >> { %913 = vst [vmem:[%s2095_s4 + $0xf0] sm:$0xff] %v912_v1  ;;  %915 = vst [vmem:[%s2095_s4 + $0xf8] sm:$0xff] %v914_v2  ;;  %v918_v4 = vld [vmem:[%s2099_s5 + $0x108] sm:$0xff]  ;;  %v920_v5 = vld [vmem:[%s2099_s5 + $0x110] sm:$0xff] }
 0x19b   : >> { %917 = vst [vmem:[%s2095_s4 + $0x100] sm:$0xff] %v916_v3  ;;  %v922_v6 = vld [vmem:[%s2099_s5 + $0x118] sm:$0xff]  ;;  %919 = vst [vmem:[%s2095_s4 + $0x108] sm:$0xff] %v918_v4  ;;  %v924_v7 = vld [vmem:[%s2099_s5 + $0x120] sm:$0xff] }
 0x19c   : >> { %921 = vst [vmem:[%s2095_s4 + $0x110] sm:$0xff] %v920_v5  ;;  %923 = vst [vmem:[%s2095_s4 + $0x118] sm:$0xff] %v922_v6  ;;  %v926_v8 = vld [vmem:[%s2099_s5 + $0x128] sm:$0xff]  ;;  %v928_v9 = vld [vmem:[%s2099_s5 + $0x130] sm:$0xff] }
 0x19d   : >> { %925 = vst [vmem:[%s2095_s4 + $0x120] sm:$0xff] %v924_v7  ;;  %927 = vst [vmem:[%s2095_s4 + $0x128] sm:$0xff] %v926_v8  ;;  %v930_v10 = vld [vmem:[%s2099_s5 + $0x138] sm:$0xff]  ;;  %v932_v11 = vld [vmem:[%s2099_s5 + $0x140] sm:$0xff] }
 0x19e   : >> { %929 = vst [vmem:[%s2095_s4 + $0x130] sm:$0xff] %v928_v9  ;;  %v934_v12 = vld [vmem:[%s2099_s5 + $0x148] sm:$0xff]  ;;  %931 = vst [vmem:[%s2095_s4 + $0x138] sm:$0xff] %v930_v10  ;;  %v936_v13 = vld [vmem:[%s2099_s5 + $0x150] sm:$0xff] }
 0x19f   : >> { %933 = vst [vmem:[%s2095_s4 + $0x140] sm:$0xff] %v932_v11  ;;  %935 = vst [vmem:[%s2095_s4 + $0x148] sm:$0xff] %v934_v12  ;;  %v938_v14 = vld [vmem:[%s2099_s5 + $0x158] sm:$0xff]  ;;  %v940_v15 = vld [vmem:[%s2099_s5 + $0x160] sm:$0xff] }
 0x1a0   : >> { %937 = vst [vmem:[%s2095_s4 + $0x150] sm:$0xff] %v936_v13  ;;  %939 = vst [vmem:[%s2095_s4 + $0x158] sm:$0xff] %v938_v14  ;;  %v942_v16 = vld [vmem:[%s2099_s5 + $0x168] sm:$0xff]  ;;  %v944_v17 = vld [vmem:[%s2099_s5 + $0x170] sm:$0xff] }
 0x1a1   : >> { %941 = vst [vmem:[%s2095_s4 + $0x160] sm:$0xff] %v940_v15  ;;  %v946_v18 = vld [vmem:[%s2099_s5 + $0x178] sm:$0xff]  ;;  %943 = vst [vmem:[%s2095_s4 + $0x168] sm:$0xff] %v942_v16  ;;  %v948_v19 = vld [vmem:[%s2099_s5 + $0x180] sm:$0xff] }
 0x1a2   : >> { %945 = vst [vmem:[%s2095_s4 + $0x170] sm:$0xff] %v944_v17  ;;  %947 = vst [vmem:[%s2095_s4 + $0x178] sm:$0xff] %v946_v18  ;;  %v950_v20 = vld [vmem:[%s2099_s5 + $0x188] sm:$0xff]  ;;  %v952_v21 = vld [vmem:[%s2099_s5 + $0x190] sm:$0xff] }
 0x1a3   : >> { %949 = vst [vmem:[%s2095_s4 + $0x180] sm:$0xff] %v948_v19  ;;  %951 = vst [vmem:[%s2095_s4 + $0x188] sm:$0xff] %v950_v20  ;;  %v954_v22 = vld [vmem:[%s2099_s5 + $0x198] sm:$0xff]  ;;  %v956_v23 = vld [vmem:[%s2099_s5 + $0x1a0] sm:$0xff] }
 0x1a4   : >> { %953 = vst [vmem:[%s2095_s4 + $0x190] sm:$0xff] %v952_v21  ;;  %v958_v24 = vld [vmem:[%s2099_s5 + $0x1a8] sm:$0xff]  ;;  %955 = vst [vmem:[%s2095_s4 + $0x198] sm:$0xff] %v954_v22  ;;  %v960_v25 = vld [vmem:[%s2099_s5 + $0x1b0] sm:$0xff] }
 0x1a5   : >> { %957 = vst [vmem:[%s2095_s4 + $0x1a0] sm:$0xff] %v956_v23  ;;  %959 = vst [vmem:[%s2095_s4 + $0x1a8] sm:$0xff] %v958_v24  ;;  %v962_v26 = vld [vmem:[%s2099_s5 + $0x1b8] sm:$0xff]  ;;  %v964_v27 = vld [vmem:[%s2099_s5 + $0x1c0] sm:$0xff] }
 0x1a6   : >> { %961 = vst [vmem:[%s2095_s4 + $0x1b0] sm:$0xff] %v960_v25  ;;  %963 = vst [vmem:[%s2095_s4 + $0x1b8] sm:$0xff] %v962_v26  ;;  %v966_v28 = vld [vmem:[%s2099_s5 + $0x1c8] sm:$0xff]  ;;  %v968_v29 = vld [vmem:[%s2099_s5 + $0x1d0] sm:$0xff]  ;;  %848 = sbr.rel (!%p845_p10) target bundleno = 394 (0x18a), region = 284 }
 0x1a7   : >> { %965 = vst [vmem:[%s2095_s4 + $0x1c0] sm:$0xff] %v964_v27  ;;  %v970_v30 = vld [vmem:[%s2099_s5 + $0x1d8] sm:$0xff]  ;;  %967 = vst [vmem:[%s2095_s4 + $0x1c8] sm:$0xff] %v966_v28  ;;  %v972_v31 = vld [vmem:[%s2099_s5 + $0x1e0] sm:$0xff] }
 0x1a8   : >> { %969 = vst [vmem:[%s2095_s4 + $0x1d0] sm:$0xff] %v968_v29  ;;  %971 = vst [vmem:[%s2095_s4 + $0x1d8] sm:$0xff] %v970_v30  ;;  %v974_v32 = vld [vmem:[%s2099_s5 + $0x1e8] sm:$0xff]  ;;  %v976_v33 = vld [vmem:[%s2099_s5 + $0x1f0] sm:$0xff] }
 0x1a9   : >> { %973 = vst [vmem:[%s2095_s4 + $0x1e0] sm:$0xff] %v972_v31  ;;  %975 = vst [vmem:[%s2095_s4 + $0x1e8] sm:$0xff] %v974_v32  ;;  %v978_v34 = vld [vmem:[%s2099_s5 + $0x1f8] sm:$0xff]  ;;  %s2981_s5 = smov %s2624_s10 }
 0x1aa   : >> { %977 = vst [vmem:[%s2095_s4 + $0x1f0] sm:$0xff] %v976_v33  ;;  %979 = vst [vmem:[%s2095_s4 + $0x1f8] sm:$0xff] %v978_v34  ;;  %s2980_s4 = smov %s2627_s8 }
 0x1ab PF: > { %s2733_s11 = sand.u32 63, %s839_s15   ;;  %s1533_s22 = sshll.u32 %s2557_s27, 13 }
 0x1ac   : > { %s991_s25 = sshra.s32 %s1533_s22, 4  ;;  %p1510_p4 = scmp.le.s32.totalorder %s2733_s11, 0 }
 0x1ad   : > { %s992_s26 = scalar_lea.vmem %s2534_s20, %s991_s25 [#allocation5]   ;;  %s995_s14 = scalar_lea.vmem %s2544_s12, %s991_s25  }
 0x1ae   : > { %1380 = sbr.rel (%p1510_p4) target bundleno = 443 (0x1bb), region = 289  ;;  %s2109_s18 = smov (!%p1510_p4), %s995_s14  }
 0x1af   : > { %s2113_s23 = smov (!%p1510_p4), %s992_s26   ;;  %s2117_s28 = smov (!%p1510_p4), 0  }
 0x1b0   : > { %s2121_s29 = smov (!%p1510_p4), 0  }
 0x1b3 LB: >> { %v1007_v35 = vld [vmem:[%s2115_s23] sm:$0xff]  ;;  %s1009_s30 = sadd.s32 1, %s2119_s28  ;;  %s1001_s29 = sadd.s32 1, %s2123_s29   ;;  %s2123_s29 = sphi %s2121_s29, %s1001_s29   ;;  %s2119_s28 = sphi %s2117_s28, %s2118_s28   ;;  %s2115_s23 = sphi %s2113_s23, %s1014_s23   ;;  %s2111_s18 = sphi %s2109_s18, %s1015_s18  }
 0x1b4   : >> { %1008 = vst [vmem:[%s2111_s18] sm:$0xff] %v1007_v35  ;;  %p1010_p5 = scmp.ge.s32.totalorder %s1009_s30, %s2733_s11  ;;  %p1000_p11 = scmp.ge.s32.totalorder %s1001_s29, %s2733_s11 }
 0x1b6   : >> { %s3006_s30 = smov (%p1010_p5, %s1009_s30), 0  ;;  %1003 = sbr.rel (!%p1000_p11) target bundleno = 435 (0x1b3), region = 295 }
 0x1b7   : >> { %s1511_s15 = sshll.u32 %s3006_s30, 3  ;;  %s2118_s28 = smov %s3006_s30  }
 0x1b8   : >> { %s1014_s23 = scalar_lea.vmem %s992_s26, %s1511_s15 [#allocation5]   ;;  %s1015_s18 = scalar_lea.vmem %s995_s14, %s1511_s15  }
 0x1bb PF: > { %1018 = sbr.rel (%p835_p2) target bundleno = 507 (0x1fb), region = 147  ;;  %s2745_s27 = ssub.s32 (!%p835_p2), %s2546_s24, %s2550_s21 }
 0x1bc   : > { %s1024_s4 = sshrl.u32 (!%p835_p2), %s2546_s24, 3  ;;  %s1021_s5 = scalar_lea.vmem (!%p835_p2), %s2534_s20, %s2745_s27 [#allocation5] }
 0x1bd   : > { %s1023_s6 = scalar_lea.vmem (!%p835_p2), %s2544_s12, %s2745_s27  ;;  %s2754_s7 = sshrl.u32 (!%p835_p2), %s1024_s4, 6 }
 0x1be   : > { %p1513_p12 = scmp.le.s32.totalorder (!%p835_p2), %s2754_s7, 0 }
 0x1c0   : > { %1394 = sbr.rel (%p1513_p12) target bundleno = 486 (0x1e6), region = 300  ;;  %s2983_s17 = smov (!%p1513_p12), %s2544_s12 }
 0x1c1   : > { %s2984_s9 = smov (!%p1513_p12), %s2534_s20  ;;  %s2763_s10 = smov (!%p1513_p12), 0  }
 0x1c2   : > { %s2765_s8 = smov (!%p1513_p12), 0  }
 0x1c5 LB: >> { %v1037_v36 = vld [vmem:[%s2131_s9] sm:$0xff]  ;;  %v1039_v37 = vld [vmem:[%s2131_s9 + $0x8] sm:$0xff]  ;;  %v1041_v38 = vld [vmem:[%s2131_s9 + $0x10] sm:$0xff]  ;;  %s1165_s11 = sadd.s32 1, %s2135_s10  ;;  %s1031_s8 = sadd.s32 1, %s2139_s8   ;;  %s2139_s8 = sphi %s2765_s8, %s1031_s8   ;;  %s2135_s10 = sphi %s2763_s10, %s2987_s10   ;;  %s2131_s9 = sphi %s2984_s9, %s2986_s9   ;;  %s2127_s17 = sphi %s2983_s17, %s2985_s17  }
 0x1c6   : >> { %1038 = vst [vmem:[%s2127_s17] sm:$0xff] %v1037_v36  ;;  %1040 = vst [vmem:[%s2127_s17 + $0x8] sm:$0xff] %v1039_v37  ;;  %v1043_v39 = vld [vmem:[%s2131_s9 + $0x18] sm:$0xff]  ;;  %v1045_v40 = vld [vmem:[%s2131_s9 + $0x20] sm:$0xff]  ;;  %p1166_p13 = scmp.ge.s32.totalorder %s1165_s11, %s2754_s7  ;;  %p1030_p8 = scmp.ge.s32.totalorder %s1031_s8, %s2754_s7 }
 0x1c7   : >> { %1042 = vst [vmem:[%s2127_s17 + $0x10] sm:$0xff] %v1041_v38  ;;  %v1047_v41 = vld [vmem:[%s2131_s9 + $0x28] sm:$0xff]  ;;  %1044 = vst [vmem:[%s2127_s17 + $0x18] sm:$0xff] %v1043_v39  ;;  %v1049_v42 = vld [vmem:[%s2131_s9 + $0x30] sm:$0xff] }
 0x1c8   : >> { %1046 = vst [vmem:[%s2127_s17 + $0x20] sm:$0xff] %v1045_v40  ;;  %1048 = vst [vmem:[%s2127_s17 + $0x28] sm:$0xff] %v1047_v41  ;;  %v1051_v43 = vld [vmem:[%s2131_s9 + $0x38] sm:$0xff]  ;;  %v1053_v44 = vld [vmem:[%s2131_s9 + $0x40] sm:$0xff]  ;;  %s3008_s11 = smov (%p1166_p13, %s1165_s11), 0 }
 0x1c9   : >> { %1050 = vst [vmem:[%s2127_s17 + $0x30] sm:$0xff] %v1049_v42  ;;  %1052 = vst [vmem:[%s2127_s17 + $0x38] sm:$0xff] %v1051_v43  ;;  %v1055_v45 = vld [vmem:[%s2131_s9 + $0x48] sm:$0xff]  ;;  %v1057_v46 = vld [vmem:[%s2131_s9 + $0x50] sm:$0xff]  ;;  %s1514_s22 = sshll.u32 %s3008_s11, 9  ;;  %s2987_s10 = smov %s3008_s11 }
 0x1ca   : >> { %1054 = vst [vmem:[%s2127_s17 + $0x40] sm:$0xff] %v1053_v44  ;;  %v1059_v47 = vld [vmem:[%s2131_s9 + $0x58] sm:$0xff]  ;;  %1056 = vst [vmem:[%s2127_s17 + $0x48] sm:$0xff] %v1055_v45  ;;  %v1061_v48 = vld [vmem:[%s2131_s9 + $0x60] sm:$0xff]  ;;  %s2821_s25 = scalar_lea.vmem %s2534_s20, %s1514_s22 [#allocation5]   ;;  %s2824_s26 = scalar_lea.vmem %s2544_s12, %s1514_s22  }
 0x1cb   : >> { %1058 = vst [vmem:[%s2127_s17 + $0x50] sm:$0xff] %v1057_v46  ;;  %1060 = vst [vmem:[%s2127_s17 + $0x58] sm:$0xff] %v1059_v47  ;;  %v1063_v49 = vld [vmem:[%s2131_s9 + $0x68] sm:$0xff]  ;;  %v1065_v50 = vld [vmem:[%s2131_s9 + $0x70] sm:$0xff] }
 0x1cc   : >> { %1062 = vst [vmem:[%s2127_s17 + $0x60] sm:$0xff] %v1061_v48  ;;  %1064 = vst [vmem:[%s2127_s17 + $0x68] sm:$0xff] %v1063_v49  ;;  %v1067_v51 = vld [vmem:[%s2131_s9 + $0x78] sm:$0xff]  ;;  %v1069_v52 = vld [vmem:[%s2131_s9 + $0x80] sm:$0xff] }
 0x1cd   : >> { %1066 = vst [vmem:[%s2127_s17 + $0x70] sm:$0xff] %v1065_v50  ;;  %v1071_v53 = vld [vmem:[%s2131_s9 + $0x88] sm:$0xff]  ;;  %1068 = vst [vmem:[%s2127_s17 + $0x78] sm:$0xff] %v1067_v51  ;;  %v1073_v54 = vld [vmem:[%s2131_s9 + $0x90] sm:$0xff] }
 0x1ce   : >> { %1070 = vst [vmem:[%s2127_s17 + $0x80] sm:$0xff] %v1069_v52  ;;  %1072 = vst [vmem:[%s2127_s17 + $0x88] sm:$0xff] %v1071_v53  ;;  %v1075_v55 = vld [vmem:[%s2131_s9 + $0x98] sm:$0xff]  ;;  %v1077_v56 = vld [vmem:[%s2131_s9 + $0xa0] sm:$0xff] }
 0x1cf   : >> { %1074 = vst [vmem:[%s2127_s17 + $0x90] sm:$0xff] %v1073_v54  ;;  %1076 = vst [vmem:[%s2127_s17 + $0x98] sm:$0xff] %v1075_v55  ;;  %v1079_v57 = vld [vmem:[%s2131_s9 + $0xa8] sm:$0xff]  ;;  %v1081_v58 = vld [vmem:[%s2131_s9 + $0xb0] sm:$0xff] }
 0x1d0   : >> { %1078 = vst [vmem:[%s2127_s17 + $0xa0] sm:$0xff] %v1077_v56  ;;  %v1083_v59 = vld [vmem:[%s2131_s9 + $0xb8] sm:$0xff]  ;;  %1080 = vst [vmem:[%s2127_s17 + $0xa8] sm:$0xff] %v1079_v57  ;;  %v1085_v60 = vld [vmem:[%s2131_s9 + $0xc0] sm:$0xff] }
 0x1d1   : >> { %1082 = vst [vmem:[%s2127_s17 + $0xb0] sm:$0xff] %v1081_v58  ;;  %1084 = vst [vmem:[%s2127_s17 + $0xb8] sm:$0xff] %v1083_v59  ;;  %v1087_v61 = vld [vmem:[%s2131_s9 + $0xc8] sm:$0xff]  ;;  %v1089_v62 = vld [vmem:[%s2131_s9 + $0xd0] sm:$0xff] }
 0x1d2   : >> { %1086 = vst [vmem:[%s2127_s17 + $0xc0] sm:$0xff] %v1085_v60  ;;  %1088 = vst [vmem:[%s2127_s17 + $0xc8] sm:$0xff] %v1087_v61  ;;  %v1091_v63 = vld [vmem:[%s2131_s9 + $0xd8] sm:$0xff]  ;;  %v1093_v0 = vld [vmem:[%s2131_s9 + $0xe0] sm:$0xff] }
 0x1d3   : >> { %1090 = vst [vmem:[%s2127_s17 + $0xd0] sm:$0xff] %v1089_v62  ;;  %v1095_v1 = vld [vmem:[%s2131_s9 + $0xe8] sm:$0xff]  ;;  %1092 = vst [vmem:[%s2127_s17 + $0xd8] sm:$0xff] %v1091_v63  ;;  %v1097_v2 = vld [vmem:[%s2131_s9 + $0xf0] sm:$0xff] }
 0x1d4   : >> { %1094 = vst [vmem:[%s2127_s17 + $0xe0] sm:$0xff] %v1093_v0  ;;  %1096 = vst [vmem:[%s2127_s17 + $0xe8] sm:$0xff] %v1095_v1  ;;  %v1099_v3 = vld [vmem:[%s2131_s9 + $0xf8] sm:$0xff]  ;;  %v1101_v4 = vld [vmem:[%s2131_s9 + $0x100] sm:$0xff] }
 0x1d5   : >> { %1098 = vst [vmem:[%s2127_s17 + $0xf0] sm:$0xff] %v1097_v2  ;;  %1100 = vst [vmem:[%s2127_s17 + $0xf8] sm:$0xff] %v1099_v3  ;;  %v1103_v5 = vld [vmem:[%s2131_s9 + $0x108] sm:$0xff]  ;;  %v1105_v6 = vld [vmem:[%s2131_s9 + $0x110] sm:$0xff] }
 0x1d6   : >> { %1102 = vst [vmem:[%s2127_s17 + $0x100] sm:$0xff] %v1101_v4  ;;  %v1107_v7 = vld [vmem:[%s2131_s9 + $0x118] sm:$0xff]  ;;  %1104 = vst [vmem:[%s2127_s17 + $0x108] sm:$0xff] %v1103_v5  ;;  %v1109_v8 = vld [vmem:[%s2131_s9 + $0x120] sm:$0xff] }
 0x1d7   : >> { %1106 = vst [vmem:[%s2127_s17 + $0x110] sm:$0xff] %v1105_v6  ;;  %1108 = vst [vmem:[%s2127_s17 + $0x118] sm:$0xff] %v1107_v7  ;;  %v1111_v9 = vld [vmem:[%s2131_s9 + $0x128] sm:$0xff]  ;;  %v1113_v10 = vld [vmem:[%s2131_s9 + $0x130] sm:$0xff] }
 0x1d8   : >> { %1110 = vst [vmem:[%s2127_s17 + $0x120] sm:$0xff] %v1109_v8  ;;  %1112 = vst [vmem:[%s2127_s17 + $0x128] sm:$0xff] %v1111_v9  ;;  %v1115_v11 = vld [vmem:[%s2131_s9 + $0x138] sm:$0xff]  ;;  %v1117_v12 = vld [vmem:[%s2131_s9 + $0x140] sm:$0xff] }
 0x1d9   : >> { %1114 = vst [vmem:[%s2127_s17 + $0x130] sm:$0xff] %v1113_v10  ;;  %v1119_v13 = vld [vmem:[%s2131_s9 + $0x148] sm:$0xff]  ;;  %1116 = vst [vmem:[%s2127_s17 + $0x138] sm:$0xff] %v1115_v11  ;;  %v1121_v14 = vld [vmem:[%s2131_s9 + $0x150] sm:$0xff] }
 0x1da   : >> { %1118 = vst [vmem:[%s2127_s17 + $0x140] sm:$0xff] %v1117_v12  ;;  %1120 = vst [vmem:[%s2127_s17 + $0x148] sm:$0xff] %v1119_v13  ;;  %v1123_v15 = vld [vmem:[%s2131_s9 + $0x158] sm:$0xff]  ;;  %v1125_v16 = vld [vmem:[%s2131_s9 + $0x160] sm:$0xff] }
 0x1db   : >> { %1122 = vst [vmem:[%s2127_s17 + $0x150] sm:$0xff] %v1121_v14  ;;  %1124 = vst [vmem:[%s2127_s17 + $0x158] sm:$0xff] %v1123_v15  ;;  %v1127_v17 = vld [vmem:[%s2131_s9 + $0x168] sm:$0xff]  ;;  %v1129_v18 = vld [vmem:[%s2131_s9 + $0x170] sm:$0xff] }
 0x1dc   : >> { %1126 = vst [vmem:[%s2127_s17 + $0x160] sm:$0xff] %v1125_v16  ;;  %v1131_v19 = vld [vmem:[%s2131_s9 + $0x178] sm:$0xff]  ;;  %1128 = vst [vmem:[%s2127_s17 + $0x168] sm:$0xff] %v1127_v17  ;;  %v1133_v20 = vld [vmem:[%s2131_s9 + $0x180] sm:$0xff] }
 0x1dd   : >> { %1130 = vst [vmem:[%s2127_s17 + $0x170] sm:$0xff] %v1129_v18  ;;  %1132 = vst [vmem:[%s2127_s17 + $0x178] sm:$0xff] %v1131_v19  ;;  %v1135_v21 = vld [vmem:[%s2131_s9 + $0x188] sm:$0xff]  ;;  %v1137_v22 = vld [vmem:[%s2131_s9 + $0x190] sm:$0xff] }
 0x1de   : >> { %1134 = vst [vmem:[%s2127_s17 + $0x180] sm:$0xff] %v1133_v20  ;;  %1136 = vst [vmem:[%s2127_s17 + $0x188] sm:$0xff] %v1135_v21  ;;  %v1139_v23 = vld [vmem:[%s2131_s9 + $0x198] sm:$0xff]  ;;  %v1141_v24 = vld [vmem:[%s2131_s9 + $0x1a0] sm:$0xff] }
 0x1df   : >> { %1138 = vst [vmem:[%s2127_s17 + $0x190] sm:$0xff] %v1137_v22  ;;  %v1143_v25 = vld [vmem:[%s2131_s9 + $0x1a8] sm:$0xff]  ;;  %1140 = vst [vmem:[%s2127_s17 + $0x198] sm:$0xff] %v1139_v23  ;;  %v1145_v26 = vld [vmem:[%s2131_s9 + $0x1b0] sm:$0xff] }
 0x1e0   : >> { %1142 = vst [vmem:[%s2127_s17 + $0x1a0] sm:$0xff] %v1141_v24  ;;  %1144 = vst [vmem:[%s2127_s17 + $0x1a8] sm:$0xff] %v1143_v25  ;;  %v1147_v27 = vld [vmem:[%s2131_s9 + $0x1b8] sm:$0xff]  ;;  %v1149_v28 = vld [vmem:[%s2131_s9 + $0x1c0] sm:$0xff] }
 0x1e1   : >> { %1146 = vst [vmem:[%s2127_s17 + $0x1b0] sm:$0xff] %v1145_v26  ;;  %1148 = vst [vmem:[%s2127_s17 + $0x1b8] sm:$0xff] %v1147_v27  ;;  %v1151_v29 = vld [vmem:[%s2131_s9 + $0x1c8] sm:$0xff]  ;;  %v1153_v30 = vld [vmem:[%s2131_s9 + $0x1d0] sm:$0xff]  ;;  %1033 = sbr.rel (!%p1030_p8) target bundleno = 453 (0x1c5), region = 306 }
 0x1e2   : >> { %1150 = vst [vmem:[%s2127_s17 + $0x1c0] sm:$0xff] %v1149_v28  ;;  %v1155_v31 = vld [vmem:[%s2131_s9 + $0x1d8] sm:$0xff]  ;;  %1152 = vst [vmem:[%s2127_s17 + $0x1c8] sm:$0xff] %v1151_v29  ;;  %v1157_v32 = vld [vmem:[%s2131_s9 + $0x1e0] sm:$0xff] }
 0x1e3   : >> { %1154 = vst [vmem:[%s2127_s17 + $0x1d0] sm:$0xff] %v1153_v30  ;;  %1156 = vst [vmem:[%s2127_s17 + $0x1d8] sm:$0xff] %v1155_v31  ;;  %v1159_v33 = vld [vmem:[%s2131_s9 + $0x1e8] sm:$0xff]  ;;  %v1161_v34 = vld [vmem:[%s2131_s9 + $0x1f0] sm:$0xff] }
 0x1e4   : >> { %1158 = vst [vmem:[%s2127_s17 + $0x1e0] sm:$0xff] %v1157_v32  ;;  %1160 = vst [vmem:[%s2127_s17 + $0x1e8] sm:$0xff] %v1159_v33  ;;  %v1163_v35 = vld [vmem:[%s2131_s9 + $0x1f8] sm:$0xff]  ;;  %s2986_s9 = smov %s2821_s25 }
 0x1e5   : >> { %1162 = vst [vmem:[%s2127_s17 + $0x1f0] sm:$0xff] %v1161_v34  ;;  %1164 = vst [vmem:[%s2127_s17 + $0x1f8] sm:$0xff] %v1163_v35  ;;  %s2985_s17 = smov %s2824_s26 }
 0x1e6 PF: > { %s2930_s14 = sand.u32 63, %s1024_s4   ;;  %s1535_s18 = sshll.u32 %s2754_s7, 13 }
 0x1e7   : > { %s1176_s23 = sshra.s32 %s1535_s18, 4  ;;  %p1519_p9 = scmp.le.s32.totalorder %s2930_s14, 0 }
 0x1e8   : > { %s1177_s28 = scalar_lea.vmem %s2534_s20, %s1176_s23 [#allocation5]   ;;  %s1180_s29 = scalar_lea.vmem %s2544_s12, %s1176_s23  }
 0x1e9   : > { %1408 = sbr.rel (%p1519_p9) target bundleno = 502 (0x1f6), region = 311  ;;  %s2141_s30 = smov (!%p1519_p9), %s1180_s29  }
 0x1ea   : > { %s2145_s15 = smov (!%p1519_p9), %s1177_s28   ;;  %s2149_s11 = smov (!%p1519_p9), 0  }
 0x1eb   : > { %s2153_s8 = smov (!%p1519_p9), 0  }
 0x1ee LB: >> { %v1192_v36 = vld [vmem:[%s2147_s15] sm:$0xff]  ;;  %s1194_s4 = sadd.s32 1, %s2151_s11  ;;  %s1186_s8 = sadd.s32 1, %s2155_s8   ;;  %s2155_s8 = sphi %s2153_s8, %s1186_s8   ;;  %s2151_s11 = sphi %s2149_s11, %s2150_s11   ;;  %s2147_s15 = sphi %s2145_s15, %s1199_s15   ;;  %s2143_s30 = sphi %s2141_s30, %s1200_s30  }
 0x1ef   : >> { %1193 = vst [vmem:[%s2143_s30] sm:$0xff] %v1192_v36  ;;  %p1195_p0 = scmp.ge.s32.totalorder %s1194_s4, %s2930_s14  ;;  %p1185_p1 = scmp.ge.s32.totalorder %s1186_s8, %s2930_s14 }
 0x1f1   : >> { %s3010_s4 = smov (%p1195_p0, %s1194_s4), 0  ;;  %1188 = sbr.rel (!%p1185_p1) target bundleno = 494 (0x1ee), region = 317 }
 0x1f2   : >> { %s1520_s7 = sshll.u32 %s3010_s4, 3  ;;  %s2150_s11 = smov %s3010_s4  }
 0x1f3   : >> { %s1199_s15 = scalar_lea.vmem %s1177_s28, %s1520_s7 [#allocation5]   ;;  %s1200_s30 = scalar_lea.vmem %s1180_s29, %s1520_s7  }
 0x1f6 PF: > { %s2162_s17 = smov 1  }
 0x1f7   : > { %s1201_s9 = sshll.u32 %s2162_s17, %s2550_s21 }
 0x1f8   : > { %s1522_s10 = sadd.s32 4294967295, %s1201_s9 }
 0x1f9   : > { %v1211_v37 = vld [vmem:[%s1021_s5] sm:%s1522_s10] }
 0x1fa   : > { %1212 = vst [vmem:[%s1023_s6] sm:%s1522_s10] %v1211_v37 }
 0x1fb PF: > { %p1523_p2 = scmp.ge.u32.totalorder %s2546_s24, 8 }
 0x1fc   : > { %s2163_s22 = smov (!%p1523_p2), 1  }
 0x1fd   : > { %821 = sbr.rel (%p1523_p2) target bundleno = 516 (0x204), region = 118  ;;  %s822_s25 = sshll.u32 (!%p1523_p2), %s2163_s22, %s2546_s24 }
 0x1fe   : > { %s1524_s26 = sadd.s32 (!%p1523_p2), 4294967295, %s822_s25 }
 0x202   : > { %v832_v38 = vld [vmem:[%s2534_s20] sm:%s1524_s26] }
 0x203   : > { %833 = vst [vmem:[%s2544_s12] sm:%s1524_s26] %v832_v38 }
 0x204 PF: > { %p11_p3 = scmp.ge.s32.totalorder %s2203_s16, 6   ;;  %s2988_s12 = smov %s2023_s13 }
 0x205   : > { %s2989_s13 = smov %s2213_s19  ;;  %s2990_s14 = smov %s2203_s16 }
 0x206   :  { %13 = sbr.rel (!%p11_p3) target bundleno = 2 (0x2), region = 328 }
 0x20b   :  { %1226 = vsyncpa [#allocation3], 1 }
 0x20c   :  { %1228 = vsyncpa [#allocation3 + $0x1], 1 }

// kernel: generator_forward.6
= control target key start
LH: loop header
LB: loop body
LE: loop exit
PB: predicated region body
PF: predicated region fallthrough
CT: control target
= control target key end

     0   :  { %s2497_s12 = smov 0   ;;  %s2499_s13 = smov 0   ;;  %s3607_s0 = inlined_call_operand.vmem [shape: bf16[8,144], index: 0, kind: input, shape index: {}]   ;;  %s3608_s1 = inlined_call_operand.vmem [shape: bf16[144,1682], index: 1, kind: input, shape index: {}]   ;;  %s3609_s2 = inlined_call_operand.vmem [shape: f32[8,1], index: 2, kind: input, shape index: {}]   ;;  %s3610_s3 = inlined_call_operand.vmem [shape: bf16[8,1682], index: 3, kind: output, shape index: {}]  }
   0x1   :  { %s2501_s14 = smov 0  }
   0x2 LB: > { %s2513_s15 = sadd.s32 4294967295, %s2342_s14   ;;  %s2516_s16 = sadd.s32 1, %s2342_s14   ;;  %s2342_s14 = sphi %s2501_s14, %s3640_s14   ;;  %s2338_s13 = sphi %s2499_s13, %s3639_s13   ;;  %s2334_s12 = sphi %s2497_s12, %s3638_s12  }
   0x3   : > { %s38_s17 = ssub.s32 %s2342_s14, %s2516_s16  ;;  %s41_s18 = sadd.s32 1, %s2338_s13 }
   0x4   : > { %p39_p0 = scmp.eq.s32.totalorder %s38_s17, 0  ;;  %p48_p1 = scmp.ne.s32.totalorder %s2338_s13, %s2334_s12 }
   0x5   : > { %p49_p2 = scmp.eq.s32.totalorder %s2342_s14, 0  ;;  %p99_p3 = scmp.eq.s32.totalorder %s2513_s15, 3 }
   0x6   : > { %s2526_s19 = scalar_select %p39_p0, %s2338_s13, %s41_s18  }
   0x7   : > { %p50_p4 = por %p49_p2, %p48_p1  ;;  %p2528_p5 = por %p99_p3, %p48_p1 }
   0x8   : > { %p1733_p6 = scmp.ge.s32.totalorder %s2342_s14, 4 }
   0xa   : > { %127 = sbr.rel (%p1733_p6) target bundleno = 177 (0xb1), region = 24 }
   0xf   : > { %130 = sbr.rel (!%p50_p4) target bundleno = 177 (0xb1), region = 28  ;;  %s132_s21 = sand.u32 (%p50_p4), 1, %s2338_s13  }
  0x10   : > { %s1734_s22 = sshll.u32 (%p50_p4), %s2342_s14, 2  ;;  %s1848_s23 = smul.u32 (%p50_p4), 288, %s132_s21 }
  0x11   : > { %s136_s24 = ssub.s32 (%p50_p4), 14, %s1734_s22  ;;  %s1836_s25 = sshll.u32 (%p50_p4), %s2342_s14, 4 }
  0x12   : > { %p137_p7 = scmp.lt.s32.totalorder (%p50_p4), %s136_s24, 4  ;;  %s2539_s28 = scalar_lea.vmem (%p50_p4), %s3608_s1, %s1836_s25  }
  0x13   : > { %s2543_s4 = scalar_lea.vmem (%p50_p4), [#allocation2], %s1848_s23  }
  0x14   : > { %s3642_s24 = smov (!%p137_p7, %s136_s24), 4 }
  0x15   : > { %s139_s29 = smul.u32 1152, %s3642_s24  ;;  %s2541_s30 = sshll.u32 %s3642_s24, 2 }
  0x17   : > { %p1738_p8 = scmp.eq.s32.totalorder %s139_s29, 0 }
  0x18   : > { %p147_p9 = scmp.lt.u32.totalorder (!%p1738_p8), %s2541_s30, 8 }
  0x19   : > { %146 = sbr.rel (%p1738_p8) target bundleno = 177 (0xb1), region = 32 }
  0x1e   : > { %150 = sbr.rel (%p147_p9) target bundleno = 152 (0x98), region = 36  ;;  %s2547_s5 = sand.u32 (!%p147_p9), 7, %s2541_s30  }
  0x1f   : > { %p201_p10 = scmp.eq.s32.totalorder (!%p147_p9), %s2547_s5, 0  ;;  %p1739_p11 = scmp.ne.s32.totalorder (!%p147_p9), %s2547_s5, 0 }
  0x23   : > { %204 = sbr.rel (%p1739_p11) target bundleno = 83 (0x53), region = 51  ;;  %s205_s6 = sshrl.u32 (!%p1739_p11), %s2541_s30, 3 }
  0x24   : > { %s2554_s7 = sshrl.u32 (!%p1739_p11), %s205_s6, 2 }
  0x25   : > { %p1740_p12 = scmp.le.s32.totalorder (!%p1739_p11), %s2554_s7, 0 }
  0x28   : > { %1603 = sbr.rel (%p1740_p12) target bundleno = 65 (0x41), region = 229  ;;  %s3612_s8 = smov (!%p1740_p12), %s2543_s4 }
  0x29   : > { %s3613_s9 = smov (!%p1740_p12), %s2539_s28  ;;  %s2563_s10 = smov (!%p1740_p12), 0  }
  0x2a   : > { %s2565_s11 = smov (!%p1740_p12), 0  }
  0x2d LB: >> { %v218_v0 = vld [vmem:[%s2350_s9] sm:$0xff]  ;;  %v220_v1 = vld [vmem:[%s2350_s9 + $0x8] sm:$0xff]  ;;  %v226_v2 = vld [vmem:[%s2350_s9 + $0x38] sm:$0xff]  ;;  %s362_s17 = sadd.s32 1, %s2354_s10  ;;  %s212_s11 = sadd.s32 1, %s2358_s11   ;;  %s2358_s11 = sphi %s2565_s11, %s212_s11   ;;  %s2354_s10 = sphi %s2563_s10, %s3616_s10   ;;  %s2350_s9 = sphi %s3613_s9, %s3615_s9   ;;  %s2346_s8 = sphi %s3612_s8, %s3614_s8  }
  0x2e   : >> { %219 = vst [vmem:[%s2346_s8] sm:$0xff] %v218_v0  ;;  %221 = vst [vmem:[%s2346_s8 + $0x8] sm:$0xff] %v220_v1  ;;  %v228_v3 = vld [vmem:[%s2350_s9 + $0x40] sm:$0xff]  ;;  %v234_v4 = vld [vmem:[%s2350_s9 + $0x70] sm:$0xff]  ;;  %p363_p13 = scmp.ge.s32.totalorder %s362_s17, %s2554_s7  ;;  %p211_p0 = scmp.ge.s32.totalorder %s212_s11, %s2554_s7 }
  0x2f   : >> { %227 = vst [vmem:[%s2346_s8 + $0x10] sm:$0xff] %v226_v2  ;;  %v236_v5 = vld [vmem:[%s2350_s9 + $0x78] sm:$0xff]  ;;  %229 = vst [vmem:[%s2346_s8 + $0x18] sm:$0xff] %v228_v3  ;;  %v242_v6 = vld [vmem:[%s2350_s9 + $0xa8] sm:$0xff] }
  0x30   : >> { %235 = vst [vmem:[%s2346_s8 + $0x20] sm:$0xff] %v234_v4  ;;  %237 = vst [vmem:[%s2346_s8 + $0x28] sm:$0xff] %v236_v5  ;;  %v244_v7 = vld [vmem:[%s2350_s9 + $0xb0] sm:$0xff]  ;;  %v250_v8 = vld [vmem:[%s2350_s9 + $0xe0] sm:$0xff]  ;;  %s3644_s17 = smov (%p363_p13, %s362_s17), 0 }
  0x31   : >> { %243 = vst [vmem:[%s2346_s8 + $0x30] sm:$0xff] %v242_v6  ;;  %245 = vst [vmem:[%s2346_s8 + $0x38] sm:$0xff] %v244_v7  ;;  %v252_v9 = vld [vmem:[%s2350_s9 + $0xe8] sm:$0xff]  ;;  %v258_v10 = vld [vmem:[%s2350_s9 + $0x118] sm:$0xff]  ;;  %s1741_s18 = sshll.u32 %s3644_s17, 5  ;;  %s3616_s10 = smov %s3644_s17 }
  0x32   : >> { %251 = vst [vmem:[%s2346_s8 + $0x40] sm:$0xff] %v250_v8  ;;  %v260_v11 = vld [vmem:[%s2350_s9 + $0x120] sm:$0xff]  ;;  %253 = vst [vmem:[%s2346_s8 + $0x48] sm:$0xff] %v252_v9  ;;  %v266_v12 = vld [vmem:[%s2350_s9 + $0x150] sm:$0xff]  ;;  %s2636_s21 = scalar_lea.vmem %s2539_s28, %s1741_s18   ;;  %s368_s22 = scalar_lea.vmem %s2543_s4, %s1741_s18 [#allocation2]  }
  0x33   : >> { %259 = vst [vmem:[%s2346_s8 + $0x50] sm:$0xff] %v258_v10  ;;  %261 = vst [vmem:[%s2346_s8 + $0x58] sm:$0xff] %v260_v11  ;;  %v268_v13 = vld [vmem:[%s2350_s9 + $0x158] sm:$0xff]  ;;  %v274_v14 = vld [vmem:[%s2350_s9 + $0x188] sm:$0xff] }
  0x34   : >> { %267 = vst [vmem:[%s2346_s8 + $0x60] sm:$0xff] %v266_v12  ;;  %269 = vst [vmem:[%s2346_s8 + $0x68] sm:$0xff] %v268_v13  ;;  %v276_v15 = vld [vmem:[%s2350_s9 + $0x190] sm:$0xff]  ;;  %v282_v16 = vld [vmem:[%s2350_s9 + $0x1c0] sm:$0xff] }
  0x35   : >> { %275 = vst [vmem:[%s2346_s8 + $0x70] sm:$0xff] %v274_v14  ;;  %v284_v17 = vld [vmem:[%s2350_s9 + $0x1c8] sm:$0xff]  ;;  %277 = vst [vmem:[%s2346_s8 + $0x78] sm:$0xff] %v276_v15  ;;  %v290_v18 = vld [vmem:[%s2350_s9 + $0x1f8] sm:$0xff] }
  0x36   : >> { %283 = vst [vmem:[%s2346_s8 + $0x80] sm:$0xff] %v282_v16  ;;  %285 = vst [vmem:[%s2346_s8 + $0x88] sm:$0xff] %v284_v17  ;;  %v292_v19 = vld [vmem:[%s2350_s9 + $0x200] sm:$0xff]  ;;  %v298_v20 = vld [vmem:[%s2350_s9 + $0x230] sm:$0xff] }
  0x37   : >> { %291 = vst [vmem:[%s2346_s8 + $0x90] sm:$0xff] %v290_v18  ;;  %293 = vst [vmem:[%s2346_s8 + $0x98] sm:$0xff] %v292_v19  ;;  %v300_v21 = vld [vmem:[%s2350_s9 + $0x238] sm:$0xff]  ;;  %v306_v22 = vld [vmem:[%s2350_s9 + $0x268] sm:$0xff] }
  0x38   : >> { %299 = vst [vmem:[%s2346_s8 + $0xa0] sm:$0xff] %v298_v20  ;;  %v308_v23 = vld [vmem:[%s2350_s9 + $0x270] sm:$0xff]  ;;  %301 = vst [vmem:[%s2346_s8 + $0xa8] sm:$0xff] %v300_v21  ;;  %v314_v24 = vld [vmem:[%s2350_s9 + $0x2a0] sm:$0xff] }
  0x39   : >> { %307 = vst [vmem:[%s2346_s8 + $0xb0] sm:$0xff] %v306_v22  ;;  %309 = vst [vmem:[%s2346_s8 + $0xb8] sm:$0xff] %v308_v23  ;;  %v316_v25 = vld [vmem:[%s2350_s9 + $0x2a8] sm:$0xff]  ;;  %v322_v26 = vld [vmem:[%s2350_s9 + $0x2d8] sm:$0xff] }
  0x3a   : >> { %315 = vst [vmem:[%s2346_s8 + $0xc0] sm:$0xff] %v314_v24  ;;  %317 = vst [vmem:[%s2346_s8 + $0xc8] sm:$0xff] %v316_v25  ;;  %v324_v27 = vld [vmem:[%s2350_s9 + $0x2e0] sm:$0xff]  ;;  %v330_v28 = vld [vmem:[%s2350_s9 + $0x310] sm:$0xff] }
  0x3b   : >> { %323 = vst [vmem:[%s2346_s8 + $0xd0] sm:$0xff] %v322_v26  ;;  %v332_v29 = vld [vmem:[%s2350_s9 + $0x318] sm:$0xff]  ;;  %325 = vst [vmem:[%s2346_s8 + $0xd8] sm:$0xff] %v324_v27  ;;  %v338_v30 = vld [vmem:[%s2350_s9 + $0x348] sm:$0xff] }
  0x3c   : >> { %331 = vst [vmem:[%s2346_s8 + $0xe0] sm:$0xff] %v330_v28  ;;  %333 = vst [vmem:[%s2346_s8 + $0xe8] sm:$0xff] %v332_v29  ;;  %v340_v31 = vld [vmem:[%s2350_s9 + $0x350] sm:$0xff]  ;;  %v346_v32 = vld [vmem:[%s2350_s9 + $0x380] sm:$0xff]  ;;  %214 = sbr.rel (!%p211_p0) target bundleno = 45 (0x2d), region = 235 }
  0x3d   : >> { %339 = vst [vmem:[%s2346_s8 + $0xf0] sm:$0xff] %v338_v30  ;;  %341 = vst [vmem:[%s2346_s8 + $0xf8] sm:$0xff] %v340_v31  ;;  %v348_v33 = vld [vmem:[%s2350_s9 + $0x388] sm:$0xff]  ;;  %v354_v34 = vld [vmem:[%s2350_s9 + $0x3b8] sm:$0xff] }
  0x3e   : >> { %347 = vst [vmem:[%s2346_s8 + $0x100] sm:$0xff] %v346_v32  ;;  %v356_v35 = vld [vmem:[%s2350_s9 + $0x3c0] sm:$0xff]  ;;  %349 = vst [vmem:[%s2346_s8 + $0x108] sm:$0xff] %v348_v33  ;;  %v358_v36 = vld [vmem:[%s2350_s9 + $0x3c8] sm:$0xff] }
  0x3f   : >> { %355 = vst [vmem:[%s2346_s8 + $0x110] sm:$0xff] %v354_v34  ;;  %357 = vst [vmem:[%s2346_s8 + $0x118] sm:$0xff] %v356_v35  ;;  %v360_v37 = vld [vmem:[%s2350_s9 + $0x3d0] sm:$0xff]  ;;  %s3615_s9 = smov %s2636_s21 }
  0x40   : >> { %359 = vst [vmem:[%s2346_s8 + $0x120] sm:$0xff] %v358_v36  ;;  %361 = vst [vmem:[%s2346_s8 + $0x128] sm:$0xff] %v360_v37  ;;  %s3614_s8 = smov %s368_s22 }
  0x41 PF: > { %s2678_s23 = sand.u32 3, %s205_s6   ;;  %s1837_s24 = sshll.u32 %s2554_s7, 9 }
  0x42   : > { %s373_s25 = sshra.s32 %s1837_s24, 4  ;;  %p1746_p1 = scmp.le.s32.totalorder %s2678_s23, 0 }
  0x43   : > { %s2682_s26 = scalar_lea.vmem %s2539_s28, %s373_s25   ;;  %s2685_s27 = scalar_lea.vmem %s2543_s4, %s373_s25 [#allocation2]  }
  0x44   : > { %1617 = sbr.rel (%p1746_p1) target bundleno = 83 (0x53), region = 240  ;;  %s3617_s29 = smov (!%p1746_p1), %s2685_s27 }
  0x45   : > { %s3618_s8 = smov (!%p1746_p1), %s2682_s26  ;;  %s2694_s9 = smov (!%p1746_p1), 0  }
  0x46   : > { %s2696_s10 = smov (!%p1746_p1), 0  }
  0x49 LB: >> { %v389_v38 = vld [vmem:[%s2366_s8] sm:$0xff]  ;;  %v391_v39 = vld [vmem:[%s2366_s8 + $0x38] sm:$0xff]  ;;  %v393_v40 = vld [vmem:[%s2366_s8 + $0x70] sm:$0xff]  ;;  %s425_s6 = sadd.s32 1, %s2370_s9  ;;  %s383_s10 = sadd.s32 1, %s2374_s10   ;;  %s2374_s10 = sphi %s2696_s10, %s383_s10   ;;  %s2370_s9 = sphi %s2694_s9, %s3619_s9   ;;  %s2366_s8 = sphi %s3618_s8, %s430_s8   ;;  %s2362_s29 = sphi %s3617_s29, %s431_s29  }
  0x4a   : >> { %390 = vst [vmem:[%s2362_s29] sm:$0xff] %v389_v38  ;;  %392 = vst [vmem:[%s2362_s29 + $0x10] sm:$0xff] %v391_v39  ;;  %v395_v41 = vld [vmem:[%s2366_s8 + $0xa8] sm:$0xff]  ;;  %v397_v42 = vld [vmem:[%s2366_s8 + $0xe0] sm:$0xff]  ;;  %p426_p2 = scmp.ge.s32.totalorder %s425_s6, %s2678_s23  ;;  %p382_p3 = scmp.ge.s32.totalorder %s383_s10, %s2678_s23 }
  0x4b   : >> { %394 = vst [vmem:[%s2362_s29 + $0x20] sm:$0xff] %v393_v40  ;;  %v399_v43 = vld [vmem:[%s2366_s8 + $0x118] sm:$0xff]  ;;  %396 = vst [vmem:[%s2362_s29 + $0x30] sm:$0xff] %v395_v41  ;;  %v401_v44 = vld [vmem:[%s2366_s8 + $0x150] sm:$0xff] }
  0x4c   : >> { %398 = vst [vmem:[%s2362_s29 + $0x40] sm:$0xff] %v397_v42  ;;  %400 = vst [vmem:[%s2362_s29 + $0x50] sm:$0xff] %v399_v43  ;;  %v403_v45 = vld [vmem:[%s2366_s8 + $0x188] sm:$0xff]  ;;  %v405_v46 = vld [vmem:[%s2366_s8 + $0x1c0] sm:$0xff]  ;;  %s3646_s6 = smov (%p426_p2, %s425_s6), 0 }
  0x4d   : >> { %402 = vst [vmem:[%s2362_s29 + $0x60] sm:$0xff] %v401_v44  ;;  %404 = vst [vmem:[%s2362_s29 + $0x70] sm:$0xff] %v403_v45  ;;  %v407_v47 = vld [vmem:[%s2366_s8 + $0x1f8] sm:$0xff]  ;;  %v409_v48 = vld [vmem:[%s2366_s8 + $0x230] sm:$0xff]  ;;  %s1747_s7 = sshll.u32 %s3646_s6, 3  ;;  %s3619_s9 = smov %s3646_s6 }
  0x4e   : >> { %406 = vst [vmem:[%s2362_s29 + $0x80] sm:$0xff] %v405_v46  ;;  %v411_v49 = vld [vmem:[%s2366_s8 + $0x268] sm:$0xff]  ;;  %408 = vst [vmem:[%s2362_s29 + $0x90] sm:$0xff] %v407_v47  ;;  %v413_v50 = vld [vmem:[%s2366_s8 + $0x2a0] sm:$0xff]  ;;  %385 = sbr.rel (!%p382_p3) target bundleno = 73 (0x49), region = 246 }
  0x4f   : >> { %410 = vst [vmem:[%s2362_s29 + $0xa0] sm:$0xff] %v409_v48  ;;  %412 = vst [vmem:[%s2362_s29 + $0xb0] sm:$0xff] %v411_v49  ;;  %v415_v51 = vld [vmem:[%s2366_s8 + $0x2d8] sm:$0xff]  ;;  %v417_v52 = vld [vmem:[%s2366_s8 + $0x310] sm:$0xff] }
  0x50   : >> { %414 = vst [vmem:[%s2362_s29 + $0xc0] sm:$0xff] %v413_v50  ;;  %416 = vst [vmem:[%s2362_s29 + $0xd0] sm:$0xff] %v415_v51  ;;  %v419_v53 = vld [vmem:[%s2366_s8 + $0x348] sm:$0xff]  ;;  %v421_v54 = vld [vmem:[%s2366_s8 + $0x380] sm:$0xff] }
  0x51   : >> { %418 = vst [vmem:[%s2362_s29 + $0xe0] sm:$0xff] %v417_v52  ;;  %v423_v55 = vld [vmem:[%s2366_s8 + $0x3b8] sm:$0xff]  ;;  %420 = vst [vmem:[%s2362_s29 + $0xf0] sm:$0xff] %v419_v53  ;;  %s430_s8 = scalar_lea.vmem %s2682_s26, %s1747_s7  }
  0x52   : >> { %422 = vst [vmem:[%s2362_s29 + $0x100] sm:$0xff] %v421_v54  ;;  %424 = vst [vmem:[%s2362_s29 + $0x110] sm:$0xff] %v423_v55  ;;  %s431_s29 = scalar_lea.vmem %s2685_s27, %s1747_s7 [#allocation2]  }
  0x53 PF: > { %434 = sbr.rel (%p201_p10) target bundleno = 152 (0x98), region = 69  ;;  %s436_s11 = ssub.s32 (!%p201_p10), %s2541_s30, %s2547_s5 }
  0x54   : > { %s440_s17 = sshrl.u32 (!%p201_p10), %s2541_s30, 3  ;;  %s2763_s18 = scalar_lea.vmem (!%p201_p10), %s2539_s28, %s436_s11 }
  0x55   : > { %s2766_s21 = scalar_lea.vmem (!%p201_p10), %s2543_s4, %s436_s11 [#allocation2]  ;;  %s2770_s22 = sshrl.u32 (!%p201_p10), %s440_s17, 2 }
  0x56   : > { %p1749_p4 = scmp.le.s32.totalorder (!%p201_p10), %s2770_s22, 0 }
  0x58   : > { %1631 = sbr.rel (%p1749_p4) target bundleno = 113 (0x71), region = 251  ;;  %s3620_s23 = smov (!%p1749_p4), %s2543_s4 }
  0x59   : > { %s3621_s24 = smov (!%p1749_p4), %s2539_s28  ;;  %s2779_s25 = smov (!%p1749_p4), 0  }
  0x5a   : > { %s2781_s26 = smov (!%p1749_p4), 0  }
  0x5d LB: >> { %v453_v56 = vld [vmem:[%s2382_s24] sm:$0xff]  ;;  %v455_v57 = vld [vmem:[%s2382_s24 + $0x8] sm:$0xff]  ;;  %v461_v58 = vld [vmem:[%s2382_s24 + $0x38] sm:$0xff]  ;;  %s597_s27 = sadd.s32 1, %s2386_s25  ;;  %s447_s26 = sadd.s32 1, %s2390_s26   ;;  %s2390_s26 = sphi %s2781_s26, %s447_s26   ;;  %s2386_s25 = sphi %s2779_s25, %s3624_s25   ;;  %s2382_s24 = sphi %s3621_s24, %s3623_s24   ;;  %s2378_s23 = sphi %s3620_s23, %s3622_s23  }
  0x5e   : >> { %454 = vst [vmem:[%s2378_s23] sm:$0xff] %v453_v56  ;;  %456 = vst [vmem:[%s2378_s23 + $0x8] sm:$0xff] %v455_v57  ;;  %v463_v59 = vld [vmem:[%s2382_s24 + $0x40] sm:$0xff]  ;;  %v469_v60 = vld [vmem:[%s2382_s24 + $0x70] sm:$0xff]  ;;  %p598_p6 = scmp.ge.s32.totalorder %s597_s27, %s2770_s22  ;;  %p446_p7 = scmp.ge.s32.totalorder %s447_s26, %s2770_s22 }
  0x5f   : >> { %462 = vst [vmem:[%s2378_s23 + $0x10] sm:$0xff] %v461_v58  ;;  %v471_v61 = vld [vmem:[%s2382_s24 + $0x78] sm:$0xff]  ;;  %464 = vst [vmem:[%s2378_s23 + $0x18] sm:$0xff] %v463_v59  ;;  %v477_v62 = vld [vmem:[%s2382_s24 + $0xa8] sm:$0xff] }
  0x60   : >> { %470 = vst [vmem:[%s2378_s23 + $0x20] sm:$0xff] %v469_v60  ;;  %472 = vst [vmem:[%s2378_s23 + $0x28] sm:$0xff] %v471_v61  ;;  %v479_v63 = vld [vmem:[%s2382_s24 + $0xb0] sm:$0xff]  ;;  %v485_v0 = vld [vmem:[%s2382_s24 + $0xe0] sm:$0xff]  ;;  %s3648_s27 = smov (%p598_p6, %s597_s27), 0 }
  0x61   : >> { %478 = vst [vmem:[%s2378_s23 + $0x30] sm:$0xff] %v477_v62  ;;  %480 = vst [vmem:[%s2378_s23 + $0x38] sm:$0xff] %v479_v63  ;;  %v487_v1 = vld [vmem:[%s2382_s24 + $0xe8] sm:$0xff]  ;;  %v493_v2 = vld [vmem:[%s2382_s24 + $0x118] sm:$0xff]  ;;  %s1750_s29 = sshll.u32 %s3648_s27, 5  ;;  %s3624_s25 = smov %s3648_s27 }
  0x62   : >> { %486 = vst [vmem:[%s2378_s23 + $0x40] sm:$0xff] %v485_v0  ;;  %v495_v3 = vld [vmem:[%s2382_s24 + $0x120] sm:$0xff]  ;;  %488 = vst [vmem:[%s2378_s23 + $0x48] sm:$0xff] %v487_v1  ;;  %v501_v4 = vld [vmem:[%s2382_s24 + $0x150] sm:$0xff]  ;;  %s2852_s8 = scalar_lea.vmem %s2539_s28, %s1750_s29   ;;  %s603_s9 = scalar_lea.vmem %s2543_s4, %s1750_s29 [#allocation2]  }
  0x63   : >> { %494 = vst [vmem:[%s2378_s23 + $0x50] sm:$0xff] %v493_v2  ;;  %496 = vst [vmem:[%s2378_s23 + $0x58] sm:$0xff] %v495_v3  ;;  %v503_v5 = vld [vmem:[%s2382_s24 + $0x158] sm:$0xff]  ;;  %v509_v6 = vld [vmem:[%s2382_s24 + $0x188] sm:$0xff] }
  0x64   : >> { %502 = vst [vmem:[%s2378_s23 + $0x60] sm:$0xff] %v501_v4  ;;  %504 = vst [vmem:[%s2378_s23 + $0x68] sm:$0xff] %v503_v5  ;;  %v511_v7 = vld [vmem:[%s2382_s24 + $0x190] sm:$0xff]  ;;  %v517_v8 = vld [vmem:[%s2382_s24 + $0x1c0] sm:$0xff] }
  0x65   : >> { %510 = vst [vmem:[%s2378_s23 + $0x70] sm:$0xff] %v509_v6  ;;  %v519_v9 = vld [vmem:[%s2382_s24 + $0x1c8] sm:$0xff]  ;;  %512 = vst [vmem:[%s2378_s23 + $0x78] sm:$0xff] %v511_v7  ;;  %v525_v10 = vld [vmem:[%s2382_s24 + $0x1f8] sm:$0xff] }
  0x66   : >> { %518 = vst [vmem:[%s2378_s23 + $0x80] sm:$0xff] %v517_v8  ;;  %520 = vst [vmem:[%s2378_s23 + $0x88] sm:$0xff] %v519_v9  ;;  %v527_v11 = vld [vmem:[%s2382_s24 + $0x200] sm:$0xff]  ;;  %v533_v12 = vld [vmem:[%s2382_s24 + $0x230] sm:$0xff] }
  0x67   : >> { %526 = vst [vmem:[%s2378_s23 + $0x90] sm:$0xff] %v525_v10  ;;  %528 = vst [vmem:[%s2378_s23 + $0x98] sm:$0xff] %v527_v11  ;;  %v535_v13 = vld [vmem:[%s2382_s24 + $0x238] sm:$0xff]  ;;  %v541_v14 = vld [vmem:[%s2382_s24 + $0x268] sm:$0xff] }
  0x68   : >> { %534 = vst [vmem:[%s2378_s23 + $0xa0] sm:$0xff] %v533_v12  ;;  %v543_v15 = vld [vmem:[%s2382_s24 + $0x270] sm:$0xff]  ;;  %536 = vst [vmem:[%s2378_s23 + $0xa8] sm:$0xff] %v535_v13  ;;  %v549_v16 = vld [vmem:[%s2382_s24 + $0x2a0] sm:$0xff] }
  0x69   : >> { %542 = vst [vmem:[%s2378_s23 + $0xb0] sm:$0xff] %v541_v14  ;;  %544 = vst [vmem:[%s2378_s23 + $0xb8] sm:$0xff] %v543_v15  ;;  %v551_v17 = vld [vmem:[%s2382_s24 + $0x2a8] sm:$0xff]  ;;  %v557_v18 = vld [vmem:[%s2382_s24 + $0x2d8] sm:$0xff] }
  0x6a   : >> { %550 = vst [vmem:[%s2378_s23 + $0xc0] sm:$0xff] %v549_v16  ;;  %552 = vst [vmem:[%s2378_s23 + $0xc8] sm:$0xff] %v551_v17  ;;  %v559_v19 = vld [vmem:[%s2382_s24 + $0x2e0] sm:$0xff]  ;;  %v565_v20 = vld [vmem:[%s2382_s24 + $0x310] sm:$0xff] }
  0x6b   : >> { %558 = vst [vmem:[%s2378_s23 + $0xd0] sm:$0xff] %v557_v18  ;;  %v567_v21 = vld [vmem:[%s2382_s24 + $0x318] sm:$0xff]  ;;  %560 = vst [vmem:[%s2378_s23 + $0xd8] sm:$0xff] %v559_v19  ;;  %v573_v22 = vld [vmem:[%s2382_s24 + $0x348] sm:$0xff] }
  0x6c   : >> { %566 = vst [vmem:[%s2378_s23 + $0xe0] sm:$0xff] %v565_v20  ;;  %568 = vst [vmem:[%s2378_s23 + $0xe8] sm:$0xff] %v567_v21  ;;  %v575_v23 = vld [vmem:[%s2382_s24 + $0x350] sm:$0xff]  ;;  %v581_v24 = vld [vmem:[%s2382_s24 + $0x380] sm:$0xff]  ;;  %449 = sbr.rel (!%p446_p7) target bundleno = 93 (0x5d), region = 257 }
  0x6d   : >> { %574 = vst [vmem:[%s2378_s23 + $0xf0] sm:$0xff] %v573_v22  ;;  %576 = vst [vmem:[%s2378_s23 + $0xf8] sm:$0xff] %v575_v23  ;;  %v583_v25 = vld [vmem:[%s2382_s24 + $0x388] sm:$0xff]  ;;  %v589_v26 = vld [vmem:[%s2382_s24 + $0x3b8] sm:$0xff] }
  0x6e   : >> { %582 = vst [vmem:[%s2378_s23 + $0x100] sm:$0xff] %v581_v24  ;;  %v591_v27 = vld [vmem:[%s2382_s24 + $0x3c0] sm:$0xff]  ;;  %584 = vst [vmem:[%s2378_s23 + $0x108] sm:$0xff] %v583_v25  ;;  %v593_v28 = vld [vmem:[%s2382_s24 + $0x3c8] sm:$0xff] }
  0x6f   : >> { %590 = vst [vmem:[%s2378_s23 + $0x110] sm:$0xff] %v589_v26  ;;  %592 = vst [vmem:[%s2378_s23 + $0x118] sm:$0xff] %v591_v27  ;;  %v595_v29 = vld [vmem:[%s2382_s24 + $0x3d0] sm:$0xff]  ;;  %s3623_s24 = smov %s2852_s8 }
  0x70   : >> { %594 = vst [vmem:[%s2378_s23 + $0x120] sm:$0xff] %v593_v28  ;;  %596 = vst [vmem:[%s2378_s23 + $0x128] sm:$0xff] %v595_v29  ;;  %s3622_s23 = smov %s603_s9 }
  0x71 PF: > { %s2894_s10 = sand.u32 3, %s440_s17   ;;  %s1839_s6 = sshll.u32 %s2770_s22, 9 }
  0x72   : > { %s608_s7 = sshra.s32 %s1839_s6, 4  ;;  %p1755_p8 = scmp.le.s32.totalorder %s2894_s10, 0 }
  0x73   : > { %s2898_s11 = scalar_lea.vmem %s2539_s28, %s608_s7   ;;  %s2901_s29 = scalar_lea.vmem %s2543_s4, %s608_s7 [#allocation2]  }
  0x74   : > { %1645 = sbr.rel (%p1755_p8) target bundleno = 131 (0x83), region = 262  ;;  %s3625_s23 = smov (!%p1755_p8), %s2901_s29 }
  0x75   : > { %s3626_s24 = smov (!%p1755_p8), %s2898_s11  ;;  %s2910_s25 = smov (!%p1755_p8), 0  }
  0x76   : > { %s2912_s26 = smov (!%p1755_p8), 0  }
  0x79 LB: >> { %v624_v30 = vld [vmem:[%s2398_s24] sm:$0xff]  ;;  %v626_v31 = vld [vmem:[%s2398_s24 + $0x38] sm:$0xff]  ;;  %v628_v32 = vld [vmem:[%s2398_s24 + $0x70] sm:$0xff]  ;;  %s660_s17 = sadd.s32 1, %s2402_s25  ;;  %s618_s26 = sadd.s32 1, %s2406_s26   ;;  %s2406_s26 = sphi %s2912_s26, %s618_s26   ;;  %s2402_s25 = sphi %s2910_s25, %s3627_s25   ;;  %s2398_s24 = sphi %s3626_s24, %s665_s24   ;;  %s2394_s23 = sphi %s3625_s23, %s666_s23  }
  0x7a   : >> { %625 = vst [vmem:[%s2394_s23] sm:$0xff] %v624_v30  ;;  %627 = vst [vmem:[%s2394_s23 + $0x10] sm:$0xff] %v626_v31  ;;  %v630_v33 = vld [vmem:[%s2398_s24 + $0xa8] sm:$0xff]  ;;  %v632_v34 = vld [vmem:[%s2398_s24 + $0xe0] sm:$0xff]  ;;  %p661_p9 = scmp.ge.s32.totalorder %s660_s17, %s2894_s10  ;;  %p617_p10 = scmp.ge.s32.totalorder %s618_s26, %s2894_s10 }
  0x7b   : >> { %629 = vst [vmem:[%s2394_s23 + $0x20] sm:$0xff] %v628_v32  ;;  %v634_v35 = vld [vmem:[%s2398_s24 + $0x118] sm:$0xff]  ;;  %631 = vst [vmem:[%s2394_s23 + $0x30] sm:$0xff] %v630_v33  ;;  %v636_v36 = vld [vmem:[%s2398_s24 + $0x150] sm:$0xff] }
  0x7c   : >> { %633 = vst [vmem:[%s2394_s23 + $0x40] sm:$0xff] %v632_v34  ;;  %635 = vst [vmem:[%s2394_s23 + $0x50] sm:$0xff] %v634_v35  ;;  %v638_v37 = vld [vmem:[%s2398_s24 + $0x188] sm:$0xff]  ;;  %v640_v38 = vld [vmem:[%s2398_s24 + $0x1c0] sm:$0xff]  ;;  %s3650_s17 = smov (%p661_p9, %s660_s17), 0 }
  0x7d   : >> { %637 = vst [vmem:[%s2394_s23 + $0x60] sm:$0xff] %v636_v36  ;;  %639 = vst [vmem:[%s2394_s23 + $0x70] sm:$0xff] %v638_v37  ;;  %v642_v39 = vld [vmem:[%s2398_s24 + $0x1f8] sm:$0xff]  ;;  %v644_v40 = vld [vmem:[%s2398_s24 + $0x230] sm:$0xff]  ;;  %s1756_s22 = sshll.u32 %s3650_s17, 3  ;;  %s3627_s25 = smov %s3650_s17 }
  0x7e   : >> { %641 = vst [vmem:[%s2394_s23 + $0x80] sm:$0xff] %v640_v38  ;;  %v646_v41 = vld [vmem:[%s2398_s24 + $0x268] sm:$0xff]  ;;  %643 = vst [vmem:[%s2394_s23 + $0x90] sm:$0xff] %v642_v39  ;;  %v648_v42 = vld [vmem:[%s2398_s24 + $0x2a0] sm:$0xff]  ;;  %620 = sbr.rel (!%p617_p10) target bundleno = 121 (0x79), region = 268 }
  0x7f   : >> { %645 = vst [vmem:[%s2394_s23 + $0xa0] sm:$0xff] %v644_v40  ;;  %647 = vst [vmem:[%s2394_s23 + $0xb0] sm:$0xff] %v646_v41  ;;  %v650_v43 = vld [vmem:[%s2398_s24 + $0x2d8] sm:$0xff]  ;;  %v652_v44 = vld [vmem:[%s2398_s24 + $0x310] sm:$0xff] }
  0x80   : >> { %649 = vst [vmem:[%s2394_s23 + $0xc0] sm:$0xff] %v648_v42  ;;  %651 = vst [vmem:[%s2394_s23 + $0xd0] sm:$0xff] %v650_v43  ;;  %v654_v45 = vld [vmem:[%s2398_s24 + $0x348] sm:$0xff]  ;;  %v656_v46 = vld [vmem:[%s2398_s24 + $0x380] sm:$0xff] }
  0x81   : >> { %653 = vst [vmem:[%s2394_s23 + $0xe0] sm:$0xff] %v652_v44  ;;  %v658_v47 = vld [vmem:[%s2398_s24 + $0x3b8] sm:$0xff]  ;;  %655 = vst [vmem:[%s2394_s23 + $0xf0] sm:$0xff] %v654_v45  ;;  %s665_s24 = scalar_lea.vmem %s2898_s11, %s1756_s22  }
  0x82   : >> { %657 = vst [vmem:[%s2394_s23 + $0x100] sm:$0xff] %v656_v46  ;;  %659 = vst [vmem:[%s2394_s23 + $0x110] sm:$0xff] %v658_v47  ;;  %s666_s23 = scalar_lea.vmem %s2901_s29, %s1756_s22 [#allocation2]  }
  0x83 PF: > { %s2472_s27 = smov 1  }
  0x84   : > { %s667_s8 = sshll.u32 %s2472_s27, %s2547_s5 }
  0x85   : > { %s2974_s9 = sadd.s32 4294967295, %s667_s8 }
  0x86   : > { %v677_v48 = vld [vmem:[%s2763_s18] sm:%s2974_s9]  ;;  %v679_v49 = vld [vmem:[%s2763_s18 + $0x38] sm:%s2974_s9] }
  0x87   : > { %678 = vst [vmem:[%s2766_s21] sm:%s2974_s9] %v677_v48  ;;  %680 = vst [vmem:[%s2766_s21 + $0x10] sm:%s2974_s9] %v679_v49 }
  0x88   : > { %v681_v50 = vld [vmem:[%s2763_s18 + $0x70] sm:%s2974_s9]  ;;  %v683_v51 = vld [vmem:[%s2763_s18 + $0xa8] sm:%s2974_s9] }
  0x89   : > { %682 = vst [vmem:[%s2766_s21 + $0x20] sm:%s2974_s9] %v681_v50  ;;  %684 = vst [vmem:[%s2766_s21 + $0x30] sm:%s2974_s9] %v683_v51 }
  0x8a   : > { %v685_v52 = vld [vmem:[%s2763_s18 + $0xe0] sm:%s2974_s9]  ;;  %v687_v53 = vld [vmem:[%s2763_s18 + $0x118] sm:%s2974_s9] }
  0x8b   : > { %686 = vst [vmem:[%s2766_s21 + $0x40] sm:%s2974_s9] %v685_v52  ;;  %688 = vst [vmem:[%s2766_s21 + $0x50] sm:%s2974_s9] %v687_v53 }
  0x8c   : > { %v689_v54 = vld [vmem:[%s2763_s18 + $0x150] sm:%s2974_s9]  ;;  %v691_v55 = vld [vmem:[%s2763_s18 + $0x188] sm:%s2974_s9] }
  0x8d   : > { %690 = vst [vmem:[%s2766_s21 + $0x60] sm:%s2974_s9] %v689_v54  ;;  %692 = vst [vmem:[%s2766_s21 + $0x70] sm:%s2974_s9] %v691_v55 }
  0x8e   : > { %v693_v56 = vld [vmem:[%s2763_s18 + $0x1c0] sm:%s2974_s9]  ;;  %v695_v57 = vld [vmem:[%s2763_s18 + $0x1f8] sm:%s2974_s9] }
  0x8f   : > { %694 = vst [vmem:[%s2766_s21 + $0x80] sm:%s2974_s9] %v693_v56  ;;  %696 = vst [vmem:[%s2766_s21 + $0x90] sm:%s2974_s9] %v695_v57 }
  0x90   : > { %v697_v58 = vld [vmem:[%s2763_s18 + $0x230] sm:%s2974_s9]  ;;  %v699_v59 = vld [vmem:[%s2763_s18 + $0x268] sm:%s2974_s9] }
  0x91   : > { %698 = vst [vmem:[%s2766_s21 + $0xa0] sm:%s2974_s9] %v697_v58  ;;  %700 = vst [vmem:[%s2766_s21 + $0xb0] sm:%s2974_s9] %v699_v59 }
  0x92   : > { %v701_v60 = vld [vmem:[%s2763_s18 + $0x2a0] sm:%s2974_s9]  ;;  %v703_v61 = vld [vmem:[%s2763_s18 + $0x2d8] sm:%s2974_s9] }
  0x93   : > { %702 = vst [vmem:[%s2766_s21 + $0xc0] sm:%s2974_s9] %v701_v60  ;;  %704 = vst [vmem:[%s2766_s21 + $0xd0] sm:%s2974_s9] %v703_v61 }
  0x94   : > { %v705_v62 = vld [vmem:[%s2763_s18 + $0x310] sm:%s2974_s9]  ;;  %v707_v63 = vld [vmem:[%s2763_s18 + $0x348] sm:%s2974_s9] }
  0x95   : > { %706 = vst [vmem:[%s2766_s21 + $0xe0] sm:%s2974_s9] %v705_v62  ;;  %708 = vst [vmem:[%s2766_s21 + $0xf0] sm:%s2974_s9] %v707_v63 }
  0x96   : > { %v709_v0 = vld [vmem:[%s2763_s18 + $0x380] sm:%s2974_s9]  ;;  %v711_v1 = vld [vmem:[%s2763_s18 + $0x3b8] sm:%s2974_s9] }
  0x97   : > { %710 = vst [vmem:[%s2766_s21 + $0x100] sm:%s2974_s9] %v709_v0  ;;  %712 = vst [vmem:[%s2766_s21 + $0x110] sm:%s2974_s9] %v711_v1 }
  0x98 PF: > { %p1759_p11 = scmp.ge.u32.totalorder %s2541_s30, 8 }
  0x99   : > { %s2473_s5 = smov (!%p1759_p11), 1  }
  0x9a   : > { %153 = sbr.rel (%p1759_p11) target bundleno = 177 (0xb1), region = 40  ;;  %s154_s18 = sshll.u32 (!%p1759_p11), %s2473_s5, %s2541_s30 }
  0x9b   : > { %s3050_s21 = sadd.s32 (!%p1759_p11), 4294967295, %s154_s18 }
  0x9f   : > { %v164_v2 = vld [vmem:[%s2539_s28] sm:%s3050_s21]  ;;  %v166_v3 = vld [vmem:[%s2539_s28 + $0x38] sm:%s3050_s21] }
  0xa0   : > { %165 = vst [vmem:[%s2543_s4] sm:%s3050_s21] %v164_v2  ;;  %167 = vst [vmem:[%s2543_s4 + $0x10] sm:%s3050_s21] %v166_v3 }
  0xa1   : > { %v168_v4 = vld [vmem:[%s2539_s28 + $0x70] sm:%s3050_s21]  ;;  %v170_v5 = vld [vmem:[%s2539_s28 + $0xa8] sm:%s3050_s21] }
  0xa2   : > { %169 = vst [vmem:[%s2543_s4 + $0x20] sm:%s3050_s21] %v168_v4  ;;  %171 = vst [vmem:[%s2543_s4 + $0x30] sm:%s3050_s21] %v170_v5 }
  0xa3   : > { %v172_v6 = vld [vmem:[%s2539_s28 + $0xe0] sm:%s3050_s21]  ;;  %v174_v7 = vld [vmem:[%s2539_s28 + $0x118] sm:%s3050_s21] }
  0xa4   : > { %173 = vst [vmem:[%s2543_s4 + $0x40] sm:%s3050_s21] %v172_v6  ;;  %175 = vst [vmem:[%s2543_s4 + $0x50] sm:%s3050_s21] %v174_v7 }
  0xa5   : > { %v176_v8 = vld [vmem:[%s2539_s28 + $0x150] sm:%s3050_s21]  ;;  %v178_v9 = vld [vmem:[%s2539_s28 + $0x188] sm:%s3050_s21] }
  0xa6   : > { %177 = vst [vmem:[%s2543_s4 + $0x60] sm:%s3050_s21] %v176_v8  ;;  %179 = vst [vmem:[%s2543_s4 + $0x70] sm:%s3050_s21] %v178_v9 }
  0xa7   : > { %v180_v10 = vld [vmem:[%s2539_s28 + $0x1c0] sm:%s3050_s21]  ;;  %v182_v11 = vld [vmem:[%s2539_s28 + $0x1f8] sm:%s3050_s21] }
  0xa8   : > { %181 = vst [vmem:[%s2543_s4 + $0x80] sm:%s3050_s21] %v180_v10  ;;  %183 = vst [vmem:[%s2543_s4 + $0x90] sm:%s3050_s21] %v182_v11 }
  0xa9   : > { %v184_v12 = vld [vmem:[%s2539_s28 + $0x230] sm:%s3050_s21]  ;;  %v186_v13 = vld [vmem:[%s2539_s28 + $0x268] sm:%s3050_s21] }
  0xaa   : > { %185 = vst [vmem:[%s2543_s4 + $0xa0] sm:%s3050_s21] %v184_v12  ;;  %187 = vst [vmem:[%s2543_s4 + $0xb0] sm:%s3050_s21] %v186_v13 }
  0xab   : > { %v188_v14 = vld [vmem:[%s2539_s28 + $0x2a0] sm:%s3050_s21]  ;;  %v190_v15 = vld [vmem:[%s2539_s28 + $0x2d8] sm:%s3050_s21] }
  0xac   : > { %189 = vst [vmem:[%s2543_s4 + $0xc0] sm:%s3050_s21] %v188_v14  ;;  %191 = vst [vmem:[%s2543_s4 + $0xd0] sm:%s3050_s21] %v190_v15 }
  0xad   : > { %v192_v16 = vld [vmem:[%s2539_s28 + $0x310] sm:%s3050_s21]  ;;  %v194_v17 = vld [vmem:[%s2539_s28 + $0x348] sm:%s3050_s21] }
  0xae   : > { %193 = vst [vmem:[%s2543_s4 + $0xe0] sm:%s3050_s21] %v192_v16  ;;  %195 = vst [vmem:[%s2543_s4 + $0xf0] sm:%s3050_s21] %v194_v17 }
  0xaf   : > { %v196_v18 = vld [vmem:[%s2539_s28 + $0x380] sm:%s3050_s21]  ;;  %v198_v19 = vld [vmem:[%s2539_s28 + $0x3b8] sm:%s3050_s21] }
  0xb0   : > { %197 = vst [vmem:[%s2543_s4 + $0x100] sm:%s3050_s21] %v196_v18  ;;  %199 = vst [vmem:[%s2543_s4 + $0x110] sm:%s3050_s21] %v198_v19 }
  0xb1 PF: > { %p1761_p12 = scmp.ge.s32.totalorder %s2342_s14, 1  ;;  %p715_p13 = scmp.lt.s32.totalorder %s2342_s14, 5 }
  0xb3   : > { %p716_p0 = pnand %p1761_p12, %p715_p13 }
  0xb4   : > { %s722_s30 = sand.u32 (!%p716_p0), 1, %s2334_s12  }
  0xb5   : > { %719 = sbr.rel (%p716_p0) target bundleno = 574 (0x23e), region = 94  ;;  %s1762_s11 = sshll.u32 (!%p716_p0), %s722_s30, 4 }
  0xb6   : > { %s1849_s7 = smul.u32 (!%p716_p0), 288, %s722_s30  ;;  %s3181_s29 = scalar_lea.vmem (!%p716_p0), [#allocation3], %s1762_s11  }
  0xb8   : > { %s3139_s14 = scalar_lea.vmem (!%p716_p0), [#allocation2], %s1849_s7 }
  0xba   : > { %v3130_v20 = vld [vmem:[%s3607_s0] sm:$0xff]  ;;  %vm984_vm0 = vcmask 130048   ;;  %v2474_v23 = vmov 0   ;;  %v2138_v25 = vld [vmem:[%s3139_s14 + $0xec] ss:$16 sps:$4 sm:$0xff]   ;;  %s1806_s12 = sshll.u32 (%p2528_p5), %s2513_s15, 2 }
  0xbb   : > { %v792_v21 = vld [vmem:[%s3609_s2] sm:$0xff]  ;;  %v1764_v22 = vcombine.high %v3130_v20, %v3130_v20  ;;  %2135 = vset.pattern.permute.xlu0 %v2474_v23  ;;  %v2141_v27 = vld [vmem:[%s3139_s14 + $0xe8] ss:$16 sps:$4 sm:$0xff]   ;;  %1029 = vmatprep.subr.bf16.mxu1 %v2138_v25  ;;  %v2144_v29 = vld [vmem:[%s3139_s14 + $0xcc] ss:$16 sps:$4 sm:$0xff]   ;;  %v1763_v60 = vcombine.low %v3130_v20, %v3130_v20  ;;  %s1843_s23 = sshll.u32 (%p2528_p5), %s2513_s15, 4 }
  0xbc   : > { %795 = vperm.xlu0 %2135, %v792_v21   ;;  %v2136_v24 = vld [vmem:[%s3139_s14 + $0xe4] ss:$16 sps:$4 sm:$0xff]   ;;  %v2140_v26 = vld [vmem:[%s3139_s14 + $0xe0] ss:$16 sps:$4 sm:$0xff]   ;;  %1030 = vmatpush1.bf16.msra.mxu1 %v2141_v27  ;;  %v2147_v31 = vld [vmem:[%s3139_s14 + $0xc8] ss:$16 sps:$4 sm:$0xff]   ;;  %s3192_s17 = scalar_lea.vmem (%p2528_p5), %s3610_s3, %s1843_s23  }
  0xbd   : > { %1801 = vmatprep.mubr.msk.bf16.mxu0 %vm984_vm0, %v1764_v22  ;;  %1802 = vmatprep.mubr.msk.bf16.mxu1 %vm984_vm0, %v1764_v22  ;;  %v2142_v28 = vld [vmem:[%s3139_s14 + $0xc4] ss:$16 sps:$4 sm:$0xff]   ;;  %v2146_v30 = vld [vmem:[%s3139_s14 + $0xc0] ss:$16 sps:$4 sm:$0xff]   ;;  %v2150_v33 = vld [vmem:[%s3139_s14 + $0xac] ss:$16 sps:$4 sm:$0xff]  }
  0xbe   : > { %988 = vmatprep.subr.bf16.mxu0 %v2136_v24  ;;  %1031 = vmatprep.subr.bf16.mxu1 %v2144_v29  ;;  %v2148_v32 = vld [vmem:[%s3139_s14 + $0xa4] ss:$16 sps:$4 sm:$0xff]   ;;  %v2152_v34 = vld [vmem:[%s3139_s14 + $0xa0] ss:$16 sps:$4 sm:$0xff]   ;;  %v2153_v35 = vld [vmem:[%s3139_s14 + $0xa8] ss:$16 sps:$4 sm:$0xff]  }
  0xbf   : > { %989 = vmatpush1.bf16.msra.mxu0 %v2140_v26  ;;  %v2154_v36 = vld [vmem:[%s3139_s14 + $0x84] ss:$16 sps:$4 sm:$0xff]   ;;  %v2156_v37 = vld [vmem:[%s3139_s14 + $0x8c] ss:$16 sps:$4 sm:$0xff]   ;;  %v2158_v38 = vld [vmem:[%s3139_s14 + $0x80] ss:$16 sps:$4 sm:$0xff]  }
  0xc0   : > { %990 = vmatprep.subr.bf16.mxu0 %v2142_v28  ;;  %1032 = vmatpush1.bf16.msra.mxu1 %v2147_v31  ;;  %v2159_v39 = vld [vmem:[%s3139_s14 + $0x88] ss:$16 sps:$4 sm:$0xff]   ;;  %v2160_v40 = vld [vmem:[%s3139_s14 + $0x64] ss:$16 sps:$4 sm:$0xff]   ;;  %v2162_v41 = vld [vmem:[%s3139_s14 + $0x6c] ss:$16 sps:$4 sm:$0xff]  }
  0xc1   : > { %1033 = vmatprep.subr.bf16.mxu1 %v2150_v33  ;;  %v2164_v42 = vld [vmem:[%s3139_s14 + $0x60] ss:$16 sps:$4 sm:$0xff]   ;;  %v2165_v43 = vld [vmem:[%s3139_s14 + $0x68] ss:$16 sps:$4 sm:$0xff]   ;;  %v2166_v44 = vld [vmem:[%s3139_s14 + $0x44] ss:$16 sps:$4 sm:$0xff]  }
  0xc2   : > { %v2168_v45 = vld [vmem:[%s3139_s14 + $0x4c] ss:$16 sps:$4 sm:$0xff]   ;;  %v2170_v46 = vld [vmem:[%s3139_s14 + $0x40] ss:$16 sps:$4 sm:$0xff]   ;;  %v2171_v47 = vld [vmem:[%s3139_s14 + $0x48] ss:$16 sps:$4 sm:$0xff]  }
  0xc3   : > { %991 = vmatpush1.bf16.msra.mxu0 %v2146_v30  ;;  %v2172_v48 = vld [vmem:[%s3139_s14 + $0x24] ss:$16 sps:$4 sm:$0xff]   ;;  %v2174_v49 = vld [vmem:[%s3139_s14 + $0x2c] ss:$16 sps:$4 sm:$0xff]   ;;  %v2176_v50 = vld [vmem:[%s3139_s14 + $0x20] ss:$16 sps:$4 sm:$0xff]  }
  0xc4   : > { %992 = vmatprep.subr.bf16.mxu0 %v2148_v32  ;;  %1034 = vmatpush1.bf16.msra.mxu1 %v2153_v35  ;;  %v2177_v51 = vld [vmem:[%s3139_s14 + $0x28] ss:$16 sps:$4 sm:$0xff]   ;;  %v2178_v52 = vld [vmem:[%s3139_s14 + $0x4] ss:$16 sps:$4 sm:$0xff]   ;;  %v2180_v53 = vld [vmem:[%s3139_s14 + $0xc] ss:$16 sps:$4 sm:$0xff]  }
  0xc5   : > { %1035 = vmatprep.subr.bf16.mxu1 %v2156_v37  ;;  %v2182_v54 = vld [vmem:[%s3139_s14] ss:$16 sps:$4 sm:$0xff]   ;;  %v2183_v55 = vld [vmem:[%s3139_s14 + $0x8] ss:$16 sps:$4 sm:$0xff]   ;;  %v2184_v56 = vld [vmem:[%s3139_s14 + $0x104] ss:$16 sps:$4 sm:$0xff]  }
  0xc6   : > { %v2186_v57 = vld [vmem:[%s3139_s14 + $0x10c] ss:$16 sps:$4 sm:$0xff]   ;;  %v2188_v58 = vld [vmem:[%s3139_s14 + $0x100] ss:$16 sps:$4 sm:$0xff]   ;;  %v2189_v59 = vld [vmem:[%s3139_s14 + $0x108] ss:$16 sps:$4 sm:$0xff]  }
  0xc7   : > { %993 = vmatpush1.bf16.msra.mxu0 %v2152_v34  ;;  %s1100_s24 = ssub.s32 (%p2528_p5), 14, %s1806_s12 }
  0xc8   : > { %994 = vmatprep.subr.bf16.mxu0 %v2154_v36  ;;  %1036 = vmatpush1.bf16.msra.mxu1 %v2159_v39  ;;  %p1101_p1 = scmp.lt.s32.totalorder (%p2528_p5), %s1100_s24, 4 }
  0xc9   : > { %1037 = vmatprep.subr.bf16.mxu1 %v2162_v41 }
  0xcb   : > { %995 = vmatpush1.bf16.msra.mxu0 %v2158_v38 }
  0xcc   : > { %996 = vmatprep.subr.bf16.mxu0 %v2160_v40  ;;  %1038 = vmatpush1.bf16.msra.mxu1 %v2165_v43 }
  0xcd   : > { %1039 = vmatprep.subr.bf16.mxu1 %v2168_v45 }
  0xcf   : > { %997 = vmatpush1.bf16.msra.mxu0 %v2164_v42 }
  0xd0   : > { %998 = vmatprep.subr.bf16.mxu0 %v2166_v44  ;;  %1040 = vmatpush1.bf16.msra.mxu1 %v2171_v47 }
  0xd1   : > { %1041 = vmatprep.subr.bf16.mxu1 %v2174_v49 }
  0xd3   : > { %999 = vmatpush1.bf16.msra.mxu0 %v2170_v46 }
  0xd4   : > { %1000 = vmatprep.subr.bf16.mxu0 %v2172_v48  ;;  %1042 = vmatpush1.bf16.msra.mxu1 %v2177_v51 }
  0xd5   : > { %1043 = vmatprep.subr.bf16.mxu1 %v2180_v53 }
  0xd7   : > { %1001 = vmatpush1.bf16.msra.mxu0 %v2176_v50 }
  0xd8   : > { %1002 = vmatprep.subr.bf16.mxu0 %v2178_v52  ;;  %1044 = vmatpush1.bf16.msra.mxu1 %v2183_v55 }
  0xd9   : > { %1059 = vmatprep.subr.bf16.mxu1 %v2186_v57 }
  0xdb   : > { %1003 = vmatpush1.bf16.msra.mxu0 %v2182_v54 }
  0xdc   : > { %1018 = vmatprep.subr.bf16.mxu0 %v2184_v56  ;;  %1060 = vmatpush2.bf16.msra.mxu1 %v2189_v59 }
  0xdf   : > { %1019 = vmatpush2.bf16.msra.mxu0 %v2188_v58  ;;  %1062 = vmatmul.mubr.bf16.vlgmr.msra.gmra.mxu1 %v1763_v60 }
  0xe2   : > { %1021 = vmatmul.mubr.bf16.vlgmr.msra.gmra.mxu0 %v1763_v60 }
 0x137   : > { %v796_v61 = vpop.permute.xlu0 %795 }
 0x19f   : > { %v1063_v63 = vpop.f32.mrf.mxu1 }
 0x1a0   : > { %v1064_v1 = vadd.f32 %v1063_v63, %v796_v61 }
 0x1a1   : > { %v1065_v3 = vpop.f32.mrf.mxu1 }
 0x1a2   : > { %v1022_v62 = vpop.f32.mrf.mxu0  ;;  %v1066_v5 = vadd.f32 %v1065_v3, %v796_v61  ;;  %v1072_v9 = vmax.f32 %v1064_v1, 0.0 }
 0x1a3   : > { %v1023_v0 = vadd.f32 %v1022_v62, %v796_v61  ;;  %v1067_v7 = vpop.f32.mrf.mxu1 }
 0x1a4   : > { %v1024_v2 = vpop.f32.mrf.mxu0  ;;  %v1073_v11 = vmax.f32 %v1066_v5, 0.0 }
 0x1a5   : > { %v1025_v4 = vadd.f32 %v1024_v2, %v796_v61  ;;  %v1070_v8 = vmax.f32 %v1023_v0, 0.0  ;;  %v1068_v13 = vpop.f32.mrf.mxu1 }
 0x1a6   : > { %v1026_v6 = vpop.f32.mrf.mxu0  ;;  %v1842_v15 = vpack.c.bf16 %v1073_v11, %v1072_v9 }
 0x1a7   : > { %v1071_v10 = vmax.f32 %v1025_v4, 0.0  ;;  %1098 = sbr.rel (!%p2528_p5) target bundleno = 574 (0x23e), region = 102 }
 0x1a8   : > { %v1027_v12 = vpop.f32.mrf.mxu0  ;;  %1091 = vst [vmem:[%s3181_s29 + $0x8] sm:$0xff] %v1842_v15 }
 0x1a9   : > { %v1841_v14 = vpack.c.bf16 %v1071_v10, %v1070_v8 }
 0x1ab   : > { %1090 = vst [vmem:[%s3181_s29] sm:$0xff] %v1841_v14 }
 0x1ac   : > { %s3652_s24 = smov (!%p1101_p1, %s1100_s24), 4 }
 0x1ad   : > { %s1807_s22 = sshll.u32 %s3652_s24, 6  ;;  %s3194_s27 = sshll.u32 %s3652_s24, 2 }
 0x1ae   : > { %p1811_p2 = scmp.eq.s32.totalorder %s1807_s22, 0 }
 0x1af   : > { %p1111_p3 = scmp.lt.u32.totalorder (!%p1811_p2), %s3194_s27, 8 }
 0x1b0   : > { %1110 = sbr.rel (%p1811_p2) target bundleno = 574 (0x23e), region = 106 }
 0x1b5   : > { %1114 = sbr.rel (%p1111_p3) target bundleno = 565 (0x235), region = 110  ;;  %s3198_s20 = sand.u32 (!%p1111_p3), 7, %s3194_s27  }
 0x1b6   : > { %p1131_p5 = scmp.eq.s32.totalorder (!%p1111_p3), %s3198_s20, 0  ;;  %p1812_p4 = scmp.ne.s32.totalorder (!%p1111_p3), %s3198_s20, 0 }
 0x1ba   : > { %1134 = sbr.rel (%p1812_p4) target bundleno = 501 (0x1f5), region = 125  ;;  %s1135_s15 = sshrl.u32 (!%p1812_p4), %s3194_s27, 3 }
 0x1bb   : > { %s3205_s8 = sshrl.u32 (!%p1812_p4), %s1135_s15, 6 }
 0x1bc   : > { %p1813_p6 = scmp.le.s32.totalorder (!%p1812_p4), %s3205_s8, 0 }
 0x1bf   : > { %1659 = sbr.rel (%p1813_p6) target bundleno = 485 (0x1e5), region = 273  ;;  %s3628_s9 = smov (!%p1813_p6), %s3192_s17 }
 0x1c0   : > { %s3629_s5 = smov (!%p1813_p6), %s3181_s29  ;;  %s3214_s18 = smov (!%p1813_p6), 0  }
 0x1c1   : > { %s3216_s21 = smov (!%p1813_p6), 0  }
 0x1c4 LB: >> { %v1148_v16 = vld [vmem:[%s2414_s5] sm:$0xff]  ;;  %v1150_v17 = vld [vmem:[%s2414_s5 + $0x8] sm:$0xff]  ;;  %v1152_v18 = vld [vmem:[%s2414_s5 + $0x10] sm:$0xff]  ;;  %s1276_s30 = sadd.s32 1, %s2418_s18  ;;  %s1142_s21 = sadd.s32 1, %s2422_s21   ;;  %s2422_s21 = sphi %s3216_s21, %s1142_s21   ;;  %s2418_s18 = sphi %s3214_s18, %s3632_s18   ;;  %s2414_s5 = sphi %s3629_s5, %s3631_s5   ;;  %s2410_s9 = sphi %s3628_s9, %s3630_s9  }
 0x1c5   : >> { %1149 = vst [vmem:[%s2410_s9] sm:$0xff] %v1148_v16  ;;  %1151 = vst [vmem:[%s2410_s9 + $0x8] sm:$0xff] %v1150_v17  ;;  %v1154_v19 = vld [vmem:[%s2414_s5 + $0x18] sm:$0xff]  ;;  %v1156_v20 = vld [vmem:[%s2414_s5 + $0x20] sm:$0xff]  ;;  %p1277_p7 = scmp.ge.s32.totalorder %s1276_s30, %s3205_s8  ;;  %p1141_p8 = scmp.ge.s32.totalorder %s1142_s21, %s3205_s8 }
 0x1c6   : >> { %1153 = vst [vmem:[%s2410_s9 + $0x10] sm:$0xff] %v1152_v18  ;;  %v1158_v21 = vld [vmem:[%s2414_s5 + $0x28] sm:$0xff]  ;;  %1155 = vst [vmem:[%s2410_s9 + $0x18] sm:$0xff] %v1154_v19  ;;  %v1160_v22 = vld [vmem:[%s2414_s5 + $0x30] sm:$0xff] }
 0x1c7   : >> { %1157 = vst [vmem:[%s2410_s9 + $0x20] sm:$0xff] %v1156_v20  ;;  %1159 = vst [vmem:[%s2410_s9 + $0x28] sm:$0xff] %v1158_v21  ;;  %v1162_v23 = vld [vmem:[%s2414_s5 + $0x38] sm:$0xff]  ;;  %v1164_v24 = vld [vmem:[%s2414_s5 + $0x40] sm:$0xff]  ;;  %s3654_s30 = smov (%p1277_p7, %s1276_s30), 0 }
 0x1c8   : >> { %1161 = vst [vmem:[%s2410_s9 + $0x30] sm:$0xff] %v1160_v22  ;;  %1163 = vst [vmem:[%s2410_s9 + $0x38] sm:$0xff] %v1162_v23  ;;  %v1166_v25 = vld [vmem:[%s2414_s5 + $0x48] sm:$0xff]  ;;  %v1168_v26 = vld [vmem:[%s2414_s5 + $0x50] sm:$0xff]  ;;  %s1814_s10 = sshll.u32 %s3654_s30, 9  ;;  %s3632_s18 = smov %s3654_s30 }
 0x1c9   : >> { %1165 = vst [vmem:[%s2410_s9 + $0x40] sm:$0xff] %v1164_v24  ;;  %v1170_v27 = vld [vmem:[%s2414_s5 + $0x58] sm:$0xff]  ;;  %1167 = vst [vmem:[%s2410_s9 + $0x48] sm:$0xff] %v1166_v25  ;;  %v1172_v28 = vld [vmem:[%s2414_s5 + $0x60] sm:$0xff]  ;;  %s3272_s6 = scalar_lea.vmem %s3181_s29, %s1814_s10 [#allocation3]   ;;  %s3275_s28 = scalar_lea.vmem %s3192_s17, %s1814_s10  }
 0x1ca   : >> { %1169 = vst [vmem:[%s2410_s9 + $0x50] sm:$0xff] %v1168_v26  ;;  %1171 = vst [vmem:[%s2410_s9 + $0x58] sm:$0xff] %v1170_v27  ;;  %v1174_v29 = vld [vmem:[%s2414_s5 + $0x68] sm:$0xff]  ;;  %v1176_v30 = vld [vmem:[%s2414_s5 + $0x70] sm:$0xff] }
 0x1cb   : >> { %1173 = vst [vmem:[%s2410_s9 + $0x60] sm:$0xff] %v1172_v28  ;;  %1175 = vst [vmem:[%s2410_s9 + $0x68] sm:$0xff] %v1174_v29  ;;  %v1178_v31 = vld [vmem:[%s2414_s5 + $0x78] sm:$0xff]  ;;  %v1180_v32 = vld [vmem:[%s2414_s5 + $0x80] sm:$0xff] }
 0x1cc   : >> { %1177 = vst [vmem:[%s2410_s9 + $0x70] sm:$0xff] %v1176_v30  ;;  %v1182_v33 = vld [vmem:[%s2414_s5 + $0x88] sm:$0xff]  ;;  %1179 = vst [vmem:[%s2410_s9 + $0x78] sm:$0xff] %v1178_v31  ;;  %v1184_v34 = vld [vmem:[%s2414_s5 + $0x90] sm:$0xff] }
 0x1cd   : >> { %1181 = vst [vmem:[%s2410_s9 + $0x80] sm:$0xff] %v1180_v32  ;;  %1183 = vst [vmem:[%s2410_s9 + $0x88] sm:$0xff] %v1182_v33  ;;  %v1186_v35 = vld [vmem:[%s2414_s5 + $0x98] sm:$0xff]  ;;  %v1188_v36 = vld [vmem:[%s2414_s5 + $0xa0] sm:$0xff] }
 0x1ce   : >> { %1185 = vst [vmem:[%s2410_s9 + $0x90] sm:$0xff] %v1184_v34  ;;  %1187 = vst [vmem:[%s2410_s9 + $0x98] sm:$0xff] %v1186_v35  ;;  %v1190_v37 = vld [vmem:[%s2414_s5 + $0xa8] sm:$0xff]  ;;  %v1192_v38 = vld [vmem:[%s2414_s5 + $0xb0] sm:$0xff] }
 0x1cf   : >> { %1189 = vst [vmem:[%s2410_s9 + $0xa0] sm:$0xff] %v1188_v36  ;;  %v1194_v39 = vld [vmem:[%s2414_s5 + $0xb8] sm:$0xff]  ;;  %1191 = vst [vmem:[%s2410_s9 + $0xa8] sm:$0xff] %v1190_v37  ;;  %v1196_v40 = vld [vmem:[%s2414_s5 + $0xc0] sm:$0xff] }
 0x1d0   : >> { %1193 = vst [vmem:[%s2410_s9 + $0xb0] sm:$0xff] %v1192_v38  ;;  %1195 = vst [vmem:[%s2410_s9 + $0xb8] sm:$0xff] %v1194_v39  ;;  %v1198_v41 = vld [vmem:[%s2414_s5 + $0xc8] sm:$0xff]  ;;  %v1200_v42 = vld [vmem:[%s2414_s5 + $0xd0] sm:$0xff] }
 0x1d1   : >> { %1197 = vst [vmem:[%s2410_s9 + $0xc0] sm:$0xff] %v1196_v40  ;;  %1199 = vst [vmem:[%s2410_s9 + $0xc8] sm:$0xff] %v1198_v41  ;;  %v1202_v43 = vld [vmem:[%s2414_s5 + $0xd8] sm:$0xff]  ;;  %v1204_v44 = vld [vmem:[%s2414_s5 + $0xe0] sm:$0xff] }
 0x1d2   : >> { %1201 = vst [vmem:[%s2410_s9 + $0xd0] sm:$0xff] %v1200_v42  ;;  %v1206_v45 = vld [vmem:[%s2414_s5 + $0xe8] sm:$0xff]  ;;  %1203 = vst [vmem:[%s2410_s9 + $0xd8] sm:$0xff] %v1202_v43  ;;  %v1208_v46 = vld [vmem:[%s2414_s5 + $0xf0] sm:$0xff] }
 0x1d3   : >> { %1205 = vst [vmem:[%s2410_s9 + $0xe0] sm:$0xff] %v1204_v44  ;;  %1207 = vst [vmem:[%s2410_s9 + $0xe8] sm:$0xff] %v1206_v45  ;;  %v1210_v47 = vld [vmem:[%s2414_s5 + $0xf8] sm:$0xff]  ;;  %v1212_v48 = vld [vmem:[%s2414_s5 + $0x100] sm:$0xff] }
 0x1d4   : >> { %1209 = vst [vmem:[%s2410_s9 + $0xf0] sm:$0xff] %v1208_v46  ;;  %1211 = vst [vmem:[%s2410_s9 + $0xf8] sm:$0xff] %v1210_v47  ;;  %v1214_v49 = vld [vmem:[%s2414_s5 + $0x108] sm:$0xff]  ;;  %v1216_v50 = vld [vmem:[%s2414_s5 + $0x110] sm:$0xff] }
 0x1d5   : >> { %1213 = vst [vmem:[%s2410_s9 + $0x100] sm:$0xff] %v1212_v48  ;;  %v1218_v51 = vld [vmem:[%s2414_s5 + $0x118] sm:$0xff]  ;;  %1215 = vst [vmem:[%s2410_s9 + $0x108] sm:$0xff] %v1214_v49  ;;  %v1220_v52 = vld [vmem:[%s2414_s5 + $0x120] sm:$0xff] }
 0x1d6   : >> { %1217 = vst [vmem:[%s2410_s9 + $0x110] sm:$0xff] %v1216_v50  ;;  %1219 = vst [vmem:[%s2410_s9 + $0x118] sm:$0xff] %v1218_v51  ;;  %v1222_v53 = vld [vmem:[%s2414_s5 + $0x128] sm:$0xff]  ;;  %v1224_v54 = vld [vmem:[%s2414_s5 + $0x130] sm:$0xff] }
 0x1d7   : >> { %1221 = vst [vmem:[%s2410_s9 + $0x120] sm:$0xff] %v1220_v52  ;;  %1223 = vst [vmem:[%s2410_s9 + $0x128] sm:$0xff] %v1222_v53  ;;  %v1226_v55 = vld [vmem:[%s2414_s5 + $0x138] sm:$0xff]  ;;  %v1228_v56 = vld [vmem:[%s2414_s5 + $0x140] sm:$0xff] }
 0x1d8   : >> { %1225 = vst [vmem:[%s2410_s9 + $0x130] sm:$0xff] %v1224_v54  ;;  %v1230_v57 = vld [vmem:[%s2414_s5 + $0x148] sm:$0xff]  ;;  %1227 = vst [vmem:[%s2410_s9 + $0x138] sm:$0xff] %v1226_v55  ;;  %v1232_v58 = vld [vmem:[%s2414_s5 + $0x150] sm:$0xff] }
 0x1d9   : >> { %1229 = vst [vmem:[%s2410_s9 + $0x140] sm:$0xff] %v1228_v56  ;;  %1231 = vst [vmem:[%s2410_s9 + $0x148] sm:$0xff] %v1230_v57  ;;  %v1234_v59 = vld [vmem:[%s2414_s5 + $0x158] sm:$0xff]  ;;  %v1236_v60 = vld [vmem:[%s2414_s5 + $0x160] sm:$0xff] }
 0x1da   : >> { %1233 = vst [vmem:[%s2410_s9 + $0x150] sm:$0xff] %v1232_v58  ;;  %1235 = vst [vmem:[%s2410_s9 + $0x158] sm:$0xff] %v1234_v59  ;;  %v1238_v61 = vld [vmem:[%s2414_s5 + $0x168] sm:$0xff]  ;;  %v1240_v62 = vld [vmem:[%s2414_s5 + $0x170] sm:$0xff] }
 0x1db   : >> { %1237 = vst [vmem:[%s2410_s9 + $0x160] sm:$0xff] %v1236_v60  ;;  %v1242_v63 = vld [vmem:[%s2414_s5 + $0x178] sm:$0xff]  ;;  %1239 = vst [vmem:[%s2410_s9 + $0x168] sm:$0xff] %v1238_v61  ;;  %v1244_v0 = vld [vmem:[%s2414_s5 + $0x180] sm:$0xff] }
 0x1dc   : >> { %1241 = vst [vmem:[%s2410_s9 + $0x170] sm:$0xff] %v1240_v62  ;;  %1243 = vst [vmem:[%s2410_s9 + $0x178] sm:$0xff] %v1242_v63  ;;  %v1246_v1 = vld [vmem:[%s2414_s5 + $0x188] sm:$0xff]  ;;  %v1248_v2 = vld [vmem:[%s2414_s5 + $0x190] sm:$0xff] }
 0x1dd   : >> { %1245 = vst [vmem:[%s2410_s9 + $0x180] sm:$0xff] %v1244_v0  ;;  %1247 = vst [vmem:[%s2410_s9 + $0x188] sm:$0xff] %v1246_v1  ;;  %v1250_v3 = vld [vmem:[%s2414_s5 + $0x198] sm:$0xff]  ;;  %v1252_v4 = vld [vmem:[%s2414_s5 + $0x1a0] sm:$0xff] }
 0x1de   : >> { %1249 = vst [vmem:[%s2410_s9 + $0x190] sm:$0xff] %v1248_v2  ;;  %v1254_v5 = vld [vmem:[%s2414_s5 + $0x1a8] sm:$0xff]  ;;  %1251 = vst [vmem:[%s2410_s9 + $0x198] sm:$0xff] %v1250_v3  ;;  %v1256_v6 = vld [vmem:[%s2414_s5 + $0x1b0] sm:$0xff] }
 0x1df   : >> { %1253 = vst [vmem:[%s2410_s9 + $0x1a0] sm:$0xff] %v1252_v4  ;;  %1255 = vst [vmem:[%s2410_s9 + $0x1a8] sm:$0xff] %v1254_v5  ;;  %v1258_v7 = vld [vmem:[%s2414_s5 + $0x1b8] sm:$0xff]  ;;  %v1260_v8 = vld [vmem:[%s2414_s5 + $0x1c0] sm:$0xff] }
 0x1e0   : >> { %1257 = vst [vmem:[%s2410_s9 + $0x1b0] sm:$0xff] %v1256_v6  ;;  %1259 = vst [vmem:[%s2410_s9 + $0x1b8] sm:$0xff] %v1258_v7  ;;  %v1262_v9 = vld [vmem:[%s2414_s5 + $0x1c8] sm:$0xff]  ;;  %v1264_v10 = vld [vmem:[%s2414_s5 + $0x1d0] sm:$0xff]  ;;  %1144 = sbr.rel (!%p1141_p8) target bundleno = 452 (0x1c4), region = 279 }
 0x1e1   : >> { %1261 = vst [vmem:[%s2410_s9 + $0x1c0] sm:$0xff] %v1260_v8  ;;  %v1266_v11 = vld [vmem:[%s2414_s5 + $0x1d8] sm:$0xff]  ;;  %1263 = vst [vmem:[%s2410_s9 + $0x1c8] sm:$0xff] %v1262_v9  ;;  %v1268_v12 = vld [vmem:[%s2414_s5 + $0x1e0] sm:$0xff] }
 0x1e2   : >> { %1265 = vst [vmem:[%s2410_s9 + $0x1d0] sm:$0xff] %v1264_v10  ;;  %1267 = vst [vmem:[%s2410_s9 + $0x1d8] sm:$0xff] %v1266_v11  ;;  %v1270_v13 = vld [vmem:[%s2414_s5 + $0x1e8] sm:$0xff]  ;;  %v1272_v14 = vld [vmem:[%s2414_s5 + $0x1f0] sm:$0xff] }
 0x1e3   : >> { %1269 = vst [vmem:[%s2410_s9 + $0x1e0] sm:$0xff] %v1268_v12  ;;  %1271 = vst [vmem:[%s2410_s9 + $0x1e8] sm:$0xff] %v1270_v13  ;;  %v1274_v15 = vld [vmem:[%s2414_s5 + $0x1f8] sm:$0xff]  ;;  %s3631_s5 = smov %s3272_s6 }
 0x1e4   : >> { %1273 = vst [vmem:[%s2410_s9 + $0x1f0] sm:$0xff] %v1272_v14  ;;  %1275 = vst [vmem:[%s2410_s9 + $0x1f8] sm:$0xff] %v1274_v15  ;;  %s3630_s9 = smov %s3275_s28 }
 0x1e5 PF: > { %s3381_s4 = sand.u32 63, %s1135_s15   ;;  %s1844_s7 = sshll.u32 %s3205_s8, 13 }
 0x1e6   : > { %s1287_s14 = sshra.s32 %s1844_s7, 4  ;;  %p1819_p9 = scmp.le.s32.totalorder %s3381_s4, 0 }
 0x1e7   : > { %s1288_s11 = scalar_lea.vmem %s3181_s29, %s1287_s14 [#allocation3]   ;;  %s1291_s12 = scalar_lea.vmem %s3192_s17, %s1287_s14  }
 0x1e8   : > { %1673 = sbr.rel (%p1819_p9) target bundleno = 501 (0x1f5), region = 284  ;;  %s2424_s23 = smov (!%p1819_p9), %s1291_s12  }
 0x1e9   : > { %s2428_s24 = smov (!%p1819_p9), %s1288_s11   ;;  %s2432_s25 = smov (!%p1819_p9), 0  }
 0x1ea   : > { %s2436_s26 = smov (!%p1819_p9), 0  }
 0x1ed LB: >> { %v1303_v16 = vld [vmem:[%s2430_s24] sm:$0xff]  ;;  %s1305_s22 = sadd.s32 1, %s2434_s25  ;;  %s1297_s26 = sadd.s32 1, %s2438_s26   ;;  %s2438_s26 = sphi %s2436_s26, %s1297_s26   ;;  %s2434_s25 = sphi %s2432_s25, %s2433_s25   ;;  %s2430_s24 = sphi %s2428_s24, %s1310_s24   ;;  %s2426_s23 = sphi %s2424_s23, %s1311_s23  }
 0x1ee   : >> { %1304 = vst [vmem:[%s2426_s23] sm:$0xff] %v1303_v16  ;;  %p1306_p10 = scmp.ge.s32.totalorder %s1305_s22, %s3381_s4  ;;  %p1296_p11 = scmp.ge.s32.totalorder %s1297_s26, %s3381_s4 }
 0x1f0   : >> { %s3656_s22 = smov (%p1306_p10, %s1305_s22), 0  ;;  %1299 = sbr.rel (!%p1296_p11) target bundleno = 493 (0x1ed), region = 290 }
 0x1f1   : >> { %s1820_s15 = sshll.u32 %s3656_s22, 3  ;;  %s2433_s25 = smov %s3656_s22  }
 0x1f2   : >> { %s1310_s24 = scalar_lea.vmem %s1288_s11, %s1820_s15 [#allocation3]   ;;  %s1311_s23 = scalar_lea.vmem %s1291_s12, %s1820_s15  }
 0x1f5 PF: > { %1314 = sbr.rel (%p1131_p5) target bundleno = 565 (0x235), region = 143  ;;  %s3393_s8 = ssub.s32 (!%p1131_p5), %s3194_s27, %s3198_s20 }
 0x1f6   : > { %s1320_s9 = sshrl.u32 (!%p1131_p5), %s3194_s27, 3  ;;  %s1317_s5 = scalar_lea.vmem (!%p1131_p5), %s3181_s29, %s3393_s8 [#allocation3] }
 0x1f7   : > { %s1319_s18 = scalar_lea.vmem (!%p1131_p5), %s3192_s17, %s3393_s8  ;;  %s3402_s21 = sshrl.u32 (!%p1131_p5), %s1320_s9, 6 }
 0x1f8   : > { %p1822_p12 = scmp.le.s32.totalorder (!%p1131_p5), %s3402_s21, 0 }
 0x1fa   : > { %1687 = sbr.rel (%p1822_p12) target bundleno = 544 (0x220), region = 295  ;;  %s3633_s30 = smov (!%p1822_p12), %s3192_s17 }
 0x1fb   : > { %s3634_s10 = smov (!%p1822_p12), %s3181_s29  ;;  %s3411_s6 = smov (!%p1822_p12), 0  }
 0x1fc   : > { %s3413_s28 = smov (!%p1822_p12), 0  }
 0x1ff LB: >> { %v1333_v17 = vld [vmem:[%s2446_s10] sm:$0xff]  ;;  %v1335_v18 = vld [vmem:[%s2446_s10 + $0x8] sm:$0xff]  ;;  %v1337_v19 = vld [vmem:[%s2446_s10 + $0x10] sm:$0xff]  ;;  %s1461_s4 = sadd.s32 1, %s2450_s6  ;;  %s1327_s28 = sadd.s32 1, %s2454_s28   ;;  %s2454_s28 = sphi %s3413_s28, %s1327_s28   ;;  %s2450_s6 = sphi %s3411_s6, %s3637_s6   ;;  %s2446_s10 = sphi %s3634_s10, %s3636_s10   ;;  %s2442_s30 = sphi %s3633_s30, %s3635_s30  }
 0x200   : >> { %1334 = vst [vmem:[%s2442_s30] sm:$0xff] %v1333_v17  ;;  %1336 = vst [vmem:[%s2442_s30 + $0x8] sm:$0xff] %v1335_v18  ;;  %v1339_v20 = vld [vmem:[%s2446_s10 + $0x18] sm:$0xff]  ;;  %v1341_v21 = vld [vmem:[%s2446_s10 + $0x20] sm:$0xff]  ;;  %p1462_p13 = scmp.ge.s32.totalorder %s1461_s4, %s3402_s21  ;;  %p1326_p0 = scmp.ge.s32.totalorder %s1327_s28, %s3402_s21 }
 0x201   : >> { %1338 = vst [vmem:[%s2442_s30 + $0x10] sm:$0xff] %v1337_v19  ;;  %v1343_v22 = vld [vmem:[%s2446_s10 + $0x28] sm:$0xff]  ;;  %1340 = vst [vmem:[%s2442_s30 + $0x18] sm:$0xff] %v1339_v20  ;;  %v1345_v23 = vld [vmem:[%s2446_s10 + $0x30] sm:$0xff] }
 0x202   : >> { %1342 = vst [vmem:[%s2442_s30 + $0x20] sm:$0xff] %v1341_v21  ;;  %1344 = vst [vmem:[%s2442_s30 + $0x28] sm:$0xff] %v1343_v22  ;;  %v1347_v24 = vld [vmem:[%s2446_s10 + $0x38] sm:$0xff]  ;;  %v1349_v25 = vld [vmem:[%s2446_s10 + $0x40] sm:$0xff]  ;;  %s3658_s4 = smov (%p1462_p13, %s1461_s4), 0 }
 0x203   : >> { %1346 = vst [vmem:[%s2442_s30 + $0x30] sm:$0xff] %v1345_v23  ;;  %1348 = vst [vmem:[%s2442_s30 + $0x38] sm:$0xff] %v1347_v24  ;;  %v1351_v26 = vld [vmem:[%s2446_s10 + $0x48] sm:$0xff]  ;;  %v1353_v27 = vld [vmem:[%s2446_s10 + $0x50] sm:$0xff]  ;;  %s1823_s7 = sshll.u32 %s3658_s4, 9  ;;  %s3637_s6 = smov %s3658_s4 }
 0x204   : >> { %1350 = vst [vmem:[%s2442_s30 + $0x40] sm:$0xff] %v1349_v25  ;;  %v1355_v28 = vld [vmem:[%s2446_s10 + $0x58] sm:$0xff]  ;;  %1352 = vst [vmem:[%s2442_s30 + $0x48] sm:$0xff] %v1351_v26  ;;  %v1357_v29 = vld [vmem:[%s2446_s10 + $0x60] sm:$0xff]  ;;  %s3469_s14 = scalar_lea.vmem %s3181_s29, %s1823_s7 [#allocation3]   ;;  %s3472_s11 = scalar_lea.vmem %s3192_s17, %s1823_s7  }
 0x205   : >> { %1354 = vst [vmem:[%s2442_s30 + $0x50] sm:$0xff] %v1353_v27  ;;  %1356 = vst [vmem:[%s2442_s30 + $0x58] sm:$0xff] %v1355_v28  ;;  %v1359_v30 = vld [vmem:[%s2446_s10 + $0x68] sm:$0xff]  ;;  %v1361_v31 = vld [vmem:[%s2446_s10 + $0x70] sm:$0xff] }
 0x206   : >> { %1358 = vst [vmem:[%s2442_s30 + $0x60] sm:$0xff] %v1357_v29  ;;  %1360 = vst [vmem:[%s2442_s30 + $0x68] sm:$0xff] %v1359_v30  ;;  %v1363_v32 = vld [vmem:[%s2446_s10 + $0x78] sm:$0xff]  ;;  %v1365_v33 = vld [vmem:[%s2446_s10 + $0x80] sm:$0xff] }
 0x207   : >> { %1362 = vst [vmem:[%s2442_s30 + $0x70] sm:$0xff] %v1361_v31  ;;  %v1367_v34 = vld [vmem:[%s2446_s10 + $0x88] sm:$0xff]  ;;  %1364 = vst [vmem:[%s2442_s30 + $0x78] sm:$0xff] %v1363_v32  ;;  %v1369_v35 = vld [vmem:[%s2446_s10 + $0x90] sm:$0xff] }
 0x208   : >> { %1366 = vst [vmem:[%s2442_s30 + $0x80] sm:$0xff] %v1365_v33  ;;  %1368 = vst [vmem:[%s2442_s30 + $0x88] sm:$0xff] %v1367_v34  ;;  %v1371_v36 = vld [vmem:[%s2446_s10 + $0x98] sm:$0xff]  ;;  %v1373_v37 = vld [vmem:[%s2446_s10 + $0xa0] sm:$0xff] }
 0x209   : >> { %1370 = vst [vmem:[%s2442_s30 + $0x90] sm:$0xff] %v1369_v35  ;;  %1372 = vst [vmem:[%s2442_s30 + $0x98] sm:$0xff] %v1371_v36  ;;  %v1375_v38 = vld [vmem:[%s2446_s10 + $0xa8] sm:$0xff]  ;;  %v1377_v39 = vld [vmem:[%s2446_s10 + $0xb0] sm:$0xff] }
 0x20a   : >> { %1374 = vst [vmem:[%s2442_s30 + $0xa0] sm:$0xff] %v1373_v37  ;;  %v1379_v40 = vld [vmem:[%s2446_s10 + $0xb8] sm:$0xff]  ;;  %1376 = vst [vmem:[%s2442_s30 + $0xa8] sm:$0xff] %v1375_v38  ;;  %v1381_v41 = vld [vmem:[%s2446_s10 + $0xc0] sm:$0xff] }
 0x20b   : >> { %1378 = vst [vmem:[%s2442_s30 + $0xb0] sm:$0xff] %v1377_v39  ;;  %1380 = vst [vmem:[%s2442_s30 + $0xb8] sm:$0xff] %v1379_v40  ;;  %v1383_v42 = vld [vmem:[%s2446_s10 + $0xc8] sm:$0xff]  ;;  %v1385_v43 = vld [vmem:[%s2446_s10 + $0xd0] sm:$0xff] }
 0x20c   : >> { %1382 = vst [vmem:[%s2442_s30 + $0xc0] sm:$0xff] %v1381_v41  ;;  %1384 = vst [vmem:[%s2442_s30 + $0xc8] sm:$0xff] %v1383_v42  ;;  %v1387_v44 = vld [vmem:[%s2446_s10 + $0xd8] sm:$0xff]  ;;  %v1389_v45 = vld [vmem:[%s2446_s10 + $0xe0] sm:$0xff] }
 0x20d   : >> { %1386 = vst [vmem:[%s2442_s30 + $0xd0] sm:$0xff] %v1385_v43  ;;  %v1391_v46 = vld [vmem:[%s2446_s10 + $0xe8] sm:$0xff]  ;;  %1388 = vst [vmem:[%s2442_s30 + $0xd8] sm:$0xff] %v1387_v44  ;;  %v1393_v47 = vld [vmem:[%s2446_s10 + $0xf0] sm:$0xff] }
 0x20e   : >> { %1390 = vst [vmem:[%s2442_s30 + $0xe0] sm:$0xff] %v1389_v45  ;;  %1392 = vst [vmem:[%s2442_s30 + $0xe8] sm:$0xff] %v1391_v46  ;;  %v1395_v48 = vld [vmem:[%s2446_s10 + $0xf8] sm:$0xff]  ;;  %v1397_v49 = vld [vmem:[%s2446_s10 + $0x100] sm:$0xff] }
 0x20f   : >> { %1394 = vst [vmem:[%s2442_s30 + $0xf0] sm:$0xff] %v1393_v47  ;;  %1396 = vst [vmem:[%s2442_s30 + $0xf8] sm:$0xff] %v1395_v48  ;;  %v1399_v50 = vld [vmem:[%s2446_s10 + $0x108] sm:$0xff]  ;;  %v1401_v51 = vld [vmem:[%s2446_s10 + $0x110] sm:$0xff] }
 0x210   : >> { %1398 = vst [vmem:[%s2442_s30 + $0x100] sm:$0xff] %v1397_v49  ;;  %v1403_v52 = vld [vmem:[%s2446_s10 + $0x118] sm:$0xff]  ;;  %1400 = vst [vmem:[%s2442_s30 + $0x108] sm:$0xff] %v1399_v50  ;;  %v1405_v53 = vld [vmem:[%s2446_s10 + $0x120] sm:$0xff] }
 0x211   : >> { %1402 = vst [vmem:[%s2442_s30 + $0x110] sm:$0xff] %v1401_v51  ;;  %1404 = vst [vmem:[%s2442_s30 + $0x118] sm:$0xff] %v1403_v52  ;;  %v1407_v54 = vld [vmem:[%s2446_s10 + $0x128] sm:$0xff]  ;;  %v1409_v55 = vld [vmem:[%s2446_s10 + $0x130] sm:$0xff] }
 0x212   : >> { %1406 = vst [vmem:[%s2442_s30 + $0x120] sm:$0xff] %v1405_v53  ;;  %1408 = vst [vmem:[%s2442_s30 + $0x128] sm:$0xff] %v1407_v54  ;;  %v1411_v56 = vld [vmem:[%s2446_s10 + $0x138] sm:$0xff]  ;;  %v1413_v57 = vld [vmem:[%s2446_s10 + $0x140] sm:$0xff] }
 0x213   : >> { %1410 = vst [vmem:[%s2442_s30 + $0x130] sm:$0xff] %v1409_v55  ;;  %v1415_v58 = vld [vmem:[%s2446_s10 + $0x148] sm:$0xff]  ;;  %1412 = vst [vmem:[%s2442_s30 + $0x138] sm:$0xff] %v1411_v56  ;;  %v1417_v59 = vld [vmem:[%s2446_s10 + $0x150] sm:$0xff] }
 0x214   : >> { %1414 = vst [vmem:[%s2442_s30 + $0x140] sm:$0xff] %v1413_v57  ;;  %1416 = vst [vmem:[%s2442_s30 + $0x148] sm:$0xff] %v1415_v58  ;;  %v1419_v60 = vld [vmem:[%s2446_s10 + $0x158] sm:$0xff]  ;;  %v1421_v61 = vld [vmem:[%s2446_s10 + $0x160] sm:$0xff] }
 0x215   : >> { %1418 = vst [vmem:[%s2442_s30 + $0x150] sm:$0xff] %v1417_v59  ;;  %1420 = vst [vmem:[%s2442_s30 + $0x158] sm:$0xff] %v1419_v60  ;;  %v1423_v62 = vld [vmem:[%s2446_s10 + $0x168] sm:$0xff]  ;;  %v1425_v63 = vld [vmem:[%s2446_s10 + $0x170] sm:$0xff] }
 0x216   : >> { %1422 = vst [vmem:[%s2442_s30 + $0x160] sm:$0xff] %v1421_v61  ;;  %v1427_v0 = vld [vmem:[%s2446_s10 + $0x178] sm:$0xff]  ;;  %1424 = vst [vmem:[%s2442_s30 + $0x168] sm:$0xff] %v1423_v62  ;;  %v1429_v1 = vld [vmem:[%s2446_s10 + $0x180] sm:$0xff] }
 0x217   : >> { %1426 = vst [vmem:[%s2442_s30 + $0x170] sm:$0xff] %v1425_v63  ;;  %1428 = vst [vmem:[%s2442_s30 + $0x178] sm:$0xff] %v1427_v0  ;;  %v1431_v2 = vld [vmem:[%s2446_s10 + $0x188] sm:$0xff]  ;;  %v1433_v3 = vld [vmem:[%s2446_s10 + $0x190] sm:$0xff] }
 0x218   : >> { %1430 = vst [vmem:[%s2442_s30 + $0x180] sm:$0xff] %v1429_v1  ;;  %1432 = vst [vmem:[%s2442_s30 + $0x188] sm:$0xff] %v1431_v2  ;;  %v1435_v4 = vld [vmem:[%s2446_s10 + $0x198] sm:$0xff]  ;;  %v1437_v5 = vld [vmem:[%s2446_s10 + $0x1a0] sm:$0xff] }
 0x219   : >> { %1434 = vst [vmem:[%s2442_s30 + $0x190] sm:$0xff] %v1433_v3  ;;  %v1439_v6 = vld [vmem:[%s2446_s10 + $0x1a8] sm:$0xff]  ;;  %1436 = vst [vmem:[%s2442_s30 + $0x198] sm:$0xff] %v1435_v4  ;;  %v1441_v7 = vld [vmem:[%s2446_s10 + $0x1b0] sm:$0xff] }
 0x21a   : >> { %1438 = vst [vmem:[%s2442_s30 + $0x1a0] sm:$0xff] %v1437_v5  ;;  %1440 = vst [vmem:[%s2442_s30 + $0x1a8] sm:$0xff] %v1439_v6  ;;  %v1443_v8 = vld [vmem:[%s2446_s10 + $0x1b8] sm:$0xff]  ;;  %v1445_v9 = vld [vmem:[%s2446_s10 + $0x1c0] sm:$0xff] }
 0x21b   : >> { %1442 = vst [vmem:[%s2442_s30 + $0x1b0] sm:$0xff] %v1441_v7  ;;  %1444 = vst [vmem:[%s2442_s30 + $0x1b8] sm:$0xff] %v1443_v8  ;;  %v1447_v10 = vld [vmem:[%s2446_s10 + $0x1c8] sm:$0xff]  ;;  %v1449_v11 = vld [vmem:[%s2446_s10 + $0x1d0] sm:$0xff]  ;;  %1329 = sbr.rel (!%p1326_p0) target bundleno = 511 (0x1ff), region = 301 }
 0x21c   : >> { %1446 = vst [vmem:[%s2442_s30 + $0x1c0] sm:$0xff] %v1445_v9  ;;  %v1451_v12 = vld [vmem:[%s2446_s10 + $0x1d8] sm:$0xff]  ;;  %1448 = vst [vmem:[%s2442_s30 + $0x1c8] sm:$0xff] %v1447_v10  ;;  %v1453_v13 = vld [vmem:[%s2446_s10 + $0x1e0] sm:$0xff] }
 0x21d   : >> { %1450 = vst [vmem:[%s2442_s30 + $0x1d0] sm:$0xff] %v1449_v11  ;;  %1452 = vst [vmem:[%s2442_s30 + $0x1d8] sm:$0xff] %v1451_v12  ;;  %v1455_v14 = vld [vmem:[%s2446_s10 + $0x1e8] sm:$0xff]  ;;  %v1457_v15 = vld [vmem:[%s2446_s10 + $0x1f0] sm:$0xff] }
 0x21e   : >> { %1454 = vst [vmem:[%s2442_s30 + $0x1e0] sm:$0xff] %v1453_v13  ;;  %1456 = vst [vmem:[%s2442_s30 + $0x1e8] sm:$0xff] %v1455_v14  ;;  %v1459_v16 = vld [vmem:[%s2446_s10 + $0x1f8] sm:$0xff]  ;;  %s3636_s10 = smov %s3469_s14 }
 0x21f   : >> { %1458 = vst [vmem:[%s2442_s30 + $0x1f0] sm:$0xff] %v1457_v15  ;;  %1460 = vst [vmem:[%s2442_s30 + $0x1f8] sm:$0xff] %v1459_v16  ;;  %s3635_s30 = smov %s3472_s11 }
 0x220 PF: > { %s3578_s12 = sand.u32 63, %s1320_s9   ;;  %s1846_s23 = sshll.u32 %s3402_s21, 13 }
 0x221   : > { %s1472_s24 = sshra.s32 %s1846_s23, 4  ;;  %p1828_p1 = scmp.le.s32.totalorder %s3578_s12, 0 }
 0x222   : > { %s1473_s25 = scalar_lea.vmem %s3181_s29, %s1472_s24 [#allocation3]   ;;  %s1476_s26 = scalar_lea.vmem %s3192_s17, %s1472_s24  }
 0x223   : > { %1701 = sbr.rel (%p1828_p1) target bundleno = 560 (0x230), region = 306  ;;  %s2456_s22 = smov (!%p1828_p1), %s1476_s26  }
 0x224   : > { %s2460_s15 = smov (!%p1828_p1), %s1473_s25   ;;  %s2464_s4 = smov (!%p1828_p1), 0  }
 0x225   : > { %s2468_s28 = smov (!%p1828_p1), 0  }
 0x228 LB: >> { %v1488_v17 = vld [vmem:[%s2462_s15] sm:$0xff]  ;;  %s1490_s9 = sadd.s32 1, %s2466_s4  ;;  %s1482_s28 = sadd.s32 1, %s2470_s28   ;;  %s2470_s28 = sphi %s2468_s28, %s1482_s28   ;;  %s2466_s4 = sphi %s2464_s4, %s2465_s4   ;;  %s2462_s15 = sphi %s2460_s15, %s1495_s15   ;;  %s2458_s22 = sphi %s2456_s22, %s1496_s22  }
 0x229   : >> { %1489 = vst [vmem:[%s2458_s22] sm:$0xff] %v1488_v17  ;;  %p1491_p2 = scmp.ge.s32.totalorder %s1490_s9, %s3578_s12  ;;  %p1481_p3 = scmp.ge.s32.totalorder %s1482_s28, %s3578_s12 }
 0x22b   : >> { %s3660_s9 = smov (%p1491_p2, %s1490_s9), 0  ;;  %1484 = sbr.rel (!%p1481_p3) target bundleno = 552 (0x228), region = 312 }
 0x22c   : >> { %s1829_s21 = sshll.u32 %s3660_s9, 3  ;;  %s2465_s4 = smov %s3660_s9  }
 0x22d   : >> { %s1495_s15 = scalar_lea.vmem %s1473_s25, %s1829_s21 [#allocation3]   ;;  %s1496_s22 = scalar_lea.vmem %s1476_s26, %s1829_s21  }
 0x230 PF: > { %s2475_s30 = smov 1  }
 0x231   : > { %s1497_s10 = sshll.u32 %s2475_s30, %s3198_s20 }
 0x232   : > { %s1831_s6 = sadd.s32 4294967295, %s1497_s10 }
 0x233   : > { %v1507_v18 = vld [vmem:[%s1317_s5] sm:%s1831_s6] }
 0x234   : > { %1508 = vst [vmem:[%s1319_s18] sm:%s1831_s6] %v1507_v18 }
 0x235 PF: > { %p1832_p5 = scmp.ge.u32.totalorder %s3194_s27, 8 }
 0x236   : > { %s2476_s7 = smov (!%p1832_p5), 1  }
 0x237   : > { %1117 = sbr.rel (%p1832_p5) target bundleno = 574 (0x23e), region = 114  ;;  %s1118_s14 = sshll.u32 (!%p1832_p5), %s2476_s7, %s3194_s27 }
 0x238   : > { %s1833_s11 = sadd.s32 (!%p1832_p5), 4294967295, %s1118_s14 }
 0x23c   : > { %v1128_v19 = vld [vmem:[%s3181_s29] sm:%s1833_s11] }
 0x23d   : > { %1129 = vst [vmem:[%s3192_s17] sm:%s1833_s11] %v1128_v19 }
 0x23e PF: > { %p10_p4 = scmp.ge.s32.totalorder %s2516_s16, 6   ;;  %s3638_s12 = smov %s2338_s13 }
 0x23f   : > { %s3639_s13 = smov %s2526_s19  ;;  %s3640_s14 = smov %s2516_s16 }
 0x240   :  { %12 = sbr.rel (!%p10_p4) target bundleno = 2 (0x2), region = 323 }

// kernel: generator_forward.7
= control target key start
LH: loop header
LB: loop body
LE: loop exit
PB: predicated region body
PF: predicated region fallthrough
CT: control target
= control target key end

     0   :  { %s3048_s12 = smov 0   ;;  %s3050_s13 = smov 0   ;;  %s4580_s0 = inlined_call_operand.vmem [shape: bf16[4,288], index: 0, kind: input, shape index: {}]   ;;  %s4581_s1 = inlined_call_operand.vmem [shape: bf16[288,1568], index: 1, kind: input, shape index: {}]   ;;  %s4582_s2 = inlined_call_operand.vmem [shape: f32[4,1], index: 2, kind: input, shape index: {}]   ;;  %s4583_s3 = inlined_call_operand.vmem [shape: bf16[4,1568], index: 3, kind: output, shape index: {}]  }
   0x1   :  { %s3052_s14 = smov 0  }
   0x2 LB: > { %s3064_s15 = sadd.s32 4294967295, %s2892_s14   ;;  %s3067_s16 = sadd.s32 1, %s2892_s14   ;;  %s2892_s14 = sphi %s3052_s14, %s4617_s14   ;;  %s2888_s13 = sphi %s3050_s13, %s4616_s13   ;;  %s2884_s12 = sphi %s3048_s12, %s4615_s12  }
   0x3   : > { %s38_s17 = ssub.s32 %s2892_s14, %s3067_s16  ;;  %s41_s18 = sadd.s32 1, %s2888_s13 }
   0x4   : > { %p39_p0 = scmp.eq.s32.totalorder %s38_s17, 0  ;;  %p48_p1 = scmp.ne.s32.totalorder %s2888_s13, %s2884_s12 }
   0x5   : > { %p49_p2 = scmp.eq.s32.totalorder %s2892_s14, 0  ;;  %p99_p3 = scmp.eq.s32.totalorder %s3064_s15, 3 }
   0x6   : > { %s3077_s19 = scalar_select %p39_p0, %s2888_s13, %s41_s18  }
   0x7   : > { %p50_p4 = por %p49_p2, %p48_p1  ;;  %p3079_p5 = por %p99_p3, %p48_p1 }
   0x8   : > { %p2197_p6 = scmp.ge.s32.totalorder %s2892_s14, 4 }
   0xa   : > { %127 = sbr.rel (%p2197_p6) target bundleno = 265 (0x109), region = 24 }
   0xf   : > { %130 = sbr.rel (!%p50_p4) target bundleno = 265 (0x109), region = 28  ;;  %s132_s21 = sand.u32 (%p50_p4), 1, %s2888_s13  }
  0x10   : > { %s2198_s22 = sshll.u32 (%p50_p4), %s2892_s14, 2  ;;  %s2344_s23 = smul.u32 (%p50_p4), 576, %s132_s21 }
  0x11   : > { %s136_s24 = ssub.s32 (%p50_p4), 13, %s2198_s22  ;;  %s2334_s25 = sshll.u32 (%p50_p4), %s2892_s14, 4 }
  0x12   : > { %p137_p7 = scmp.lt.s32.totalorder (%p50_p4), %s136_s24, 4  ;;  %s3090_s28 = scalar_lea.vmem (%p50_p4), %s4581_s1, %s2334_s25  }
  0x13   : > { %s3094_s4 = scalar_lea.vmem (%p50_p4), [#allocation2], %s2344_s23  }
  0x14   : > { %s4619_s24 = smov (!%p137_p7, %s136_s24), 4 }
  0x15   : > { %s139_s29 = smul.u32 2304, %s4619_s24  ;;  %s3092_s30 = sshll.u32 %s4619_s24, 2 }
  0x17   : > { %p2202_p8 = scmp.eq.s32.totalorder %s139_s29, 0 }
  0x18   : > { %p147_p9 = scmp.lt.u32.totalorder (!%p2202_p8), %s3092_s30, 8 }
  0x19   : > { %146 = sbr.rel (%p2202_p8) target bundleno = 265 (0x109), region = 32 }
  0x1e   : > { %150 = sbr.rel (%p147_p9) target bundleno = 222 (0xde), region = 36  ;;  %s3098_s5 = sand.u32 (!%p147_p9), 7, %s3092_s30  }
  0x1f   : > { %p237_p10 = scmp.eq.s32.totalorder (!%p147_p9), %s3098_s5, 0  ;;  %p2203_p11 = scmp.ne.s32.totalorder (!%p147_p9), %s3098_s5, 0 }
  0x23   : > { %240 = sbr.rel (%p2203_p11) target bundleno = 109 (0x6d), region = 51  ;;  %s241_s6 = sshrl.u32 (!%p2203_p11), %s3092_s30, 3 }
  0x24   : > { %s3105_s7 = sshrl.u32 (!%p2203_p11), %s241_s6, 1 }
  0x25   : > { %p2204_p12 = scmp.le.s32.totalorder (!%p2203_p11), %s3105_s7, 0 }
  0x28   : > { %2067 = sbr.rel (%p2204_p12) target bundleno = 82 (0x52), region = 229  ;;  %s4585_s8 = smov (!%p2204_p12), %s3094_s4 }
  0x29   : > { %s4586_s9 = smov (!%p2204_p12), %s3090_s28  ;;  %s3114_s10 = smov (!%p2204_p12), 0  }
  0x2a   : > { %s3116_s11 = smov (!%p2204_p12), 0  }
  0x2d LB: >> { %v254_v0 = vld [vmem:[%s2900_s9] sm:$0xff]  ;;  %v256_v1 = vld [vmem:[%s2900_s9 + $0x8] sm:$0xff]  ;;  %v258_v2 = vld [vmem:[%s2900_s9 + $0x34] sm:$0xff]  ;;  %s398_s17 = sadd.s32 1, %s2904_s10  ;;  %s248_s11 = sadd.s32 1, %s2908_s11   ;;  %s2908_s11 = sphi %s3116_s11, %s248_s11   ;;  %s2904_s10 = sphi %s3114_s10, %s4589_s10   ;;  %s2900_s9 = sphi %s4586_s9, %s4588_s9   ;;  %s2896_s8 = sphi %s4585_s8, %s4587_s8  }
  0x2e   : >> { %255 = vst [vmem:[%s2896_s8] sm:$0xff] %v254_v0  ;;  %257 = vst [vmem:[%s2896_s8 + $0x8] sm:$0xff] %v256_v1  ;;  %v260_v3 = vld [vmem:[%s2900_s9 + $0x3c] sm:$0xff]  ;;  %v262_v4 = vld [vmem:[%s2900_s9 + $0x68] sm:$0xff]  ;;  %p399_p13 = scmp.ge.s32.totalorder %s398_s17, %s3105_s7  ;;  %p247_p0 = scmp.ge.s32.totalorder %s248_s11, %s3105_s7 }
  0x2f   : >> { %259 = vst [vmem:[%s2896_s8 + $0x10] sm:$0xff] %v258_v2  ;;  %v264_v5 = vld [vmem:[%s2900_s9 + $0x70] sm:$0xff]  ;;  %261 = vst [vmem:[%s2896_s8 + $0x18] sm:$0xff] %v260_v3  ;;  %v266_v6 = vld [vmem:[%s2900_s9 + $0x9c] sm:$0xff] }
  0x30   : >> { %263 = vst [vmem:[%s2896_s8 + $0x20] sm:$0xff] %v262_v4  ;;  %265 = vst [vmem:[%s2896_s8 + $0x28] sm:$0xff] %v264_v5  ;;  %v268_v7 = vld [vmem:[%s2900_s9 + $0xa4] sm:$0xff]  ;;  %v270_v8 = vld [vmem:[%s2900_s9 + $0xd0] sm:$0xff]  ;;  %s4621_s17 = smov (%p399_p13, %s398_s17), 0 }
  0x31   : >> { %267 = vst [vmem:[%s2896_s8 + $0x30] sm:$0xff] %v266_v6  ;;  %269 = vst [vmem:[%s2896_s8 + $0x38] sm:$0xff] %v268_v7  ;;  %v272_v9 = vld [vmem:[%s2900_s9 + $0xd8] sm:$0xff]  ;;  %v274_v10 = vld [vmem:[%s2900_s9 + $0x104] sm:$0xff]  ;;  %s2205_s18 = sshll.u32 %s4621_s17, 4  ;;  %s4589_s10 = smov %s4621_s17 }
  0x32   : >> { %271 = vst [vmem:[%s2896_s8 + $0x40] sm:$0xff] %v270_v8  ;;  %v276_v11 = vld [vmem:[%s2900_s9 + $0x10c] sm:$0xff]  ;;  %273 = vst [vmem:[%s2896_s8 + $0x48] sm:$0xff] %v272_v9  ;;  %v278_v12 = vld [vmem:[%s2900_s9 + $0x138] sm:$0xff]  ;;  %s3172_s21 = scalar_lea.vmem %s3090_s28, %s2205_s18   ;;  %s3175_s22 = scalar_lea.vmem %s3094_s4, %s2205_s18 [#allocation2]  }
  0x33   : >> { %275 = vst [vmem:[%s2896_s8 + $0x50] sm:$0xff] %v274_v10  ;;  %277 = vst [vmem:[%s2896_s8 + $0x58] sm:$0xff] %v276_v11  ;;  %v280_v13 = vld [vmem:[%s2900_s9 + $0x140] sm:$0xff]  ;;  %v282_v14 = vld [vmem:[%s2900_s9 + $0x16c] sm:$0xff] }
  0x34   : >> { %279 = vst [vmem:[%s2896_s8 + $0x60] sm:$0xff] %v278_v12  ;;  %281 = vst [vmem:[%s2896_s8 + $0x68] sm:$0xff] %v280_v13  ;;  %v284_v15 = vld [vmem:[%s2900_s9 + $0x174] sm:$0xff]  ;;  %v286_v16 = vld [vmem:[%s2900_s9 + $0x1a0] sm:$0xff] }
  0x35   : >> { %283 = vst [vmem:[%s2896_s8 + $0x70] sm:$0xff] %v282_v14  ;;  %v288_v17 = vld [vmem:[%s2900_s9 + $0x1a8] sm:$0xff]  ;;  %285 = vst [vmem:[%s2896_s8 + $0x78] sm:$0xff] %v284_v15  ;;  %v290_v18 = vld [vmem:[%s2900_s9 + $0x1d4] sm:$0xff] }
  0x36   : >> { %287 = vst [vmem:[%s2896_s8 + $0x80] sm:$0xff] %v286_v16  ;;  %289 = vst [vmem:[%s2896_s8 + $0x88] sm:$0xff] %v288_v17  ;;  %v292_v19 = vld [vmem:[%s2900_s9 + $0x1dc] sm:$0xff]  ;;  %v294_v20 = vld [vmem:[%s2900_s9 + $0x208] sm:$0xff] }
  0x37   : >> { %291 = vst [vmem:[%s2896_s8 + $0x90] sm:$0xff] %v290_v18  ;;  %293 = vst [vmem:[%s2896_s8 + $0x98] sm:$0xff] %v292_v19  ;;  %v296_v21 = vld [vmem:[%s2900_s9 + $0x210] sm:$0xff]  ;;  %v298_v22 = vld [vmem:[%s2900_s9 + $0x23c] sm:$0xff] }
  0x38   : >> { %295 = vst [vmem:[%s2896_s8 + $0xa0] sm:$0xff] %v294_v20  ;;  %v300_v23 = vld [vmem:[%s2900_s9 + $0x244] sm:$0xff]  ;;  %297 = vst [vmem:[%s2896_s8 + $0xa8] sm:$0xff] %v296_v21  ;;  %v302_v24 = vld [vmem:[%s2900_s9 + $0x270] sm:$0xff] }
  0x39   : >> { %299 = vst [vmem:[%s2896_s8 + $0xb0] sm:$0xff] %v298_v22  ;;  %301 = vst [vmem:[%s2896_s8 + $0xb8] sm:$0xff] %v300_v23  ;;  %v304_v25 = vld [vmem:[%s2900_s9 + $0x278] sm:$0xff]  ;;  %v306_v26 = vld [vmem:[%s2900_s9 + $0x2a4] sm:$0xff] }
  0x3a   : >> { %303 = vst [vmem:[%s2896_s8 + $0xc0] sm:$0xff] %v302_v24  ;;  %305 = vst [vmem:[%s2896_s8 + $0xc8] sm:$0xff] %v304_v25  ;;  %v308_v27 = vld [vmem:[%s2900_s9 + $0x2ac] sm:$0xff]  ;;  %v310_v28 = vld [vmem:[%s2900_s9 + $0x2d8] sm:$0xff] }
  0x3b   : >> { %307 = vst [vmem:[%s2896_s8 + $0xd0] sm:$0xff] %v306_v26  ;;  %v312_v29 = vld [vmem:[%s2900_s9 + $0x2e0] sm:$0xff]  ;;  %309 = vst [vmem:[%s2896_s8 + $0xd8] sm:$0xff] %v308_v27  ;;  %v314_v30 = vld [vmem:[%s2900_s9 + $0x30c] sm:$0xff] }
  0x3c   : >> { %311 = vst [vmem:[%s2896_s8 + $0xe0] sm:$0xff] %v310_v28  ;;  %313 = vst [vmem:[%s2896_s8 + $0xe8] sm:$0xff] %v312_v29  ;;  %v316_v31 = vld [vmem:[%s2900_s9 + $0x314] sm:$0xff]  ;;  %v318_v32 = vld [vmem:[%s2900_s9 + $0x340] sm:$0xff] }
  0x3d   : >> { %315 = vst [vmem:[%s2896_s8 + $0xf0] sm:$0xff] %v314_v30  ;;  %317 = vst [vmem:[%s2896_s8 + $0xf8] sm:$0xff] %v316_v31  ;;  %v320_v33 = vld [vmem:[%s2900_s9 + $0x348] sm:$0xff]  ;;  %v322_v34 = vld [vmem:[%s2900_s9 + $0x374] sm:$0xff] }
  0x3e   : >> { %319 = vst [vmem:[%s2896_s8 + $0x100] sm:$0xff] %v318_v32  ;;  %v324_v35 = vld [vmem:[%s2900_s9 + $0x37c] sm:$0xff]  ;;  %321 = vst [vmem:[%s2896_s8 + $0x108] sm:$0xff] %v320_v33  ;;  %v326_v36 = vld [vmem:[%s2900_s9 + $0x3a8] sm:$0xff] }
  0x3f   : >> { %323 = vst [vmem:[%s2896_s8 + $0x110] sm:$0xff] %v322_v34  ;;  %325 = vst [vmem:[%s2896_s8 + $0x118] sm:$0xff] %v324_v35  ;;  %v328_v37 = vld [vmem:[%s2900_s9 + $0x3b0] sm:$0xff]  ;;  %v330_v38 = vld [vmem:[%s2900_s9 + $0x3dc] sm:$0xff] }
  0x40   : >> { %327 = vst [vmem:[%s2896_s8 + $0x120] sm:$0xff] %v326_v36  ;;  %329 = vst [vmem:[%s2896_s8 + $0x128] sm:$0xff] %v328_v37  ;;  %v332_v39 = vld [vmem:[%s2900_s9 + $0x3e4] sm:$0xff]  ;;  %v334_v40 = vld [vmem:[%s2900_s9 + $0x410] sm:$0xff] }
  0x41   : >> { %331 = vst [vmem:[%s2896_s8 + $0x130] sm:$0xff] %v330_v38  ;;  %v336_v41 = vld [vmem:[%s2900_s9 + $0x418] sm:$0xff]  ;;  %333 = vst [vmem:[%s2896_s8 + $0x138] sm:$0xff] %v332_v39  ;;  %v338_v42 = vld [vmem:[%s2900_s9 + $0x444] sm:$0xff] }
  0x42   : >> { %335 = vst [vmem:[%s2896_s8 + $0x140] sm:$0xff] %v334_v40  ;;  %337 = vst [vmem:[%s2896_s8 + $0x148] sm:$0xff] %v336_v41  ;;  %v340_v43 = vld [vmem:[%s2900_s9 + $0x44c] sm:$0xff]  ;;  %v342_v44 = vld [vmem:[%s2900_s9 + $0x478] sm:$0xff] }
  0x43   : >> { %339 = vst [vmem:[%s2896_s8 + $0x150] sm:$0xff] %v338_v42  ;;  %341 = vst [vmem:[%s2896_s8 + $0x158] sm:$0xff] %v340_v43  ;;  %v344_v45 = vld [vmem:[%s2900_s9 + $0x480] sm:$0xff]  ;;  %v346_v46 = vld [vmem:[%s2900_s9 + $0x4ac] sm:$0xff] }
  0x44   : >> { %343 = vst [vmem:[%s2896_s8 + $0x160] sm:$0xff] %v342_v44  ;;  %v348_v47 = vld [vmem:[%s2900_s9 + $0x4b4] sm:$0xff]  ;;  %345 = vst [vmem:[%s2896_s8 + $0x168] sm:$0xff] %v344_v45  ;;  %v350_v48 = vld [vmem:[%s2900_s9 + $0x4e0] sm:$0xff] }
  0x45   : >> { %347 = vst [vmem:[%s2896_s8 + $0x170] sm:$0xff] %v346_v46  ;;  %349 = vst [vmem:[%s2896_s8 + $0x178] sm:$0xff] %v348_v47  ;;  %v352_v49 = vld [vmem:[%s2900_s9 + $0x4e8] sm:$0xff]  ;;  %v354_v50 = vld [vmem:[%s2900_s9 + $0x514] sm:$0xff] }
  0x46   : >> { %351 = vst [vmem:[%s2896_s8 + $0x180] sm:$0xff] %v350_v48  ;;  %353 = vst [vmem:[%s2896_s8 + $0x188] sm:$0xff] %v352_v49  ;;  %v356_v51 = vld [vmem:[%s2900_s9 + $0x51c] sm:$0xff]  ;;  %v358_v52 = vld [vmem:[%s2900_s9 + $0x548] sm:$0xff] }
  0x47   : >> { %355 = vst [vmem:[%s2896_s8 + $0x190] sm:$0xff] %v354_v50  ;;  %v360_v53 = vld [vmem:[%s2900_s9 + $0x550] sm:$0xff]  ;;  %357 = vst [vmem:[%s2896_s8 + $0x198] sm:$0xff] %v356_v51  ;;  %v362_v54 = vld [vmem:[%s2900_s9 + $0x57c] sm:$0xff] }
  0x48   : >> { %359 = vst [vmem:[%s2896_s8 + $0x1a0] sm:$0xff] %v358_v52  ;;  %361 = vst [vmem:[%s2896_s8 + $0x1a8] sm:$0xff] %v360_v53  ;;  %v364_v55 = vld [vmem:[%s2900_s9 + $0x584] sm:$0xff]  ;;  %v366_v56 = vld [vmem:[%s2900_s9 + $0x5b0] sm:$0xff] }
  0x49   : >> { %363 = vst [vmem:[%s2896_s8 + $0x1b0] sm:$0xff] %v362_v54  ;;  %365 = vst [vmem:[%s2896_s8 + $0x1b8] sm:$0xff] %v364_v55  ;;  %v368_v57 = vld [vmem:[%s2900_s9 + $0x5b8] sm:$0xff]  ;;  %v370_v58 = vld [vmem:[%s2900_s9 + $0x5e4] sm:$0xff] }
  0x4a   : >> { %367 = vst [vmem:[%s2896_s8 + $0x1c0] sm:$0xff] %v366_v56  ;;  %v372_v59 = vld [vmem:[%s2900_s9 + $0x5ec] sm:$0xff]  ;;  %369 = vst [vmem:[%s2896_s8 + $0x1c8] sm:$0xff] %v368_v57  ;;  %v374_v60 = vld [vmem:[%s2900_s9 + $0x618] sm:$0xff] }
  0x4b   : >> { %371 = vst [vmem:[%s2896_s8 + $0x1d0] sm:$0xff] %v370_v58  ;;  %373 = vst [vmem:[%s2896_s8 + $0x1d8] sm:$0xff] %v372_v59  ;;  %v376_v61 = vld [vmem:[%s2900_s9 + $0x620] sm:$0xff]  ;;  %v378_v62 = vld [vmem:[%s2900_s9 + $0x64c] sm:$0xff] }
  0x4c   : >> { %375 = vst [vmem:[%s2896_s8 + $0x1e0] sm:$0xff] %v374_v60  ;;  %377 = vst [vmem:[%s2896_s8 + $0x1e8] sm:$0xff] %v376_v61  ;;  %v380_v63 = vld [vmem:[%s2900_s9 + $0x654] sm:$0xff]  ;;  %v382_v0 = vld [vmem:[%s2900_s9 + $0x680] sm:$0xff] }
  0x4d   : >> { %379 = vst [vmem:[%s2896_s8 + $0x1f0] sm:$0xff] %v378_v62  ;;  %v384_v1 = vld [vmem:[%s2900_s9 + $0x688] sm:$0xff]  ;;  %381 = vst [vmem:[%s2896_s8 + $0x1f8] sm:$0xff] %v380_v63  ;;  %v386_v2 = vld [vmem:[%s2900_s9 + $0x6b4] sm:$0xff]  ;;  %250 = sbr.rel (!%p247_p0) target bundleno = 45 (0x2d), region = 235 }
  0x4e   : >> { %383 = vst [vmem:[%s2896_s8 + $0x200] sm:$0xff] %v382_v0  ;;  %385 = vst [vmem:[%s2896_s8 + $0x208] sm:$0xff] %v384_v1  ;;  %v388_v3 = vld [vmem:[%s2900_s9 + $0x6bc] sm:$0xff]  ;;  %v390_v4 = vld [vmem:[%s2900_s9 + $0x6e8] sm:$0xff] }
  0x4f   : >> { %387 = vst [vmem:[%s2896_s8 + $0x210] sm:$0xff] %v386_v2  ;;  %389 = vst [vmem:[%s2896_s8 + $0x218] sm:$0xff] %v388_v3  ;;  %v392_v5 = vld [vmem:[%s2900_s9 + $0x6f0] sm:$0xff]  ;;  %v394_v6 = vld [vmem:[%s2900_s9 + $0x71c] sm:$0xff] }
  0x50   : >> { %391 = vst [vmem:[%s2896_s8 + $0x220] sm:$0xff] %v390_v4  ;;  %v396_v7 = vld [vmem:[%s2900_s9 + $0x724] sm:$0xff]  ;;  %393 = vst [vmem:[%s2896_s8 + $0x228] sm:$0xff] %v392_v5  ;;  %s4588_s9 = smov %s3172_s21 }
  0x51   : >> { %395 = vst [vmem:[%s2896_s8 + $0x230] sm:$0xff] %v394_v6  ;;  %397 = vst [vmem:[%s2896_s8 + $0x238] sm:$0xff] %v396_v7  ;;  %s4587_s8 = smov %s3175_s22 }
  0x52 PF: > { %s3297_s23 = sand.u32 1, %s241_s6   ;;  %s2335_s24 = sshll.u32 %s3105_s7, 8 }
  0x53   : > { %s409_s25 = sshra.s32 %s2335_s24, 4  ;;  %p2210_p1 = scmp.le.s32.totalorder %s3297_s23, 0 }
  0x54   : > { %s3301_s26 = scalar_lea.vmem %s3090_s28, %s409_s25   ;;  %s3304_s27 = scalar_lea.vmem %s3094_s4, %s409_s25 [#allocation2]  }
  0x55   : > { %2081 = sbr.rel (%p2210_p1) target bundleno = 109 (0x6d), region = 240  ;;  %s4590_s29 = smov (!%p2210_p1), %s3304_s27 }
  0x56   : > { %s4591_s8 = smov (!%p2210_p1), %s3301_s26  ;;  %s3313_s9 = smov (!%p2210_p1), 0  }
  0x57   : > { %s3315_s10 = smov (!%p2210_p1), 0  }
  0x5a LB: >> { %v425_v8 = vld [vmem:[%s2916_s8] sm:$0xff]  ;;  %v427_v9 = vld [vmem:[%s2916_s8 + $0x34] sm:$0xff]  ;;  %v429_v10 = vld [vmem:[%s2916_s8 + $0x68] sm:$0xff]  ;;  %s497_s6 = sadd.s32 1, %s2920_s9  ;;  %s419_s10 = sadd.s32 1, %s2924_s10   ;;  %s2924_s10 = sphi %s3315_s10, %s419_s10   ;;  %s2920_s9 = sphi %s3313_s9, %s4594_s9   ;;  %s2916_s8 = sphi %s4591_s8, %s4593_s8   ;;  %s2912_s29 = sphi %s4590_s29, %s4592_s29  }
  0x5b   : >> { %426 = vst [vmem:[%s2912_s29] sm:$0xff] %v425_v8  ;;  %428 = vst [vmem:[%s2912_s29 + $0x10] sm:$0xff] %v427_v9  ;;  %v431_v11 = vld [vmem:[%s2916_s8 + $0x9c] sm:$0xff]  ;;  %v433_v12 = vld [vmem:[%s2916_s8 + $0xd0] sm:$0xff]  ;;  %p498_p2 = scmp.ge.s32.totalorder %s497_s6, %s3297_s23  ;;  %p418_p3 = scmp.ge.s32.totalorder %s419_s10, %s3297_s23 }
  0x5c   : >> { %430 = vst [vmem:[%s2912_s29 + $0x20] sm:$0xff] %v429_v10  ;;  %v435_v13 = vld [vmem:[%s2916_s8 + $0x104] sm:$0xff]  ;;  %432 = vst [vmem:[%s2912_s29 + $0x30] sm:$0xff] %v431_v11  ;;  %v437_v14 = vld [vmem:[%s2916_s8 + $0x138] sm:$0xff] }
  0x5d   : >> { %434 = vst [vmem:[%s2912_s29 + $0x40] sm:$0xff] %v433_v12  ;;  %436 = vst [vmem:[%s2912_s29 + $0x50] sm:$0xff] %v435_v13  ;;  %v439_v15 = vld [vmem:[%s2916_s8 + $0x16c] sm:$0xff]  ;;  %v441_v16 = vld [vmem:[%s2916_s8 + $0x1a0] sm:$0xff]  ;;  %s4623_s6 = smov (%p498_p2, %s497_s6), 0 }
  0x5e   : >> { %438 = vst [vmem:[%s2912_s29 + $0x60] sm:$0xff] %v437_v14  ;;  %440 = vst [vmem:[%s2912_s29 + $0x70] sm:$0xff] %v439_v15  ;;  %v443_v17 = vld [vmem:[%s2916_s8 + $0x1d4] sm:$0xff]  ;;  %v445_v18 = vld [vmem:[%s2916_s8 + $0x208] sm:$0xff]  ;;  %s2211_s7 = sshll.u32 %s4623_s6, 3  ;;  %s4594_s9 = smov %s4623_s6 }
  0x5f   : >> { %442 = vst [vmem:[%s2912_s29 + $0x80] sm:$0xff] %v441_v16  ;;  %v447_v19 = vld [vmem:[%s2916_s8 + $0x23c] sm:$0xff]  ;;  %444 = vst [vmem:[%s2912_s29 + $0x90] sm:$0xff] %v443_v17  ;;  %v449_v20 = vld [vmem:[%s2916_s8 + $0x270] sm:$0xff]  ;;  %s3371_s11 = scalar_lea.vmem %s3301_s26, %s2211_s7   ;;  %s3374_s17 = scalar_lea.vmem %s3304_s27, %s2211_s7 [#allocation2]  }
  0x60   : >> { %446 = vst [vmem:[%s2912_s29 + $0xa0] sm:$0xff] %v445_v18  ;;  %448 = vst [vmem:[%s2912_s29 + $0xb0] sm:$0xff] %v447_v19  ;;  %v451_v21 = vld [vmem:[%s2916_s8 + $0x2a4] sm:$0xff]  ;;  %v453_v22 = vld [vmem:[%s2916_s8 + $0x2d8] sm:$0xff] }
  0x61   : >> { %450 = vst [vmem:[%s2912_s29 + $0xc0] sm:$0xff] %v449_v20  ;;  %452 = vst [vmem:[%s2912_s29 + $0xd0] sm:$0xff] %v451_v21  ;;  %v455_v23 = vld [vmem:[%s2916_s8 + $0x30c] sm:$0xff]  ;;  %v457_v24 = vld [vmem:[%s2916_s8 + $0x340] sm:$0xff] }
  0x62   : >> { %454 = vst [vmem:[%s2912_s29 + $0xe0] sm:$0xff] %v453_v22  ;;  %v459_v25 = vld [vmem:[%s2916_s8 + $0x374] sm:$0xff]  ;;  %456 = vst [vmem:[%s2912_s29 + $0xf0] sm:$0xff] %v455_v23  ;;  %v461_v26 = vld [vmem:[%s2916_s8 + $0x3a8] sm:$0xff] }
  0x63   : >> { %458 = vst [vmem:[%s2912_s29 + $0x100] sm:$0xff] %v457_v24  ;;  %460 = vst [vmem:[%s2912_s29 + $0x110] sm:$0xff] %v459_v25  ;;  %v463_v27 = vld [vmem:[%s2916_s8 + $0x3dc] sm:$0xff]  ;;  %v465_v28 = vld [vmem:[%s2916_s8 + $0x410] sm:$0xff] }
  0x64   : >> { %462 = vst [vmem:[%s2912_s29 + $0x120] sm:$0xff] %v461_v26  ;;  %464 = vst [vmem:[%s2912_s29 + $0x130] sm:$0xff] %v463_v27  ;;  %v467_v29 = vld [vmem:[%s2916_s8 + $0x444] sm:$0xff]  ;;  %v469_v30 = vld [vmem:[%s2916_s8 + $0x478] sm:$0xff] }
  0x65   : >> { %466 = vst [vmem:[%s2912_s29 + $0x140] sm:$0xff] %v465_v28  ;;  %v471_v31 = vld [vmem:[%s2916_s8 + $0x4ac] sm:$0xff]  ;;  %468 = vst [vmem:[%s2912_s29 + $0x150] sm:$0xff] %v467_v29  ;;  %v473_v32 = vld [vmem:[%s2916_s8 + $0x4e0] sm:$0xff] }
  0x66   : >> { %470 = vst [vmem:[%s2912_s29 + $0x160] sm:$0xff] %v469_v30  ;;  %472 = vst [vmem:[%s2912_s29 + $0x170] sm:$0xff] %v471_v31  ;;  %v475_v33 = vld [vmem:[%s2916_s8 + $0x514] sm:$0xff]  ;;  %v477_v34 = vld [vmem:[%s2916_s8 + $0x548] sm:$0xff] }
  0x67   : >> { %474 = vst [vmem:[%s2912_s29 + $0x180] sm:$0xff] %v473_v32  ;;  %476 = vst [vmem:[%s2912_s29 + $0x190] sm:$0xff] %v475_v33  ;;  %v479_v35 = vld [vmem:[%s2916_s8 + $0x57c] sm:$0xff]  ;;  %v481_v36 = vld [vmem:[%s2916_s8 + $0x5b0] sm:$0xff] }
  0x68   : >> { %478 = vst [vmem:[%s2912_s29 + $0x1a0] sm:$0xff] %v477_v34  ;;  %v483_v37 = vld [vmem:[%s2916_s8 + $0x5e4] sm:$0xff]  ;;  %480 = vst [vmem:[%s2912_s29 + $0x1b0] sm:$0xff] %v479_v35  ;;  %v485_v38 = vld [vmem:[%s2916_s8 + $0x618] sm:$0xff]  ;;  %421 = sbr.rel (!%p418_p3) target bundleno = 90 (0x5a), region = 246 }
  0x69   : >> { %482 = vst [vmem:[%s2912_s29 + $0x1c0] sm:$0xff] %v481_v36  ;;  %484 = vst [vmem:[%s2912_s29 + $0x1d0] sm:$0xff] %v483_v37  ;;  %v487_v39 = vld [vmem:[%s2916_s8 + $0x64c] sm:$0xff]  ;;  %v489_v40 = vld [vmem:[%s2916_s8 + $0x680] sm:$0xff] }
  0x6a   : >> { %486 = vst [vmem:[%s2912_s29 + $0x1e0] sm:$0xff] %v485_v38  ;;  %488 = vst [vmem:[%s2912_s29 + $0x1f0] sm:$0xff] %v487_v39  ;;  %v491_v41 = vld [vmem:[%s2916_s8 + $0x6b4] sm:$0xff]  ;;  %v493_v42 = vld [vmem:[%s2916_s8 + $0x6e8] sm:$0xff] }
  0x6b   : >> { %490 = vst [vmem:[%s2912_s29 + $0x200] sm:$0xff] %v489_v40  ;;  %v495_v43 = vld [vmem:[%s2916_s8 + $0x71c] sm:$0xff]  ;;  %492 = vst [vmem:[%s2912_s29 + $0x210] sm:$0xff] %v491_v41  ;;  %s4593_s8 = smov %s3371_s11 }
  0x6c   : >> { %494 = vst [vmem:[%s2912_s29 + $0x220] sm:$0xff] %v493_v42  ;;  %496 = vst [vmem:[%s2912_s29 + $0x230] sm:$0xff] %v495_v43  ;;  %s4592_s29 = smov %s3374_s17 }
  0x6d PF: > { %506 = sbr.rel (%p237_p10) target bundleno = 222 (0xde), region = 69  ;;  %s508_s18 = ssub.s32 (!%p237_p10), %s3092_s30, %s3098_s5 }
  0x6e   : > { %s512_s21 = sshrl.u32 (!%p237_p10), %s3092_s30, 3  ;;  %s3428_s22 = scalar_lea.vmem (!%p237_p10), %s3090_s28, %s508_s18 }
  0x6f   : > { %s3431_s24 = scalar_lea.vmem (!%p237_p10), %s3094_s4, %s508_s18 [#allocation2]  ;;  %s3435_s25 = sshrl.u32 (!%p237_p10), %s512_s21, 1 }
  0x70   : > { %p2213_p4 = scmp.le.s32.totalorder (!%p237_p10), %s3435_s25, 0 }
  0x72   : > { %2095 = sbr.rel (%p2213_p4) target bundleno = 156 (0x9c), region = 251  ;;  %s4595_s23 = smov (!%p2213_p4), %s3094_s4 }
  0x73   : > { %s4596_s26 = smov (!%p2213_p4), %s3090_s28  ;;  %s3444_s27 = smov (!%p2213_p4), 0  }
  0x74   : > { %s3446_s29 = smov (!%p2213_p4), 0  }
  0x77 LB: >> { %v525_v44 = vld [vmem:[%s2932_s26] sm:$0xff]  ;;  %v527_v45 = vld [vmem:[%s2932_s26 + $0x8] sm:$0xff]  ;;  %v529_v46 = vld [vmem:[%s2932_s26 + $0x34] sm:$0xff]  ;;  %s669_s8 = sadd.s32 1, %s2936_s27  ;;  %s519_s29 = sadd.s32 1, %s2940_s29   ;;  %s2940_s29 = sphi %s3446_s29, %s519_s29   ;;  %s2936_s27 = sphi %s3444_s27, %s4599_s27   ;;  %s2932_s26 = sphi %s4596_s26, %s4598_s26   ;;  %s2928_s23 = sphi %s4595_s23, %s4597_s23  }
  0x78   : >> { %526 = vst [vmem:[%s2928_s23] sm:$0xff] %v525_v44  ;;  %528 = vst [vmem:[%s2928_s23 + $0x8] sm:$0xff] %v527_v45  ;;  %v531_v47 = vld [vmem:[%s2932_s26 + $0x3c] sm:$0xff]  ;;  %v533_v48 = vld [vmem:[%s2932_s26 + $0x68] sm:$0xff]  ;;  %p670_p6 = scmp.ge.s32.totalorder %s669_s8, %s3435_s25  ;;  %p518_p7 = scmp.ge.s32.totalorder %s519_s29, %s3435_s25 }
  0x79   : >> { %530 = vst [vmem:[%s2928_s23 + $0x10] sm:$0xff] %v529_v46  ;;  %v535_v49 = vld [vmem:[%s2932_s26 + $0x70] sm:$0xff]  ;;  %532 = vst [vmem:[%s2928_s23 + $0x18] sm:$0xff] %v531_v47  ;;  %v537_v50 = vld [vmem:[%s2932_s26 + $0x9c] sm:$0xff] }
  0x7a   : >> { %534 = vst [vmem:[%s2928_s23 + $0x20] sm:$0xff] %v533_v48  ;;  %536 = vst [vmem:[%s2928_s23 + $0x28] sm:$0xff] %v535_v49  ;;  %v539_v51 = vld [vmem:[%s2932_s26 + $0xa4] sm:$0xff]  ;;  %v541_v52 = vld [vmem:[%s2932_s26 + $0xd0] sm:$0xff]  ;;  %s4625_s8 = smov (%p670_p6, %s669_s8), 0 }
  0x7b   : >> { %538 = vst [vmem:[%s2928_s23 + $0x30] sm:$0xff] %v537_v50  ;;  %540 = vst [vmem:[%s2928_s23 + $0x38] sm:$0xff] %v539_v51  ;;  %v543_v53 = vld [vmem:[%s2932_s26 + $0xd8] sm:$0xff]  ;;  %v545_v54 = vld [vmem:[%s2932_s26 + $0x104] sm:$0xff]  ;;  %s2214_s9 = sshll.u32 %s4625_s8, 4  ;;  %s4599_s27 = smov %s4625_s8 }
  0x7c   : >> { %542 = vst [vmem:[%s2928_s23 + $0x40] sm:$0xff] %v541_v52  ;;  %v547_v55 = vld [vmem:[%s2932_s26 + $0x10c] sm:$0xff]  ;;  %544 = vst [vmem:[%s2928_s23 + $0x48] sm:$0xff] %v543_v53  ;;  %v549_v56 = vld [vmem:[%s2932_s26 + $0x138] sm:$0xff]  ;;  %s3502_s10 = scalar_lea.vmem %s3090_s28, %s2214_s9   ;;  %s3505_s6 = scalar_lea.vmem %s3094_s4, %s2214_s9 [#allocation2]  }
  0x7d   : >> { %546 = vst [vmem:[%s2928_s23 + $0x50] sm:$0xff] %v545_v54  ;;  %548 = vst [vmem:[%s2928_s23 + $0x58] sm:$0xff] %v547_v55  ;;  %v551_v57 = vld [vmem:[%s2932_s26 + $0x140] sm:$0xff]  ;;  %v553_v58 = vld [vmem:[%s2932_s26 + $0x16c] sm:$0xff] }
  0x7e   : >> { %550 = vst [vmem:[%s2928_s23 + $0x60] sm:$0xff] %v549_v56  ;;  %552 = vst [vmem:[%s2928_s23 + $0x68] sm:$0xff] %v551_v57  ;;  %v555_v59 = vld [vmem:[%s2932_s26 + $0x174] sm:$0xff]  ;;  %v557_v60 = vld [vmem:[%s2932_s26 + $0x1a0] sm:$0xff] }
  0x7f   : >> { %554 = vst [vmem:[%s2928_s23 + $0x70] sm:$0xff] %v553_v58  ;;  %v559_v61 = vld [vmem:[%s2932_s26 + $0x1a8] sm:$0xff]  ;;  %556 = vst [vmem:[%s2928_s23 + $0x78] sm:$0xff] %v555_v59  ;;  %v561_v62 = vld [vmem:[%s2932_s26 + $0x1d4] sm:$0xff] }
  0x80   : >> { %558 = vst [vmem:[%s2928_s23 + $0x80] sm:$0xff] %v557_v60  ;;  %560 = vst [vmem:[%s2928_s23 + $0x88] sm:$0xff] %v559_v61  ;;  %v563_v63 = vld [vmem:[%s2932_s26 + $0x1dc] sm:$0xff]  ;;  %v565_v0 = vld [vmem:[%s2932_s26 + $0x208] sm:$0xff] }
  0x81   : >> { %562 = vst [vmem:[%s2928_s23 + $0x90] sm:$0xff] %v561_v62  ;;  %564 = vst [vmem:[%s2928_s23 + $0x98] sm:$0xff] %v563_v63  ;;  %v567_v1 = vld [vmem:[%s2932_s26 + $0x210] sm:$0xff]  ;;  %v569_v2 = vld [vmem:[%s2932_s26 + $0x23c] sm:$0xff] }
  0x82   : >> { %566 = vst [vmem:[%s2928_s23 + $0xa0] sm:$0xff] %v565_v0  ;;  %v571_v3 = vld [vmem:[%s2932_s26 + $0x244] sm:$0xff]  ;;  %568 = vst [vmem:[%s2928_s23 + $0xa8] sm:$0xff] %v567_v1  ;;  %v573_v4 = vld [vmem:[%s2932_s26 + $0x270] sm:$0xff] }
  0x83   : >> { %570 = vst [vmem:[%s2928_s23 + $0xb0] sm:$0xff] %v569_v2  ;;  %572 = vst [vmem:[%s2928_s23 + $0xb8] sm:$0xff] %v571_v3  ;;  %v575_v5 = vld [vmem:[%s2932_s26 + $0x278] sm:$0xff]  ;;  %v577_v6 = vld [vmem:[%s2932_s26 + $0x2a4] sm:$0xff] }
  0x84   : >> { %574 = vst [vmem:[%s2928_s23 + $0xc0] sm:$0xff] %v573_v4  ;;  %576 = vst [vmem:[%s2928_s23 + $0xc8] sm:$0xff] %v575_v5  ;;  %v579_v7 = vld [vmem:[%s2932_s26 + $0x2ac] sm:$0xff]  ;;  %v581_v8 = vld [vmem:[%s2932_s26 + $0x2d8] sm:$0xff] }
  0x85   : >> { %578 = vst [vmem:[%s2928_s23 + $0xd0] sm:$0xff] %v577_v6  ;;  %v583_v9 = vld [vmem:[%s2932_s26 + $0x2e0] sm:$0xff]  ;;  %580 = vst [vmem:[%s2928_s23 + $0xd8] sm:$0xff] %v579_v7  ;;  %v585_v10 = vld [vmem:[%s2932_s26 + $0x30c] sm:$0xff] }
  0x86   : >> { %582 = vst [vmem:[%s2928_s23 + $0xe0] sm:$0xff] %v581_v8  ;;  %584 = vst [vmem:[%s2928_s23 + $0xe8] sm:$0xff] %v583_v9  ;;  %v587_v11 = vld [vmem:[%s2932_s26 + $0x314] sm:$0xff]  ;;  %v589_v12 = vld [vmem:[%s2932_s26 + $0x340] sm:$0xff] }
  0x87   : >> { %586 = vst [vmem:[%s2928_s23 + $0xf0] sm:$0xff] %v585_v10  ;;  %588 = vst [vmem:[%s2928_s23 + $0xf8] sm:$0xff] %v587_v11  ;;  %v591_v13 = vld [vmem:[%s2932_s26 + $0x348] sm:$0xff]  ;;  %v593_v14 = vld [vmem:[%s2932_s26 + $0x374] sm:$0xff] }
  0x88   : >> { %590 = vst [vmem:[%s2928_s23 + $0x100] sm:$0xff] %v589_v12  ;;  %v595_v15 = vld [vmem:[%s2932_s26 + $0x37c] sm:$0xff]  ;;  %592 = vst [vmem:[%s2928_s23 + $0x108] sm:$0xff] %v591_v13  ;;  %v597_v16 = vld [vmem:[%s2932_s26 + $0x3a8] sm:$0xff] }
  0x89   : >> { %594 = vst [vmem:[%s2928_s23 + $0x110] sm:$0xff] %v593_v14  ;;  %596 = vst [vmem:[%s2928_s23 + $0x118] sm:$0xff] %v595_v15  ;;  %v599_v17 = vld [vmem:[%s2932_s26 + $0x3b0] sm:$0xff]  ;;  %v601_v18 = vld [vmem:[%s2932_s26 + $0x3dc] sm:$0xff] }
  0x8a   : >> { %598 = vst [vmem:[%s2928_s23 + $0x120] sm:$0xff] %v597_v16  ;;  %600 = vst [vmem:[%s2928_s23 + $0x128] sm:$0xff] %v599_v17  ;;  %v603_v19 = vld [vmem:[%s2932_s26 + $0x3e4] sm:$0xff]  ;;  %v605_v20 = vld [vmem:[%s2932_s26 + $0x410] sm:$0xff] }
  0x8b   : >> { %602 = vst [vmem:[%s2928_s23 + $0x130] sm:$0xff] %v601_v18  ;;  %v607_v21 = vld [vmem:[%s2932_s26 + $0x418] sm:$0xff]  ;;  %604 = vst [vmem:[%s2928_s23 + $0x138] sm:$0xff] %v603_v19  ;;  %v609_v22 = vld [vmem:[%s2932_s26 + $0x444] sm:$0xff] }
  0x8c   : >> { %606 = vst [vmem:[%s2928_s23 + $0x140] sm:$0xff] %v605_v20  ;;  %608 = vst [vmem:[%s2928_s23 + $0x148] sm:$0xff] %v607_v21  ;;  %v611_v23 = vld [vmem:[%s2932_s26 + $0x44c] sm:$0xff]  ;;  %v613_v24 = vld [vmem:[%s2932_s26 + $0x478] sm:$0xff] }
  0x8d   : >> { %610 = vst [vmem:[%s2928_s23 + $0x150] sm:$0xff] %v609_v22  ;;  %612 = vst [vmem:[%s2928_s23 + $0x158] sm:$0xff] %v611_v23  ;;  %v615_v25 = vld [vmem:[%s2932_s26 + $0x480] sm:$0xff]  ;;  %v617_v26 = vld [vmem:[%s2932_s26 + $0x4ac] sm:$0xff] }
  0x8e   : >> { %614 = vst [vmem:[%s2928_s23 + $0x160] sm:$0xff] %v613_v24  ;;  %v619_v27 = vld [vmem:[%s2932_s26 + $0x4b4] sm:$0xff]  ;;  %616 = vst [vmem:[%s2928_s23 + $0x168] sm:$0xff] %v615_v25  ;;  %v621_v28 = vld [vmem:[%s2932_s26 + $0x4e0] sm:$0xff] }
  0x8f   : >> { %618 = vst [vmem:[%s2928_s23 + $0x170] sm:$0xff] %v617_v26  ;;  %620 = vst [vmem:[%s2928_s23 + $0x178] sm:$0xff] %v619_v27  ;;  %v623_v29 = vld [vmem:[%s2932_s26 + $0x4e8] sm:$0xff]  ;;  %v625_v30 = vld [vmem:[%s2932_s26 + $0x514] sm:$0xff] }
  0x90   : >> { %622 = vst [vmem:[%s2928_s23 + $0x180] sm:$0xff] %v621_v28  ;;  %624 = vst [vmem:[%s2928_s23 + $0x188] sm:$0xff] %v623_v29  ;;  %v627_v31 = vld [vmem:[%s2932_s26 + $0x51c] sm:$0xff]  ;;  %v629_v32 = vld [vmem:[%s2932_s26 + $0x548] sm:$0xff] }
  0x91   : >> { %626 = vst [vmem:[%s2928_s23 + $0x190] sm:$0xff] %v625_v30  ;;  %v631_v33 = vld [vmem:[%s2932_s26 + $0x550] sm:$0xff]  ;;  %628 = vst [vmem:[%s2928_s23 + $0x198] sm:$0xff] %v627_v31  ;;  %v633_v34 = vld [vmem:[%s2932_s26 + $0x57c] sm:$0xff] }
  0x92   : >> { %630 = vst [vmem:[%s2928_s23 + $0x1a0] sm:$0xff] %v629_v32  ;;  %632 = vst [vmem:[%s2928_s23 + $0x1a8] sm:$0xff] %v631_v33  ;;  %v635_v35 = vld [vmem:[%s2932_s26 + $0x584] sm:$0xff]  ;;  %v637_v36 = vld [vmem:[%s2932_s26 + $0x5b0] sm:$0xff] }
  0x93   : >> { %634 = vst [vmem:[%s2928_s23 + $0x1b0] sm:$0xff] %v633_v34  ;;  %636 = vst [vmem:[%s2928_s23 + $0x1b8] sm:$0xff] %v635_v35  ;;  %v639_v37 = vld [vmem:[%s2932_s26 + $0x5b8] sm:$0xff]  ;;  %v641_v38 = vld [vmem:[%s2932_s26 + $0x5e4] sm:$0xff] }
  0x94   : >> { %638 = vst [vmem:[%s2928_s23 + $0x1c0] sm:$0xff] %v637_v36  ;;  %v643_v39 = vld [vmem:[%s2932_s26 + $0x5ec] sm:$0xff]  ;;  %640 = vst [vmem:[%s2928_s23 + $0x1c8] sm:$0xff] %v639_v37  ;;  %v645_v40 = vld [vmem:[%s2932_s26 + $0x618] sm:$0xff] }
  0x95   : >> { %642 = vst [vmem:[%s2928_s23 + $0x1d0] sm:$0xff] %v641_v38  ;;  %644 = vst [vmem:[%s2928_s23 + $0x1d8] sm:$0xff] %v643_v39  ;;  %v647_v41 = vld [vmem:[%s2932_s26 + $0x620] sm:$0xff]  ;;  %v649_v42 = vld [vmem:[%s2932_s26 + $0x64c] sm:$0xff] }
  0x96   : >> { %646 = vst [vmem:[%s2928_s23 + $0x1e0] sm:$0xff] %v645_v40  ;;  %648 = vst [vmem:[%s2928_s23 + $0x1e8] sm:$0xff] %v647_v41  ;;  %v651_v43 = vld [vmem:[%s2932_s26 + $0x654] sm:$0xff]  ;;  %v653_v44 = vld [vmem:[%s2932_s26 + $0x680] sm:$0xff] }
  0x97   : >> { %650 = vst [vmem:[%s2928_s23 + $0x1f0] sm:$0xff] %v649_v42  ;;  %v655_v45 = vld [vmem:[%s2932_s26 + $0x688] sm:$0xff]  ;;  %652 = vst [vmem:[%s2928_s23 + $0x1f8] sm:$0xff] %v651_v43  ;;  %v657_v46 = vld [vmem:[%s2932_s26 + $0x6b4] sm:$0xff]  ;;  %521 = sbr.rel (!%p518_p7) target bundleno = 119 (0x77), region = 257 }
  0x98   : >> { %654 = vst [vmem:[%s2928_s23 + $0x200] sm:$0xff] %v653_v44  ;;  %656 = vst [vmem:[%s2928_s23 + $0x208] sm:$0xff] %v655_v45  ;;  %v659_v47 = vld [vmem:[%s2932_s26 + $0x6bc] sm:$0xff]  ;;  %v661_v48 = vld [vmem:[%s2932_s26 + $0x6e8] sm:$0xff] }
  0x99   : >> { %658 = vst [vmem:[%s2928_s23 + $0x210] sm:$0xff] %v657_v46  ;;  %660 = vst [vmem:[%s2928_s23 + $0x218] sm:$0xff] %v659_v47  ;;  %v663_v49 = vld [vmem:[%s2932_s26 + $0x6f0] sm:$0xff]  ;;  %v665_v50 = vld [vmem:[%s2932_s26 + $0x71c] sm:$0xff] }
  0x9a   : >> { %662 = vst [vmem:[%s2928_s23 + $0x220] sm:$0xff] %v661_v48  ;;  %v667_v51 = vld [vmem:[%s2932_s26 + $0x724] sm:$0xff]  ;;  %664 = vst [vmem:[%s2928_s23 + $0x228] sm:$0xff] %v663_v49  ;;  %s4598_s26 = smov %s3502_s10 }
  0x9b   : >> { %666 = vst [vmem:[%s2928_s23 + $0x230] sm:$0xff] %v665_v50  ;;  %668 = vst [vmem:[%s2928_s23 + $0x238] sm:$0xff] %v667_v51  ;;  %s4597_s23 = smov %s3505_s6 }
  0x9c PF: > { %s3627_s7 = sand.u32 1, %s512_s21   ;;  %s2337_s11 = sshll.u32 %s3435_s25, 8 }
  0x9d   : > { %s680_s17 = sshra.s32 %s2337_s11, 4  ;;  %p2219_p8 = scmp.le.s32.totalorder %s3627_s7, 0 }
  0x9e   : > { %s3631_s18 = scalar_lea.vmem %s3090_s28, %s680_s17   ;;  %s3634_s9 = scalar_lea.vmem %s3094_s4, %s680_s17 [#allocation2]  }
  0x9f   : > { %2109 = sbr.rel (%p2219_p8) target bundleno = 183 (0xb7), region = 262  ;;  %s4600_s23 = smov (!%p2219_p8), %s3634_s9 }
  0xa0   : > { %s4601_s26 = smov (!%p2219_p8), %s3631_s18  ;;  %s3643_s27 = smov (!%p2219_p8), 0  }
  0xa1   : > { %s3645_s29 = smov (!%p2219_p8), 0  }
  0xa4 LB: >> { %v696_v52 = vld [vmem:[%s2948_s26] sm:$0xff]  ;;  %v698_v53 = vld [vmem:[%s2948_s26 + $0x34] sm:$0xff]  ;;  %v700_v54 = vld [vmem:[%s2948_s26 + $0x68] sm:$0xff]  ;;  %s768_s21 = sadd.s32 1, %s2952_s27  ;;  %s690_s29 = sadd.s32 1, %s2956_s29   ;;  %s2956_s29 = sphi %s3645_s29, %s690_s29   ;;  %s2952_s27 = sphi %s3643_s27, %s4604_s27   ;;  %s2948_s26 = sphi %s4601_s26, %s4603_s26   ;;  %s2944_s23 = sphi %s4600_s23, %s4602_s23  }
  0xa5   : >> { %697 = vst [vmem:[%s2944_s23] sm:$0xff] %v696_v52  ;;  %699 = vst [vmem:[%s2944_s23 + $0x10] sm:$0xff] %v698_v53  ;;  %v702_v55 = vld [vmem:[%s2948_s26 + $0x9c] sm:$0xff]  ;;  %v704_v56 = vld [vmem:[%s2948_s26 + $0xd0] sm:$0xff]  ;;  %p769_p9 = scmp.ge.s32.totalorder %s768_s21, %s3627_s7  ;;  %p689_p10 = scmp.ge.s32.totalorder %s690_s29, %s3627_s7 }
  0xa6   : >> { %701 = vst [vmem:[%s2944_s23 + $0x20] sm:$0xff] %v700_v54  ;;  %v706_v57 = vld [vmem:[%s2948_s26 + $0x104] sm:$0xff]  ;;  %703 = vst [vmem:[%s2944_s23 + $0x30] sm:$0xff] %v702_v55  ;;  %v708_v58 = vld [vmem:[%s2948_s26 + $0x138] sm:$0xff] }
  0xa7   : >> { %705 = vst [vmem:[%s2944_s23 + $0x40] sm:$0xff] %v704_v56  ;;  %707 = vst [vmem:[%s2944_s23 + $0x50] sm:$0xff] %v706_v57  ;;  %v710_v59 = vld [vmem:[%s2948_s26 + $0x16c] sm:$0xff]  ;;  %v712_v60 = vld [vmem:[%s2948_s26 + $0x1a0] sm:$0xff]  ;;  %s4627_s21 = smov (%p769_p9, %s768_s21), 0 }
  0xa8   : >> { %709 = vst [vmem:[%s2944_s23 + $0x60] sm:$0xff] %v708_v58  ;;  %711 = vst [vmem:[%s2944_s23 + $0x70] sm:$0xff] %v710_v59  ;;  %v714_v61 = vld [vmem:[%s2948_s26 + $0x1d4] sm:$0xff]  ;;  %v716_v62 = vld [vmem:[%s2948_s26 + $0x208] sm:$0xff]  ;;  %s2220_s25 = sshll.u32 %s4627_s21, 3  ;;  %s4604_s27 = smov %s4627_s21 }
  0xa9   : >> { %713 = vst [vmem:[%s2944_s23 + $0x80] sm:$0xff] %v712_v60  ;;  %v718_v63 = vld [vmem:[%s2948_s26 + $0x23c] sm:$0xff]  ;;  %715 = vst [vmem:[%s2944_s23 + $0x90] sm:$0xff] %v714_v61  ;;  %v720_v0 = vld [vmem:[%s2948_s26 + $0x270] sm:$0xff]  ;;  %s3701_s8 = scalar_lea.vmem %s3631_s18, %s2220_s25   ;;  %s3704_s10 = scalar_lea.vmem %s3634_s9, %s2220_s25 [#allocation2]  }
  0xaa   : >> { %717 = vst [vmem:[%s2944_s23 + $0xa0] sm:$0xff] %v716_v62  ;;  %719 = vst [vmem:[%s2944_s23 + $0xb0] sm:$0xff] %v718_v63  ;;  %v722_v1 = vld [vmem:[%s2948_s26 + $0x2a4] sm:$0xff]  ;;  %v724_v2 = vld [vmem:[%s2948_s26 + $0x2d8] sm:$0xff] }
  0xab   : >> { %721 = vst [vmem:[%s2944_s23 + $0xc0] sm:$0xff] %v720_v0  ;;  %723 = vst [vmem:[%s2944_s23 + $0xd0] sm:$0xff] %v722_v1  ;;  %v726_v3 = vld [vmem:[%s2948_s26 + $0x30c] sm:$0xff]  ;;  %v728_v4 = vld [vmem:[%s2948_s26 + $0x340] sm:$0xff] }
  0xac   : >> { %725 = vst [vmem:[%s2944_s23 + $0xe0] sm:$0xff] %v724_v2  ;;  %v730_v5 = vld [vmem:[%s2948_s26 + $0x374] sm:$0xff]  ;;  %727 = vst [vmem:[%s2944_s23 + $0xf0] sm:$0xff] %v726_v3  ;;  %v732_v6 = vld [vmem:[%s2948_s26 + $0x3a8] sm:$0xff] }
  0xad   : >> { %729 = vst [vmem:[%s2944_s23 + $0x100] sm:$0xff] %v728_v4  ;;  %731 = vst [vmem:[%s2944_s23 + $0x110] sm:$0xff] %v730_v5  ;;  %v734_v7 = vld [vmem:[%s2948_s26 + $0x3dc] sm:$0xff]  ;;  %v736_v8 = vld [vmem:[%s2948_s26 + $0x410] sm:$0xff] }
  0xae   : >> { %733 = vst [vmem:[%s2944_s23 + $0x120] sm:$0xff] %v732_v6  ;;  %735 = vst [vmem:[%s2944_s23 + $0x130] sm:$0xff] %v734_v7  ;;  %v738_v9 = vld [vmem:[%s2948_s26 + $0x444] sm:$0xff]  ;;  %v740_v10 = vld [vmem:[%s2948_s26 + $0x478] sm:$0xff] }
  0xaf   : >> { %737 = vst [vmem:[%s2944_s23 + $0x140] sm:$0xff] %v736_v8  ;;  %v742_v11 = vld [vmem:[%s2948_s26 + $0x4ac] sm:$0xff]  ;;  %739 = vst [vmem:[%s2944_s23 + $0x150] sm:$0xff] %v738_v9  ;;  %v744_v12 = vld [vmem:[%s2948_s26 + $0x4e0] sm:$0xff] }
  0xb0   : >> { %741 = vst [vmem:[%s2944_s23 + $0x160] sm:$0xff] %v740_v10  ;;  %743 = vst [vmem:[%s2944_s23 + $0x170] sm:$0xff] %v742_v11  ;;  %v746_v13 = vld [vmem:[%s2948_s26 + $0x514] sm:$0xff]  ;;  %v748_v14 = vld [vmem:[%s2948_s26 + $0x548] sm:$0xff] }
  0xb1   : >> { %745 = vst [vmem:[%s2944_s23 + $0x180] sm:$0xff] %v744_v12  ;;  %747 = vst [vmem:[%s2944_s23 + $0x190] sm:$0xff] %v746_v13  ;;  %v750_v15 = vld [vmem:[%s2948_s26 + $0x57c] sm:$0xff]  ;;  %v752_v16 = vld [vmem:[%s2948_s26 + $0x5b0] sm:$0xff] }
  0xb2   : >> { %749 = vst [vmem:[%s2944_s23 + $0x1a0] sm:$0xff] %v748_v14  ;;  %v754_v17 = vld [vmem:[%s2948_s26 + $0x5e4] sm:$0xff]  ;;  %751 = vst [vmem:[%s2944_s23 + $0x1b0] sm:$0xff] %v750_v15  ;;  %v756_v18 = vld [vmem:[%s2948_s26 + $0x618] sm:$0xff]  ;;  %692 = sbr.rel (!%p689_p10) target bundleno = 164 (0xa4), region = 268 }
  0xb3   : >> { %753 = vst [vmem:[%s2944_s23 + $0x1c0] sm:$0xff] %v752_v16  ;;  %755 = vst [vmem:[%s2944_s23 + $0x1d0] sm:$0xff] %v754_v17  ;;  %v758_v19 = vld [vmem:[%s2948_s26 + $0x64c] sm:$0xff]  ;;  %v760_v20 = vld [vmem:[%s2948_s26 + $0x680] sm:$0xff] }
  0xb4   : >> { %757 = vst [vmem:[%s2944_s23 + $0x1e0] sm:$0xff] %v756_v18  ;;  %759 = vst [vmem:[%s2944_s23 + $0x1f0] sm:$0xff] %v758_v19  ;;  %v762_v21 = vld [vmem:[%s2948_s26 + $0x6b4] sm:$0xff]  ;;  %v764_v22 = vld [vmem:[%s2948_s26 + $0x6e8] sm:$0xff] }
  0xb5   : >> { %761 = vst [vmem:[%s2944_s23 + $0x200] sm:$0xff] %v760_v20  ;;  %v766_v23 = vld [vmem:[%s2948_s26 + $0x71c] sm:$0xff]  ;;  %763 = vst [vmem:[%s2944_s23 + $0x210] sm:$0xff] %v762_v21  ;;  %s4603_s26 = smov %s3701_s8 }
  0xb6   : >> { %765 = vst [vmem:[%s2944_s23 + $0x220] sm:$0xff] %v764_v22  ;;  %767 = vst [vmem:[%s2944_s23 + $0x230] sm:$0xff] %v766_v23  ;;  %s4602_s23 = smov %s3704_s10 }
  0xb7 PF: > { %s3022_s6 = smov 1  }
  0xb8   : > { %s775_s11 = sshll.u32 %s3022_s6, %s3098_s5 }
  0xb9   : > { %s3753_s17 = sadd.s32 4294967295, %s775_s11 }
  0xba   : > { %v785_v24 = vld [vmem:[%s3428_s22] sm:%s3753_s17]  ;;  %v787_v25 = vld [vmem:[%s3428_s22 + $0x34] sm:%s3753_s17] }
  0xbb   : > { %786 = vst [vmem:[%s3431_s24] sm:%s3753_s17] %v785_v24  ;;  %788 = vst [vmem:[%s3431_s24 + $0x10] sm:%s3753_s17] %v787_v25 }
  0xbc   : > { %v789_v26 = vld [vmem:[%s3428_s22 + $0x68] sm:%s3753_s17]  ;;  %v791_v27 = vld [vmem:[%s3428_s22 + $0x9c] sm:%s3753_s17] }
  0xbd   : > { %790 = vst [vmem:[%s3431_s24 + $0x20] sm:%s3753_s17] %v789_v26  ;;  %792 = vst [vmem:[%s3431_s24 + $0x30] sm:%s3753_s17] %v791_v27 }
  0xbe   : > { %v793_v28 = vld [vmem:[%s3428_s22 + $0xd0] sm:%s3753_s17]  ;;  %v795_v29 = vld [vmem:[%s3428_s22 + $0x104] sm:%s3753_s17] }
  0xbf   : > { %794 = vst [vmem:[%s3431_s24 + $0x40] sm:%s3753_s17] %v793_v28  ;;  %796 = vst [vmem:[%s3431_s24 + $0x50] sm:%s3753_s17] %v795_v29 }
  0xc0   : > { %v797_v30 = vld [vmem:[%s3428_s22 + $0x138] sm:%s3753_s17]  ;;  %v799_v31 = vld [vmem:[%s3428_s22 + $0x16c] sm:%s3753_s17] }
  0xc1   : > { %798 = vst [vmem:[%s3431_s24 + $0x60] sm:%s3753_s17] %v797_v30  ;;  %800 = vst [vmem:[%s3431_s24 + $0x70] sm:%s3753_s17] %v799_v31 }
  0xc2   : > { %v801_v32 = vld [vmem:[%s3428_s22 + $0x1a0] sm:%s3753_s17]  ;;  %v803_v33 = vld [vmem:[%s3428_s22 + $0x1d4] sm:%s3753_s17] }
  0xc3   : > { %802 = vst [vmem:[%s3431_s24 + $0x80] sm:%s3753_s17] %v801_v32  ;;  %804 = vst [vmem:[%s3431_s24 + $0x90] sm:%s3753_s17] %v803_v33 }
  0xc4   : > { %v805_v34 = vld [vmem:[%s3428_s22 + $0x208] sm:%s3753_s17]  ;;  %v807_v35 = vld [vmem:[%s3428_s22 + $0x23c] sm:%s3753_s17] }
  0xc5   : > { %806 = vst [vmem:[%s3431_s24 + $0xa0] sm:%s3753_s17] %v805_v34  ;;  %808 = vst [vmem:[%s3431_s24 + $0xb0] sm:%s3753_s17] %v807_v35 }
  0xc6   : > { %v809_v36 = vld [vmem:[%s3428_s22 + $0x270] sm:%s3753_s17]  ;;  %v811_v37 = vld [vmem:[%s3428_s22 + $0x2a4] sm:%s3753_s17] }
  0xc7   : > { %810 = vst [vmem:[%s3431_s24 + $0xc0] sm:%s3753_s17] %v809_v36  ;;  %812 = vst [vmem:[%s3431_s24 + $0xd0] sm:%s3753_s17] %v811_v37 }
  0xc8   : > { %v813_v38 = vld [vmem:[%s3428_s22 + $0x2d8] sm:%s3753_s17]  ;;  %v815_v39 = vld [vmem:[%s3428_s22 + $0x30c] sm:%s3753_s17] }
  0xc9   : > { %814 = vst [vmem:[%s3431_s24 + $0xe0] sm:%s3753_s17] %v813_v38  ;;  %816 = vst [vmem:[%s3431_s24 + $0xf0] sm:%s3753_s17] %v815_v39 }
  0xca   : > { %v817_v40 = vld [vmem:[%s3428_s22 + $0x340] sm:%s3753_s17]  ;;  %v819_v41 = vld [vmem:[%s3428_s22 + $0x374] sm:%s3753_s17] }
  0xcb   : > { %818 = vst [vmem:[%s3431_s24 + $0x100] sm:%s3753_s17] %v817_v40  ;;  %820 = vst [vmem:[%s3431_s24 + $0x110] sm:%s3753_s17] %v819_v41 }
  0xcc   : > { %v821_v42 = vld [vmem:[%s3428_s22 + $0x3a8] sm:%s3753_s17]  ;;  %v823_v43 = vld [vmem:[%s3428_s22 + $0x3dc] sm:%s3753_s17] }
  0xcd   : > { %822 = vst [vmem:[%s3431_s24 + $0x120] sm:%s3753_s17] %v821_v42  ;;  %824 = vst [vmem:[%s3431_s24 + $0x130] sm:%s3753_s17] %v823_v43 }
  0xce   : > { %v825_v44 = vld [vmem:[%s3428_s22 + $0x410] sm:%s3753_s17]  ;;  %v827_v45 = vld [vmem:[%s3428_s22 + $0x444] sm:%s3753_s17] }
  0xcf   : > { %826 = vst [vmem:[%s3431_s24 + $0x140] sm:%s3753_s17] %v825_v44  ;;  %828 = vst [vmem:[%s3431_s24 + $0x150] sm:%s3753_s17] %v827_v45 }
  0xd0   : > { %v829_v46 = vld [vmem:[%s3428_s22 + $0x478] sm:%s3753_s17]  ;;  %v831_v47 = vld [vmem:[%s3428_s22 + $0x4ac] sm:%s3753_s17] }
  0xd1   : > { %830 = vst [vmem:[%s3431_s24 + $0x160] sm:%s3753_s17] %v829_v46  ;;  %832 = vst [vmem:[%s3431_s24 + $0x170] sm:%s3753_s17] %v831_v47 }
  0xd2   : > { %v833_v48 = vld [vmem:[%s3428_s22 + $0x4e0] sm:%s3753_s17]  ;;  %v835_v49 = vld [vmem:[%s3428_s22 + $0x514] sm:%s3753_s17] }
  0xd3   : > { %834 = vst [vmem:[%s3431_s24 + $0x180] sm:%s3753_s17] %v833_v48  ;;  %836 = vst [vmem:[%s3431_s24 + $0x190] sm:%s3753_s17] %v835_v49 }
  0xd4   : > { %v837_v50 = vld [vmem:[%s3428_s22 + $0x548] sm:%s3753_s17]  ;;  %v839_v51 = vld [vmem:[%s3428_s22 + $0x57c] sm:%s3753_s17] }
  0xd5   : > { %838 = vst [vmem:[%s3431_s24 + $0x1a0] sm:%s3753_s17] %v837_v50  ;;  %840 = vst [vmem:[%s3431_s24 + $0x1b0] sm:%s3753_s17] %v839_v51 }
  0xd6   : > { %v841_v52 = vld [vmem:[%s3428_s22 + $0x5b0] sm:%s3753_s17]  ;;  %v843_v53 = vld [vmem:[%s3428_s22 + $0x5e4] sm:%s3753_s17] }
  0xd7   : > { %842 = vst [vmem:[%s3431_s24 + $0x1c0] sm:%s3753_s17] %v841_v52  ;;  %844 = vst [vmem:[%s3431_s24 + $0x1d0] sm:%s3753_s17] %v843_v53 }
  0xd8   : > { %v845_v54 = vld [vmem:[%s3428_s22 + $0x618] sm:%s3753_s17]  ;;  %v847_v55 = vld [vmem:[%s3428_s22 + $0x64c] sm:%s3753_s17] }
  0xd9   : > { %846 = vst [vmem:[%s3431_s24 + $0x1e0] sm:%s3753_s17] %v845_v54  ;;  %848 = vst [vmem:[%s3431_s24 + $0x1f0] sm:%s3753_s17] %v847_v55 }
  0xda   : > { %v849_v56 = vld [vmem:[%s3428_s22 + $0x680] sm:%s3753_s17]  ;;  %v851_v57 = vld [vmem:[%s3428_s22 + $0x6b4] sm:%s3753_s17] }
  0xdb   : > { %850 = vst [vmem:[%s3431_s24 + $0x200] sm:%s3753_s17] %v849_v56  ;;  %852 = vst [vmem:[%s3431_s24 + $0x210] sm:%s3753_s17] %v851_v57 }
  0xdc   : > { %v853_v58 = vld [vmem:[%s3428_s22 + $0x6e8] sm:%s3753_s17]  ;;  %v855_v59 = vld [vmem:[%s3428_s22 + $0x71c] sm:%s3753_s17] }
  0xdd   : > { %854 = vst [vmem:[%s3431_s24 + $0x220] sm:%s3753_s17] %v853_v58  ;;  %856 = vst [vmem:[%s3431_s24 + $0x230] sm:%s3753_s17] %v855_v59 }
  0xde PF: > { %p2223_p11 = scmp.ge.u32.totalorder %s3092_s30, 8 }
  0xdf   : > { %s3023_s5 = smov (!%p2223_p11), 1  }
  0xe0   : > { %153 = sbr.rel (%p2223_p11) target bundleno = 265 (0x109), region = 40  ;;  %s154_s22 = sshll.u32 (!%p2223_p11), %s3023_s5, %s3092_s30 }
  0xe1   : > { %s3901_s24 = sadd.s32 (!%p2223_p11), 4294967295, %s154_s22 }
  0xe5   : > { %v164_v60 = vld [vmem:[%s3090_s28] sm:%s3901_s24]  ;;  %v166_v61 = vld [vmem:[%s3090_s28 + $0x34] sm:%s3901_s24] }
  0xe6   : > { %165 = vst [vmem:[%s3094_s4] sm:%s3901_s24] %v164_v60  ;;  %167 = vst [vmem:[%s3094_s4 + $0x10] sm:%s3901_s24] %v166_v61 }
  0xe7   : > { %v168_v62 = vld [vmem:[%s3090_s28 + $0x68] sm:%s3901_s24]  ;;  %v170_v63 = vld [vmem:[%s3090_s28 + $0x9c] sm:%s3901_s24] }
  0xe8   : > { %169 = vst [vmem:[%s3094_s4 + $0x20] sm:%s3901_s24] %v168_v62  ;;  %171 = vst [vmem:[%s3094_s4 + $0x30] sm:%s3901_s24] %v170_v63 }
  0xe9   : > { %v172_v0 = vld [vmem:[%s3090_s28 + $0xd0] sm:%s3901_s24]  ;;  %v174_v1 = vld [vmem:[%s3090_s28 + $0x104] sm:%s3901_s24] }
  0xea   : > { %173 = vst [vmem:[%s3094_s4 + $0x40] sm:%s3901_s24] %v172_v0  ;;  %175 = vst [vmem:[%s3094_s4 + $0x50] sm:%s3901_s24] %v174_v1 }
  0xeb   : > { %v176_v2 = vld [vmem:[%s3090_s28 + $0x138] sm:%s3901_s24]  ;;  %v178_v3 = vld [vmem:[%s3090_s28 + $0x16c] sm:%s3901_s24] }
  0xec   : > { %177 = vst [vmem:[%s3094_s4 + $0x60] sm:%s3901_s24] %v176_v2  ;;  %179 = vst [vmem:[%s3094_s4 + $0x70] sm:%s3901_s24] %v178_v3 }
  0xed   : > { %v180_v4 = vld [vmem:[%s3090_s28 + $0x1a0] sm:%s3901_s24]  ;;  %v182_v5 = vld [vmem:[%s3090_s28 + $0x1d4] sm:%s3901_s24] }
  0xee   : > { %181 = vst [vmem:[%s3094_s4 + $0x80] sm:%s3901_s24] %v180_v4  ;;  %183 = vst [vmem:[%s3094_s4 + $0x90] sm:%s3901_s24] %v182_v5 }
  0xef   : > { %v184_v6 = vld [vmem:[%s3090_s28 + $0x208] sm:%s3901_s24]  ;;  %v186_v7 = vld [vmem:[%s3090_s28 + $0x23c] sm:%s3901_s24] }
  0xf0   : > { %185 = vst [vmem:[%s3094_s4 + $0xa0] sm:%s3901_s24] %v184_v6  ;;  %187 = vst [vmem:[%s3094_s4 + $0xb0] sm:%s3901_s24] %v186_v7 }
  0xf1   : > { %v188_v8 = vld [vmem:[%s3090_s28 + $0x270] sm:%s3901_s24]  ;;  %v190_v9 = vld [vmem:[%s3090_s28 + $0x2a4] sm:%s3901_s24] }
  0xf2   : > { %189 = vst [vmem:[%s3094_s4 + $0xc0] sm:%s3901_s24] %v188_v8  ;;  %191 = vst [vmem:[%s3094_s4 + $0xd0] sm:%s3901_s24] %v190_v9 }
  0xf3   : > { %v192_v10 = vld [vmem:[%s3090_s28 + $0x2d8] sm:%s3901_s24]  ;;  %v194_v11 = vld [vmem:[%s3090_s28 + $0x30c] sm:%s3901_s24] }
  0xf4   : > { %193 = vst [vmem:[%s3094_s4 + $0xe0] sm:%s3901_s24] %v192_v10  ;;  %195 = vst [vmem:[%s3094_s4 + $0xf0] sm:%s3901_s24] %v194_v11 }
  0xf5   : > { %v196_v12 = vld [vmem:[%s3090_s28 + $0x340] sm:%s3901_s24]  ;;  %v198_v13 = vld [vmem:[%s3090_s28 + $0x374] sm:%s3901_s24] }
  0xf6   : > { %197 = vst [vmem:[%s3094_s4 + $0x100] sm:%s3901_s24] %v196_v12  ;;  %199 = vst [vmem:[%s3094_s4 + $0x110] sm:%s3901_s24] %v198_v13 }
  0xf7   : > { %v200_v14 = vld [vmem:[%s3090_s28 + $0x3a8] sm:%s3901_s24]  ;;  %v202_v15 = vld [vmem:[%s3090_s28 + $0x3dc] sm:%s3901_s24] }
  0xf8   : > { %201 = vst [vmem:[%s3094_s4 + $0x120] sm:%s3901_s24] %v200_v14  ;;  %203 = vst [vmem:[%s3094_s4 + $0x130] sm:%s3901_s24] %v202_v15 }
  0xf9   : > { %v204_v16 = vld [vmem:[%s3090_s28 + $0x410] sm:%s3901_s24]  ;;  %v206_v17 = vld [vmem:[%s3090_s28 + $0x444] sm:%s3901_s24] }
  0xfa   : > { %205 = vst [vmem:[%s3094_s4 + $0x140] sm:%s3901_s24] %v204_v16  ;;  %207 = vst [vmem:[%s3094_s4 + $0x150] sm:%s3901_s24] %v206_v17 }
  0xfb   : > { %v208_v18 = vld [vmem:[%s3090_s28 + $0x478] sm:%s3901_s24]  ;;  %v210_v19 = vld [vmem:[%s3090_s28 + $0x4ac] sm:%s3901_s24] }
  0xfc   : > { %209 = vst [vmem:[%s3094_s4 + $0x160] sm:%s3901_s24] %v208_v18  ;;  %211 = vst [vmem:[%s3094_s4 + $0x170] sm:%s3901_s24] %v210_v19 }
  0xfd   : > { %v212_v20 = vld [vmem:[%s3090_s28 + $0x4e0] sm:%s3901_s24]  ;;  %v214_v21 = vld [vmem:[%s3090_s28 + $0x514] sm:%s3901_s24] }
  0xfe   : > { %213 = vst [vmem:[%s3094_s4 + $0x180] sm:%s3901_s24] %v212_v20  ;;  %215 = vst [vmem:[%s3094_s4 + $0x190] sm:%s3901_s24] %v214_v21 }
  0xff   : > { %v216_v22 = vld [vmem:[%s3090_s28 + $0x548] sm:%s3901_s24]  ;;  %v218_v23 = vld [vmem:[%s3090_s28 + $0x57c] sm:%s3901_s24] }
 0x100   : > { %217 = vst [vmem:[%s3094_s4 + $0x1a0] sm:%s3901_s24] %v216_v22  ;;  %219 = vst [vmem:[%s3094_s4 + $0x1b0] sm:%s3901_s24] %v218_v23 }
 0x101   : > { %v220_v24 = vld [vmem:[%s3090_s28 + $0x5b0] sm:%s3901_s24]  ;;  %v222_v25 = vld [vmem:[%s3090_s28 + $0x5e4] sm:%s3901_s24] }
 0x102   : > { %221 = vst [vmem:[%s3094_s4 + $0x1c0] sm:%s3901_s24] %v220_v24  ;;  %223 = vst [vmem:[%s3094_s4 + $0x1d0] sm:%s3901_s24] %v222_v25 }
 0x103   : > { %v224_v26 = vld [vmem:[%s3090_s28 + $0x618] sm:%s3901_s24]  ;;  %v226_v27 = vld [vmem:[%s3090_s28 + $0x64c] sm:%s3901_s24] }
 0x104   : > { %225 = vst [vmem:[%s3094_s4 + $0x1e0] sm:%s3901_s24] %v224_v26  ;;  %227 = vst [vmem:[%s3094_s4 + $0x1f0] sm:%s3901_s24] %v226_v27 }
 0x105   : > { %v228_v28 = vld [vmem:[%s3090_s28 + $0x680] sm:%s3901_s24]  ;;  %v230_v29 = vld [vmem:[%s3090_s28 + $0x6b4] sm:%s3901_s24] }
 0x106   : > { %229 = vst [vmem:[%s3094_s4 + $0x200] sm:%s3901_s24] %v228_v28  ;;  %231 = vst [vmem:[%s3094_s4 + $0x210] sm:%s3901_s24] %v230_v29 }
 0x107   : > { %v232_v30 = vld [vmem:[%s3090_s28 + $0x6e8] sm:%s3901_s24]  ;;  %v234_v31 = vld [vmem:[%s3090_s28 + $0x71c] sm:%s3901_s24] }
 0x108   : > { %233 = vst [vmem:[%s3094_s4 + $0x220] sm:%s3901_s24] %v232_v30  ;;  %235 = vst [vmem:[%s3094_s4 + $0x230] sm:%s3901_s24] %v234_v31 }
 0x109 PF: > { %p2225_p12 = scmp.ge.s32.totalorder %s2892_s14, 1  ;;  %p859_p13 = scmp.lt.s32.totalorder %s2892_s14, 5 }
 0x10b   : > { %p860_p0 = pnand %p2225_p12, %p859_p13 }
 0x10c   : > { %s866_s30 = sand.u32 (!%p860_p0), 1, %s2884_s12  }
 0x10d   : > { %863 = sbr.rel (%p860_p0) target bundleno = 704 (0x2c0), region = 94  ;;  %s2226_s23 = sshll.u32 (!%p860_p0), %s866_s30, 3 }
 0x10e   : > { %s2345_s7 = smul.u32 (!%p860_p0), 576, %s866_s30  ;;  %s4155_s26 = scalar_lea.vmem (!%p860_p0), [#allocation3], %s2226_s23  }
 0x110   : > { %s4060_s9 = scalar_lea.vmem (!%p860_p0), [#allocation2], %s2345_s7 }
 0x112   : > { %v983_v32 = vlaneseq  ;;  %v3024_v33 = vmov 0   ;;  %v3025_v34 = vmov 1983009808   ;;  %v972_v36 = vld [vmem:[%s4582_s2] sm:$0xf]  ;;  %vm1357_vm0 = vcmask 261120  }
 0x113   : > { %1434 = vmatprep.mubr.bf16.mxu1 %v3024_v33  ;;  %v981_v35 = vunpack.c.l.s4 %v3025_v34  ;;  %2632 = vset.pattern.permute.xlu0 %v3024_v33  ;;  %v899_v38 = vld [vmem:[%s4580_s0] sm:$0x3f]  ;;  %v2648_v54 = vld [vmem:[%s4060_s9 + $0xe8] ss:$16 sps:$4 sm:$0xff]   ;;  %v2650_v55 = vld [vmem:[%s4060_s9 + $0xec] ss:$16 sps:$4 sm:$0xff]  }
 0x114   : > { %v984_v37 = vshrl.u32 %v983_v32, 7  ;;  %975 = vperm.xlu0 %2632, %v972_v36   ;;  %v2633_v40 = vld [vmem:[%s4060_s9 + $0xe4] ss:$16 sps:$4 sm:$0xff]   ;;  %v2637_v43 = vld [vmem:[%s4060_s9 + $0xe0] ss:$16 sps:$4 sm:$0xff]   ;;  %v979_v46 = vcombine.high %v899_v38, %v899_v38  ;;  %s2304_s27 = sshll.u32 (%p3079_p5), %s3064_s15, 2 }
 0x115   : > { %v982_v39 = vunpack.c.0.s8 %v981_v35  ;;  %v2635_v41 = vld [vmem:[%s4060_s9 + $0x224] ss:$16 sps:$4 sm:$0xff]   ;;  %1361 = vmatprep.subr.bf16.mxu0 %v2633_v40  ;;  %v2638_v44 = vld [vmem:[%s4060_s9 + $0x220] ss:$16 sps:$4 sm:$0xff]   ;;  %v2656_v58 = vld [vmem:[%s4060_s9 + $0xcc] ss:$16 sps:$4 sm:$0xff]  }
 0x116   : > { %1414 = vmatprep.subr.bf16.mxu1 %v2635_v41  ;;  %v2639_v45 = vld [vmem:[%s4060_s9 + $0xc4] ss:$16 sps:$4 sm:$0xff]   ;;  %1362 = vmatpush1.bf16.msra.mxu0 %v2637_v43  ;;  %v2643_v49 = vld [vmem:[%s4060_s9 + $0xc0] ss:$16 sps:$4 sm:$0xff]   ;;  %v2654_v59 = vld [vmem:[%s4060_s9 + $0xc8] ss:$16 sps:$4 sm:$0xff]  }
 0x117   : > { %v4064_v42 = vsub.s32 %v982_v39, %v984_v37  ;;  %1415 = vmatpush1.bf16.msra.mxu1 %v2638_v44  ;;  %v2641_v48 = vld [vmem:[%s4060_s9 + $0x204] ss:$16 sps:$4 sm:$0xff]   ;;  %1363 = vmatprep.subr.bf16.mxu0 %v2639_v45  ;;  %v2644_v50 = vld [vmem:[%s4060_s9 + $0x200] ss:$16 sps:$4 sm:$0xff]   ;;  %v2662_v62 = vld [vmem:[%s4060_s9 + $0xac] ss:$16 sps:$4 sm:$0xff]  }
 0x118   : > { %1416 = vmatprep.subr.bf16.mxu1 %v2641_v48  ;;  %v2645_v52 = vld [vmem:[%s4060_s9 + $0xa4] ss:$16 sps:$4 sm:$0xff]   ;;  %v2651_v56 = vld [vmem:[%s4060_s9 + $0xa0] ss:$16 sps:$4 sm:$0xff]   ;;  %v2660_v63 = vld [vmem:[%s4060_s9 + $0xa8] ss:$16 sps:$4 sm:$0xff]  }
 0x119   : > { %v4070_v47 = vrot.slane %v899_v38, %v4064_v42  ;;  %v4079_v53 = vrot.slane %v979_v46, %v4064_v42  ;;  %v2652_v57 = vld [vmem:[%s4060_s9 + $0x84] ss:$16 sps:$4 sm:$0xff]   ;;  %v2657_v60 = vld [vmem:[%s4060_s9 + $0x80] ss:$16 sps:$4 sm:$0xff]   ;;  %v2668_v2 = vld [vmem:[%s4060_s9 + $0x8c] ss:$16 sps:$4 sm:$0xff]  }
 0x11a   : > { %1364 = vmatpush1.bf16.msra.mxu0 %v2643_v49  ;;  %v2658_v61 = vld [vmem:[%s4060_s9 + $0x64] ss:$16 sps:$4 sm:$0xff]   ;;  %v2663_v0 = vld [vmem:[%s4060_s9 + $0x60] ss:$16 sps:$4 sm:$0xff]   ;;  %v2666_v3 = vld [vmem:[%s4060_s9 + $0x88] ss:$16 sps:$4 sm:$0xff]  }
 0x11b   : > { %v994_v51 = vcombine.high %v4070_v47, %v4070_v47  ;;  %1417 = vmatpush1.bf16.msra.mxu1 %v2644_v50  ;;  %1365 = vmatprep.subr.bf16.mxu0 %v2645_v52  ;;  %v2664_v1 = vld [vmem:[%s4060_s9 + $0x44] ss:$16 sps:$4 sm:$0xff]   ;;  %v2669_v4 = vld [vmem:[%s4060_s9 + $0x40] ss:$16 sps:$4 sm:$0xff]   ;;  %v2674_v6 = vld [vmem:[%s4060_s9 + $0x6c] ss:$16 sps:$4 sm:$0xff]  }
 0x11c   : > { %1443 = vmatprep.subr.bf16.mxu1 %v2650_v55  ;;  %v2670_v5 = vld [vmem:[%s4060_s9 + $0x24] ss:$16 sps:$4 sm:$0xff]   ;;  %v2672_v7 = vld [vmem:[%s4060_s9 + $0x68] ss:$16 sps:$4 sm:$0xff]   ;;  %v2675_v8 = vld [vmem:[%s4060_s9 + $0x20] ss:$16 sps:$4 sm:$0xff]  }
 0x11d   : > { %1393 = vmatprep.mubr.bf16.mxu0 %v994_v51  ;;  %v2676_v9 = vld [vmem:[%s4060_s9 + $0x4] ss:$16 sps:$4 sm:$0xff]   ;;  %v2680_v10 = vld [vmem:[%s4060_s9 + $0x4c] ss:$16 sps:$4 sm:$0xff]   ;;  %v2678_v11 = vld [vmem:[%s4060_s9 + $0x48] ss:$16 sps:$4 sm:$0xff]  }
 0x11e   : > { %2299 = vmatmul.mubr.msk.bf16.vlgmr.msra.gmra.mxu1 %vm1357_vm0, %v4079_v53  ;;  %1366 = vmatpush1.bf16.msra.mxu0 %v2651_v56  ;;  %v2681_v12 = vld [vmem:[%s4060_s9] ss:$16 sps:$4 sm:$0xff]   ;;  %v2682_v13 = vld [vmem:[%s4060_s9 + $0x1e4] ss:$16 sps:$4 sm:$0xff]   ;;  %v2686_v14 = vld [vmem:[%s4060_s9 + $0x2c] ss:$16 sps:$4 sm:$0xff]  }
 0x11f   : > { %1444 = vmatpush1.bf16.msra.mxu1 %v2648_v54  ;;  %1367 = vmatprep.subr.bf16.mxu0 %v2652_v57  ;;  %v2684_v15 = vld [vmem:[%s4060_s9 + $0x28] ss:$16 sps:$4 sm:$0xff]   ;;  %v2687_v16 = vld [vmem:[%s4060_s9 + $0x1e0] ss:$16 sps:$4 sm:$0xff]   ;;  %v2688_v17 = vld [vmem:[%s4060_s9 + $0x1c4] ss:$16 sps:$4 sm:$0xff]  }
 0x120   : > { %1445 = vmatprep.subr.bf16.mxu1 %v2656_v58  ;;  %1475 = vmatprep.mubr.bf16.mxu1 %v994_v51  ;;  %v2692_v18 = vld [vmem:[%s4060_s9 + $0xc] ss:$16 sps:$4 sm:$0xff]   ;;  %v2690_v19 = vld [vmem:[%s4060_s9 + $0x8] ss:$16 sps:$4 sm:$0xff]   ;;  %v2693_v20 = vld [vmem:[%s4060_s9 + $0x1c0] ss:$16 sps:$4 sm:$0xff]  }
 0x121   : > { %v2694_v21 = vld [vmem:[%s4060_s9 + $0x1a4] ss:$16 sps:$4 sm:$0xff]   ;;  %v2698_v22 = vld [vmem:[%s4060_s9 + $0x1ec] ss:$16 sps:$4 sm:$0xff]   ;;  %v2696_v23 = vld [vmem:[%s4060_s9 + $0x1e8] ss:$16 sps:$4 sm:$0xff]  }
 0x122   : > { %1368 = vmatpush1.bf16.msra.mxu0 %v2657_v60  ;;  %v2699_v24 = vld [vmem:[%s4060_s9 + $0x1a0] ss:$16 sps:$4 sm:$0xff]   ;;  %v2700_v25 = vld [vmem:[%s4060_s9 + $0x184] ss:$16 sps:$4 sm:$0xff]   ;;  %v2704_v26 = vld [vmem:[%s4060_s9 + $0x1cc] ss:$16 sps:$4 sm:$0xff]  }
 0x123   : > { %1446 = vmatpush1.bf16.msra.mxu1 %v2654_v59  ;;  %1369 = vmatprep.subr.bf16.mxu0 %v2658_v61  ;;  %v2702_v27 = vld [vmem:[%s4060_s9 + $0x1c8] ss:$16 sps:$4 sm:$0xff]   ;;  %v2705_v28 = vld [vmem:[%s4060_s9 + $0x180] ss:$16 sps:$4 sm:$0xff]   ;;  %v2706_v29 = vld [vmem:[%s4060_s9 + $0x164] ss:$16 sps:$4 sm:$0xff]  }
 0x124   : > { %1447 = vmatprep.subr.bf16.mxu1 %v2662_v62  ;;  %v2710_v30 = vld [vmem:[%s4060_s9 + $0x1ac] ss:$16 sps:$4 sm:$0xff]   ;;  %v2708_v31 = vld [vmem:[%s4060_s9 + $0x1a8] ss:$16 sps:$4 sm:$0xff]   ;;  %v2711_v32 = vld [vmem:[%s4060_s9 + $0x160] ss:$16 sps:$4 sm:$0xff]  }
 0x125   : > { %v2712_v34 = vld [vmem:[%s4060_s9 + $0x144] ss:$16 sps:$4 sm:$0xff]   ;;  %v2716_v35 = vld [vmem:[%s4060_s9 + $0x18c] ss:$16 sps:$4 sm:$0xff]   ;;  %v2714_v36 = vld [vmem:[%s4060_s9 + $0x188] ss:$16 sps:$4 sm:$0xff]  }
 0x126   : > { %1370 = vmatpush1.bf16.msra.mxu0 %v2663_v0  ;;  %v2717_v37 = vld [vmem:[%s4060_s9 + $0x140] ss:$16 sps:$4 sm:$0xff]   ;;  %v2718_v38 = vld [vmem:[%s4060_s9 + $0x124] ss:$16 sps:$4 sm:$0xff]   ;;  %v2722_v39 = vld [vmem:[%s4060_s9 + $0x16c] ss:$16 sps:$4 sm:$0xff]  }
 0x127   : > { %1448 = vmatpush1.bf16.msra.mxu1 %v2660_v63  ;;  %1371 = vmatprep.subr.bf16.mxu0 %v2664_v1  ;;  %v2720_v40 = vld [vmem:[%s4060_s9 + $0x168] ss:$16 sps:$4 sm:$0xff]   ;;  %v2723_v41 = vld [vmem:[%s4060_s9 + $0x120] ss:$16 sps:$4 sm:$0xff]   ;;  %v2724_v43 = vld [vmem:[%s4060_s9 + $0x104] ss:$16 sps:$4 sm:$0xff]  }
 0x128   : > { %1449 = vmatprep.subr.bf16.mxu1 %v2668_v2  ;;  %v2728_v44 = vld [vmem:[%s4060_s9 + $0x14c] ss:$16 sps:$4 sm:$0xff]   ;;  %v2726_v45 = vld [vmem:[%s4060_s9 + $0x148] ss:$16 sps:$4 sm:$0xff]   ;;  %v2729_v46 = vld [vmem:[%s4060_s9 + $0x100] ss:$16 sps:$4 sm:$0xff]  }
 0x129   : > { %v2732_v48 = vld [vmem:[%s4060_s9 + $0x12c] ss:$16 sps:$4 sm:$0xff]   ;;  %v2730_v50 = vld [vmem:[%s4060_s9 + $0x128] ss:$16 sps:$4 sm:$0xff]   ;;  %s2339_s29 = sshll.u32 (%p3079_p5), %s3064_s15, 3  ;;  %s1564_s21 = ssub.s32 (%p3079_p5), 13, %s2304_s27 }
 0x12a   : > { %1372 = vmatpush1.bf16.msra.mxu0 %v2669_v4  ;;  %v2735_v49 = vld [vmem:[%s4060_s9 + $0x22c] ss:$16 sps:$4 sm:$0xff]   ;;  %v2733_v51 = vld [vmem:[%s4060_s9 + $0x228] ss:$16 sps:$4 sm:$0xff]   ;;  %s4165_s8 = scalar_lea.vmem (%p3079_p5), %s4583_s3, %s2339_s29   ;;  %p1565_p1 = scmp.lt.s32.totalorder (%p3079_p5), %s1564_s21, 4 }
 0x12b   : > { %1450 = vmatpush1.bf16.msra.mxu1 %v2666_v3  ;;  %1373 = vmatprep.subr.bf16.mxu0 %v2670_v5  ;;  %v2738_v52 = vld [vmem:[%s4060_s9 + $0x10c] ss:$16 sps:$4 sm:$0xff]   ;;  %v2736_v55 = vld [vmem:[%s4060_s9 + $0x108] ss:$16 sps:$4 sm:$0xff]  }
 0x12c   : > { %1451 = vmatprep.subr.bf16.mxu1 %v2674_v6  ;;  %v2741_v54 = vld [vmem:[%s4060_s9 + $0x20c] ss:$16 sps:$4 sm:$0xff]   ;;  %v2739_v56 = vld [vmem:[%s4060_s9 + $0x208] ss:$16 sps:$4 sm:$0xff]  }
 0x12e   : > { %1374 = vmatpush1.bf16.msra.mxu0 %v2675_v8 }
 0x12f   : > { %1452 = vmatpush1.bf16.msra.mxu1 %v2672_v7  ;;  %1375 = vmatprep.subr.bf16.mxu0 %v2676_v9 }
 0x130   : > { %1453 = vmatprep.subr.bf16.mxu1 %v2680_v10 }
 0x132   : > { %1376 = vmatpush1.bf16.msra.mxu0 %v2681_v12 }
 0x133   : > { %1454 = vmatpush1.bf16.msra.mxu1 %v2678_v11  ;;  %1377 = vmatprep.subr.bf16.mxu0 %v2682_v13 }
 0x134   : > { %1455 = vmatprep.subr.bf16.mxu1 %v2686_v14 }
 0x136   : > { %1378 = vmatpush2.bf16.msra.mxu0 %v2687_v16 }
 0x137   : > { %1456 = vmatpush1.bf16.msra.mxu1 %v2684_v15  ;;  %1379 = vmatprep.subr.bf16.mxu0 %v2688_v17 }
 0x138   : > { %1457 = vmatprep.subr.bf16.mxu1 %v2692_v18 }
 0x13a   : > { %1380 = vmatpush2.bf16.msra.mxu0 %v2693_v20 }
 0x13b   : > { %1458 = vmatpush1.bf16.msra.mxu1 %v2690_v19  ;;  %1381 = vmatprep.subr.bf16.mxu0 %v2694_v21 }
 0x13c   : > { %1459 = vmatprep.subr.bf16.mxu1 %v2698_v22 }
 0x13e   : > { %1382 = vmatpush2.bf16.msra.mxu0 %v2699_v24 }
 0x13f   : > { %1460 = vmatpush2.bf16.msra.mxu1 %v2696_v23  ;;  %1383 = vmatprep.subr.bf16.mxu0 %v2700_v25 }
 0x140   : > { %1461 = vmatprep.subr.bf16.mxu1 %v2704_v26 }
 0x142   : > { %1384 = vmatpush2.bf16.msra.mxu0 %v2705_v28 }
 0x143   : > { %1462 = vmatpush2.bf16.msra.mxu1 %v2702_v27  ;;  %1385 = vmatprep.subr.bf16.mxu0 %v2706_v29 }
 0x144   : > { %1463 = vmatprep.subr.bf16.mxu1 %v2710_v30 }
 0x146   : > { %1386 = vmatpush2.bf16.msra.mxu0 %v2711_v32 }
 0x147   : > { %1464 = vmatpush2.bf16.msra.mxu1 %v2708_v31  ;;  %1387 = vmatprep.subr.bf16.mxu0 %v2712_v34 }
 0x148   : > { %1465 = vmatprep.subr.bf16.mxu1 %v2716_v35 }
 0x14a   : > { %1388 = vmatpush2.bf16.msra.mxu0 %v2717_v37 }
 0x14b   : > { %1466 = vmatpush2.bf16.msra.mxu1 %v2714_v36  ;;  %1389 = vmatprep.subr.bf16.mxu0 %v2718_v38 }
 0x14c   : > { %1467 = vmatprep.subr.bf16.mxu1 %v2722_v39 }
 0x14e   : > { %1390 = vmatpush2.bf16.msra.mxu0 %v2723_v41 }
 0x14f   : > { %1468 = vmatpush2.bf16.msra.mxu1 %v2720_v40  ;;  %1391 = vmatprep.subr.bf16.mxu0 %v2724_v43 }
 0x150   : > { %1469 = vmatprep.subr.bf16.mxu1 %v2728_v44 }
 0x152   : > { %1392 = vmatpush2.bf16.msra.mxu0 %v2729_v46 }
 0x153   : > { %1470 = vmatpush2.bf16.msra.mxu1 %v2726_v45  ;;  %1496 = vmatprep.subr.bf16.mxu0 %v2735_v49 }
 0x154   : > { %1471 = vmatprep.subr.bf16.mxu1 %v2732_v48 }
 0x155   : > { %1394 = vmatmul.mubr.bf16.vlgmr.msra.gmra.mxu0 %v4070_v47 }
 0x156   : > { %1497 = vmatpush1.bf16.msra.mxu0 %v2733_v51  ;;  %1516 = vmatprep.mubr.bf16.mxu0 %v3024_v33 }
 0x157   : > { %1472 = vmatpush2.bf16.msra.mxu1 %v2730_v50  ;;  %1498 = vmatprep.subr.bf16.mxu0 %v2741_v54 }
 0x158   : > { %1473 = vmatprep.subr.bf16.mxu1 %v2738_v52 }
 0x15a   : > { %1499 = vmatpush1.bf16.msra.mxu0 %v2739_v56 }
 0x15b   : > { %1474 = vmatpush2.bf16.msra.mxu1 %v2736_v55 }
 0x15d   : > { %2300 = vmatmul.mubr.msk.bf16.vlgmr.msra.gmra.mxu0 %vm1357_vm0, %v4079_v53 }
 0x15e   : > { %1476 = vmatmul.mubr.bf16.vlgmr.msra.gmra.mxu1 %v4070_v47 }
 0x18f   : > { %v976_v61 = vpop.permute.xlu0 %975 }
 0x1de   : > { %v1436_v57 = vpop.f32.mrf.mxu1 }
 0x1e0   : > { %v1438_v58 = vpop.f32.mrf.mxu1 }
 0x1e2   : > { %v1440_v59 = vpop.f32.mrf.mxu1 }
 0x1e4   : > { %v1441_v60 = vpop.f32.mrf.mxu1 }
 0x215   : > { %v1395_v62 = vpop.f32.mrf.mxu0 }
 0x216   : > { %v1396_v63 = vadd.f32 %v1395_v62, %v976_v61 }
 0x217   : > { %v1397_v0 = vpop.f32.mrf.mxu0 }
 0x218   : > { %v1437_v1 = vadd.f32 %v1436_v57, %v1396_v63  ;;  %v1398_v2 = vadd.f32 %v1397_v0, %v976_v61 }
 0x219   : > { %v1399_v3 = vpop.f32.mrf.mxu0 }
 0x21a   : > { %v1439_v4 = vadd.f32 %v1438_v58, %v1398_v2  ;;  %v1525_v5 = vmax.f32 %v1437_v1, 0.0 }
 0x21b   : > { %v1400_v33 = vpop.f32.mrf.mxu0 }
 0x21c   : > { %v1526_v6 = vmax.f32 %v1439_v4, 0.0 }
 0x21d   : > { %v1518_v7 = vpop.f32.mrf.mxu0 }
 0x21e   : > { %v1477_v47 = vpop.f32.mrf.mxu1  ;;  %v2301_v8 = vpack.c.bf16 %v1526_v6, %v1525_v5 }
 0x21f   : > { %v1478_v53 = vadd.f32 %v1477_v47, %v976_v61  ;;  %v1520_v10 = vpop.f32.mrf.mxu0 }
 0x220   : > { %v1479_v9 = vpop.f32.mrf.mxu1  ;;  %v1545_v21 = vrot.slane %v2301_v8, %v4064_v42 }
 0x221   : > { %v1519_v11 = vadd.f32 %v1518_v7, %v1478_v53  ;;  %v1480_v12 = vadd.f32 %v1479_v9, %v976_v61  ;;  %v1522_v14 = vpop.f32.mrf.mxu0 }
 0x222   : > { %v1481_v13 = vpop.f32.mrf.mxu1 }
 0x223   : > { %v1521_v15 = vadd.f32 %v1520_v10, %v1480_v12  ;;  %v1523_v17 = vpop.f32.mrf.mxu0  ;;  %v1527_v18 = vmax.f32 %v1519_v11, 0.0 }
 0x224   : > { %v1482_v16 = vpop.f32.mrf.mxu1 }
 0x225   : > { %v1528_v19 = vmax.f32 %v1521_v15, 0.0 }
 0x227   : > { %v2302_v20 = vpack.c.bf16 %v1528_v19, %v1527_v18 }
 0x229   : > { %v1552_v22 = vrot.slane %v2302_v20, %v4064_v42  ;;  %1562 = sbr.rel (!%p3079_p5) target bundleno = 704 (0x2c0), region = 102 }
 0x22b   : > { %v1553_v23 = vcombine.low %v1545_v21, %v1552_v22 }
 0x22d   : > { %1555 = vst [vmem:[%s4155_s26] sm:$0xff] %v1553_v23 }
 0x22e   : > { %s4629_s21 = smov (!%p1565_p1, %s1564_s21), 4 }
 0x22f   : > { %s2305_s10 = sshll.u32 %s4629_s21, 5  ;;  %s4167_s6 = sshll.u32 %s4629_s21, 1 }
 0x230   : > { %p2309_p2 = scmp.eq.s32.totalorder %s2305_s10, 0 }
 0x231   : > { %p1575_p3 = scmp.lt.u32.totalorder (!%p2309_p2), %s4167_s6, 8 }
 0x232   : > { %1574 = sbr.rel (%p2309_p2) target bundleno = 704 (0x2c0), region = 106 }
 0x237   : > { %1578 = sbr.rel (%p1575_p3) target bundleno = 695 (0x2b7), region = 110  ;;  %s4171_s20 = sand.u32 (!%p1575_p3), 7, %s4167_s6  }
 0x238   : > { %p1595_p5 = scmp.eq.s32.totalorder (!%p1575_p3), %s4171_s20, 0  ;;  %p2310_p4 = scmp.ne.s32.totalorder (!%p1575_p3), %s4171_s20, 0 }
 0x23c   : > { %1598 = sbr.rel (%p2310_p4) target bundleno = 631 (0x277), region = 125  ;;  %s1599_s15 = sshrl.u32 (!%p2310_p4), %s4167_s6, 3 }
 0x23d   : > { %s4178_s11 = sshrl.u32 (!%p2310_p4), %s1599_s15, 6 }
 0x23e   : > { %p2311_p6 = scmp.le.s32.totalorder (!%p2310_p4), %s4178_s11, 0 }
 0x241   : > { %2123 = sbr.rel (%p2311_p6) target bundleno = 615 (0x267), region = 273  ;;  %s4605_s17 = smov (!%p2311_p6), %s4165_s8 }
 0x242   : > { %s4606_s5 = smov (!%p2311_p6), %s4155_s26  ;;  %s4187_s22 = smov (!%p2311_p6), 0  }
 0x243   : > { %s4189_s24 = smov (!%p2311_p6), 0  }
 0x246 LB: >> { %v1612_v42 = vld [vmem:[%s2964_s5] sm:$0xff]  ;;  %v1614_v24 = vld [vmem:[%s2964_s5 + $0x8] sm:$0xff]  ;;  %v1616_v25 = vld [vmem:[%s2964_s5 + $0x10] sm:$0xff]  ;;  %s1740_s30 = sadd.s32 1, %s2968_s22  ;;  %s1606_s24 = sadd.s32 1, %s2972_s24   ;;  %s2972_s24 = sphi %s4189_s24, %s1606_s24   ;;  %s2968_s22 = sphi %s4187_s22, %s4609_s22   ;;  %s2964_s5 = sphi %s4606_s5, %s4608_s5   ;;  %s2960_s17 = sphi %s4605_s17, %s4607_s17  }
 0x247   : >> { %1613 = vst [vmem:[%s2960_s17] sm:$0xff] %v1612_v42  ;;  %1615 = vst [vmem:[%s2960_s17 + $0x8] sm:$0xff] %v1614_v24  ;;  %v1618_v26 = vld [vmem:[%s2964_s5 + $0x18] sm:$0xff]  ;;  %v1620_v27 = vld [vmem:[%s2964_s5 + $0x20] sm:$0xff]  ;;  %p1741_p7 = scmp.ge.s32.totalorder %s1740_s30, %s4178_s11  ;;  %p1605_p8 = scmp.ge.s32.totalorder %s1606_s24, %s4178_s11 }
 0x248   : >> { %1617 = vst [vmem:[%s2960_s17 + $0x10] sm:$0xff] %v1616_v25  ;;  %v1622_v28 = vld [vmem:[%s2964_s5 + $0x28] sm:$0xff]  ;;  %1619 = vst [vmem:[%s2960_s17 + $0x18] sm:$0xff] %v1618_v26  ;;  %v1624_v29 = vld [vmem:[%s2964_s5 + $0x30] sm:$0xff] }
 0x249   : >> { %1621 = vst [vmem:[%s2960_s17 + $0x20] sm:$0xff] %v1620_v27  ;;  %1623 = vst [vmem:[%s2960_s17 + $0x28] sm:$0xff] %v1622_v28  ;;  %v1626_v30 = vld [vmem:[%s2964_s5 + $0x38] sm:$0xff]  ;;  %v1628_v31 = vld [vmem:[%s2964_s5 + $0x40] sm:$0xff]  ;;  %s4631_s30 = smov (%p1741_p7, %s1740_s30), 0 }
 0x24a   : >> { %1625 = vst [vmem:[%s2960_s17 + $0x30] sm:$0xff] %v1624_v29  ;;  %1627 = vst [vmem:[%s2960_s17 + $0x38] sm:$0xff] %v1626_v30  ;;  %v1630_v32 = vld [vmem:[%s2964_s5 + $0x48] sm:$0xff]  ;;  %v1632_v34 = vld [vmem:[%s2964_s5 + $0x50] sm:$0xff]  ;;  %s2312_s7 = sshll.u32 %s4631_s30, 9  ;;  %s4609_s22 = smov %s4631_s30 }
 0x24b   : >> { %1629 = vst [vmem:[%s2960_s17 + $0x40] sm:$0xff] %v1628_v31  ;;  %v1634_v35 = vld [vmem:[%s2964_s5 + $0x58] sm:$0xff]  ;;  %1631 = vst [vmem:[%s2960_s17 + $0x48] sm:$0xff] %v1630_v32  ;;  %v1636_v36 = vld [vmem:[%s2964_s5 + $0x60] sm:$0xff]  ;;  %s4245_s28 = scalar_lea.vmem %s4155_s26, %s2312_s7 [#allocation3]   ;;  %s4248_s4 = scalar_lea.vmem %s4165_s8, %s2312_s7  }
 0x24c   : >> { %1633 = vst [vmem:[%s2960_s17 + $0x50] sm:$0xff] %v1632_v34  ;;  %1635 = vst [vmem:[%s2960_s17 + $0x58] sm:$0xff] %v1634_v35  ;;  %v1638_v37 = vld [vmem:[%s2964_s5 + $0x68] sm:$0xff]  ;;  %v1640_v38 = vld [vmem:[%s2964_s5 + $0x70] sm:$0xff] }
 0x24d   : >> { %1637 = vst [vmem:[%s2960_s17 + $0x60] sm:$0xff] %v1636_v36  ;;  %1639 = vst [vmem:[%s2960_s17 + $0x68] sm:$0xff] %v1638_v37  ;;  %v1642_v39 = vld [vmem:[%s2964_s5 + $0x78] sm:$0xff]  ;;  %v1644_v40 = vld [vmem:[%s2964_s5 + $0x80] sm:$0xff] }
 0x24e   : >> { %1641 = vst [vmem:[%s2960_s17 + $0x70] sm:$0xff] %v1640_v38  ;;  %v1646_v41 = vld [vmem:[%s2964_s5 + $0x88] sm:$0xff]  ;;  %1643 = vst [vmem:[%s2960_s17 + $0x78] sm:$0xff] %v1642_v39  ;;  %v1648_v43 = vld [vmem:[%s2964_s5 + $0x90] sm:$0xff] }
 0x24f   : >> { %1645 = vst [vmem:[%s2960_s17 + $0x80] sm:$0xff] %v1644_v40  ;;  %1647 = vst [vmem:[%s2960_s17 + $0x88] sm:$0xff] %v1646_v41  ;;  %v1650_v44 = vld [vmem:[%s2964_s5 + $0x98] sm:$0xff]  ;;  %v1652_v45 = vld [vmem:[%s2964_s5 + $0xa0] sm:$0xff] }
 0x250   : >> { %1649 = vst [vmem:[%s2960_s17 + $0x90] sm:$0xff] %v1648_v43  ;;  %1651 = vst [vmem:[%s2960_s17 + $0x98] sm:$0xff] %v1650_v44  ;;  %v1654_v46 = vld [vmem:[%s2964_s5 + $0xa8] sm:$0xff]  ;;  %v1656_v48 = vld [vmem:[%s2964_s5 + $0xb0] sm:$0xff] }
 0x251   : >> { %1653 = vst [vmem:[%s2960_s17 + $0xa0] sm:$0xff] %v1652_v45  ;;  %v1658_v49 = vld [vmem:[%s2964_s5 + $0xb8] sm:$0xff]  ;;  %1655 = vst [vmem:[%s2960_s17 + $0xa8] sm:$0xff] %v1654_v46  ;;  %v1660_v50 = vld [vmem:[%s2964_s5 + $0xc0] sm:$0xff] }
 0x252   : >> { %1657 = vst [vmem:[%s2960_s17 + $0xb0] sm:$0xff] %v1656_v48  ;;  %1659 = vst [vmem:[%s2960_s17 + $0xb8] sm:$0xff] %v1658_v49  ;;  %v1662_v51 = vld [vmem:[%s2964_s5 + $0xc8] sm:$0xff]  ;;  %v1664_v52 = vld [vmem:[%s2964_s5 + $0xd0] sm:$0xff] }
 0x253   : >> { %1661 = vst [vmem:[%s2960_s17 + $0xc0] sm:$0xff] %v1660_v50  ;;  %1663 = vst [vmem:[%s2960_s17 + $0xc8] sm:$0xff] %v1662_v51  ;;  %v1666_v54 = vld [vmem:[%s2964_s5 + $0xd8] sm:$0xff]  ;;  %v1668_v55 = vld [vmem:[%s2964_s5 + $0xe0] sm:$0xff] }
 0x254   : >> { %1665 = vst [vmem:[%s2960_s17 + $0xd0] sm:$0xff] %v1664_v52  ;;  %v1670_v56 = vld [vmem:[%s2964_s5 + $0xe8] sm:$0xff]  ;;  %1667 = vst [vmem:[%s2960_s17 + $0xd8] sm:$0xff] %v1666_v54  ;;  %v1672_v57 = vld [vmem:[%s2964_s5 + $0xf0] sm:$0xff] }
 0x255   : >> { %1669 = vst [vmem:[%s2960_s17 + $0xe0] sm:$0xff] %v1668_v55  ;;  %1671 = vst [vmem:[%s2960_s17 + $0xe8] sm:$0xff] %v1670_v56  ;;  %v1674_v58 = vld [vmem:[%s2964_s5 + $0xf8] sm:$0xff]  ;;  %v1676_v59 = vld [vmem:[%s2964_s5 + $0x100] sm:$0xff] }
 0x256   : >> { %1673 = vst [vmem:[%s2960_s17 + $0xf0] sm:$0xff] %v1672_v57  ;;  %1675 = vst [vmem:[%s2960_s17 + $0xf8] sm:$0xff] %v1674_v58  ;;  %v1678_v60 = vld [vmem:[%s2964_s5 + $0x108] sm:$0xff]  ;;  %v1680_v61 = vld [vmem:[%s2964_s5 + $0x110] sm:$0xff] }
 0x257   : >> { %1677 = vst [vmem:[%s2960_s17 + $0x100] sm:$0xff] %v1676_v59  ;;  %v1682_v62 = vld [vmem:[%s2964_s5 + $0x118] sm:$0xff]  ;;  %1679 = vst [vmem:[%s2960_s17 + $0x108] sm:$0xff] %v1678_v60  ;;  %v1684_v63 = vld [vmem:[%s2964_s5 + $0x120] sm:$0xff] }
 0x258   : >> { %1681 = vst [vmem:[%s2960_s17 + $0x110] sm:$0xff] %v1680_v61  ;;  %1683 = vst [vmem:[%s2960_s17 + $0x118] sm:$0xff] %v1682_v62  ;;  %v1686_v0 = vld [vmem:[%s2964_s5 + $0x128] sm:$0xff]  ;;  %v1688_v1 = vld [vmem:[%s2964_s5 + $0x130] sm:$0xff] }
 0x259   : >> { %1685 = vst [vmem:[%s2960_s17 + $0x120] sm:$0xff] %v1684_v63  ;;  %1687 = vst [vmem:[%s2960_s17 + $0x128] sm:$0xff] %v1686_v0  ;;  %v1690_v2 = vld [vmem:[%s2964_s5 + $0x138] sm:$0xff]  ;;  %v1692_v3 = vld [vmem:[%s2964_s5 + $0x140] sm:$0xff] }
 0x25a   : >> { %1689 = vst [vmem:[%s2960_s17 + $0x130] sm:$0xff] %v1688_v1  ;;  %v1694_v4 = vld [vmem:[%s2964_s5 + $0x148] sm:$0xff]  ;;  %1691 = vst [vmem:[%s2960_s17 + $0x138] sm:$0xff] %v1690_v2  ;;  %v1696_v33 = vld [vmem:[%s2964_s5 + $0x150] sm:$0xff] }
 0x25b   : >> { %1693 = vst [vmem:[%s2960_s17 + $0x140] sm:$0xff] %v1692_v3  ;;  %1695 = vst [vmem:[%s2960_s17 + $0x148] sm:$0xff] %v1694_v4  ;;  %v1698_v5 = vld [vmem:[%s2964_s5 + $0x158] sm:$0xff]  ;;  %v1700_v6 = vld [vmem:[%s2964_s5 + $0x160] sm:$0xff] }
 0x25c   : >> { %1697 = vst [vmem:[%s2960_s17 + $0x150] sm:$0xff] %v1696_v33  ;;  %1699 = vst [vmem:[%s2960_s17 + $0x158] sm:$0xff] %v1698_v5  ;;  %v1702_v47 = vld [vmem:[%s2964_s5 + $0x168] sm:$0xff]  ;;  %v1704_v7 = vld [vmem:[%s2964_s5 + $0x170] sm:$0xff] }
 0x25d   : >> { %1701 = vst [vmem:[%s2960_s17 + $0x160] sm:$0xff] %v1700_v6  ;;  %v1706_v8 = vld [vmem:[%s2964_s5 + $0x178] sm:$0xff]  ;;  %1703 = vst [vmem:[%s2960_s17 + $0x168] sm:$0xff] %v1702_v47  ;;  %v1708_v53 = vld [vmem:[%s2964_s5 + $0x180] sm:$0xff] }
 0x25e   : >> { %1705 = vst [vmem:[%s2960_s17 + $0x170] sm:$0xff] %v1704_v7  ;;  %1707 = vst [vmem:[%s2960_s17 + $0x178] sm:$0xff] %v1706_v8  ;;  %v1710_v9 = vld [vmem:[%s2964_s5 + $0x188] sm:$0xff]  ;;  %v1712_v10 = vld [vmem:[%s2964_s5 + $0x190] sm:$0xff] }
 0x25f   : >> { %1709 = vst [vmem:[%s2960_s17 + $0x180] sm:$0xff] %v1708_v53  ;;  %1711 = vst [vmem:[%s2960_s17 + $0x188] sm:$0xff] %v1710_v9  ;;  %v1714_v11 = vld [vmem:[%s2964_s5 + $0x198] sm:$0xff]  ;;  %v1716_v12 = vld [vmem:[%s2964_s5 + $0x1a0] sm:$0xff] }
 0x260   : >> { %1713 = vst [vmem:[%s2960_s17 + $0x190] sm:$0xff] %v1712_v10  ;;  %v1718_v13 = vld [vmem:[%s2964_s5 + $0x1a8] sm:$0xff]  ;;  %1715 = vst [vmem:[%s2960_s17 + $0x198] sm:$0xff] %v1714_v11  ;;  %v1720_v14 = vld [vmem:[%s2964_s5 + $0x1b0] sm:$0xff] }
 0x261   : >> { %1717 = vst [vmem:[%s2960_s17 + $0x1a0] sm:$0xff] %v1716_v12  ;;  %1719 = vst [vmem:[%s2960_s17 + $0x1a8] sm:$0xff] %v1718_v13  ;;  %v1722_v15 = vld [vmem:[%s2964_s5 + $0x1b8] sm:$0xff]  ;;  %v1724_v16 = vld [vmem:[%s2964_s5 + $0x1c0] sm:$0xff] }
 0x262   : >> { %1721 = vst [vmem:[%s2960_s17 + $0x1b0] sm:$0xff] %v1720_v14  ;;  %1723 = vst [vmem:[%s2960_s17 + $0x1b8] sm:$0xff] %v1722_v15  ;;  %v1726_v17 = vld [vmem:[%s2964_s5 + $0x1c8] sm:$0xff]  ;;  %v1728_v18 = vld [vmem:[%s2964_s5 + $0x1d0] sm:$0xff]  ;;  %1608 = sbr.rel (!%p1605_p8) target bundleno = 582 (0x246), region = 279 }
 0x263   : >> { %1725 = vst [vmem:[%s2960_s17 + $0x1c0] sm:$0xff] %v1724_v16  ;;  %v1730_v19 = vld [vmem:[%s2964_s5 + $0x1d8] sm:$0xff]  ;;  %1727 = vst [vmem:[%s2960_s17 + $0x1c8] sm:$0xff] %v1726_v17  ;;  %v1732_v20 = vld [vmem:[%s2964_s5 + $0x1e0] sm:$0xff] }
 0x264   : >> { %1729 = vst [vmem:[%s2960_s17 + $0x1d0] sm:$0xff] %v1728_v18  ;;  %1731 = vst [vmem:[%s2960_s17 + $0x1d8] sm:$0xff] %v1730_v19  ;;  %v1734_v21 = vld [vmem:[%s2964_s5 + $0x1e8] sm:$0xff]  ;;  %v1736_v22 = vld [vmem:[%s2964_s5 + $0x1f0] sm:$0xff] }
 0x265   : >> { %1733 = vst [vmem:[%s2960_s17 + $0x1e0] sm:$0xff] %v1732_v20  ;;  %1735 = vst [vmem:[%s2960_s17 + $0x1e8] sm:$0xff] %v1734_v21  ;;  %v1738_v23 = vld [vmem:[%s2964_s5 + $0x1f8] sm:$0xff]  ;;  %s4608_s5 = smov %s4245_s28 }
 0x266   : >> { %1737 = vst [vmem:[%s2960_s17 + $0x1f0] sm:$0xff] %v1736_v22  ;;  %1739 = vst [vmem:[%s2960_s17 + $0x1f8] sm:$0xff] %v1738_v23  ;;  %s4607_s17 = smov %s4248_s4 }
 0x267 PF: > { %s4354_s14 = sand.u32 63, %s1599_s15   ;;  %s2340_s18 = sshll.u32 %s4178_s11, 13 }
 0x268   : > { %s1751_s9 = sshra.s32 %s2340_s18, 4  ;;  %p2317_p9 = scmp.le.s32.totalorder %s4354_s14, 0 }
 0x269   : > { %s1752_s23 = scalar_lea.vmem %s4155_s26, %s1751_s9 [#allocation3]   ;;  %s1755_s27 = scalar_lea.vmem %s4165_s8, %s1751_s9  }
 0x26a   : > { %2137 = sbr.rel (%p2317_p9) target bundleno = 631 (0x277), region = 284  ;;  %s2974_s29 = smov (!%p2317_p9), %s1755_s27  }
 0x26b   : > { %s2978_s21 = smov (!%p2317_p9), %s1752_s23   ;;  %s2982_s12 = smov (!%p2317_p9), 0  }
 0x26c   : > { %s2986_s25 = smov (!%p2317_p9), 0  }
 0x26f LB: >> { %v1767_v42 = vld [vmem:[%s2980_s21] sm:$0xff]  ;;  %s1769_s10 = sadd.s32 1, %s2984_s12  ;;  %s1761_s25 = sadd.s32 1, %s2988_s25   ;;  %s2988_s25 = sphi %s2986_s25, %s1761_s25   ;;  %s2984_s12 = sphi %s2982_s12, %s2983_s12   ;;  %s2980_s21 = sphi %s2978_s21, %s1774_s21   ;;  %s2976_s29 = sphi %s2974_s29, %s1775_s29  }
 0x270   : >> { %1768 = vst [vmem:[%s2976_s29] sm:$0xff] %v1767_v42  ;;  %p1770_p10 = scmp.ge.s32.totalorder %s1769_s10, %s4354_s14  ;;  %p1760_p11 = scmp.ge.s32.totalorder %s1761_s25, %s4354_s14 }
 0x272   : >> { %s4633_s10 = smov (%p1770_p10, %s1769_s10), 0  ;;  %1763 = sbr.rel (!%p1760_p11) target bundleno = 623 (0x26f), region = 290 }
 0x273   : >> { %s2318_s15 = sshll.u32 %s4633_s10, 3  ;;  %s2983_s12 = smov %s4633_s10  }
 0x274   : >> { %s1774_s21 = scalar_lea.vmem %s1752_s23, %s2318_s15 [#allocation3]   ;;  %s1775_s29 = scalar_lea.vmem %s1755_s27, %s2318_s15  }
 0x277 PF: > { %1778 = sbr.rel (%p1595_p5) target bundleno = 695 (0x2b7), region = 143  ;;  %s4366_s11 = ssub.s32 (!%p1595_p5), %s4167_s6, %s4171_s20 }
 0x278   : > { %s1784_s17 = sshrl.u32 (!%p1595_p5), %s4167_s6, 3  ;;  %s1781_s5 = scalar_lea.vmem (!%p1595_p5), %s4155_s26, %s4366_s11 [#allocation3] }
 0x279   : > { %s1783_s22 = scalar_lea.vmem (!%p1595_p5), %s4165_s8, %s4366_s11  ;;  %s4375_s24 = sshrl.u32 (!%p1595_p5), %s1784_s17, 6 }
 0x27a   : > { %p2320_p12 = scmp.le.s32.totalorder (!%p1595_p5), %s4375_s24, 0 }
 0x27c   : > { %2151 = sbr.rel (%p2320_p12) target bundleno = 674 (0x2a2), region = 295  ;;  %s4610_s30 = smov (!%p2320_p12), %s4165_s8 }
 0x27d   : > { %s4611_s7 = smov (!%p2320_p12), %s4155_s26  ;;  %s4384_s28 = smov (!%p2320_p12), 0  }
 0x27e   : > { %s4386_s4 = smov (!%p2320_p12), 0  }
 0x281 LB: >> { %v1797_v24 = vld [vmem:[%s2996_s7] sm:$0xff]  ;;  %v1799_v25 = vld [vmem:[%s2996_s7 + $0x8] sm:$0xff]  ;;  %v1801_v26 = vld [vmem:[%s2996_s7 + $0x10] sm:$0xff]  ;;  %s1925_s14 = sadd.s32 1, %s3000_s28  ;;  %s1791_s4 = sadd.s32 1, %s3004_s4   ;;  %s3004_s4 = sphi %s4386_s4, %s1791_s4   ;;  %s3000_s28 = sphi %s4384_s28, %s4614_s28   ;;  %s2996_s7 = sphi %s4611_s7, %s4613_s7   ;;  %s2992_s30 = sphi %s4610_s30, %s4612_s30  }
 0x282   : >> { %1798 = vst [vmem:[%s2992_s30] sm:$0xff] %v1797_v24  ;;  %1800 = vst [vmem:[%s2992_s30 + $0x8] sm:$0xff] %v1799_v25  ;;  %v1803_v27 = vld [vmem:[%s2996_s7 + $0x18] sm:$0xff]  ;;  %v1805_v28 = vld [vmem:[%s2996_s7 + $0x20] sm:$0xff]  ;;  %p1926_p13 = scmp.ge.s32.totalorder %s1925_s14, %s4375_s24  ;;  %p1790_p0 = scmp.ge.s32.totalorder %s1791_s4, %s4375_s24 }
 0x283   : >> { %1802 = vst [vmem:[%s2992_s30 + $0x10] sm:$0xff] %v1801_v26  ;;  %v1807_v29 = vld [vmem:[%s2996_s7 + $0x28] sm:$0xff]  ;;  %1804 = vst [vmem:[%s2992_s30 + $0x18] sm:$0xff] %v1803_v27  ;;  %v1809_v30 = vld [vmem:[%s2996_s7 + $0x30] sm:$0xff] }
 0x284   : >> { %1806 = vst [vmem:[%s2992_s30 + $0x20] sm:$0xff] %v1805_v28  ;;  %1808 = vst [vmem:[%s2992_s30 + $0x28] sm:$0xff] %v1807_v29  ;;  %v1811_v31 = vld [vmem:[%s2996_s7 + $0x38] sm:$0xff]  ;;  %v1813_v32 = vld [vmem:[%s2996_s7 + $0x40] sm:$0xff]  ;;  %s4635_s14 = smov (%p1926_p13, %s1925_s14), 0 }
 0x285   : >> { %1810 = vst [vmem:[%s2992_s30 + $0x30] sm:$0xff] %v1809_v30  ;;  %1812 = vst [vmem:[%s2992_s30 + $0x38] sm:$0xff] %v1811_v31  ;;  %v1815_v34 = vld [vmem:[%s2996_s7 + $0x48] sm:$0xff]  ;;  %v1817_v35 = vld [vmem:[%s2996_s7 + $0x50] sm:$0xff]  ;;  %s2321_s18 = sshll.u32 %s4635_s14, 9  ;;  %s4614_s28 = smov %s4635_s14 }
 0x286   : >> { %1814 = vst [vmem:[%s2992_s30 + $0x40] sm:$0xff] %v1813_v32  ;;  %v1819_v36 = vld [vmem:[%s2996_s7 + $0x58] sm:$0xff]  ;;  %1816 = vst [vmem:[%s2992_s30 + $0x48] sm:$0xff] %v1815_v34  ;;  %v1821_v37 = vld [vmem:[%s2996_s7 + $0x60] sm:$0xff]  ;;  %s4442_s9 = scalar_lea.vmem %s4155_s26, %s2321_s18 [#allocation3]   ;;  %s4445_s23 = scalar_lea.vmem %s4165_s8, %s2321_s18  }
 0x287   : >> { %1818 = vst [vmem:[%s2992_s30 + $0x50] sm:$0xff] %v1817_v35  ;;  %1820 = vst [vmem:[%s2992_s30 + $0x58] sm:$0xff] %v1819_v36  ;;  %v1823_v38 = vld [vmem:[%s2996_s7 + $0x68] sm:$0xff]  ;;  %v1825_v39 = vld [vmem:[%s2996_s7 + $0x70] sm:$0xff] }
 0x288   : >> { %1822 = vst [vmem:[%s2992_s30 + $0x60] sm:$0xff] %v1821_v37  ;;  %1824 = vst [vmem:[%s2992_s30 + $0x68] sm:$0xff] %v1823_v38  ;;  %v1827_v40 = vld [vmem:[%s2996_s7 + $0x78] sm:$0xff]  ;;  %v1829_v41 = vld [vmem:[%s2996_s7 + $0x80] sm:$0xff] }
 0x289   : >> { %1826 = vst [vmem:[%s2992_s30 + $0x70] sm:$0xff] %v1825_v39  ;;  %v1831_v43 = vld [vmem:[%s2996_s7 + $0x88] sm:$0xff]  ;;  %1828 = vst [vmem:[%s2992_s30 + $0x78] sm:$0xff] %v1827_v40  ;;  %v1833_v44 = vld [vmem:[%s2996_s7 + $0x90] sm:$0xff] }
 0x28a   : >> { %1830 = vst [vmem:[%s2992_s30 + $0x80] sm:$0xff] %v1829_v41  ;;  %1832 = vst [vmem:[%s2992_s30 + $0x88] sm:$0xff] %v1831_v43  ;;  %v1835_v45 = vld [vmem:[%s2996_s7 + $0x98] sm:$0xff]  ;;  %v1837_v46 = vld [vmem:[%s2996_s7 + $0xa0] sm:$0xff] }
 0x28b   : >> { %1834 = vst [vmem:[%s2992_s30 + $0x90] sm:$0xff] %v1833_v44  ;;  %1836 = vst [vmem:[%s2992_s30 + $0x98] sm:$0xff] %v1835_v45  ;;  %v1839_v48 = vld [vmem:[%s2996_s7 + $0xa8] sm:$0xff]  ;;  %v1841_v49 = vld [vmem:[%s2996_s7 + $0xb0] sm:$0xff] }
 0x28c   : >> { %1838 = vst [vmem:[%s2992_s30 + $0xa0] sm:$0xff] %v1837_v46  ;;  %v1843_v50 = vld [vmem:[%s2996_s7 + $0xb8] sm:$0xff]  ;;  %1840 = vst [vmem:[%s2992_s30 + $0xa8] sm:$0xff] %v1839_v48  ;;  %v1845_v51 = vld [vmem:[%s2996_s7 + $0xc0] sm:$0xff] }
 0x28d   : >> { %1842 = vst [vmem:[%s2992_s30 + $0xb0] sm:$0xff] %v1841_v49  ;;  %1844 = vst [vmem:[%s2992_s30 + $0xb8] sm:$0xff] %v1843_v50  ;;  %v1847_v52 = vld [vmem:[%s2996_s7 + $0xc8] sm:$0xff]  ;;  %v1849_v54 = vld [vmem:[%s2996_s7 + $0xd0] sm:$0xff] }
 0x28e   : >> { %1846 = vst [vmem:[%s2992_s30 + $0xc0] sm:$0xff] %v1845_v51  ;;  %1848 = vst [vmem:[%s2992_s30 + $0xc8] sm:$0xff] %v1847_v52  ;;  %v1851_v55 = vld [vmem:[%s2996_s7 + $0xd8] sm:$0xff]  ;;  %v1853_v56 = vld [vmem:[%s2996_s7 + $0xe0] sm:$0xff] }
 0x28f   : >> { %1850 = vst [vmem:[%s2992_s30 + $0xd0] sm:$0xff] %v1849_v54  ;;  %v1855_v57 = vld [vmem:[%s2996_s7 + $0xe8] sm:$0xff]  ;;  %1852 = vst [vmem:[%s2992_s30 + $0xd8] sm:$0xff] %v1851_v55  ;;  %v1857_v58 = vld [vmem:[%s2996_s7 + $0xf0] sm:$0xff] }
 0x290   : >> { %1854 = vst [vmem:[%s2992_s30 + $0xe0] sm:$0xff] %v1853_v56  ;;  %1856 = vst [vmem:[%s2992_s30 + $0xe8] sm:$0xff] %v1855_v57  ;;  %v1859_v59 = vld [vmem:[%s2996_s7 + $0xf8] sm:$0xff]  ;;  %v1861_v60 = vld [vmem:[%s2996_s7 + $0x100] sm:$0xff] }
 0x291   : >> { %1858 = vst [vmem:[%s2992_s30 + $0xf0] sm:$0xff] %v1857_v58  ;;  %1860 = vst [vmem:[%s2992_s30 + $0xf8] sm:$0xff] %v1859_v59  ;;  %v1863_v61 = vld [vmem:[%s2996_s7 + $0x108] sm:$0xff]  ;;  %v1865_v62 = vld [vmem:[%s2996_s7 + $0x110] sm:$0xff] }
 0x292   : >> { %1862 = vst [vmem:[%s2992_s30 + $0x100] sm:$0xff] %v1861_v60  ;;  %v1867_v63 = vld [vmem:[%s2996_s7 + $0x118] sm:$0xff]  ;;  %1864 = vst [vmem:[%s2992_s30 + $0x108] sm:$0xff] %v1863_v61  ;;  %v1869_v0 = vld [vmem:[%s2996_s7 + $0x120] sm:$0xff] }
 0x293   : >> { %1866 = vst [vmem:[%s2992_s30 + $0x110] sm:$0xff] %v1865_v62  ;;  %1868 = vst [vmem:[%s2992_s30 + $0x118] sm:$0xff] %v1867_v63  ;;  %v1871_v1 = vld [vmem:[%s2996_s7 + $0x128] sm:$0xff]  ;;  %v1873_v2 = vld [vmem:[%s2996_s7 + $0x130] sm:$0xff] }
 0x294   : >> { %1870 = vst [vmem:[%s2992_s30 + $0x120] sm:$0xff] %v1869_v0  ;;  %1872 = vst [vmem:[%s2992_s30 + $0x128] sm:$0xff] %v1871_v1  ;;  %v1875_v3 = vld [vmem:[%s2996_s7 + $0x138] sm:$0xff]  ;;  %v1877_v4 = vld [vmem:[%s2996_s7 + $0x140] sm:$0xff] }
 0x295   : >> { %1874 = vst [vmem:[%s2992_s30 + $0x130] sm:$0xff] %v1873_v2  ;;  %v1879_v33 = vld [vmem:[%s2996_s7 + $0x148] sm:$0xff]  ;;  %1876 = vst [vmem:[%s2992_s30 + $0x138] sm:$0xff] %v1875_v3  ;;  %v1881_v5 = vld [vmem:[%s2996_s7 + $0x150] sm:$0xff] }
 0x296   : >> { %1878 = vst [vmem:[%s2992_s30 + $0x140] sm:$0xff] %v1877_v4  ;;  %1880 = vst [vmem:[%s2992_s30 + $0x148] sm:$0xff] %v1879_v33  ;;  %v1883_v6 = vld [vmem:[%s2996_s7 + $0x158] sm:$0xff]  ;;  %v1885_v47 = vld [vmem:[%s2996_s7 + $0x160] sm:$0xff] }
 0x297   : >> { %1882 = vst [vmem:[%s2992_s30 + $0x150] sm:$0xff] %v1881_v5  ;;  %1884 = vst [vmem:[%s2992_s30 + $0x158] sm:$0xff] %v1883_v6  ;;  %v1887_v7 = vld [vmem:[%s2996_s7 + $0x168] sm:$0xff]  ;;  %v1889_v8 = vld [vmem:[%s2996_s7 + $0x170] sm:$0xff] }
 0x298   : >> { %1886 = vst [vmem:[%s2992_s30 + $0x160] sm:$0xff] %v1885_v47  ;;  %v1891_v53 = vld [vmem:[%s2996_s7 + $0x178] sm:$0xff]  ;;  %1888 = vst [vmem:[%s2992_s30 + $0x168] sm:$0xff] %v1887_v7  ;;  %v1893_v9 = vld [vmem:[%s2996_s7 + $0x180] sm:$0xff] }
 0x299   : >> { %1890 = vst [vmem:[%s2992_s30 + $0x170] sm:$0xff] %v1889_v8  ;;  %1892 = vst [vmem:[%s2992_s30 + $0x178] sm:$0xff] %v1891_v53  ;;  %v1895_v10 = vld [vmem:[%s2996_s7 + $0x188] sm:$0xff]  ;;  %v1897_v11 = vld [vmem:[%s2996_s7 + $0x190] sm:$0xff] }
 0x29a   : >> { %1894 = vst [vmem:[%s2992_s30 + $0x180] sm:$0xff] %v1893_v9  ;;  %1896 = vst [vmem:[%s2992_s30 + $0x188] sm:$0xff] %v1895_v10  ;;  %v1899_v12 = vld [vmem:[%s2996_s7 + $0x198] sm:$0xff]  ;;  %v1901_v13 = vld [vmem:[%s2996_s7 + $0x1a0] sm:$0xff] }
 0x29b   : >> { %1898 = vst [vmem:[%s2992_s30 + $0x190] sm:$0xff] %v1897_v11  ;;  %v1903_v14 = vld [vmem:[%s2996_s7 + $0x1a8] sm:$0xff]  ;;  %1900 = vst [vmem:[%s2992_s30 + $0x198] sm:$0xff] %v1899_v12  ;;  %v1905_v15 = vld [vmem:[%s2996_s7 + $0x1b0] sm:$0xff] }
 0x29c   : >> { %1902 = vst [vmem:[%s2992_s30 + $0x1a0] sm:$0xff] %v1901_v13  ;;  %1904 = vst [vmem:[%s2992_s30 + $0x1a8] sm:$0xff] %v1903_v14  ;;  %v1907_v16 = vld [vmem:[%s2996_s7 + $0x1b8] sm:$0xff]  ;;  %v1909_v17 = vld [vmem:[%s2996_s7 + $0x1c0] sm:$0xff] }
 0x29d   : >> { %1906 = vst [vmem:[%s2992_s30 + $0x1b0] sm:$0xff] %v1905_v15  ;;  %1908 = vst [vmem:[%s2992_s30 + $0x1b8] sm:$0xff] %v1907_v16  ;;  %v1911_v18 = vld [vmem:[%s2996_s7 + $0x1c8] sm:$0xff]  ;;  %v1913_v19 = vld [vmem:[%s2996_s7 + $0x1d0] sm:$0xff]  ;;  %1793 = sbr.rel (!%p1790_p0) target bundleno = 641 (0x281), region = 301 }
 0x29e   : >> { %1910 = vst [vmem:[%s2992_s30 + $0x1c0] sm:$0xff] %v1909_v17  ;;  %v1915_v20 = vld [vmem:[%s2996_s7 + $0x1d8] sm:$0xff]  ;;  %1912 = vst [vmem:[%s2992_s30 + $0x1c8] sm:$0xff] %v1911_v18  ;;  %v1917_v21 = vld [vmem:[%s2996_s7 + $0x1e0] sm:$0xff] }
 0x29f   : >> { %1914 = vst [vmem:[%s2992_s30 + $0x1d0] sm:$0xff] %v1913_v19  ;;  %1916 = vst [vmem:[%s2992_s30 + $0x1d8] sm:$0xff] %v1915_v20  ;;  %v1919_v22 = vld [vmem:[%s2996_s7 + $0x1e8] sm:$0xff]  ;;  %v1921_v23 = vld [vmem:[%s2996_s7 + $0x1f0] sm:$0xff] }
 0x2a0   : >> { %1918 = vst [vmem:[%s2992_s30 + $0x1e0] sm:$0xff] %v1917_v21  ;;  %1920 = vst [vmem:[%s2992_s30 + $0x1e8] sm:$0xff] %v1919_v22  ;;  %v1923_v42 = vld [vmem:[%s2996_s7 + $0x1f8] sm:$0xff]  ;;  %s4613_s7 = smov %s4442_s9 }
 0x2a1   : >> { %1922 = vst [vmem:[%s2992_s30 + $0x1f0] sm:$0xff] %v1921_v23  ;;  %1924 = vst [vmem:[%s2992_s30 + $0x1f8] sm:$0xff] %v1923_v42  ;;  %s4612_s30 = smov %s4445_s23 }
 0x2a2 PF: > { %s4551_s27 = sand.u32 63, %s1784_s17   ;;  %s2342_s29 = sshll.u32 %s4375_s24, 13 }
 0x2a3   : > { %s1936_s21 = sshra.s32 %s2342_s29, 4  ;;  %p2326_p1 = scmp.le.s32.totalorder %s4551_s27, 0 }
 0x2a4   : > { %s1937_s12 = scalar_lea.vmem %s4155_s26, %s1936_s21 [#allocation3]   ;;  %s1940_s25 = scalar_lea.vmem %s4165_s8, %s1936_s21  }
 0x2a5   : > { %2165 = sbr.rel (%p2326_p1) target bundleno = 690 (0x2b2), region = 306  ;;  %s3006_s10 = smov (!%p2326_p1), %s1940_s25  }
 0x2a6   : > { %s3010_s15 = smov (!%p2326_p1), %s1937_s12   ;;  %s3014_s14 = smov (!%p2326_p1), 0  }
 0x2a7   : > { %s3018_s4 = smov (!%p2326_p1), 0  }
 0x2aa LB: >> { %v1952_v24 = vld [vmem:[%s3012_s15] sm:$0xff]  ;;  %s1954_s17 = sadd.s32 1, %s3016_s14  ;;  %s1946_s4 = sadd.s32 1, %s3020_s4   ;;  %s3020_s4 = sphi %s3018_s4, %s1946_s4   ;;  %s3016_s14 = sphi %s3014_s14, %s3015_s14   ;;  %s3012_s15 = sphi %s3010_s15, %s1959_s15   ;;  %s3008_s10 = sphi %s3006_s10, %s1960_s10  }
 0x2ab   : >> { %1953 = vst [vmem:[%s3008_s10] sm:$0xff] %v1952_v24  ;;  %p1955_p2 = scmp.ge.s32.totalorder %s1954_s17, %s4551_s27  ;;  %p1945_p3 = scmp.ge.s32.totalorder %s1946_s4, %s4551_s27 }
 0x2ad   : >> { %s4637_s17 = smov (%p1955_p2, %s1954_s17), 0  ;;  %1948 = sbr.rel (!%p1945_p3) target bundleno = 682 (0x2aa), region = 312 }
 0x2ae   : >> { %s2327_s24 = sshll.u32 %s4637_s17, 3  ;;  %s3015_s14 = smov %s4637_s17  }
 0x2af   : >> { %s1959_s15 = scalar_lea.vmem %s1937_s12, %s2327_s24 [#allocation3]   ;;  %s1960_s10 = scalar_lea.vmem %s1940_s25, %s2327_s24  }
 0x2b2 PF: > { %s3026_s30 = smov 1  }
 0x2b3   : > { %s1961_s7 = sshll.u32 %s3026_s30, %s4171_s20 }
 0x2b4   : > { %s2329_s28 = sadd.s32 4294967295, %s1961_s7 }
 0x2b5   : > { %v1971_v25 = vld [vmem:[%s1781_s5] sm:%s2329_s28] }
 0x2b6   : > { %1972 = vst [vmem:[%s1783_s22] sm:%s2329_s28] %v1971_v25 }
 0x2b7 PF: > { %p2330_p5 = scmp.ge.u32.totalorder %s4167_s6, 8 }
 0x2b8   : > { %s3027_s18 = smov (!%p2330_p5), 1  }
 0x2b9   : > { %1581 = sbr.rel (%p2330_p5) target bundleno = 704 (0x2c0), region = 114  ;;  %s1582_s9 = sshll.u32 (!%p2330_p5), %s3027_s18, %s4167_s6 }
 0x2ba   : > { %s2331_s23 = sadd.s32 (!%p2330_p5), 4294967295, %s1582_s9 }
 0x2be   : > { %v1592_v26 = vld [vmem:[%s4155_s26] sm:%s2331_s23] }
 0x2bf   : > { %1593 = vst [vmem:[%s4165_s8] sm:%s2331_s23] %v1592_v26 }
 0x2c0 PF: > { %p10_p4 = scmp.ge.s32.totalorder %s3067_s16, 6   ;;  %s4615_s12 = smov %s2888_s13 }
 0x2c1   : > { %s4616_s13 = smov %s3077_s19  ;;  %s4617_s14 = smov %s3067_s16 }
 0x2c2   :  { %12 = sbr.rel (!%p10_p4) target bundleno = 2 (0x2), region = 323 }

// kernel: generator_forward.8
= control target key start
LH: loop header
LB: loop body
LE: loop exit
PB: predicated region body
PF: predicated region fallthrough
CT: control target
= control target key end

     0   :  { %s2201_s12 = smov 0   ;;  %s2203_s13 = smov 0   ;;  %s2978_s0 = inlined_call_operand.vmem [shape: bf16[2,48], index: 0, kind: input, shape index: {}]   ;;  %s2979_s1 = inlined_call_operand.vmem [shape: bf16[48,1568], index: 1, kind: input, shape index: {}]   ;;  %s2980_s2 = inlined_call_operand.vmem [shape: f32[2,1], index: 2, kind: input, shape index: {}]   ;;  %s2981_s3 = inlined_call_operand.vmem [shape: bf16[2,1568], index: 3, kind: output, shape index: {}]  }
   0x1   :  { %s2205_s14 = smov 0  }
   0x2 LB: > { %s1500_s15 = sadd.s32 4294967295, %s2045_s14   ;;  %s2218_s16 = sadd.s32 1, %s2045_s14   ;;  %s2045_s14 = sphi %s2205_s14, %s3007_s14   ;;  %s2041_s13 = sphi %s2203_s13, %s3006_s13   ;;  %s2037_s12 = sphi %s2201_s12, %s3005_s12  }
   0x3   : > { %s38_s17 = ssub.s32 %s2045_s14, %s2218_s16  ;;  %s41_s18 = sadd.s32 1, %s2041_s13 }
   0x4   : > { %p39_p0 = scmp.eq.s32.totalorder %s38_s17, 0  ;;  %p48_p1 = scmp.ne.s32.totalorder %s2041_s13, %s2037_s12 }
   0x5   : > { %p49_p2 = scmp.eq.s32.totalorder %s2045_s14, 0  ;;  %p99_p3 = scmp.eq.s32.totalorder %s1500_s15, 3 }
   0x6   : > { %s2229_s19 = scalar_select %p39_p0, %s2041_s13, %s41_s18  }
   0x7   : > { %p50_p4 = por %p49_p2, %p48_p1  ;;  %p2231_p5 = por %p99_p3, %p48_p1 }
   0x8   : > { %p1503_p6 = scmp.ge.s32.totalorder %s2045_s14, 4 }
   0xa   : > { %127 = sbr.rel (%p1503_p6) target bundleno = 168 (0xa8), region = 24 }
   0xf   : > { %130 = sbr.rel (!%p50_p4) target bundleno = 168 (0xa8), region = 28  ;;  %s132_s21 = sand.u32 (%p50_p4), 1, %s2041_s13  }
  0x10   : > { %s1504_s22 = sshll.u32 (%p50_p4), %s2045_s14, 2  ;;  %s1578_s23 = smul.u32 (%p50_p4), 96, %s132_s21 }
  0x11   : > { %s136_s24 = ssub.s32 (%p50_p4), 13, %s1504_s22  ;;  %s1573_s25 = sshll.u32 (%p50_p4), %s2045_s14, 4 }
  0x12   : > { %p137_p7 = scmp.lt.s32.totalorder (%p50_p4), %s136_s24, 4  ;;  %s2242_s28 = scalar_lea.vmem (%p50_p4), %s2979_s1, %s1573_s25  }
  0x13   : > { %s2246_s4 = scalar_lea.vmem (%p50_p4), [#allocation2], %s1578_s23  }
  0x14   : > { %s3009_s24 = smov (!%p137_p7, %s136_s24), 4 }
  0x15   : > { %s139_s29 = smul.u32 384, %s3009_s24  ;;  %s2244_s30 = sshll.u32 %s3009_s24, 2 }
  0x17   : > { %p1508_p8 = scmp.eq.s32.totalorder %s139_s29, 0 }
  0x18   : > { %p147_p9 = scmp.lt.u32.totalorder (!%p1508_p8), %s2244_s30, 8 }
  0x19   : > { %146 = sbr.rel (%p1508_p8) target bundleno = 168 (0xa8), region = 32 }
  0x1e   : > { %150 = sbr.rel (%p147_p9) target bundleno = 155 (0x9b), region = 36  ;;  %s2250_s5 = sand.u32 (!%p147_p9), 7, %s2244_s30  }
  0x1f   : > { %p177_p10 = scmp.eq.s32.totalorder (!%p147_p9), %s2250_s5, 0  ;;  %p1509_p11 = scmp.ne.s32.totalorder (!%p147_p9), %s2250_s5, 0 }
  0x23   : > { %180 = sbr.rel (%p1509_p11) target bundleno = 90 (0x5a), region = 51  ;;  %s181_s6 = sshrl.u32 (!%p1509_p11), %s2244_s30, 3 }
  0x24   : > { %1868 = sdivrem.u32 (!%p1509_p11), %s181_s6, 12 }
  0x2d   : > { %s2257_s7 = spop.drf %1868 }
  0x2e   : > { %p1510_p12 = scmp.le.s32.totalorder %s2257_s7, 0 }
  0x2f   : > { %s2983_s8 = smov (!%p1510_p12), %s2246_s4  ;;  %s2984_s9 = smov (!%p1510_p12), %s2242_s28 }
  0x30   : > { %1373 = sbr.rel (%p1510_p12) target bundleno = 65 (0x41), region = 229  ;;  %s2266_s10 = smov (!%p1510_p12), 0  }
  0x31   : > { %s2268_s11 = smov (!%p1510_p12), 0  }
  0x35 LB: >> { %v195_v0 = vld [vmem:[%s2053_s9] sm:$0xff]  ;;  %v197_v1 = vld [vmem:[%s2053_s9 + $0x8] sm:$0xff]  ;;  %v219_v2 = vld [vmem:[%s2053_s9 + $0x34] sm:$0xff]  ;;  %s339_s17 = sadd.s32 1, %s2057_s10  ;;  %s189_s11 = sadd.s32 1, %s2061_s11   ;;  %s2061_s11 = sphi %s2268_s11, %s189_s11   ;;  %s2057_s10 = sphi %s2266_s10, %s2985_s10   ;;  %s2053_s9 = sphi %s2984_s9, %s344_s9   ;;  %s2049_s8 = sphi %s2983_s8, %s345_s8  }
  0x36   : >> { %196 = vst [vmem:[%s2049_s8] sm:$0xff] %v195_v0  ;;  %198 = vst [vmem:[%s2049_s8 + $0x8] sm:$0xff] %v197_v1  ;;  %v221_v3 = vld [vmem:[%s2053_s9 + $0x3c] sm:$0xff]  ;;  %v243_v4 = vld [vmem:[%s2053_s9 + $0x68] sm:$0xff]  ;;  %p340_p13 = scmp.ge.s32.totalorder %s339_s17, %s2257_s7  ;;  %p188_p0 = scmp.ge.s32.totalorder %s189_s11, %s2257_s7 }
  0x37   : >> { %220 = vst [vmem:[%s2049_s8 + $0x10] sm:$0xff] %v219_v2  ;;  %v245_v5 = vld [vmem:[%s2053_s9 + $0x70] sm:$0xff]  ;;  %222 = vst [vmem:[%s2049_s8 + $0x18] sm:$0xff] %v221_v3  ;;  %v267_v6 = vld [vmem:[%s2053_s9 + $0x9c] sm:$0xff] }
  0x38   : >> { %244 = vst [vmem:[%s2049_s8 + $0x20] sm:$0xff] %v243_v4  ;;  %246 = vst [vmem:[%s2049_s8 + $0x28] sm:$0xff] %v245_v5  ;;  %v269_v7 = vld [vmem:[%s2053_s9 + $0xa4] sm:$0xff]  ;;  %v291_v8 = vld [vmem:[%s2053_s9 + $0xd0] sm:$0xff]  ;;  %s3011_s17 = smov (%p340_p13, %s339_s17), 0 }
  0x39   : >> { %268 = vst [vmem:[%s2049_s8 + $0x30] sm:$0xff] %v267_v6  ;;  %270 = vst [vmem:[%s2049_s8 + $0x38] sm:$0xff] %v269_v7  ;;  %v293_v9 = vld [vmem:[%s2053_s9 + $0xd8] sm:$0xff]  ;;  %v315_v10 = vld [vmem:[%s2053_s9 + $0x104] sm:$0xff]  ;;  %s342_s18 = smul.u32 96, %s3011_s17  ;;  %s2985_s10 = smov %s3011_s17 }
  0x3a   : >> { %292 = vst [vmem:[%s2049_s8 + $0x40] sm:$0xff] %v291_v8  ;;  %v317_v11 = vld [vmem:[%s2053_s9 + $0x10c] sm:$0xff]  ;;  %294 = vst [vmem:[%s2049_s8 + $0x48] sm:$0xff] %v293_v9  ;;  %v319_v12 = vld [vmem:[%s2053_s9 + $0x114] sm:$0xff] }
  0x3b   : >> { %316 = vst [vmem:[%s2049_s8 + $0x50] sm:$0xff] %v315_v10  ;;  %318 = vst [vmem:[%s2049_s8 + $0x58] sm:$0xff] %v317_v11  ;;  %v321_v13 = vld [vmem:[%s2053_s9 + $0x11c] sm:$0xff]  ;;  %v323_v14 = vld [vmem:[%s2053_s9 + $0x124] sm:$0xff] }
  0x3c   : >> { %320 = vst [vmem:[%s2049_s8 + $0x60] sm:$0xff] %v319_v12  ;;  %322 = vst [vmem:[%s2049_s8 + $0x68] sm:$0xff] %v321_v13  ;;  %v325_v15 = vld [vmem:[%s2053_s9 + $0x12c] sm:$0xff]  ;;  %v327_v16 = vld [vmem:[%s2053_s9 + $0x134] sm:$0xff]  ;;  %191 = sbr.rel (!%p188_p0) target bundleno = 53 (0x35), region = 235 }
  0x3d   : >> { %324 = vst [vmem:[%s2049_s8 + $0x70] sm:$0xff] %v323_v14  ;;  %v329_v17 = vld [vmem:[%s2053_s9 + $0x13c] sm:$0xff]  ;;  %326 = vst [vmem:[%s2049_s8 + $0x78] sm:$0xff] %v325_v15  ;;  %v331_v18 = vld [vmem:[%s2053_s9 + $0x144] sm:$0xff] }
  0x3e   : >> { %328 = vst [vmem:[%s2049_s8 + $0x80] sm:$0xff] %v327_v16  ;;  %330 = vst [vmem:[%s2049_s8 + $0x88] sm:$0xff] %v329_v17  ;;  %v333_v19 = vld [vmem:[%s2053_s9 + $0x14c] sm:$0xff]  ;;  %v335_v20 = vld [vmem:[%s2053_s9 + $0x154] sm:$0xff] }
  0x3f   : >> { %332 = vst [vmem:[%s2049_s8 + $0x90] sm:$0xff] %v331_v18  ;;  %334 = vst [vmem:[%s2049_s8 + $0x98] sm:$0xff] %v333_v19  ;;  %v337_v21 = vld [vmem:[%s2053_s9 + $0x15c] sm:$0xff]  ;;  %s344_s9 = scalar_lea.vmem %s2242_s28, %s342_s18  }
  0x40   : >> { %336 = vst [vmem:[%s2049_s8 + $0xa0] sm:$0xff] %v335_v20  ;;  %338 = vst [vmem:[%s2049_s8 + $0xa8] sm:$0xff] %v337_v21  ;;  %s345_s8 = scalar_lea.vmem %s2246_s4, %s342_s18 [#allocation2]  }
  0x41 PF: > { %1870 = sdivrem.u32 %s181_s6, 12 }
  0x42   : > { %s1511_s21 = smul.u32 1536, %s2257_s7 }
  0x44   : > { %s350_s22 = sshra.s32 %s1511_s21, 4 }
  0x45   : > { %s2344_s23 = scalar_lea.vmem %s2242_s28, %s350_s22   ;;  %s2347_s24 = scalar_lea.vmem %s2246_s4, %s350_s22 [#allocation2]  }
  0x4a   : > { %s2349_s25 = spop.drf %1870 }
  0x4b   : > { %p1513_p1 = scmp.le.s32.totalorder %s2349_s25, 0 }
  0x4c   : > { %s2986_s26 = smov (!%p1513_p1), %s2347_s24  ;;  %s2987_s27 = smov (!%p1513_p1), %s2344_s23 }
  0x4d   : > { %1387 = sbr.rel (%p1513_p1) target bundleno = 90 (0x5a), region = 240  ;;  %s2358_s29 = smov (!%p1513_p1), 0  }
  0x4e   : > { %s2360_s6 = smov (!%p1513_p1), 0  }
  0x52 LB: >> { %v366_v22 = vld [vmem:[%s2069_s27] sm:$0xff]  ;;  %v368_v23 = vld [vmem:[%s2069_s27 + $0x34] sm:$0xff]  ;;  %v370_v24 = vld [vmem:[%s2069_s27 + $0x68] sm:$0xff]  ;;  %s378_s7 = sadd.s32 1, %s2073_s29  ;;  %s360_s6 = sadd.s32 1, %s2077_s6   ;;  %s2077_s6 = sphi %s2360_s6, %s360_s6   ;;  %s2073_s29 = sphi %s2358_s29, %s2988_s29   ;;  %s2069_s27 = sphi %s2987_s27, %s383_s27   ;;  %s2065_s26 = sphi %s2986_s26, %s384_s26  }
  0x53   : >> { %367 = vst [vmem:[%s2065_s26] sm:$0xff] %v366_v22  ;;  %369 = vst [vmem:[%s2065_s26 + $0x10] sm:$0xff] %v368_v23  ;;  %v372_v25 = vld [vmem:[%s2069_s27 + $0x9c] sm:$0xff]  ;;  %v374_v26 = vld [vmem:[%s2069_s27 + $0xd0] sm:$0xff]  ;;  %p379_p2 = scmp.ge.s32.totalorder %s378_s7, %s2349_s25  ;;  %p359_p3 = scmp.ge.s32.totalorder %s360_s6, %s2349_s25 }
  0x54   : >> { %371 = vst [vmem:[%s2065_s26 + $0x20] sm:$0xff] %v370_v24  ;;  %v376_v27 = vld [vmem:[%s2069_s27 + $0x104] sm:$0xff]  ;;  %373 = vst [vmem:[%s2065_s26 + $0x30] sm:$0xff] %v372_v25 }
  0x55   : >> { %375 = vst [vmem:[%s2065_s26 + $0x40] sm:$0xff] %v374_v26  ;;  %377 = vst [vmem:[%s2065_s26 + $0x50] sm:$0xff] %v376_v27  ;;  %s3013_s7 = smov (%p379_p2, %s378_s7), 0  ;;  %362 = sbr.rel (!%p359_p3) target bundleno = 82 (0x52), region = 246 }
  0x56   : >> { %s1514_s8 = sshll.u32 %s3013_s7, 3  ;;  %s2988_s29 = smov %s3013_s7 }
  0x57   : >> { %s383_s27 = scalar_lea.vmem %s2344_s23, %s1514_s8   ;;  %s384_s26 = scalar_lea.vmem %s2347_s24, %s1514_s8 [#allocation2]  }
  0x5a PF: > { %387 = sbr.rel (%p177_p10) target bundleno = 155 (0x9b), region = 69  ;;  %s389_s9 = ssub.s32 (!%p177_p10), %s2244_s30, %s2250_s5 }
  0x5b   : > { %s393_s10 = sshrl.u32 (!%p177_p10), %s2244_s30, 3  ;;  %s2384_s11 = scalar_lea.vmem (!%p177_p10), %s2242_s28, %s389_s9 }
  0x5c   : > { %s2387_s17 = scalar_lea.vmem (!%p177_p10), %s2246_s4, %s389_s9 [#allocation2]  ;;  %1872 = sdivrem.u32 (!%p177_p10), %s393_s10, 12 }
  0x65   : > { %s2391_s18 = spop.drf %1872 }
  0x66   : > { %p1516_p4 = scmp.le.s32.totalorder %s2391_s18, 0 }
  0x67   : > { %s2989_s21 = smov (!%p1516_p4), %s2246_s4  ;;  %s2990_s22 = smov (!%p1516_p4), %s2242_s28 }
  0x68   : > { %1401 = sbr.rel (%p1516_p4) target bundleno = 121 (0x79), region = 251  ;;  %s2400_s23 = smov (!%p1516_p4), 0  }
  0x69   : > { %s2402_s24 = smov (!%p1516_p4), 0  }
  0x6d LB: >> { %v407_v28 = vld [vmem:[%s2085_s22] sm:$0xff]  ;;  %v409_v29 = vld [vmem:[%s2085_s22 + $0x8] sm:$0xff]  ;;  %v431_v30 = vld [vmem:[%s2085_s22 + $0x34] sm:$0xff]  ;;  %s551_s25 = sadd.s32 1, %s2089_s23  ;;  %s401_s24 = sadd.s32 1, %s2093_s24   ;;  %s2093_s24 = sphi %s2402_s24, %s401_s24   ;;  %s2089_s23 = sphi %s2400_s23, %s2991_s23   ;;  %s2085_s22 = sphi %s2990_s22, %s556_s22   ;;  %s2081_s21 = sphi %s2989_s21, %s557_s21  }
  0x6e   : >> { %408 = vst [vmem:[%s2081_s21] sm:$0xff] %v407_v28  ;;  %410 = vst [vmem:[%s2081_s21 + $0x8] sm:$0xff] %v409_v29  ;;  %v433_v31 = vld [vmem:[%s2085_s22 + $0x3c] sm:$0xff]  ;;  %v455_v32 = vld [vmem:[%s2085_s22 + $0x68] sm:$0xff]  ;;  %p552_p6 = scmp.ge.s32.totalorder %s551_s25, %s2391_s18  ;;  %p400_p7 = scmp.ge.s32.totalorder %s401_s24, %s2391_s18 }
  0x6f   : >> { %432 = vst [vmem:[%s2081_s21 + $0x10] sm:$0xff] %v431_v30  ;;  %v457_v33 = vld [vmem:[%s2085_s22 + $0x70] sm:$0xff]  ;;  %434 = vst [vmem:[%s2081_s21 + $0x18] sm:$0xff] %v433_v31  ;;  %v479_v34 = vld [vmem:[%s2085_s22 + $0x9c] sm:$0xff] }
  0x70   : >> { %456 = vst [vmem:[%s2081_s21 + $0x20] sm:$0xff] %v455_v32  ;;  %458 = vst [vmem:[%s2081_s21 + $0x28] sm:$0xff] %v457_v33  ;;  %v481_v35 = vld [vmem:[%s2085_s22 + $0xa4] sm:$0xff]  ;;  %v503_v36 = vld [vmem:[%s2085_s22 + $0xd0] sm:$0xff]  ;;  %s3015_s25 = smov (%p552_p6, %s551_s25), 0 }
  0x71   : >> { %480 = vst [vmem:[%s2081_s21 + $0x30] sm:$0xff] %v479_v34  ;;  %482 = vst [vmem:[%s2081_s21 + $0x38] sm:$0xff] %v481_v35  ;;  %v505_v37 = vld [vmem:[%s2085_s22 + $0xd8] sm:$0xff]  ;;  %v527_v38 = vld [vmem:[%s2085_s22 + $0x104] sm:$0xff]  ;;  %s554_s26 = smul.u32 96, %s3015_s25  ;;  %s2991_s23 = smov %s3015_s25 }
  0x72   : >> { %504 = vst [vmem:[%s2081_s21 + $0x40] sm:$0xff] %v503_v36  ;;  %v529_v39 = vld [vmem:[%s2085_s22 + $0x10c] sm:$0xff]  ;;  %506 = vst [vmem:[%s2081_s21 + $0x48] sm:$0xff] %v505_v37  ;;  %v531_v40 = vld [vmem:[%s2085_s22 + $0x114] sm:$0xff] }
  0x73   : >> { %528 = vst [vmem:[%s2081_s21 + $0x50] sm:$0xff] %v527_v38  ;;  %530 = vst [vmem:[%s2081_s21 + $0x58] sm:$0xff] %v529_v39  ;;  %v533_v41 = vld [vmem:[%s2085_s22 + $0x11c] sm:$0xff]  ;;  %v535_v42 = vld [vmem:[%s2085_s22 + $0x124] sm:$0xff] }
  0x74   : >> { %532 = vst [vmem:[%s2081_s21 + $0x60] sm:$0xff] %v531_v40  ;;  %534 = vst [vmem:[%s2081_s21 + $0x68] sm:$0xff] %v533_v41  ;;  %v537_v43 = vld [vmem:[%s2085_s22 + $0x12c] sm:$0xff]  ;;  %v539_v44 = vld [vmem:[%s2085_s22 + $0x134] sm:$0xff]  ;;  %403 = sbr.rel (!%p400_p7) target bundleno = 109 (0x6d), region = 257 }
  0x75   : >> { %536 = vst [vmem:[%s2081_s21 + $0x70] sm:$0xff] %v535_v42  ;;  %v541_v45 = vld [vmem:[%s2085_s22 + $0x13c] sm:$0xff]  ;;  %538 = vst [vmem:[%s2081_s21 + $0x78] sm:$0xff] %v537_v43  ;;  %v543_v46 = vld [vmem:[%s2085_s22 + $0x144] sm:$0xff] }
  0x76   : >> { %540 = vst [vmem:[%s2081_s21 + $0x80] sm:$0xff] %v539_v44  ;;  %542 = vst [vmem:[%s2081_s21 + $0x88] sm:$0xff] %v541_v45  ;;  %v545_v47 = vld [vmem:[%s2085_s22 + $0x14c] sm:$0xff]  ;;  %v547_v48 = vld [vmem:[%s2085_s22 + $0x154] sm:$0xff] }
  0x77   : >> { %544 = vst [vmem:[%s2081_s21 + $0x90] sm:$0xff] %v543_v46  ;;  %546 = vst [vmem:[%s2081_s21 + $0x98] sm:$0xff] %v545_v47  ;;  %v549_v49 = vld [vmem:[%s2085_s22 + $0x15c] sm:$0xff]  ;;  %s556_s22 = scalar_lea.vmem %s2242_s28, %s554_s26  }
  0x78   : >> { %548 = vst [vmem:[%s2081_s21 + $0xa0] sm:$0xff] %v547_v48  ;;  %550 = vst [vmem:[%s2081_s21 + $0xa8] sm:$0xff] %v549_v49  ;;  %s557_s21 = scalar_lea.vmem %s2246_s4, %s554_s26 [#allocation2]  }
  0x79 PF: > { %1874 = sdivrem.u32 %s393_s10, 12 }
  0x7a   : > { %s1517_s27 = smul.u32 1536, %s2391_s18 }
  0x7c   : > { %s562_s29 = sshra.s32 %s1517_s27, 4 }
  0x7d   : > { %s2478_s6 = scalar_lea.vmem %s2242_s28, %s562_s29   ;;  %s2481_s7 = scalar_lea.vmem %s2246_s4, %s562_s29 [#allocation2]  }
  0x82   : > { %s2483_s8 = spop.drf %1874 }
  0x83   : > { %p1519_p8 = scmp.le.s32.totalorder %s2483_s8, 0 }
  0x84   : > { %s2992_s9 = smov (!%p1519_p8), %s2481_s7  ;;  %s2993_s21 = smov (!%p1519_p8), %s2478_s6 }
  0x85   : > { %1415 = sbr.rel (%p1519_p8) target bundleno = 146 (0x92), region = 262  ;;  %s2492_s22 = smov (!%p1519_p8), 0  }
  0x86   : > { %s2494_s10 = smov (!%p1519_p8), 0  }
  0x8a LB: >> { %v578_v50 = vld [vmem:[%s2101_s21] sm:$0xff]  ;;  %v580_v51 = vld [vmem:[%s2101_s21 + $0x34] sm:$0xff]  ;;  %v582_v52 = vld [vmem:[%s2101_s21 + $0x68] sm:$0xff]  ;;  %s590_s18 = sadd.s32 1, %s2105_s22  ;;  %s572_s10 = sadd.s32 1, %s2109_s10   ;;  %s2109_s10 = sphi %s2494_s10, %s572_s10   ;;  %s2105_s22 = sphi %s2492_s22, %s2994_s22   ;;  %s2101_s21 = sphi %s2993_s21, %s595_s21   ;;  %s2097_s9 = sphi %s2992_s9, %s596_s9  }
  0x8b   : >> { %579 = vst [vmem:[%s2097_s9] sm:$0xff] %v578_v50  ;;  %581 = vst [vmem:[%s2097_s9 + $0x10] sm:$0xff] %v580_v51  ;;  %v584_v53 = vld [vmem:[%s2101_s21 + $0x9c] sm:$0xff]  ;;  %v586_v54 = vld [vmem:[%s2101_s21 + $0xd0] sm:$0xff]  ;;  %p591_p9 = scmp.ge.s32.totalorder %s590_s18, %s2483_s8  ;;  %p571_p10 = scmp.ge.s32.totalorder %s572_s10, %s2483_s8 }
  0x8c   : >> { %583 = vst [vmem:[%s2097_s9 + $0x20] sm:$0xff] %v582_v52  ;;  %v588_v55 = vld [vmem:[%s2101_s21 + $0x104] sm:$0xff]  ;;  %585 = vst [vmem:[%s2097_s9 + $0x30] sm:$0xff] %v584_v53 }
  0x8d   : >> { %587 = vst [vmem:[%s2097_s9 + $0x40] sm:$0xff] %v586_v54  ;;  %589 = vst [vmem:[%s2097_s9 + $0x50] sm:$0xff] %v588_v55  ;;  %s3017_s18 = smov (%p591_p9, %s590_s18), 0  ;;  %574 = sbr.rel (!%p571_p10) target bundleno = 138 (0x8a), region = 268 }
  0x8e   : >> { %s1520_s23 = sshll.u32 %s3017_s18, 3  ;;  %s2994_s22 = smov %s3017_s18 }
  0x8f   : >> { %s595_s21 = scalar_lea.vmem %s2478_s6, %s1520_s23   ;;  %s596_s9 = scalar_lea.vmem %s2481_s7, %s1520_s23 [#allocation2]  }
  0x92 PF: > { %s2175_s24 = smov 1  }
  0x93   : > { %s597_s25 = sshll.u32 %s2175_s24, %s2250_s5 }
  0x94   : > { %s1522_s26 = sadd.s32 4294967295, %s597_s25 }
  0x95   : > { %v607_v56 = vld [vmem:[%s2384_s11] sm:%s1522_s26]  ;;  %v609_v57 = vld [vmem:[%s2384_s11 + $0x34] sm:%s1522_s26] }
  0x96   : > { %608 = vst [vmem:[%s2387_s17] sm:%s1522_s26] %v607_v56  ;;  %610 = vst [vmem:[%s2387_s17 + $0x10] sm:%s1522_s26] %v609_v57 }
  0x97   : > { %v611_v58 = vld [vmem:[%s2384_s11 + $0x68] sm:%s1522_s26]  ;;  %v613_v59 = vld [vmem:[%s2384_s11 + $0x9c] sm:%s1522_s26] }
  0x98   : > { %612 = vst [vmem:[%s2387_s17 + $0x20] sm:%s1522_s26] %v611_v58  ;;  %614 = vst [vmem:[%s2387_s17 + $0x30] sm:%s1522_s26] %v613_v59 }
  0x99   : > { %v615_v60 = vld [vmem:[%s2384_s11 + $0xd0] sm:%s1522_s26]  ;;  %v617_v61 = vld [vmem:[%s2384_s11 + $0x104] sm:%s1522_s26] }
  0x9a   : > { %616 = vst [vmem:[%s2387_s17 + $0x40] sm:%s1522_s26] %v615_v60  ;;  %618 = vst [vmem:[%s2387_s17 + $0x50] sm:%s1522_s26] %v617_v61 }
  0x9b PF: > { %p1523_p11 = scmp.ge.u32.totalorder %s2244_s30, 8 }
  0x9c   : > { %s2176_s27 = smov (!%p1523_p11), 1  }
  0x9d   : > { %153 = sbr.rel (%p1523_p11) target bundleno = 168 (0xa8), region = 40  ;;  %s154_s5 = sshll.u32 (!%p1523_p11), %s2176_s27, %s2244_s30 }
  0x9e   : > { %s1524_s11 = sadd.s32 (!%p1523_p11), 4294967295, %s154_s5 }
  0xa2   : > { %v164_v62 = vld [vmem:[%s2242_s28] sm:%s1524_s11]  ;;  %v166_v63 = vld [vmem:[%s2242_s28 + $0x34] sm:%s1524_s11] }
  0xa3   : > { %165 = vst [vmem:[%s2246_s4] sm:%s1524_s11] %v164_v62  ;;  %167 = vst [vmem:[%s2246_s4 + $0x10] sm:%s1524_s11] %v166_v63 }
  0xa4   : > { %v168_v0 = vld [vmem:[%s2242_s28 + $0x68] sm:%s1524_s11]  ;;  %v170_v1 = vld [vmem:[%s2242_s28 + $0x9c] sm:%s1524_s11] }
  0xa5   : > { %169 = vst [vmem:[%s2246_s4 + $0x20] sm:%s1524_s11] %v168_v0  ;;  %171 = vst [vmem:[%s2246_s4 + $0x30] sm:%s1524_s11] %v170_v1 }
  0xa6   : > { %v172_v2 = vld [vmem:[%s2242_s28 + $0xd0] sm:%s1524_s11]  ;;  %v174_v3 = vld [vmem:[%s2242_s28 + $0x104] sm:%s1524_s11] }
  0xa7   : > { %173 = vst [vmem:[%s2246_s4 + $0x40] sm:%s1524_s11] %v172_v2  ;;  %175 = vst [vmem:[%s2246_s4 + $0x50] sm:%s1524_s11] %v174_v3 }
  0xa8 PF: > { %p1525_p12 = scmp.ge.s32.totalorder %s2045_s14, 1  ;;  %p621_p13 = scmp.lt.s32.totalorder %s2045_s14, 5 }
  0xaa   : > { %p622_p0 = pnand %p1525_p12, %p621_p13 }
  0xab   : > { %s628_s30 = sand.u32 (!%p622_p0), 1, %s2037_s12  }
  0xac   : > { %625 = sbr.rel (%p622_p0) target bundleno = 544 (0x220), region = 94  ;;  %s1526_s8 = sshll.u32 (!%p622_p0), %s628_s30, 2 }
  0xad   : > { %s1579_s17 = smul.u32 (!%p622_p0), 96, %s628_s30  ;;  %s2552_s9 = scalar_lea.vmem (!%p622_p0), [#allocation3], %s1526_s8  }
  0xaf   : > { %s630_s29 = scalar_lea.vmem (!%p622_p0), [#allocation2], %s1579_s17 }
  0xb1   : > { %v2177_v4 = vmov 0   ;;  %v674_v5 = vld [vmem:[%s2980_s2] sm:$0x3]  ;;  %v1877_v6 = vld [vmem:[%s630_s29 + $0x44] ss:$16 sps:$4 sm:$0xff]   ;;  %vm740_vm0 = vcmask 392192   ;;  %v843_v21 = vlaneseq }
  0xb2   : > { %776 = vmatprep.mubr.bf16.mxu0 %v2177_v4  ;;  %817 = vmatprep.mubr.bf16.mxu1 %v2177_v4  ;;  %v1879_v7 = vld [vmem:[%s630_s29 + $0x4c] ss:$16 sps:$4 sm:$0xff]   ;;  %v1881_v8 = vld [vmem:[%s630_s29 + $0x40] ss:$16 sps:$4 sm:$0xff]   ;;  %v1882_v9 = vld [vmem:[%s630_s29 + $0x48] ss:$16 sps:$4 sm:$0xff]  }
  0xb3   : > { %1876 = vset.pattern.permute.xlu0 %v2177_v4  ;;  %754 = vmatprep.subr.bf16.mxu0 %v1877_v6  ;;  %v1883_v10 = vld [vmem:[%s630_s29 + $0x24] ss:$16 sps:$4 sm:$0xff]   ;;  %v1885_v11 = vld [vmem:[%s630_s29 + $0x2c] ss:$16 sps:$4 sm:$0xff]   ;;  %v1887_v12 = vld [vmem:[%s630_s29 + $0x20] ss:$16 sps:$4 sm:$0xff]  }
  0xb4   : > { %677 = vperm.xlu0 %1876, %v674_v5   ;;  %795 = vmatprep.subr.bf16.mxu1 %v1879_v7  ;;  %v1888_v13 = vld [vmem:[%s630_s29 + $0x28] ss:$16 sps:$4 sm:$0xff]   ;;  %v1889_v14 = vld [vmem:[%s630_s29 + $0x4] ss:$16 sps:$4 sm:$0xff]   ;;  %v1891_v15 = vld [vmem:[%s630_s29 + $0xc] ss:$16 sps:$4 sm:$0xff]  }
  0xb5   : > { %755 = vmatpush1.bf16.msra.mxu0 %v1881_v8  ;;  %796 = vmatpush1.bf16.msra.mxu1 %v1882_v9  ;;  %v1893_v16 = vld [vmem:[%s630_s29] ss:$16 sps:$4 sm:$0xff]   ;;  %v1894_v17 = vld [vmem:[%s630_s29 + $0x8] ss:$16 sps:$4 sm:$0xff]   ;;  %v2178_v19 = vmov 1966171168  }
  0xb6   : > { %756 = vmatprep.subr.bf16.mxu0 %v1883_v10  ;;  %797 = vmatprep.subr.bf16.mxu1 %v1885_v11  ;;  %v661_v18 = vld [vmem:[%s2978_s0] sm:$0x1]  ;;  %v841_v20 = vunpack.c.l.s4 %v2178_v19  ;;  %v844_v26 = vshrl.u32 %v843_v21, 7  ;;  %s1545_s21 = sshll.u32 (%p2231_p5), %s1500_s15, 2 }
  0xb7   : > { %s872_s22 = ssub.s32 (%p2231_p5), 13, %s1545_s21  ;;  %s2562_s12 = scalar_lea.vmem (%p2231_p5), %s2981_s3, %s1545_s21  }
  0xb8   : > { %v842_v25 = vunpack.c.0.s8 %v841_v20  ;;  %p873_p1 = scmp.lt.s32.totalorder (%p2231_p5), %s872_s22, 4 }
  0xb9   : > { %757 = vmatpush1.bf16.msra.mxu0 %v1887_v12  ;;  %798 = vmatpush1.bf16.msra.mxu1 %v1888_v13 }
  0xba   : > { %758 = vmatprep.subr.bf16.mxu0 %v1889_v14  ;;  %799 = vmatprep.subr.bf16.mxu1 %v1891_v15  ;;  %v845_v33 = vsub.s32 %v842_v25, %v844_v26 }
  0xbd   : > { %759 = vmatpush1.bf16.msra.mxu0 %v1893_v16  ;;  %800 = vmatpush1.bf16.msra.mxu1 %v1894_v17 }
  0xc0   : > { %1539 = vmatmul.mubr.msk.bf16.vlgmr.msra.gmra.mxu0 %vm740_vm0, %v661_v18  ;;  %1540 = vmatmul.mubr.msk.bf16.vlgmr.msra.gmra.mxu1 %vm740_vm0, %v661_v18 }
 0x12f   : > { %v678_v22 = vpop.permute.xlu0 %677 }
 0x180   : > { %v778_v23 = vpop.f32.mrf.mxu0  ;;  %v819_v24 = vpop.f32.mrf.mxu1 }
 0x181   : > { %v779_v27 = vadd.f32 %v778_v23, %v678_v22  ;;  %v820_v28 = vadd.f32 %v819_v24, %v678_v22 }
 0x182   : > { %v780_v29 = vpop.f32.mrf.mxu0  ;;  %v821_v30 = vpop.f32.mrf.mxu1 }
 0x183   : > { %v781_v31 = vadd.f32 %v780_v29, %v678_v22  ;;  %v822_v32 = vadd.f32 %v821_v30, %v678_v22  ;;  %v826_v36 = vmax.f32 %v779_v27, 0.0  ;;  %v828_v37 = vmax.f32 %v820_v28, 0.0 }
 0x184   : > { %v782_v34 = vpop.f32.mrf.mxu0  ;;  %v823_v35 = vpop.f32.mrf.mxu1 }
 0x185   : > { %v827_v38 = vmax.f32 %v781_v31, 0.0  ;;  %v829_v39 = vmax.f32 %v822_v32, 0.0 }
 0x186   : > { %v783_v40 = vpop.f32.mrf.mxu0  ;;  %v824_v41 = vpop.f32.mrf.mxu1 }
 0x187   : > { %v1541_v42 = vpack.c.bf16 %v827_v38, %v826_v36  ;;  %v1542_v43 = vpack.c.bf16 %v829_v39, %v828_v37 }
 0x189   : > { %v846_v44 = vrot.slane %v1541_v42, %v845_v33  ;;  %v853_v45 = vrot.slane %v1542_v43, %v845_v33  ;;  %870 = sbr.rel (!%p2231_p5) target bundleno = 544 (0x220), region = 102 }
 0x18b   : > { %v854_v46 = vcombine.low %v846_v44, %v853_v45 }
 0x18d   : > { %1543 = vst.sshfl [vmem:[%s2552_s9] sm:$0x55 pattern:$0x73625140] %v854_v46 }
 0x18e   : > { %s3019_s22 = smov (!%p873_p1, %s872_s22), 4 }
 0x18f   : > { %s1546_s23 = sshll.u32 %s3019_s22, 4 }
 0x190   : > { %p1548_p2 = scmp.eq.s32.totalorder %s1546_s23, 0 }
 0x191   : > { %p881_p3 = scmp.lt.u32.totalorder (!%p1548_p2), %s3019_s22, 8 }
 0x192   : > { %880 = sbr.rel (%p1548_p2) target bundleno = 544 (0x220), region = 106 }
 0x197   : > { %884 = sbr.rel (%p881_p3) target bundleno = 535 (0x217), region = 110  ;;  %s2569_s20 = sand.u32 (!%p881_p3), 7, %s3019_s22  }
 0x198   : > { %p901_p5 = scmp.eq.s32.totalorder (!%p881_p3), %s2569_s20, 0  ;;  %p1549_p4 = scmp.ne.s32.totalorder (!%p881_p3), %s2569_s20, 0 }
 0x19c   : > { %904 = sbr.rel (%p1549_p4) target bundleno = 471 (0x1d7), region = 125  ;;  %s905_s14 = sshrl.u32 (!%p1549_p4), %s3019_s22, 3 }
 0x19d   : > { %s2576_s15 = sshrl.u32 (!%p1549_p4), %s905_s14, 6 }
 0x19e   : > { %p1550_p6 = scmp.le.s32.totalorder (!%p1549_p4), %s2576_s15, 0 }
 0x1a1   : > { %1429 = sbr.rel (%p1550_p6) target bundleno = 455 (0x1c7), region = 273  ;;  %s2995_s24 = smov (!%p1550_p6), %s2562_s12 }
 0x1a2   : > { %s2996_s25 = smov (!%p1550_p6), %s2552_s9  ;;  %s2585_s26 = smov (!%p1550_p6), 0  }
 0x1a3   : > { %s2587_s27 = smov (!%p1550_p6), 0  }
 0x1a6 LB: >> { %v918_v47 = vld [vmem:[%s2117_s25] sm:$0xff]  ;;  %v920_v48 = vld [vmem:[%s2117_s25 + $0x8] sm:$0xff]  ;;  %v922_v49 = vld [vmem:[%s2117_s25 + $0x10] sm:$0xff]  ;;  %s1046_s5 = sadd.s32 1, %s2121_s26  ;;  %s912_s27 = sadd.s32 1, %s2125_s27   ;;  %s2125_s27 = sphi %s2587_s27, %s912_s27   ;;  %s2121_s26 = sphi %s2585_s26, %s2999_s26   ;;  %s2117_s25 = sphi %s2996_s25, %s2998_s25   ;;  %s2113_s24 = sphi %s2995_s24, %s2997_s24  }
 0x1a7   : >> { %919 = vst [vmem:[%s2113_s24] sm:$0xff] %v918_v47  ;;  %921 = vst [vmem:[%s2113_s24 + $0x8] sm:$0xff] %v920_v48  ;;  %v924_v50 = vld [vmem:[%s2117_s25 + $0x18] sm:$0xff]  ;;  %v926_v51 = vld [vmem:[%s2117_s25 + $0x20] sm:$0xff]  ;;  %p1047_p7 = scmp.ge.s32.totalorder %s1046_s5, %s2576_s15  ;;  %p911_p8 = scmp.ge.s32.totalorder %s912_s27, %s2576_s15 }
 0x1a8   : >> { %923 = vst [vmem:[%s2113_s24 + $0x10] sm:$0xff] %v922_v49  ;;  %v928_v52 = vld [vmem:[%s2117_s25 + $0x28] sm:$0xff]  ;;  %925 = vst [vmem:[%s2113_s24 + $0x18] sm:$0xff] %v924_v50  ;;  %v930_v53 = vld [vmem:[%s2117_s25 + $0x30] sm:$0xff] }
 0x1a9   : >> { %927 = vst [vmem:[%s2113_s24 + $0x20] sm:$0xff] %v926_v51  ;;  %929 = vst [vmem:[%s2113_s24 + $0x28] sm:$0xff] %v928_v52  ;;  %v932_v54 = vld [vmem:[%s2117_s25 + $0x38] sm:$0xff]  ;;  %v934_v55 = vld [vmem:[%s2117_s25 + $0x40] sm:$0xff]  ;;  %s3021_s5 = smov (%p1047_p7, %s1046_s5), 0 }
 0x1aa   : >> { %931 = vst [vmem:[%s2113_s24 + $0x30] sm:$0xff] %v930_v53  ;;  %933 = vst [vmem:[%s2113_s24 + $0x38] sm:$0xff] %v932_v54  ;;  %v936_v56 = vld [vmem:[%s2117_s25 + $0x48] sm:$0xff]  ;;  %v938_v57 = vld [vmem:[%s2117_s25 + $0x50] sm:$0xff]  ;;  %s1551_s11 = sshll.u32 %s3021_s5, 9  ;;  %s2999_s26 = smov %s3021_s5 }
 0x1ab   : >> { %935 = vst [vmem:[%s2113_s24 + $0x40] sm:$0xff] %v934_v55  ;;  %v940_v58 = vld [vmem:[%s2117_s25 + $0x58] sm:$0xff]  ;;  %937 = vst [vmem:[%s2113_s24 + $0x48] sm:$0xff] %v936_v56  ;;  %v942_v59 = vld [vmem:[%s2117_s25 + $0x60] sm:$0xff]  ;;  %s2643_s30 = scalar_lea.vmem %s2552_s9, %s1551_s11 [#allocation3]   ;;  %s2646_s17 = scalar_lea.vmem %s2562_s12, %s1551_s11  }
 0x1ac   : >> { %939 = vst [vmem:[%s2113_s24 + $0x50] sm:$0xff] %v938_v57  ;;  %941 = vst [vmem:[%s2113_s24 + $0x58] sm:$0xff] %v940_v58  ;;  %v944_v60 = vld [vmem:[%s2117_s25 + $0x68] sm:$0xff]  ;;  %v946_v61 = vld [vmem:[%s2117_s25 + $0x70] sm:$0xff] }
 0x1ad   : >> { %943 = vst [vmem:[%s2113_s24 + $0x60] sm:$0xff] %v942_v59  ;;  %945 = vst [vmem:[%s2113_s24 + $0x68] sm:$0xff] %v944_v60  ;;  %v948_v62 = vld [vmem:[%s2117_s25 + $0x78] sm:$0xff]  ;;  %v950_v63 = vld [vmem:[%s2117_s25 + $0x80] sm:$0xff] }
 0x1ae   : >> { %947 = vst [vmem:[%s2113_s24 + $0x70] sm:$0xff] %v946_v61  ;;  %v952_v0 = vld [vmem:[%s2117_s25 + $0x88] sm:$0xff]  ;;  %949 = vst [vmem:[%s2113_s24 + $0x78] sm:$0xff] %v948_v62  ;;  %v954_v1 = vld [vmem:[%s2117_s25 + $0x90] sm:$0xff] }
 0x1af   : >> { %951 = vst [vmem:[%s2113_s24 + $0x80] sm:$0xff] %v950_v63  ;;  %953 = vst [vmem:[%s2113_s24 + $0x88] sm:$0xff] %v952_v0  ;;  %v956_v2 = vld [vmem:[%s2117_s25 + $0x98] sm:$0xff]  ;;  %v958_v3 = vld [vmem:[%s2117_s25 + $0xa0] sm:$0xff] }
 0x1b0   : >> { %955 = vst [vmem:[%s2113_s24 + $0x90] sm:$0xff] %v954_v1  ;;  %957 = vst [vmem:[%s2113_s24 + $0x98] sm:$0xff] %v956_v2  ;;  %v960_v4 = vld [vmem:[%s2117_s25 + $0xa8] sm:$0xff]  ;;  %v962_v5 = vld [vmem:[%s2117_s25 + $0xb0] sm:$0xff] }
 0x1b1   : >> { %959 = vst [vmem:[%s2113_s24 + $0xa0] sm:$0xff] %v958_v3  ;;  %v964_v6 = vld [vmem:[%s2117_s25 + $0xb8] sm:$0xff]  ;;  %961 = vst [vmem:[%s2113_s24 + $0xa8] sm:$0xff] %v960_v4  ;;  %v966_v7 = vld [vmem:[%s2117_s25 + $0xc0] sm:$0xff] }
 0x1b2   : >> { %963 = vst [vmem:[%s2113_s24 + $0xb0] sm:$0xff] %v962_v5  ;;  %965 = vst [vmem:[%s2113_s24 + $0xb8] sm:$0xff] %v964_v6  ;;  %v968_v8 = vld [vmem:[%s2117_s25 + $0xc8] sm:$0xff]  ;;  %v970_v9 = vld [vmem:[%s2117_s25 + $0xd0] sm:$0xff] }
 0x1b3   : >> { %967 = vst [vmem:[%s2113_s24 + $0xc0] sm:$0xff] %v966_v7  ;;  %969 = vst [vmem:[%s2113_s24 + $0xc8] sm:$0xff] %v968_v8  ;;  %v972_v10 = vld [vmem:[%s2117_s25 + $0xd8] sm:$0xff]  ;;  %v974_v11 = vld [vmem:[%s2117_s25 + $0xe0] sm:$0xff] }
 0x1b4   : >> { %971 = vst [vmem:[%s2113_s24 + $0xd0] sm:$0xff] %v970_v9  ;;  %v976_v12 = vld [vmem:[%s2117_s25 + $0xe8] sm:$0xff]  ;;  %973 = vst [vmem:[%s2113_s24 + $0xd8] sm:$0xff] %v972_v10  ;;  %v978_v13 = vld [vmem:[%s2117_s25 + $0xf0] sm:$0xff] }
 0x1b5   : >> { %975 = vst [vmem:[%s2113_s24 + $0xe0] sm:$0xff] %v974_v11  ;;  %977 = vst [vmem:[%s2113_s24 + $0xe8] sm:$0xff] %v976_v12  ;;  %v980_v14 = vld [vmem:[%s2117_s25 + $0xf8] sm:$0xff]  ;;  %v982_v15 = vld [vmem:[%s2117_s25 + $0x100] sm:$0xff] }
 0x1b6   : >> { %979 = vst [vmem:[%s2113_s24 + $0xf0] sm:$0xff] %v978_v13  ;;  %981 = vst [vmem:[%s2113_s24 + $0xf8] sm:$0xff] %v980_v14  ;;  %v984_v16 = vld [vmem:[%s2117_s25 + $0x108] sm:$0xff]  ;;  %v986_v17 = vld [vmem:[%s2117_s25 + $0x110] sm:$0xff] }
 0x1b7   : >> { %983 = vst [vmem:[%s2113_s24 + $0x100] sm:$0xff] %v982_v15  ;;  %v988_v18 = vld [vmem:[%s2117_s25 + $0x118] sm:$0xff]  ;;  %985 = vst [vmem:[%s2113_s24 + $0x108] sm:$0xff] %v984_v16  ;;  %v990_v19 = vld [vmem:[%s2117_s25 + $0x120] sm:$0xff] }
 0x1b8   : >> { %987 = vst [vmem:[%s2113_s24 + $0x110] sm:$0xff] %v986_v17  ;;  %989 = vst [vmem:[%s2113_s24 + $0x118] sm:$0xff] %v988_v18  ;;  %v992_v20 = vld [vmem:[%s2117_s25 + $0x128] sm:$0xff]  ;;  %v994_v21 = vld [vmem:[%s2117_s25 + $0x130] sm:$0xff] }
 0x1b9   : >> { %991 = vst [vmem:[%s2113_s24 + $0x120] sm:$0xff] %v990_v19  ;;  %993 = vst [vmem:[%s2113_s24 + $0x128] sm:$0xff] %v992_v20  ;;  %v996_v22 = vld [vmem:[%s2117_s25 + $0x138] sm:$0xff]  ;;  %v998_v23 = vld [vmem:[%s2117_s25 + $0x140] sm:$0xff] }
 0x1ba   : >> { %995 = vst [vmem:[%s2113_s24 + $0x130] sm:$0xff] %v994_v21  ;;  %v1000_v24 = vld [vmem:[%s2117_s25 + $0x148] sm:$0xff]  ;;  %997 = vst [vmem:[%s2113_s24 + $0x138] sm:$0xff] %v996_v22  ;;  %v1002_v25 = vld [vmem:[%s2117_s25 + $0x150] sm:$0xff] }
 0x1bb   : >> { %999 = vst [vmem:[%s2113_s24 + $0x140] sm:$0xff] %v998_v23  ;;  %1001 = vst [vmem:[%s2113_s24 + $0x148] sm:$0xff] %v1000_v24  ;;  %v1004_v26 = vld [vmem:[%s2117_s25 + $0x158] sm:$0xff]  ;;  %v1006_v27 = vld [vmem:[%s2117_s25 + $0x160] sm:$0xff] }
 0x1bc   : >> { %1003 = vst [vmem:[%s2113_s24 + $0x150] sm:$0xff] %v1002_v25  ;;  %1005 = vst [vmem:[%s2113_s24 + $0x158] sm:$0xff] %v1004_v26  ;;  %v1008_v28 = vld [vmem:[%s2117_s25 + $0x168] sm:$0xff]  ;;  %v1010_v29 = vld [vmem:[%s2117_s25 + $0x170] sm:$0xff] }
 0x1bd   : >> { %1007 = vst [vmem:[%s2113_s24 + $0x160] sm:$0xff] %v1006_v27  ;;  %v1012_v30 = vld [vmem:[%s2117_s25 + $0x178] sm:$0xff]  ;;  %1009 = vst [vmem:[%s2113_s24 + $0x168] sm:$0xff] %v1008_v28  ;;  %v1014_v31 = vld [vmem:[%s2117_s25 + $0x180] sm:$0xff] }
 0x1be   : >> { %1011 = vst [vmem:[%s2113_s24 + $0x170] sm:$0xff] %v1010_v29  ;;  %1013 = vst [vmem:[%s2113_s24 + $0x178] sm:$0xff] %v1012_v30  ;;  %v1016_v32 = vld [vmem:[%s2117_s25 + $0x188] sm:$0xff]  ;;  %v1018_v33 = vld [vmem:[%s2117_s25 + $0x190] sm:$0xff] }
 0x1bf   : >> { %1015 = vst [vmem:[%s2113_s24 + $0x180] sm:$0xff] %v1014_v31  ;;  %1017 = vst [vmem:[%s2113_s24 + $0x188] sm:$0xff] %v1016_v32  ;;  %v1020_v34 = vld [vmem:[%s2117_s25 + $0x198] sm:$0xff]  ;;  %v1022_v35 = vld [vmem:[%s2117_s25 + $0x1a0] sm:$0xff] }
 0x1c0   : >> { %1019 = vst [vmem:[%s2113_s24 + $0x190] sm:$0xff] %v1018_v33  ;;  %v1024_v36 = vld [vmem:[%s2117_s25 + $0x1a8] sm:$0xff]  ;;  %1021 = vst [vmem:[%s2113_s24 + $0x198] sm:$0xff] %v1020_v34  ;;  %v1026_v37 = vld [vmem:[%s2117_s25 + $0x1b0] sm:$0xff] }
 0x1c1   : >> { %1023 = vst [vmem:[%s2113_s24 + $0x1a0] sm:$0xff] %v1022_v35  ;;  %1025 = vst [vmem:[%s2113_s24 + $0x1a8] sm:$0xff] %v1024_v36  ;;  %v1028_v38 = vld [vmem:[%s2117_s25 + $0x1b8] sm:$0xff]  ;;  %v1030_v39 = vld [vmem:[%s2117_s25 + $0x1c0] sm:$0xff] }
 0x1c2   : >> { %1027 = vst [vmem:[%s2113_s24 + $0x1b0] sm:$0xff] %v1026_v37  ;;  %1029 = vst [vmem:[%s2113_s24 + $0x1b8] sm:$0xff] %v1028_v38  ;;  %v1032_v40 = vld [vmem:[%s2117_s25 + $0x1c8] sm:$0xff]  ;;  %v1034_v41 = vld [vmem:[%s2117_s25 + $0x1d0] sm:$0xff]  ;;  %914 = sbr.rel (!%p911_p8) target bundleno = 422 (0x1a6), region = 279 }
 0x1c3   : >> { %1031 = vst [vmem:[%s2113_s24 + $0x1c0] sm:$0xff] %v1030_v39  ;;  %v1036_v42 = vld [vmem:[%s2117_s25 + $0x1d8] sm:$0xff]  ;;  %1033 = vst [vmem:[%s2113_s24 + $0x1c8] sm:$0xff] %v1032_v40  ;;  %v1038_v43 = vld [vmem:[%s2117_s25 + $0x1e0] sm:$0xff] }
 0x1c4   : >> { %1035 = vst [vmem:[%s2113_s24 + $0x1d0] sm:$0xff] %v1034_v41  ;;  %1037 = vst [vmem:[%s2113_s24 + $0x1d8] sm:$0xff] %v1036_v42  ;;  %v1040_v44 = vld [vmem:[%s2117_s25 + $0x1e8] sm:$0xff]  ;;  %v1042_v45 = vld [vmem:[%s2117_s25 + $0x1f0] sm:$0xff] }
 0x1c5   : >> { %1039 = vst [vmem:[%s2113_s24 + $0x1e0] sm:$0xff] %v1038_v43  ;;  %1041 = vst [vmem:[%s2113_s24 + $0x1e8] sm:$0xff] %v1040_v44  ;;  %v1044_v46 = vld [vmem:[%s2117_s25 + $0x1f8] sm:$0xff]  ;;  %s2998_s25 = smov %s2643_s30 }
 0x1c6   : >> { %1043 = vst [vmem:[%s2113_s24 + $0x1f0] sm:$0xff] %v1042_v45  ;;  %1045 = vst [vmem:[%s2113_s24 + $0x1f8] sm:$0xff] %v1044_v46  ;;  %s2997_s24 = smov %s2646_s17 }
 0x1c7 PF: > { %s2752_s28 = sand.u32 63, %s905_s14   ;;  %s1574_s4 = sshll.u32 %s2576_s15, 13 }
 0x1c8   : > { %s1057_s29 = sshra.s32 %s1574_s4, 4  ;;  %p1556_p9 = scmp.le.s32.totalorder %s2752_s28, 0 }
 0x1c9   : > { %s1058_s6 = scalar_lea.vmem %s2552_s9, %s1057_s29 [#allocation3]   ;;  %s1061_s7 = scalar_lea.vmem %s2562_s12, %s1057_s29  }
 0x1ca   : > { %1443 = sbr.rel (%p1556_p9) target bundleno = 471 (0x1d7), region = 284  ;;  %s2127_s8 = smov (!%p1556_p9), %s1061_s7  }
 0x1cb   : > { %s2131_s21 = smov (!%p1556_p9), %s1058_s6   ;;  %s2135_s10 = smov (!%p1556_p9), 0  }
 0x1cc   : > { %s2139_s18 = smov (!%p1556_p9), 0  }
 0x1cf LB: >> { %v1073_v47 = vld [vmem:[%s2133_s21] sm:$0xff]  ;;  %s1075_s23 = sadd.s32 1, %s2137_s10  ;;  %s1067_s18 = sadd.s32 1, %s2141_s18   ;;  %s2141_s18 = sphi %s2139_s18, %s1067_s18   ;;  %s2137_s10 = sphi %s2135_s10, %s2136_s10   ;;  %s2133_s21 = sphi %s2131_s21, %s1080_s21   ;;  %s2129_s8 = sphi %s2127_s8, %s1081_s8  }
 0x1d0   : >> { %1074 = vst [vmem:[%s2129_s8] sm:$0xff] %v1073_v47  ;;  %p1076_p10 = scmp.ge.s32.totalorder %s1075_s23, %s2752_s28  ;;  %p1066_p11 = scmp.ge.s32.totalorder %s1067_s18, %s2752_s28 }
 0x1d2   : >> { %s3023_s23 = smov (%p1076_p10, %s1075_s23), 0  ;;  %1069 = sbr.rel (!%p1066_p11) target bundleno = 463 (0x1cf), region = 290 }
 0x1d3   : >> { %s1557_s14 = sshll.u32 %s3023_s23, 3  ;;  %s2136_s10 = smov %s3023_s23  }
 0x1d4   : >> { %s1080_s21 = scalar_lea.vmem %s1058_s6, %s1557_s14 [#allocation3]   ;;  %s1081_s8 = scalar_lea.vmem %s1061_s7, %s1557_s14  }
 0x1d7 PF: > { %1084 = sbr.rel (%p901_p5) target bundleno = 535 (0x217), region = 143  ;;  %s2764_s15 = ssub.s32 (!%p901_p5), %s3019_s22, %s2569_s20 }
 0x1d8   : > { %s1090_s24 = sshrl.u32 (!%p901_p5), %s3019_s22, 3  ;;  %s1087_s25 = scalar_lea.vmem (!%p901_p5), %s2552_s9, %s2764_s15 [#allocation3] }
 0x1d9   : > { %s1089_s26 = scalar_lea.vmem (!%p901_p5), %s2562_s12, %s2764_s15  ;;  %s2773_s27 = sshrl.u32 (!%p901_p5), %s1090_s24, 6 }
 0x1da   : > { %p1559_p12 = scmp.le.s32.totalorder (!%p901_p5), %s2773_s27, 0 }
 0x1dc   : > { %1457 = sbr.rel (%p1559_p12) target bundleno = 514 (0x202), region = 295  ;;  %s3000_s5 = smov (!%p1559_p12), %s2562_s12 }
 0x1dd   : > { %s3001_s11 = smov (!%p1559_p12), %s2552_s9  ;;  %s2782_s30 = smov (!%p1559_p12), 0  }
 0x1de   : > { %s2784_s17 = smov (!%p1559_p12), 0  }
 0x1e1 LB: >> { %v1103_v48 = vld [vmem:[%s2149_s11] sm:$0xff]  ;;  %v1105_v49 = vld [vmem:[%s2149_s11 + $0x8] sm:$0xff]  ;;  %v1107_v50 = vld [vmem:[%s2149_s11 + $0x10] sm:$0xff]  ;;  %s1231_s28 = sadd.s32 1, %s2153_s30  ;;  %s1097_s17 = sadd.s32 1, %s2157_s17   ;;  %s2157_s17 = sphi %s2784_s17, %s1097_s17   ;;  %s2153_s30 = sphi %s2782_s30, %s3004_s30   ;;  %s2149_s11 = sphi %s3001_s11, %s3003_s11   ;;  %s2145_s5 = sphi %s3000_s5, %s3002_s5  }
 0x1e2   : >> { %1104 = vst [vmem:[%s2145_s5] sm:$0xff] %v1103_v48  ;;  %1106 = vst [vmem:[%s2145_s5 + $0x8] sm:$0xff] %v1105_v49  ;;  %v1109_v51 = vld [vmem:[%s2149_s11 + $0x18] sm:$0xff]  ;;  %v1111_v52 = vld [vmem:[%s2149_s11 + $0x20] sm:$0xff]  ;;  %p1232_p13 = scmp.ge.s32.totalorder %s1231_s28, %s2773_s27  ;;  %p1096_p0 = scmp.ge.s32.totalorder %s1097_s17, %s2773_s27 }
 0x1e3   : >> { %1108 = vst [vmem:[%s2145_s5 + $0x10] sm:$0xff] %v1107_v50  ;;  %v1113_v53 = vld [vmem:[%s2149_s11 + $0x28] sm:$0xff]  ;;  %1110 = vst [vmem:[%s2145_s5 + $0x18] sm:$0xff] %v1109_v51  ;;  %v1115_v54 = vld [vmem:[%s2149_s11 + $0x30] sm:$0xff] }
 0x1e4   : >> { %1112 = vst [vmem:[%s2145_s5 + $0x20] sm:$0xff] %v1111_v52  ;;  %1114 = vst [vmem:[%s2145_s5 + $0x28] sm:$0xff] %v1113_v53  ;;  %v1117_v55 = vld [vmem:[%s2149_s11 + $0x38] sm:$0xff]  ;;  %v1119_v56 = vld [vmem:[%s2149_s11 + $0x40] sm:$0xff]  ;;  %s3025_s28 = smov (%p1232_p13, %s1231_s28), 0 }
 0x1e5   : >> { %1116 = vst [vmem:[%s2145_s5 + $0x30] sm:$0xff] %v1115_v54  ;;  %1118 = vst [vmem:[%s2145_s5 + $0x38] sm:$0xff] %v1117_v55  ;;  %v1121_v57 = vld [vmem:[%s2149_s11 + $0x48] sm:$0xff]  ;;  %v1123_v58 = vld [vmem:[%s2149_s11 + $0x50] sm:$0xff]  ;;  %s1560_s4 = sshll.u32 %s3025_s28, 9  ;;  %s3004_s30 = smov %s3025_s28 }
 0x1e6   : >> { %1120 = vst [vmem:[%s2145_s5 + $0x40] sm:$0xff] %v1119_v56  ;;  %v1125_v59 = vld [vmem:[%s2149_s11 + $0x58] sm:$0xff]  ;;  %1122 = vst [vmem:[%s2145_s5 + $0x48] sm:$0xff] %v1121_v57  ;;  %v1127_v60 = vld [vmem:[%s2149_s11 + $0x60] sm:$0xff]  ;;  %s2840_s29 = scalar_lea.vmem %s2552_s9, %s1560_s4 [#allocation3]   ;;  %s2843_s6 = scalar_lea.vmem %s2562_s12, %s1560_s4  }
 0x1e7   : >> { %1124 = vst [vmem:[%s2145_s5 + $0x50] sm:$0xff] %v1123_v58  ;;  %1126 = vst [vmem:[%s2145_s5 + $0x58] sm:$0xff] %v1125_v59  ;;  %v1129_v61 = vld [vmem:[%s2149_s11 + $0x68] sm:$0xff]  ;;  %v1131_v62 = vld [vmem:[%s2149_s11 + $0x70] sm:$0xff] }
 0x1e8   : >> { %1128 = vst [vmem:[%s2145_s5 + $0x60] sm:$0xff] %v1127_v60  ;;  %1130 = vst [vmem:[%s2145_s5 + $0x68] sm:$0xff] %v1129_v61  ;;  %v1133_v63 = vld [vmem:[%s2149_s11 + $0x78] sm:$0xff]  ;;  %v1135_v0 = vld [vmem:[%s2149_s11 + $0x80] sm:$0xff] }
 0x1e9   : >> { %1132 = vst [vmem:[%s2145_s5 + $0x70] sm:$0xff] %v1131_v62  ;;  %v1137_v1 = vld [vmem:[%s2149_s11 + $0x88] sm:$0xff]  ;;  %1134 = vst [vmem:[%s2145_s5 + $0x78] sm:$0xff] %v1133_v63  ;;  %v1139_v2 = vld [vmem:[%s2149_s11 + $0x90] sm:$0xff] }
 0x1ea   : >> { %1136 = vst [vmem:[%s2145_s5 + $0x80] sm:$0xff] %v1135_v0  ;;  %1138 = vst [vmem:[%s2145_s5 + $0x88] sm:$0xff] %v1137_v1  ;;  %v1141_v3 = vld [vmem:[%s2149_s11 + $0x98] sm:$0xff]  ;;  %v1143_v4 = vld [vmem:[%s2149_s11 + $0xa0] sm:$0xff] }
 0x1eb   : >> { %1140 = vst [vmem:[%s2145_s5 + $0x90] sm:$0xff] %v1139_v2  ;;  %1142 = vst [vmem:[%s2145_s5 + $0x98] sm:$0xff] %v1141_v3  ;;  %v1145_v5 = vld [vmem:[%s2149_s11 + $0xa8] sm:$0xff]  ;;  %v1147_v6 = vld [vmem:[%s2149_s11 + $0xb0] sm:$0xff] }
 0x1ec   : >> { %1144 = vst [vmem:[%s2145_s5 + $0xa0] sm:$0xff] %v1143_v4  ;;  %v1149_v7 = vld [vmem:[%s2149_s11 + $0xb8] sm:$0xff]  ;;  %1146 = vst [vmem:[%s2145_s5 + $0xa8] sm:$0xff] %v1145_v5  ;;  %v1151_v8 = vld [vmem:[%s2149_s11 + $0xc0] sm:$0xff] }
 0x1ed   : >> { %1148 = vst [vmem:[%s2145_s5 + $0xb0] sm:$0xff] %v1147_v6  ;;  %1150 = vst [vmem:[%s2145_s5 + $0xb8] sm:$0xff] %v1149_v7  ;;  %v1153_v9 = vld [vmem:[%s2149_s11 + $0xc8] sm:$0xff]  ;;  %v1155_v10 = vld [vmem:[%s2149_s11 + $0xd0] sm:$0xff] }
 0x1ee   : >> { %1152 = vst [vmem:[%s2145_s5 + $0xc0] sm:$0xff] %v1151_v8  ;;  %1154 = vst [vmem:[%s2145_s5 + $0xc8] sm:$0xff] %v1153_v9  ;;  %v1157_v11 = vld [vmem:[%s2149_s11 + $0xd8] sm:$0xff]  ;;  %v1159_v12 = vld [vmem:[%s2149_s11 + $0xe0] sm:$0xff] }
 0x1ef   : >> { %1156 = vst [vmem:[%s2145_s5 + $0xd0] sm:$0xff] %v1155_v10  ;;  %v1161_v13 = vld [vmem:[%s2149_s11 + $0xe8] sm:$0xff]  ;;  %1158 = vst [vmem:[%s2145_s5 + $0xd8] sm:$0xff] %v1157_v11  ;;  %v1163_v14 = vld [vmem:[%s2149_s11 + $0xf0] sm:$0xff] }
 0x1f0   : >> { %1160 = vst [vmem:[%s2145_s5 + $0xe0] sm:$0xff] %v1159_v12  ;;  %1162 = vst [vmem:[%s2145_s5 + $0xe8] sm:$0xff] %v1161_v13  ;;  %v1165_v15 = vld [vmem:[%s2149_s11 + $0xf8] sm:$0xff]  ;;  %v1167_v16 = vld [vmem:[%s2149_s11 + $0x100] sm:$0xff] }
 0x1f1   : >> { %1164 = vst [vmem:[%s2145_s5 + $0xf0] sm:$0xff] %v1163_v14  ;;  %1166 = vst [vmem:[%s2145_s5 + $0xf8] sm:$0xff] %v1165_v15  ;;  %v1169_v17 = vld [vmem:[%s2149_s11 + $0x108] sm:$0xff]  ;;  %v1171_v18 = vld [vmem:[%s2149_s11 + $0x110] sm:$0xff] }
 0x1f2   : >> { %1168 = vst [vmem:[%s2145_s5 + $0x100] sm:$0xff] %v1167_v16  ;;  %v1173_v19 = vld [vmem:[%s2149_s11 + $0x118] sm:$0xff]  ;;  %1170 = vst [vmem:[%s2145_s5 + $0x108] sm:$0xff] %v1169_v17  ;;  %v1175_v20 = vld [vmem:[%s2149_s11 + $0x120] sm:$0xff] }
 0x1f3   : >> { %1172 = vst [vmem:[%s2145_s5 + $0x110] sm:$0xff] %v1171_v18  ;;  %1174 = vst [vmem:[%s2145_s5 + $0x118] sm:$0xff] %v1173_v19  ;;  %v1177_v21 = vld [vmem:[%s2149_s11 + $0x128] sm:$0xff]  ;;  %v1179_v22 = vld [vmem:[%s2149_s11 + $0x130] sm:$0xff] }
 0x1f4   : >> { %1176 = vst [vmem:[%s2145_s5 + $0x120] sm:$0xff] %v1175_v20  ;;  %1178 = vst [vmem:[%s2145_s5 + $0x128] sm:$0xff] %v1177_v21  ;;  %v1181_v23 = vld [vmem:[%s2149_s11 + $0x138] sm:$0xff]  ;;  %v1183_v24 = vld [vmem:[%s2149_s11 + $0x140] sm:$0xff] }
 0x1f5   : >> { %1180 = vst [vmem:[%s2145_s5 + $0x130] sm:$0xff] %v1179_v22  ;;  %v1185_v25 = vld [vmem:[%s2149_s11 + $0x148] sm:$0xff]  ;;  %1182 = vst [vmem:[%s2145_s5 + $0x138] sm:$0xff] %v1181_v23  ;;  %v1187_v26 = vld [vmem:[%s2149_s11 + $0x150] sm:$0xff] }
 0x1f6   : >> { %1184 = vst [vmem:[%s2145_s5 + $0x140] sm:$0xff] %v1183_v24  ;;  %1186 = vst [vmem:[%s2145_s5 + $0x148] sm:$0xff] %v1185_v25  ;;  %v1189_v27 = vld [vmem:[%s2149_s11 + $0x158] sm:$0xff]  ;;  %v1191_v28 = vld [vmem:[%s2149_s11 + $0x160] sm:$0xff] }
 0x1f7   : >> { %1188 = vst [vmem:[%s2145_s5 + $0x150] sm:$0xff] %v1187_v26  ;;  %1190 = vst [vmem:[%s2145_s5 + $0x158] sm:$0xff] %v1189_v27  ;;  %v1193_v29 = vld [vmem:[%s2149_s11 + $0x168] sm:$0xff]  ;;  %v1195_v30 = vld [vmem:[%s2149_s11 + $0x170] sm:$0xff] }
 0x1f8   : >> { %1192 = vst [vmem:[%s2145_s5 + $0x160] sm:$0xff] %v1191_v28  ;;  %v1197_v31 = vld [vmem:[%s2149_s11 + $0x178] sm:$0xff]  ;;  %1194 = vst [vmem:[%s2145_s5 + $0x168] sm:$0xff] %v1193_v29  ;;  %v1199_v32 = vld [vmem:[%s2149_s11 + $0x180] sm:$0xff] }
 0x1f9   : >> { %1196 = vst [vmem:[%s2145_s5 + $0x170] sm:$0xff] %v1195_v30  ;;  %1198 = vst [vmem:[%s2145_s5 + $0x178] sm:$0xff] %v1197_v31  ;;  %v1201_v33 = vld [vmem:[%s2149_s11 + $0x188] sm:$0xff]  ;;  %v1203_v34 = vld [vmem:[%s2149_s11 + $0x190] sm:$0xff] }
 0x1fa   : >> { %1200 = vst [vmem:[%s2145_s5 + $0x180] sm:$0xff] %v1199_v32  ;;  %1202 = vst [vmem:[%s2145_s5 + $0x188] sm:$0xff] %v1201_v33  ;;  %v1205_v35 = vld [vmem:[%s2149_s11 + $0x198] sm:$0xff]  ;;  %v1207_v36 = vld [vmem:[%s2149_s11 + $0x1a0] sm:$0xff] }
 0x1fb   : >> { %1204 = vst [vmem:[%s2145_s5 + $0x190] sm:$0xff] %v1203_v34  ;;  %v1209_v37 = vld [vmem:[%s2149_s11 + $0x1a8] sm:$0xff]  ;;  %1206 = vst [vmem:[%s2145_s5 + $0x198] sm:$0xff] %v1205_v35  ;;  %v1211_v38 = vld [vmem:[%s2149_s11 + $0x1b0] sm:$0xff] }
 0x1fc   : >> { %1208 = vst [vmem:[%s2145_s5 + $0x1a0] sm:$0xff] %v1207_v36  ;;  %1210 = vst [vmem:[%s2145_s5 + $0x1a8] sm:$0xff] %v1209_v37  ;;  %v1213_v39 = vld [vmem:[%s2149_s11 + $0x1b8] sm:$0xff]  ;;  %v1215_v40 = vld [vmem:[%s2149_s11 + $0x1c0] sm:$0xff] }
 0x1fd   : >> { %1212 = vst [vmem:[%s2145_s5 + $0x1b0] sm:$0xff] %v1211_v38  ;;  %1214 = vst [vmem:[%s2145_s5 + $0x1b8] sm:$0xff] %v1213_v39  ;;  %v1217_v41 = vld [vmem:[%s2149_s11 + $0x1c8] sm:$0xff]  ;;  %v1219_v42 = vld [vmem:[%s2149_s11 + $0x1d0] sm:$0xff]  ;;  %1099 = sbr.rel (!%p1096_p0) target bundleno = 481 (0x1e1), region = 301 }
 0x1fe   : >> { %1216 = vst [vmem:[%s2145_s5 + $0x1c0] sm:$0xff] %v1215_v40  ;;  %v1221_v43 = vld [vmem:[%s2149_s11 + $0x1d8] sm:$0xff]  ;;  %1218 = vst [vmem:[%s2145_s5 + $0x1c8] sm:$0xff] %v1217_v41  ;;  %v1223_v44 = vld [vmem:[%s2149_s11 + $0x1e0] sm:$0xff] }
 0x1ff   : >> { %1220 = vst [vmem:[%s2145_s5 + $0x1d0] sm:$0xff] %v1219_v42  ;;  %1222 = vst [vmem:[%s2145_s5 + $0x1d8] sm:$0xff] %v1221_v43  ;;  %v1225_v45 = vld [vmem:[%s2149_s11 + $0x1e8] sm:$0xff]  ;;  %v1227_v46 = vld [vmem:[%s2149_s11 + $0x1f0] sm:$0xff] }
 0x200   : >> { %1224 = vst [vmem:[%s2145_s5 + $0x1e0] sm:$0xff] %v1223_v44  ;;  %1226 = vst [vmem:[%s2145_s5 + $0x1e8] sm:$0xff] %v1225_v45  ;;  %v1229_v47 = vld [vmem:[%s2149_s11 + $0x1f8] sm:$0xff]  ;;  %s3003_s11 = smov %s2840_s29 }
 0x201   : >> { %1228 = vst [vmem:[%s2145_s5 + $0x1f0] sm:$0xff] %v1227_v46  ;;  %1230 = vst [vmem:[%s2145_s5 + $0x1f8] sm:$0xff] %v1229_v47  ;;  %s3002_s5 = smov %s2843_s6 }
 0x202 PF: > { %s2949_s7 = sand.u32 63, %s1090_s24   ;;  %s1576_s8 = sshll.u32 %s2773_s27, 13 }
 0x203   : > { %s1242_s21 = sshra.s32 %s1576_s8, 4  ;;  %p1565_p1 = scmp.le.s32.totalorder %s2949_s7, 0 }
 0x204   : > { %s1243_s10 = scalar_lea.vmem %s2552_s9, %s1242_s21 [#allocation3]   ;;  %s1246_s18 = scalar_lea.vmem %s2562_s12, %s1242_s21  }
 0x205   : > { %1471 = sbr.rel (%p1565_p1) target bundleno = 530 (0x212), region = 306  ;;  %s2159_s23 = smov (!%p1565_p1), %s1246_s18  }
 0x206   : > { %s2163_s14 = smov (!%p1565_p1), %s1243_s10   ;;  %s2167_s28 = smov (!%p1565_p1), 0  }
 0x207   : > { %s2171_s17 = smov (!%p1565_p1), 0  }
 0x20a LB: >> { %v1258_v48 = vld [vmem:[%s2165_s14] sm:$0xff]  ;;  %s1260_s24 = sadd.s32 1, %s2169_s28  ;;  %s1252_s17 = sadd.s32 1, %s2173_s17   ;;  %s2173_s17 = sphi %s2171_s17, %s1252_s17   ;;  %s2169_s28 = sphi %s2167_s28, %s2168_s28   ;;  %s2165_s14 = sphi %s2163_s14, %s1265_s14   ;;  %s2161_s23 = sphi %s2159_s23, %s1266_s23  }
 0x20b   : >> { %1259 = vst [vmem:[%s2161_s23] sm:$0xff] %v1258_v48  ;;  %p1261_p2 = scmp.ge.s32.totalorder %s1260_s24, %s2949_s7  ;;  %p1251_p3 = scmp.ge.s32.totalorder %s1252_s17, %s2949_s7 }
 0x20d   : >> { %s3027_s24 = smov (%p1261_p2, %s1260_s24), 0  ;;  %1254 = sbr.rel (!%p1251_p3) target bundleno = 522 (0x20a), region = 312 }
 0x20e   : >> { %s1566_s27 = sshll.u32 %s3027_s24, 3  ;;  %s2168_s28 = smov %s3027_s24  }
 0x20f   : >> { %s1265_s14 = scalar_lea.vmem %s1243_s10, %s1566_s27 [#allocation3]   ;;  %s1266_s23 = scalar_lea.vmem %s1246_s18, %s1566_s27  }
 0x212 PF: > { %s2179_s5 = smov 1  }
 0x213   : > { %s1267_s11 = sshll.u32 %s2179_s5, %s2569_s20 }
 0x214   : > { %s1568_s30 = sadd.s32 4294967295, %s1267_s11 }
 0x215   : > { %v1277_v49 = vld [vmem:[%s1087_s25] sm:%s1568_s30] }
 0x216   : > { %1278 = vst [vmem:[%s1089_s26] sm:%s1568_s30] %v1277_v49 }
 0x217 PF: > { %p1569_p5 = scmp.ge.u32.totalorder %s3019_s22, 8 }
 0x218   : > { %s2180_s4 = smov (!%p1569_p5), 1  }
 0x219   : > { %887 = sbr.rel (%p1569_p5) target bundleno = 544 (0x220), region = 114  ;;  %s888_s29 = sshll.u32 (!%p1569_p5), %s2180_s4, %s3019_s22 }
 0x21a   : > { %s1570_s6 = sadd.s32 (!%p1569_p5), 4294967295, %s888_s29 }
 0x21e   : > { %v898_v50 = vld [vmem:[%s2552_s9] sm:%s1570_s6] }
 0x21f   : > { %899 = vst [vmem:[%s2562_s12] sm:%s1570_s6] %v898_v50 }
 0x220 PF: > { %p10_p4 = scmp.ge.s32.totalorder %s2218_s16, 6   ;;  %s3005_s12 = smov %s2041_s13 }
 0x221   : > { %s3006_s13 = smov %s2229_s19  ;;  %s3007_s14 = smov %s2218_s16 }
 0x222   :  { %12 = sbr.rel (!%p10_p4) target bundleno = 2 (0x2), region = 323 }

// kernel: generator_forward.9
= control target key start
LH: loop header
LB: loop body
LE: loop exit
PB: predicated region body
PF: predicated region fallthrough
CT: control target
= control target key end

     0   :  { %v227_v28 = vlaneseq  ;;  %v1597_v36 = vmov 1966171168   ;;  %s1948_s0 = inlined_call_operand.vmem [shape: bf16[2,1568], index: 0, kind: input, shape index: {}]   ;;  %s1949_s1 = inlined_call_operand.vmem [shape: bf16[1568,4], index: 1, kind: input, shape index: {}]   ;;  %s1950_s2 = inlined_call_operand.vmem [shape: f32[1,4], index: 2, kind: input, shape index: {}]   ;;  %s1951_s3 = inlined_call_operand.hbm [shape: f32[2,4], index: 3, kind: output, shape index: {}]  }
   0x1   :  { %v1471_v0 = vld [vmem:[%s1949_s1 + $0x78] sm:$0xff]   ;;  %v1475_v4 = vld [vmem:[%s1949_s1 + $0x70] sm:$0xff]   ;;  %v1479_v8 = vld [vmem:[%s1949_s1 + $0x68] sm:$0xff]   ;;  %v225_v37 = vunpack.c.l.s4 %v1597_v36 }
   0x2   :  { %v1472_v1 = vld [vmem:[%s1949_s1 + $0xf8] sm:$0xff]   ;;  %1324 = vmatprep.subr.bf16.mxu0 %v1471_v0  ;;  %v1476_v5 = vld [vmem:[%s1949_s1 + $0xf0] sm:$0xff]   ;;  %v1480_v9 = vld [vmem:[%s1949_s1 + $0xe8] sm:$0xff]   ;;  %v228_v33 = vshrl.u32 %v227_v28, 7 }
   0x3   :  { %v1473_v2 = vld [vmem:[%s1949_s1 + $0x38] sm:$0xff]   ;;  %1346 = vmatprep.subr.bf16.mxu1 %v1472_v1  ;;  %v1477_v6 = vld [vmem:[%s1949_s1 + $0x30] sm:$0xff]   ;;  %v1481_v10 = vld [vmem:[%s1949_s1 + $0x28] sm:$0xff]   ;;  %v226_v40 = vunpack.c.0.s8 %v225_v37 }
   0x4   :  { %v1474_v3 = vld [vmem:[%s1949_s1 + $0xb8] sm:$0xff]   ;;  %1325 = vmatpush3.bf16.msra.mxu0 %v1473_v2  ;;  %v1478_v7 = vld [vmem:[%s1949_s1 + $0xb0] sm:$0xff]   ;;  %v1482_v11 = vld [vmem:[%s1949_s1 + $0xa8] sm:$0xff]  }
   0x5   :  { %1347 = vmatpush3.bf16.msra.mxu1 %v1474_v3  ;;  %1326 = vmatprep.subr.bf16.mxu0 %v1475_v4  ;;  %v1483_v12 = vld [vmem:[%s1949_s1 + $0x60] sm:$0xff]   ;;  %v1487_v16 = vld [vmem:[%s1949_s1 + $0x58] sm:$0xff]   ;;  %v1491_v20 = vld [vmem:[%s1949_s1 + $0x50] sm:$0xff]   ;;  %v1726_v41 = vsub.s32 %v226_v40, %v228_v33 }
   0x6   :  { %1348 = vmatprep.subr.bf16.mxu1 %v1476_v5  ;;  %v1484_v13 = vld [vmem:[%s1949_s1 + $0xe0] sm:$0xff]   ;;  %v1488_v17 = vld [vmem:[%s1949_s1 + $0xd8] sm:$0xff]   ;;  %v1492_v21 = vld [vmem:[%s1949_s1 + $0xd0] sm:$0xff]  }
   0x7   :  { %v1485_v14 = vld [vmem:[%s1949_s1 + $0x20] sm:$0xff]   ;;  %v1489_v18 = vld [vmem:[%s1949_s1 + $0x18] sm:$0xff]   ;;  %v1493_v22 = vld [vmem:[%s1949_s1 + $0x10] sm:$0xff]  }
   0x8   :  { %1327 = vmatpush3.bf16.msra.mxu0 %v1477_v6  ;;  %v1486_v15 = vld [vmem:[%s1949_s1 + $0xa0] sm:$0xff]   ;;  %v1490_v19 = vld [vmem:[%s1949_s1 + $0x98] sm:$0xff]   ;;  %v1494_v23 = vld [vmem:[%s1949_s1 + $0x90] sm:$0xff]  }
   0x9   :  { %1349 = vmatpush3.bf16.msra.mxu1 %v1478_v7  ;;  %1328 = vmatprep.subr.bf16.mxu0 %v1479_v8  ;;  %v1495_v24 = vld [vmem:[%s1949_s1 + $0x48] sm:$0xff]   ;;  %v1499_v29 = vld [vmem:[%s1949_s1 + $0x40] sm:$0xff]   ;;  %v1504_v35 = vld [vmem:[%s1949_s1 + $0x178] sm:$0xff]  }
   0xa   :  { %1350 = vmatprep.subr.bf16.mxu1 %v1480_v9  ;;  %v1496_v25 = vld [vmem:[%s1949_s1 + $0xc8] sm:$0xff]   ;;  %v1500_v30 = vld [vmem:[%s1949_s1 + $0xc0] sm:$0xff]   ;;  %v1505_v38 = vld [vmem:[%s1949_s1 + $0x1f8] sm:$0xff]  }
   0xb   :  { %v1497_v26 = vld [vmem:[%s1949_s1 + $0x8] sm:$0xff]   ;;  %v1501_v31 = vld [vmem:[%s1949_s1] sm:$0xff]   ;;  %v1506_v48 = vld [vmem:[%s1949_s1 + $0x138] sm:$0xff]  }
   0xc   :  { %1329 = vmatpush3.bf16.msra.mxu0 %v1481_v10  ;;  %v1498_v27 = vld [vmem:[%s1949_s1 + $0x88] sm:$0xff]   ;;  %v1502_v32 = vld [vmem:[%s1949_s1 + $0x80] sm:$0xff]   ;;  %v1508_v51 = vld [vmem:[%s1949_s1 + $0x170] sm:$0xff]  }
   0xd   :  { %1351 = vmatpush3.bf16.msra.mxu1 %v1482_v11  ;;  %1330 = vmatprep.subr.bf16.mxu0 %v1483_v12  ;;  %v16_v34 = vld [vmem:[%s1948_s0] sm:$0xff]  ;;  %v1507_v53 = vld [vmem:[%s1949_s1 + $0x1b8] sm:$0xff]   ;;  %v1509_v54 = vld [vmem:[%s1949_s1 + $0x1f0] sm:$0xff]  }
   0xe   :  { %1352 = vmatprep.subr.bf16.mxu1 %v1484_v13  ;;  %v223_v39 = vcombine.high %v16_v34, %v16_v34  ;;  %v230_v42 = vrot.slane %v16_v34, %v1726_v41  ;;  %v1510_v56 = vld [vmem:[%s1949_s1 + $0x130] sm:$0xff]   ;;  %v1512_v57 = vld [vmem:[%s1949_s1 + $0x168] sm:$0xff]   ;;  %v1516_v61 = vld [vmem:[%s1949_s1 + $0x160] sm:$0xff]  }
   0xf   :  { %v1511_v58 = vld [vmem:[%s1949_s1 + $0x1b0] sm:$0xff]   ;;  %v1513_v59 = vld [vmem:[%s1949_s1 + $0x1e8] sm:$0xff]   ;;  %v1517_v63 = vld [vmem:[%s1949_s1 + $0x1e0] sm:$0xff]  }
  0x10   :  { %1331 = vmatpush3.bf16.msra.mxu0 %v1485_v14  ;;  %v1730_v43 = vrot.slane %v223_v39, %v1726_v41  ;;  %v238_v44 = vcombine.high %v230_v42, %v230_v42  ;;  %v246_v45 = vrot.slane %v230_v42, %v1726_v41  ;;  %v1514_v60 = vld [vmem:[%s1949_s1 + $0x128] sm:$0xff]   ;;  %v1518_v0 = vld [vmem:[%s1949_s1 + $0x120] sm:$0xff]   ;;  %v1520_v1 = vld [vmem:[%s1949_s1 + $0x158] sm:$0xff]  }
  0x11   :  { %1353 = vmatpush3.bf16.msra.mxu1 %v1486_v15  ;;  %1332 = vmatprep.subr.bf16.mxu0 %v1487_v16  ;;  %v1515_v62 = vld [vmem:[%s1949_s1 + $0x1a8] sm:$0xff]   ;;  %v1519_v2 = vld [vmem:[%s1949_s1 + $0x1a0] sm:$0xff]   ;;  %v1521_v3 = vld [vmem:[%s1949_s1 + $0x1d8] sm:$0xff]  }
  0x12   :  { %1354 = vmatprep.subr.bf16.mxu1 %v1488_v17  ;;  %v239_v46 = vcombine.high %v1730_v43, %v1730_v43  ;;  %v260_v47 = vrot.slane %v238_v44, %v1726_v41  ;;  %v268_v50 = vcombine.high %v246_v45, %v246_v45  ;;  %v1522_v4 = vld [vmem:[%s1949_s1 + $0x118] sm:$0xff]   ;;  %v1524_v5 = vld [vmem:[%s1949_s1 + $0x150] sm:$0xff]   ;;  %v1528_v9 = vld [vmem:[%s1949_s1 + $0x148] sm:$0xff]   ;;  %v253_v17 = vrot.slane %v1730_v43, %v1726_v41 }
  0x13   :  { %v1523_v6 = vld [vmem:[%s1949_s1 + $0x198] sm:$0xff]   ;;  %v1525_v7 = vld [vmem:[%s1949_s1 + $0x1d0] sm:$0xff]   ;;  %v1529_v11 = vld [vmem:[%s1949_s1 + $0x1c8] sm:$0xff]  }
  0x14   :  { %1333 = vmatpush3.bf16.msra.mxu0 %v1489_v18  ;;  %v267_v49 = vrot.slane %v239_v46, %v1726_v41  ;;  %947 = vmatprep.mubr.bf16.mxu0 %v260_v47  ;;  %v270_v52 = vcombine.high %v260_v47, %v260_v47  ;;  %v1526_v8 = vld [vmem:[%s1949_s1 + $0x110] sm:$0xff]   ;;  %v1530_v12 = vld [vmem:[%s1949_s1 + $0x108] sm:$0xff]   ;;  %v1532_v13 = vld [vmem:[%s1949_s1 + $0x140] sm:$0xff]  }
  0x15   :  { %1355 = vmatpush3.bf16.msra.mxu1 %v1490_v19  ;;  %1334 = vmatprep.subr.bf16.mxu0 %v1491_v20  ;;  %v1527_v10 = vld [vmem:[%s1949_s1 + $0x190] sm:$0xff]   ;;  %v1531_v14 = vld [vmem:[%s1949_s1 + $0x188] sm:$0xff]   ;;  %v1533_v15 = vld [vmem:[%s1949_s1 + $0x1c0] sm:$0xff]  }
  0x16   :  { %1356 = vmatprep.subr.bf16.mxu1 %v1492_v21  ;;  %v271_v55 = vcombine.high %v267_v49, %v267_v49  ;;  %987 = vmatprep.mubr.bf16.mxu1 %v270_v52  ;;  %v1534_v16 = vld [vmem:[%s1949_s1 + $0x100] sm:$0xff]   ;;  %v1536_v18 = vld [vmem:[%s1949_s1 + $0x278] sm:$0xff]   ;;  %v1543_v28 = vld [vmem:[%s1949_s1 + $0x2b0] sm:$0xff]  }
  0x17   :  { %v1535_v19 = vld [vmem:[%s1949_s1 + $0x180] sm:$0xff]   ;;  %v1537_v20 = vld [vmem:[%s1949_s1 + $0x2f8] sm:$0xff]   ;;  %v1556_v39 = vld [vmem:[%s1949_s1 + $0x250] sm:$0xff]  }
  0x18   :  { %1335 = vmatpush3.bf16.msra.mxu0 %v1493_v22  ;;  %v1538_v21 = vld [vmem:[%s1949_s1 + $0x238] sm:$0xff]   ;;  %v269_v22 = vcombine.high %v253_v17, %v253_v17  ;;  %v1549_v33 = vld [vmem:[%s1949_s1 + $0x2e0] sm:$0xff]   ;;  %v1557_v42 = vld [vmem:[%s1949_s1 + $0x2d0] sm:$0xff]  }
  0x19   :  { %1357 = vmatpush3.bf16.msra.mxu1 %v1494_v23  ;;  %1336 = vmatprep.subr.bf16.mxu0 %v1495_v24  ;;  %v1540_v23 = vld [vmem:[%s1949_s1 + $0x270] sm:$0xff]   ;;  %v1539_v24 = vld [vmem:[%s1949_s1 + $0x2b8] sm:$0xff]   ;;  %v1550_v34 = vld [vmem:[%s1949_s1 + $0x220] sm:$0xff]  }
  0x1a   :  { %1358 = vmatprep.subr.bf16.mxu1 %v1496_v25  ;;  %v1541_v25 = vld [vmem:[%s1949_s1 + $0x2f0] sm:$0xff]   ;;  %v1551_v36 = vld [vmem:[%s1949_s1 + $0x2a0] sm:$0xff]   ;;  %v1553_v37 = vld [vmem:[%s1949_s1 + $0x2d8] sm:$0xff]  }
  0x1b   :  { %v1555_v40 = vld [vmem:[%s1949_s1 + $0x298] sm:$0xff]   ;;  %v1558_v43 = vld [vmem:[%s1949_s1 + $0x210] sm:$0xff]   ;;  %v1560_v44 = vld [vmem:[%s1949_s1 + $0x248] sm:$0xff]  }
  0x1c   :  { %1337 = vmatpush3.bf16.msra.mxu0 %v1497_v26  ;;  %v1542_v26 = vld [vmem:[%s1949_s1 + $0x230] sm:$0xff]  }
  0x1d   :  { %1359 = vmatpush3.bf16.msra.mxu1 %v1498_v27  ;;  %1338 = vmatprep.subr.bf16.mxu0 %v1499_v29  ;;  %v1544_v27 = vld [vmem:[%s1949_s1 + $0x268] sm:$0xff]   ;;  %v1559_v46 = vld [vmem:[%s1949_s1 + $0x290] sm:$0xff]  }
  0x1e   :  { %1360 = vmatprep.subr.bf16.mxu1 %v1500_v30  ;;  %v1545_v29 = vld [vmem:[%s1949_s1 + $0x2e8] sm:$0xff]  }
  0x1f   :  { %v1546_v30 = vld [vmem:[%s1949_s1 + $0x228] sm:$0xff]  }
  0x20   :  { %1339 = vmatpush3.bf16.msra.mxu0 %v1501_v31  ;;  %v1548_v31 = vld [vmem:[%s1949_s1 + $0x260] sm:$0xff]  }
  0x21   :  { %1361 = vmatpush3.bf16.msra.mxu1 %v1502_v32  ;;  %1368 = vmatprep.subr.bf16.mxu0 %v1504_v35  ;;  %v1547_v32 = vld [vmem:[%s1949_s1 + $0x2a8] sm:$0xff]   ;;  %v1552_v35 = vld [vmem:[%s1949_s1 + $0x258] sm:$0xff]  }
  0x22   :  { %1390 = vmatprep.subr.bf16.mxu1 %v1505_v38  ;;  %v1554_v38 = vld [vmem:[%s1949_s1 + $0x218] sm:$0xff]  }
  0x23   :  { %948 = vmatmul.mubr.bf16.vlgmr.msra.gmra.mxu0 %v246_v45  ;;  %v17_v45 = vld [vmem:[%s1948_s0 + $0x8] sm:$0x1f] }
  0x24   :  { %1369 = vmatpush3.bf16.msra.mxu0 %v1506_v48  ;;  %988 = vmatmul.mubr.bf16.vlgmr.msra.gmra.mxu1 %v268_v50  ;;  %v279_v47 = vrot.slane %v17_v45, %v1726_v41  ;;  %v1561_v48 = vld [vmem:[%s1949_s1 + $0x2c8] sm:$0xff]  }
  0x25   :  { %1370 = vmatprep.subr.bf16.mxu0 %v1508_v51  ;;  %1391 = vmatpush3.bf16.msra.mxu1 %v1507_v53 }
  0x26   :  { %1027 = vmatprep.mubr.bf16.mxu0 %v267_v49  ;;  %1392 = vmatprep.subr.bf16.mxu1 %v1509_v54 }
  0x27   :  { %1067 = vmatprep.mubr.bf16.mxu1 %v271_v55 }
  0x28   :  { %1371 = vmatpush3.bf16.msra.mxu0 %v1510_v56 }
  0x29   :  { %1372 = vmatprep.subr.bf16.mxu0 %v1512_v57  ;;  %1393 = vmatpush3.bf16.msra.mxu1 %v1511_v58 }
  0x2a   :  { %1394 = vmatprep.subr.bf16.mxu1 %v1513_v59 }
  0x2c   :  { %1373 = vmatpush3.bf16.msra.mxu0 %v1514_v60 }
  0x2d   :  { %1374 = vmatprep.subr.bf16.mxu0 %v1516_v61  ;;  %1395 = vmatpush3.bf16.msra.mxu1 %v1515_v62 }
  0x2e   :  { %1396 = vmatprep.subr.bf16.mxu1 %v1517_v63 }
  0x30   :  { %1375 = vmatpush3.bf16.msra.mxu0 %v1518_v0 }
  0x31   :  { %1376 = vmatprep.subr.bf16.mxu0 %v1520_v1  ;;  %1397 = vmatpush3.bf16.msra.mxu1 %v1519_v2 }
  0x32   :  { %1398 = vmatprep.subr.bf16.mxu1 %v1521_v3 }
  0x34   :  { %1377 = vmatpush3.bf16.msra.mxu0 %v1522_v4 }
  0x35   :  { %1378 = vmatprep.subr.bf16.mxu0 %v1524_v5  ;;  %1399 = vmatpush3.bf16.msra.mxu1 %v1523_v6 }
  0x36   :  { %1400 = vmatprep.subr.bf16.mxu1 %v1525_v7 }
  0x38   :  { %1379 = vmatpush3.bf16.msra.mxu0 %v1526_v8 }
  0x39   :  { %1380 = vmatprep.subr.bf16.mxu0 %v1528_v9  ;;  %1401 = vmatpush3.bf16.msra.mxu1 %v1527_v10 }
  0x3a   :  { %1402 = vmatprep.subr.bf16.mxu1 %v1529_v11 }
  0x3c   :  { %1381 = vmatpush3.bf16.msra.mxu0 %v1530_v12 }
  0x3d   :  { %1382 = vmatprep.subr.bf16.mxu0 %v1532_v13  ;;  %1403 = vmatpush3.bf16.msra.mxu1 %v1531_v14 }
  0x3e   :  { %1404 = vmatprep.subr.bf16.mxu1 %v1533_v15 }
  0x40   :  { %1383 = vmatpush3.bf16.msra.mxu0 %v1534_v16 }
  0x41   :  { %1412 = vmatprep.subr.bf16.mxu0 %v1536_v18  ;;  %1405 = vmatpush3.bf16.msra.mxu1 %v1535_v19 }
  0x42   :  { %1434 = vmatprep.subr.bf16.mxu1 %v1537_v20 }
  0x43   :  { %1028 = vmatmul.mubr.bf16.vlgmr.msra.gmra.mxu0 %v253_v17 }
  0x44   :  { %1413 = vmatpush3.bf16.msra.mxu0 %v1538_v21  ;;  %1068 = vmatmul.mubr.bf16.vlgmr.msra.gmra.mxu1 %v269_v22 }
  0x45   :  { %1414 = vmatprep.subr.bf16.mxu0 %v1540_v23  ;;  %1435 = vmatpush3.bf16.msra.mxu1 %v1539_v24 }
  0x46   :  { %1436 = vmatprep.subr.bf16.mxu1 %v1541_v25 }
  0x48   :  { %1415 = vmatpush3.bf16.msra.mxu0 %v1542_v26 }
  0x49   :  { %1416 = vmatprep.subr.bf16.mxu0 %v1544_v27  ;;  %1437 = vmatpush3.bf16.msra.mxu1 %v1543_v28 }
  0x4a   :  { %1438 = vmatprep.subr.bf16.mxu1 %v1545_v29 }
  0x4c   :  { %1417 = vmatpush3.bf16.msra.mxu0 %v1546_v30 }
  0x4d   :  { %1418 = vmatprep.subr.bf16.mxu0 %v1548_v31  ;;  %1439 = vmatpush3.bf16.msra.mxu1 %v1547_v32 }
  0x4e   :  { %1440 = vmatprep.subr.bf16.mxu1 %v1549_v33 }
  0x50   :  { %1419 = vmatpush3.bf16.msra.mxu0 %v1550_v34 }
  0x51   :  { %1420 = vmatprep.subr.bf16.mxu0 %v1552_v35  ;;  %1441 = vmatpush3.bf16.msra.mxu1 %v1551_v36 }
  0x52   :  { %1442 = vmatprep.subr.bf16.mxu1 %v1553_v37 }
  0x54   :  { %1421 = vmatpush3.bf16.msra.mxu0 %v1554_v38 }
  0x55   :  { %1422 = vmatprep.subr.bf16.mxu0 %v1556_v39  ;;  %1443 = vmatpush3.bf16.msra.mxu1 %v1555_v40 }
  0x56   :  { %1444 = vmatprep.subr.bf16.mxu1 %v1557_v42 }
  0x57   :  { %8 = vsyncpa [#allocation3], 0  ;;  %v1562_v49 = vld [vmem:[%s1949_s1 + $0x208] sm:$0xff]   ;;  %v287_v50 = vcombine.high %v279_v47, %v279_v47  ;;  %v1564_v51 = vld [vmem:[%s1949_s1 + $0x240] sm:$0xff]   ;;  %v294_v57 = vrot.slane %v279_v47, %v1726_v41  ;;  %v272_v59 = vcombine.high %v17_v45, %v17_v45  ;;  %v1598_v62 = vmov 0.0  }
  0x58   :  { %1423 = vmatpush3.bf16.msra.mxu0 %v1558_v43  ;;  %v1563_v52 = vld [vmem:[%s1949_s1 + $0x288] sm:$0xff]   ;;  %v1565_v54 = vld [vmem:[%s1949_s1 + $0x2c0] sm:$0xff]   ;;  %vm1599_vm0 = vmmov 0   ;;  %vm911_vm1 = vcmask 261120   ;;  %vm1195_vm2 = vcmask 25600  }
  0x59   :  { %1424 = vmatprep.subr.bf16.mxu0 %v1560_v44  ;;  %1445 = vmatpush3.bf16.msra.mxu1 %v1559_v46  ;;  %v308_v53 = vrot.slane %v287_v50, %v1726_v41  ;;  %v1566_v55 = vld [vmem:[%s1949_s1 + $0x200] sm:$0xff]   ;;  %v1569_v60 = vld [vmem:[%s1949_s1 + $0x308] sm:$0xff]   ;;  %v309_v61 = vcombine.high %v294_v57, %v294_v57  ;;  %v286_v63 = vrot.slane %v272_v59, %v1726_v41 }
  0x5a   :  { %1446 = vmatprep.subr.bf16.mxu1 %v1561_v48  ;;  %v1567_v58 = vld [vmem:[%s1949_s1 + $0x280] sm:$0xff]  }
  0x5b   :  { %1107 = vmatprep.mubr.bf16.mxu0 %v308_v53  ;;  %v310_v56 = vcombine.high %v308_v53, %v308_v53  ;;  %v1570_v0 = vld [vmem:[%s1949_s1 + $0x300] sm:$0xff]   ;;  %v301_v1 = vrot.slane %v286_v63, %v1726_v41 }
  0x5c   :  { %1425 = vmatpush3.bf16.msra.mxu0 %v1562_v49  ;;  %v1224_v18 = vld [vmem:[%s1950_s2] ss:$0 sm:$0xff]  ;;  %s1600_s2 = smov [#allocation2]  }
  0x5d   :  { %1426 = vmatprep.subr.bf16.mxu0 %v1564_v51  ;;  %1447 = vmatpush3.bf16.msra.mxu1 %v1563_v52  ;;  %s1216_s23 = sshll.u32 %s1600_s2, 4  ;;  %s1217_s23 = int_to_ptr.vmem [resolvable:$true] %s1216_s23 }
  0x5e   :  { %1147 = vmatprep.mubr.bf16.mxu1 %v310_v56  ;;  %1448 = vmatprep.subr.bf16.mxu1 %v1565_v54  ;;  %s1575_s24 = scalar_lea.vmem %s1217_s23, 32  ;;  %p1580_p1 = scmp.lt.s32.totalorder %s1217_s23, %s1217_s23 }
  0x5f   :  { %p1576_p0 = scmp.ne.s32.totalorder %s1217_s23, %s1575_s24  ;;  %p1581_p2 = scmp.lt.s32.totalorder %s1575_s24, %s1575_s24 }
  0x60   :  { %1427 = vmatpush3.bf16.msra.mxu0 %v1566_v55 }
  0x61   :  { %1459 = vmatprep.subr.bf16.mxu0 %v1598_v62  ;;  %1449 = vmatpush3.bf16.msra.mxu1 %v1567_v58  ;;  %p1582_p3 = por %p1581_p2, %p1580_p1 }
  0x63   :  { %1108 = vmatmul.mubr.bf16.vlgmr.msra.gmra.mxu0 %v294_v57  ;;  %p1583_p4 = pnand %p1582_p3, %p1576_p0 }
  0x64   :  { %1460 = vmatpush3.bf16.msra.mxu0 %v1569_v60  ;;  %1463 = vmatprep.mubr.msk.bf16.mxu0 %vm1599_vm0, %v1598_v62 }
  0x65   :  { %1148 = vmatmul.mubr.bf16.vlgmr.msra.gmra.mxu1 %v309_v61  ;;  %1461 = vmatprep.subr.bf16.mxu0 %v1598_v62 }
  0x68   :  { %1462 = vmatpush3.bf16.msra.mxu0 %v1570_v0 }
  0x6b   :  { %1464 = vmatmul.mubr.msk.bf16.vlgmr.msra.gmra.mxu0 %vm911_vm1, %v301_v1 }
  0xe3   :  { %v1340_v2 = vpop.f32.mrf.mxu0 }
  0xe4   :  { %v1362_v3 = vpop.f32.mrf.mxu1 }
  0xe5   :  { %v1341_v4 = vpop.f32.mrf.mxu0 }
  0xe6   :  { %v1363_v5 = vpop.f32.mrf.mxu1  ;;  %v1342_v41 = vadd.f32 %v1341_v4, %v1340_v2 }
  0xe7   :  { %v1343_v6 = vpop.f32.mrf.mxu0  ;;  %v1364_v20 = vadd.f32 %v1363_v5, %v1362_v3 }
  0xe8   :  { %v1365_v7 = vpop.f32.mrf.mxu1  ;;  %v950_v19 = vadd.f32 %v1342_v41, %v1224_v18 }
  0xe9   :  { %v1344_v8 = vpop.f32.mrf.mxu0 }
  0xea   :  { %v1366_v9 = vpop.f32.mrf.mxu1  ;;  %v990_v22 = vadd.f32 %v1364_v20, %v950_v19 }
 0x103   :  { %v1384_v10 = vpop.f32.mrf.mxu0 }
 0x104   :  { %v1406_v11 = vpop.f32.mrf.mxu1 }
 0x105   :  { %v1385_v12 = vpop.f32.mrf.mxu0 }
 0x106   :  { %v1407_v13 = vpop.f32.mrf.mxu1  ;;  %v1386_v21 = vadd.f32 %v1385_v12, %v1384_v10 }
 0x107   :  { %v1387_v14 = vpop.f32.mrf.mxu0  ;;  %v1408_v24 = vadd.f32 %v1407_v13, %v1406_v11 }
 0x108   :  { %v1409_v15 = vpop.f32.mrf.mxu1  ;;  %v1030_v23 = vadd.f32 %v1386_v21, %v990_v22 }
 0x109   :  { %v1388_v16 = vpop.f32.mrf.mxu0 }
 0x10a   :  { %v1410_v17 = vpop.f32.mrf.mxu1  ;;  %v1070_v28 = vadd.f32 %v1408_v24, %v1030_v23 }
 0x123   :  { %v1428_v25 = vpop.f32.mrf.mxu0 }
 0x125   :  { %v1450_v26 = vpop.f32.mrf.mxu1  ;;  %v1429_v27 = vpop.f32.mrf.mxu0 }
 0x126   :  { %v1430_v29 = vadd.f32 %v1429_v27, %v1428_v25 }
 0x127   :  { %v1451_v30 = vpop.f32.mrf.mxu1  ;;  %v1431_v31 = vpop.f32.mrf.mxu0 }
 0x128   :  { %v1110_v32 = vadd.f32 %v1430_v29, %v1070_v28  ;;  %v1452_v33 = vadd.f32 %v1451_v30, %v1450_v26 }
 0x129   :  { %v1453_v34 = vpop.f32.mrf.mxu1  ;;  %v1432_v35 = vpop.f32.mrf.mxu0 }
 0x12a   :  { %v1150_v36 = vadd.f32 %v1452_v33, %v1110_v32 }
 0x12b   :  { %v1454_v37 = vpop.f32.mrf.mxu1  ;;  %v1189_v38 = vpop.f32.mrf.mxu0 }
 0x12c   :  { %v1190_v39 = vadd.f32 %v1189_v38, %v1150_v36 }
 0x12d   :  { %v1465_v40 = vpop.f32.mrf.mxu0 }
 0x12e   :  { %v1196_v42 = vsel %vm1195_vm2, %v1190_v39, -inf }
 0x12f   :  { %v1192_v43 = vpop.f32.mrf.mxu0  ;;  %1197 = vmax.xlane.f32.xlu0 %v1196_v42 }
 0x131   :  { %v1466_v44 = vpop.f32.mrf.mxu0 }
 0x1b8   :  { %v1198_v45 = vpop.xlane.xlu0 %1197 }
 0x1b9   :  { %v1199_v46 = vsub.f32 %v1190_v39, %v1198_v45 }
 0x1bb   :  { %v1200_v47 = vmul.f32 1.442695, %v1199_v46 }
 0x1bd   :  { %1571 = vpow2.f32 %v1200_v47 }
 0x1ca   :  { %v1572_v48 = vpop.eup %1571 }
 0x1cb   :  { %v1202_v49 = vsel %vm1195_vm2, %v1572_v48, 0.0 }
 0x1cc   :  { %1203 = vadd.xlane.f32.xlu0 %v1202_v49 }
 0x255   :  { %v1204_v50 = vpop.xlane.xlu0 %1203 }
 0x256   :  { %1573 = vrcp.f32 %v1204_v50 }
 0x263   :  { %v1574_v51 = vpop.eup %1573 }
 0x264   :  { %v1206_v52 = vmul.f32 %v1574_v51, %v1572_v48 }
 0x266   :  { %v1207_v53 = vmax.f32 %v1206_v52, 0.2 }
 0x268   :  { %v1208_v54 = vmin.f32 %v1207_v53, 0.26 }
 0x26a   :  { %1209 = vst.msk [vmem:[#allocation2] sm:$0x3] %vm1195_vm2, %v1208_v54 }
 0x26b   :  { %1586 = shalt.err (!%p1583_p4)
}
 0x26c   :  { %1219 = dma.vmem_to_hbm [thread:$0]  %s1217_s23, 32, %s1951_s3, [#allocation3]  }
 0x26d   :  { %1595 = dma.done.wait [#allocation3], 32  }
 0x26e   :  { %1596 = vsyncadd [#allocation3], 4294967264 }
 0x26f   :  { %1223 = vsyncpa [#allocation3], 1 }

</bundles_post_ra>
